<compile_context>
chip_gen: v6e
topology: v6e:2x2x1
jax: 0.10.0
libtpu: 0.0.40
codegen_flags: <defaults>
</compile_context>

<pallas_src>
import jax
import jax.numpy as jnp
from jax import lax
from jax.experimental import pallas as pl
from jax.experimental.pallas import tpu as pltpu


# ----------------------------------------------------------------------------
# In-kernel helpers
# ----------------------------------------------------------------------------
def _tap_conv(src_ref, w_ref, hw, cin, cout):
    """3x3 conv as 9 shifted matmul accumulations.

    src_ref: padded activation ref (hw+2, hw+2, cin) (zero border).
    w_ref:   tap-major weights (9, cin, cout); tap t = dh*3 + dw.
    Returns (hw*hw, cout) f32 (bias not added).
    """
    m = hw * hw
    acc = jnp.zeros((m, cout), jnp.float32)
    for t in range(9):
        dh, dw = divmod(t, 3)
        a = src_ref[dh:dh + hw, dw:dw + hw, :].reshape(m, cin)
        acc = acc + jnp.dot(a, w_ref[t], preferred_element_type=jnp.float32)
    return acc


# ----------------------------------------------------------------------------
# Stage 1: Conv3x3 + ReLU, 2x ResBlock, ConvT(128->64) + ReLU   (8x8 grid)
# ----------------------------------------------------------------------------
def _stage1_kernel(x0_ref,
                   wc1, bc1,
                   wr1a, br1a, wr1b, br1b,
                   wr2a, br2a, wr2b, br2b,
                   wt1, bt1,
                   o_ref, xp_s):
    # Zero the padded scratch once per grid step; only its 8x8 center is
    # rewritten below, so the pad=1 border stays zero for every 3x3 layer.
    xp_s[...] = jnp.zeros_like(xp_s)

    # Conv2d(32, 128, 3, padding=1) + ReLU
    x = _tap_conv(x0_ref, wc1, 8, 32, 128)
    x = jnp.maximum(x + bc1[...], 0.0)                       # (64, 128)

    # 2 x ResBlock(128, 32): 3x3 -> ReLU -> 1x1 -> +residual -> ReLU
    for wa, ba, wb, bb in ((wr1a, br1a, wr1b, br1b),
                           (wr2a, br2a, wr2b, br2b)):
        xp_s[1:9, 1:9, :] = x.reshape(8, 8, 128)
        h = _tap_conv(xp_s, wa, 8, 128, 32)
        h = jnp.maximum(h + ba[...], 0.0)                    # (64, 32)
        x = jnp.dot(h, wb[...], preferred_element_type=jnp.float32) + bb[...] + x
        x = jnp.maximum(x, 0.0)                              # (64, 128)

    # ConvTranspose2d(128, 64, 4, 2, 1) + ReLU, phase-decomposed: one
    # lane-dense (64, 256) result with column order (rh, rw, co).
    xp_s[1:9, 1:9, :] = x.reshape(8, 8, 128)
    o = _tap_conv(xp_s, wt1, 8, 128, 256)
    o_ref[...] = jnp.maximum(o + bt1[...], 0.0)              # (64, 256)


def _stage1_call(x0p, W):
    B = x0p.shape[0]

    def wspec(shape):
        return pl.BlockSpec(shape, lambda b, _s=shape: (0,) * len(_s))

    return pl.pallas_call(
        _stage1_kernel,
        out_shape=jax.ShapeDtypeStruct((B, 64, 256), jnp.float32),
        grid=(B,),
        in_specs=[
            pl.BlockSpec((None, 10, 10, 32), lambda b: (b, 0, 0, 0)),
            wspec((9, 32, 128)), wspec((1, 128)),
            wspec((9, 128, 32)), wspec((1, 32)),
            wspec((32, 128)), wspec((1, 128)),
            wspec((9, 128, 32)), wspec((1, 32)),
            wspec((32, 128)), wspec((1, 128)),
            wspec((9, 128, 256)), wspec((1, 256)),
        ],
        out_specs=pl.BlockSpec((None, 64, 256), lambda b: (b, 0, 0)),
        scratch_shapes=[pltpu.VMEM((10, 10, 128), jnp.float32)],
        compiler_params=pltpu.CompilerParams(
            dimension_semantics=("parallel",)),
    )(x0p,
      W["c1_w"], W["c1_b"],
      W["r1a_w"], W["r1a_b"], W["r1b_w"], W["r1b_b"],
      W["r2a_w"], W["r2a_b"], W["r2b_w"], W["r2b_b"],
      W["t1_w"], W["t1_b"])


# ----------------------------------------------------------------------------
# Stage 2: ConvT(64->3), phase-decomposed, lane-dense padded output (16x16 grid)
# ----------------------------------------------------------------------------
def _stage2_kernel(x2_ref, wt2, bt2, o_ref):
    o = _tap_conv(x2_ref, wt2, 16, 64, 128)                  # (256, 128)
    o_ref[...] = o + bt2[...]


def _stage2_call(x2p, W):
    B = x2p.shape[0]
    return pl.pallas_call(
        _stage2_kernel,
        out_shape=jax.ShapeDtypeStruct((B, 256, 128), jnp.float32),
        grid=(B,),
        in_specs=[
            pl.BlockSpec((None, 18, 18, 64), lambda b: (b, 0, 0, 0)),
            pl.BlockSpec((9, 64, 128), lambda b: (0, 0, 0)),
            pl.BlockSpec((1, 128), lambda b: (0, 0)),
        ],
        out_specs=pl.BlockSpec((None, 256, 128), lambda b: (b, 0, 0)),
        compiler_params=pltpu.CompilerParams(
            dimension_semantics=("parallel",)),
    )(x2p, W["t2_w"], W["t2_b"])


# ----------------------------------------------------------------------------
# One-time weight packing (outside the jitted forward)
# ----------------------------------------------------------------------------
def _pack_conv(w, b):
    """(Cout,Cin,kH,kW) -> ((kH*kW, Cin, Cout), (1, Cout)); tap t = kh*3+kw."""
    cout, cin, kh, kw = w.shape
    wm = jnp.transpose(w, (2, 3, 1, 0)).reshape(kh * kw, cin, cout)
    return wm.astype(jnp.float32), b.reshape(1, cout).astype(jnp.float32)


def _pack_conv1x1(w, b):
    """(Cout,Cin,1,1) -> ((Cin, Cout), (1, Cout))."""
    cout, cin = w.shape[0], w.shape[1]
    return (w.reshape(cout, cin).T.astype(jnp.float32),
            b.reshape(1, cout).astype(jnp.float32))


def _pack_convT(w, b):
    """Phase-decompose ConvTranspose2d(k=4, s=2, p=1) into 9 tap matmuls.

    out[b, 2p+rh, 2q+rw, co] =
        sum_{dh,dw,ci} xpad[b, p+dh, q+dw, ci] * w[ci, co, 3-2dh+rh, 3-2dw+rw]
    (kernel index kept only when in [0,4)).  Packed (9, Cin, 4*Cout) with
    column order (rh, rw, co), so one lane-dense conv on the ORIGINAL low-res
    input replaces the zero-inserted 4x4 conv.
    """
    cin, cout = w.shape[0], w.shape[1]
    Wt = jnp.zeros((3, 3, cin, 2, 2, cout), jnp.float32)
    for rh in range(2):
        for dh in range(3):
            kh = 3 - 2 * dh + rh
            if not 0 <= kh <= 3:
                continue
            for rw in range(2):
                for dw in range(3):
                    kw = 3 - 2 * dw + rw
                    if not 0 <= kw <= 3:
                        continue
                    Wt = Wt.at[dh, dw, :, rh, rw, :].set(w[:, :, kh, kw])
    wm = Wt.reshape(9, cin, 4 * cout)
    bm = jnp.tile(b.astype(jnp.float32), 4).reshape(1, 4 * cout)
    return wm, bm


def pack_params(p):
    pp = {
        "lin_w": p["lin_w"].astype(jnp.float32),
        "lin_b": p["lin_b"].reshape(1, -1).astype(jnp.float32),
    }
    pp["c1_w"], pp["c1_b"] = _pack_conv(p["c1_w"], p["c1_b"])
    for r in ("r1", "r2"):
        pp[r + "a_w"], pp[r + "a_b"] = _pack_conv(p[r + "a_w"], p[r + "a_b"])
        pp[r + "b_w"], pp[r + "b_b"] = _pack_conv1x1(p[r + "b_w"], p[r + "b_b"])
    pp["t1_w"], pp["t1_b"] = _pack_convT(p["t1_w"], p["t1_b"])
    # t2: pad N from 12 -> 128 so the kernel output is lane-dense (columns
    # 12..127 are zero and are sliced away in the epilogue).
    wt2, bt2 = _pack_convT(p["t2_w"], p["t2_b"])             # (9,64,12), (1,12)
    pp["t2_w"] = jnp.pad(wt2, ((0, 0), (0, 0), (0, 116)))
    pp["t2_b"] = jnp.pad(bt2, ((0, 0), (0, 116)))
    return pp


# ----------------------------------------------------------------------------
# Full Decoder forward (2 Pallas kernels + tiny XLA layout glue)
# ----------------------------------------------------------------------------
def decoder_forward(z, W):
    B = z.shape[0]
    # Linear(z_dim, 32*8*8) in plain XLA (65 KFLOP; a dedicated kernel would be
    # pure dispatch overhead), then NCHW->NHWC + pad=1 for the first 3x3 conv.
    x = z.astype(jnp.float32) @ W["lin_w"] + W["lin_b"]              # (B, 2048)
    x = x.reshape(B, 32, 8, 8).transpose(0, 2, 3, 1)                 # (B,8,8,32)
    x0p = jnp.pad(x, ((0, 0), (1, 1), (1, 1), (0, 0)))               # (B,10,10,32)

    o1 = _stage1_call(x0p, W)                                        # (B,64,256)

    # Pixel-shuffle the (rh, rw, co) phases to the 16x16 grid + pad=1 for t2.
    x2 = o1.reshape(B, 8, 8, 2, 2, 64).transpose(0, 1, 3, 2, 4, 5)
    x2 = x2.reshape(B, 16, 16, 64)
    x2p = jnp.pad(x2, ((0, 0), (1, 1), (1, 1), (0, 0)))              # (B,18,18,64)

    o2 = _stage2_call(x2p, W)                                        # (B,256,128)

    # Drop the zero-padded output channels, pixel-shuffle to NCHW (B,3,32,32).
    y = o2[:, :, :12].reshape(B, 16, 16, 2, 2, 3)
    return y.transpose(0, 5, 1, 3, 2, 4).reshape(B, 3, 32, 32)


decoder_forward_jit = jax.jit(decoder_forward)


# ----------------------------------------------------------------------------
# Pure-JAX (XLA) reference for correctness check
# ----------------------------------------------------------------------------
def reference_forward(z, p):
    def conv(x, w, b, pad):
        y = lax.conv_general_dilated(x, w, (1, 1), ((pad, pad), (pad, pad)))
        return y + b[None, :, None, None]

    def convT(x, w, b):
        wc = jnp.transpose(w[:, :, ::-1, ::-1], (1, 0, 2, 3))
        y = lax.conv_general_dilated(x, wc, (1, 1), ((2, 2), (2, 2)),
                                     lhs_dilation=(2, 2))
        return y + b[None, :, None, None]

    x = z @ p["lin_w"] + p["lin_b"]
    x = x.reshape(-1, 32, 8, 8)
    x = jax.nn.relu(conv(x, p["c1_w"], p["c1_b"], 1))
    for a, bk in (("r1a", "r1b"), ("r2a", "r2b")):
        h = jax.nn.relu(conv(x, p[a + "_w"], p[a + "_b"], 1))
        h = conv(h, p[bk + "_w"], p[bk + "_b"], 0)
        x = jax.nn.relu(h + x)
    x = jax.nn.relu(convT(x, p["t1_w"], p["t1_b"]))
    return convT(x, p["t2_w"], p["t2_b"])


# ----------------------------------------------------------------------------
# Deterministic parameter init (matching nn.Module shapes) + driver
# ----------------------------------------------------------------------------
def init_params(key, z_dim):
    ks = jax.random.split(key, 16)
    n = jax.random.normal
    f32 = jnp.float32
    return {
        # Linear(z_dim, 32*8*8); stored already-transposed: (z_dim, 2048)
        "lin_w": 0.05 * n(ks[0], (z_dim, 32 * 8 * 8), f32),
        "lin_b": 0.01 * n(ks[1], (32 * 8 * 8,), f32),
        # Conv2d(32, 128, 3, padding=1)
        "c1_w": 0.05 * n(ks[2], (128, 32, 3, 3), f32),
        "c1_b": 0.01 * n(ks[3], (128,), f32),
        # ResBlock(128, 32) x2: Conv2d(128,32,3,p=1) then Conv2d(32,128,1)
        "r1a_w": 0.05 * n(ks[4], (32, 128, 3, 3), f32),
        "r1a_b": 0.01 * n(ks[5], (32,), f32),
        "r1b_w": 0.05 * n(ks[6], (128, 32, 1, 1), f32),
        "r1b_b": 0.01 * n(ks[7], (128,), f32),
        "r2a_w": 0.05 * n(ks[8], (32, 128, 3, 3), f32),
        "r2a_b": 0.01 * n(ks[9], (32,), f32),
        "r2b_w": 0.05 * n(ks[10], (128, 32, 1, 1), f32),
        "r2b_b": 0.01 * n(ks[11], (128,), f32),
        # ConvTranspose2d(128, 64, 4, stride=2, padding=1): weight (Cin,Cout,4,4)
        "t1_w": 0.05 * n(ks[12], (128, 64, 4, 4), f32),
        "t1_b": 0.01 * n(ks[13], (64,), f32),
        # ConvTranspose2d(64, 3, 4, stride=2, padding=1)
        "t2_w": 0.05 * n(ks[14], (64, 3, 4, 4), f32),
        "t2_b": 0.01 * n(ks[15], (3,), f32),
    }


if __name__ == "__main__":
    B, z_dim = 2, 16
    key = jax.random.PRNGKey(0)
    kz, kp = jax.random.split(key)
    z = jax.random.normal(kz, (B, z_dim), jnp.float32)
    params = init_params(kp, z_dim)
    packed = pack_params(params)              # weight layout packing: done once

    out = jax.block_until_ready(decoder_forward_jit(z, packed))
    assert out.shape == (B, 3, 32, 32), out.shape

    ref = jax.block_until_ready(reference_forward(z, params))
    assert jnp.allclose(out, ref, rtol=1e-3, atol=1e-3), (
        float(jnp.max(jnp.abs(out - ref))))

    print("KERNEL_OK")
</pallas_src>

<mosaic_0001>
module attributes {stable_mosaic.version = 11 : i64} {
  func.func @_stage1_kernel(%arg0: i32, %arg1: memref<1x10x10x32xf32, #tpu.memory_space<vmem>>, %arg2: memref<9x32x128xf32, #tpu.memory_space<vmem>>, %arg3: memref<1x128xf32, #tpu.memory_space<vmem>>, %arg4: memref<9x128x32xf32, #tpu.memory_space<vmem>>, %arg5: memref<1x32xf32, #tpu.memory_space<vmem>>, %arg6: memref<32x128xf32, #tpu.memory_space<vmem>>, %arg7: memref<1x128xf32, #tpu.memory_space<vmem>>, %arg8: memref<9x128x32xf32, #tpu.memory_space<vmem>>, %arg9: memref<1x32xf32, #tpu.memory_space<vmem>>, %arg10: memref<32x128xf32, #tpu.memory_space<vmem>>, %arg11: memref<1x128xf32, #tpu.memory_space<vmem>>, %arg12: memref<9x128x256xf32, #tpu.memory_space<vmem>>, %arg13: memref<1x256xf32, #tpu.memory_space<vmem>>, %arg14: memref<1x64x256xf32, #tpu.memory_space<vmem>>, %arg15: memref<10x10x128xf32, #tpu.memory_space<vmem>>) attributes {dimension_semantics = [#tpu.dimension_semantics<parallel>], iteration_bounds = array<i64: 2>, scalar_prefetch = 0 : i64, scratch_operands = 1 : i64, tpu.core_type = #tpu.core_type<tc>, window_params = [{transform_indices = @transform_0, window_bounds = array<i64: 1, 10, 10, 32>}, {pipeline_mode = #tpu.pipeline_mode<synchronous>, transform_indices = @transform_1, window_bounds = array<i64: 9, 32, 128>}, {pipeline_mode = #tpu.pipeline_mode<synchronous>, transform_indices = @transform_2, window_bounds = array<i64: 1, 128>}, {pipeline_mode = #tpu.pipeline_mode<synchronous>, transform_indices = @transform_3, window_bounds = array<i64: 9, 128, 32>}, {pipeline_mode = #tpu.pipeline_mode<synchronous>, transform_indices = @transform_4, window_bounds = array<i64: 1, 32>}, {pipeline_mode = #tpu.pipeline_mode<synchronous>, transform_indices = @transform_5, window_bounds = array<i64: 32, 128>}, {pipeline_mode = #tpu.pipeline_mode<synchronous>, transform_indices = @transform_6, window_bounds = array<i64: 1, 128>}, {pipeline_mode = #tpu.pipeline_mode<synchronous>, transform_indices = @transform_7, window_bounds = array<i64: 9, 128, 32>}, {pipeline_mode = #tpu.pipeline_mode<synchronous>, transform_indices = @transform_8, window_bounds = array<i64: 1, 32>}, {pipeline_mode = #tpu.pipeline_mode<synchronous>, transform_indices = @transform_9, window_bounds = array<i64: 32, 128>}, {pipeline_mode = #tpu.pipeline_mode<synchronous>, transform_indices = @transform_10, window_bounds = array<i64: 1, 128>}, {pipeline_mode = #tpu.pipeline_mode<synchronous>, transform_indices = @transform_11, window_bounds = array<i64: 9, 128, 256>}, {pipeline_mode = #tpu.pipeline_mode<synchronous>, transform_indices = @transform_12, window_bounds = array<i64: 1, 256>}, {transform_indices = @transform_13, window_bounds = array<i64: 1, 64, 256>}]} {
    %cst = arith.constant 0.000000e+00 : f32
    %0 = vector.broadcast %cst : f32 to vector<10x10x128xf32>
    %c0 = arith.constant 0 : index
    %c0_0 = arith.constant 0 : index
    %c0_1 = arith.constant 0 : index
    %1 = vector.load %arg15[%c0, %c0_0, %c0_1] : memref<10x10x128xf32, #tpu.memory_space<vmem>>, vector<10x10x128xf32>
    tpu.vector_store %arg15[%c0, %c0_0, %c0_1], %0 {strides = array<i32>} : memref<10x10x128xf32, #tpu.memory_space<vmem>>, vector<10x10x128xf32>,
    %cst_2 = arith.constant 0.000000e+00 : f32
    %2 = vector.broadcast %cst_2 : f32 to vector<64x128xf32>
    %c0_3 = arith.constant 0 : index
    %c0_4 = arith.constant 0 : index
    %c0_5 = arith.constant 0 : index
    %c0_6 = arith.constant 0 : index
    %3 = vector.load %arg1[%c0_3, %c0_4, %c0_5, %c0_6] : memref<1x10x10x32xf32, #tpu.memory_space<vmem>>, vector<1x8x8x32xf32>
    %4 = vector.shape_cast %3 : vector<1x8x8x32xf32> to vector<8x8x32xf32>
    %5 = vector.shape_cast %4 : vector<8x8x32xf32> to vector<64x32xf32>
    %c0_7 = arith.constant 0 : index
    %c0_8 = arith.constant 0 : index
    %c0_9 = arith.constant 0 : index
    %6 = vector.load %arg2[%c0_7, %c0_8, %c0_9] : memref<9x32x128xf32, #tpu.memory_space<vmem>>, vector<1x32x128xf32>
    %7 = vector.shape_cast %6 : vector<1x32x128xf32> to vector<32x128xf32>
    %cst_10 = arith.constant dense<0.000000e+00> : vector<64x128xf32>
    %8 = tpu.matmul %5, %7, %cst_10 {dimension_numbers = #tpu.dot_dimension_numbers<[1], [0], [0], [1], [0, 0, 1, 1], [], []>} : vector<64x32xf32>, vector<32x128xf32>, vector<64x128xf32> -> vector<64x128xf32>
    %9 = arith.addf %2, %8 : vector<64x128xf32>
    %c0_11 = arith.constant 0 : index
    %c0_12 = arith.constant 0 : index
    %c1 = arith.constant 1 : index
    %c0_13 = arith.constant 0 : index
    %10 = vector.load %arg1[%c0_11, %c0_12, %c1, %c0_13] : memref<1x10x10x32xf32, #tpu.memory_space<vmem>>, vector<1x8x8x32xf32>
    %11 = vector.shape_cast %10 : vector<1x8x8x32xf32> to vector<8x8x32xf32>
    %12 = vector.shape_cast %11 : vector<8x8x32xf32> to vector<64x32xf32>
    %c1_14 = arith.constant 1 : index
    %c0_15 = arith.constant 0 : index
    %c0_16 = arith.constant 0 : index
    %13 = vector.load %arg2[%c1_14, %c0_15, %c0_16] : memref<9x32x128xf32, #tpu.memory_space<vmem>>, vector<1x32x128xf32>
    %14 = vector.shape_cast %13 : vector<1x32x128xf32> to vector<32x128xf32>
    %cst_17 = arith.constant dense<0.000000e+00> : vector<64x128xf32>
    %15 = tpu.matmul %12, %14, %cst_17 {dimension_numbers = #tpu.dot_dimension_numbers<[1], [0], [0], [1], [0, 0, 1, 1], [], []>} : vector<64x32xf32>, vector<32x128xf32>, vector<64x128xf32> -> vector<64x128xf32>
    %16 = arith.addf %9, %15 : vector<64x128xf32>
    %c0_18 = arith.constant 0 : index
    %c0_19 = arith.constant 0 : index
    %c2 = arith.constant 2 : index
    %c0_20 = arith.constant 0 : index
    %17 = vector.load %arg1[%c0_18, %c0_19, %c2, %c0_20] : memref<1x10x10x32xf32, #tpu.memory_space<vmem>>, vector<1x8x8x32xf32>
    %18 = vector.shape_cast %17 : vector<1x8x8x32xf32> to vector<8x8x32xf32>
    %19 = vector.shape_cast %18 : vector<8x8x32xf32> to vector<64x32xf32>
    %c2_21 = arith.constant 2 : index
    %c0_22 = arith.constant 0 : index
    %c0_23 = arith.constant 0 : index
    %20 = vector.load %arg2[%c2_21, %c0_22, %c0_23] : memref<9x32x128xf32, #tpu.memory_space<vmem>>, vector<1x32x128xf32>
    %21 = vector.shape_cast %20 : vector<1x32x128xf32> to vector<32x128xf32>
    %cst_24 = arith.constant dense<0.000000e+00> : vector<64x128xf32>
    %22 = tpu.matmul %19, %21, %cst_24 {dimension_numbers = #tpu.dot_dimension_numbers<[1], [0], [0], [1], [0, 0, 1, 1], [], []>} : vector<64x32xf32>, vector<32x128xf32>, vector<64x128xf32> -> vector<64x128xf32>
    %23 = arith.addf %16, %22 : vector<64x128xf32>
    %c0_25 = arith.constant 0 : index
    %c1_26 = arith.constant 1 : index
    %c0_27 = arith.constant 0 : index
    %c0_28 = arith.constant 0 : index
    %24 = vector.load %arg1[%c0_25, %c1_26, %c0_27, %c0_28] : memref<1x10x10x32xf32, #tpu.memory_space<vmem>>, vector<1x8x8x32xf32>
    %25 = vector.shape_cast %24 : vector<1x8x8x32xf32> to vector<8x8x32xf32>
    %26 = vector.shape_cast %25 : vector<8x8x32xf32> to vector<64x32xf32>
    %c3 = arith.constant 3 : index
    %c0_29 = arith.constant 0 : index
    %c0_30 = arith.constant 0 : index
    %27 = vector.load %arg2[%c3, %c0_29, %c0_30] : memref<9x32x128xf32, #tpu.memory_space<vmem>>, vector<1x32x128xf32>
    %28 = vector.shape_cast %27 : vector<1x32x128xf32> to vector<32x128xf32>
    %cst_31 = arith.constant dense<0.000000e+00> : vector<64x128xf32>
    %29 = tpu.matmul %26, %28, %cst_31 {dimension_numbers = #tpu.dot_dimension_numbers<[1], [0], [0], [1], [0, 0, 1, 1], [], []>} : vector<64x32xf32>, vector<32x128xf32>, vector<64x128xf32> -> vector<64x128xf32>
    %30 = arith.addf %23, %29 : vector<64x128xf32>
    %c0_32 = arith.constant 0 : index
    %c1_33 = arith.constant 1 : index
    %c1_34 = arith.constant 1 : index
    %c0_35 = arith.constant 0 : index
    %31 = vector.load %arg1[%c0_32, %c1_33, %c1_34, %c0_35] : memref<1x10x10x32xf32, #tpu.memory_space<vmem>>, vector<1x8x8x32xf32>
    %32 = vector.shape_cast %31 : vector<1x8x8x32xf32> to vector<8x8x32xf32>
    %33 = vector.shape_cast %32 : vector<8x8x32xf32> to vector<64x32xf32>
    %c4 = arith.constant 4 : index
    %c0_36 = arith.constant 0 : index
    %c0_37 = arith.constant 0 : index
    %34 = vector.load %arg2[%c4, %c0_36, %c0_37] : memref<9x32x128xf32, #tpu.memory_space<vmem>>, vector<1x32x128xf32>
    %35 = vector.shape_cast %34 : vector<1x32x128xf32> to vector<32x128xf32>
    %cst_38 = arith.constant dense<0.000000e+00> : vector<64x128xf32>
    %36 = tpu.matmul %33, %35, %cst_38 {dimension_numbers = #tpu.dot_dimension_numbers<[1], [0], [0], [1], [0, 0, 1, 1], [], []>} : vector<64x32xf32>, vector<32x128xf32>, vector<64x128xf32> -> vector<64x128xf32>
    %37 = arith.addf %30, %36 : vector<64x128xf32>
    %c0_39 = arith.constant 0 : index
    %c1_40 = arith.constant 1 : index
    %c2_41 = arith.constant 2 : index
    %c0_42 = arith.constant 0 : index
    %38 = vector.load %arg1[%c0_39, %c1_40, %c2_41, %c0_42] : memref<1x10x10x32xf32, #tpu.memory_space<vmem>>, vector<1x8x8x32xf32>
    %39 = vector.shape_cast %38 : vector<1x8x8x32xf32> to vector<8x8x32xf32>
    %40 = vector.shape_cast %39 : vector<8x8x32xf32> to vector<64x32xf32>
    %c5 = arith.constant 5 : index
    %c0_43 = arith.constant 0 : index
    %c0_44 = arith.constant 0 : index
    %41 = vector.load %arg2[%c5, %c0_43, %c0_44] : memref<9x32x128xf32, #tpu.memory_space<vmem>>, vector<1x32x128xf32>
    %42 = vector.shape_cast %41 : vector<1x32x128xf32> to vector<32x128xf32>
    %cst_45 = arith.constant dense<0.000000e+00> : vector<64x128xf32>
    %43 = tpu.matmul %40, %42, %cst_45 {dimension_numbers = #tpu.dot_dimension_numbers<[1], [0], [0], [1], [0, 0, 1, 1], [], []>} : vector<64x32xf32>, vector<32x128xf32>, vector<64x128xf32> -> vector<64x128xf32>
    %44 = arith.addf %37, %43 : vector<64x128xf32>
    %c0_46 = arith.constant 0 : index
    %c2_47 = arith.constant 2 : index
    %c0_48 = arith.constant 0 : index
    %c0_49 = arith.constant 0 : index
    %45 = vector.load %arg1[%c0_46, %c2_47, %c0_48, %c0_49] : memref<1x10x10x32xf32, #tpu.memory_space<vmem>>, vector<1x8x8x32xf32>
    %46 = vector.shape_cast %45 : vector<1x8x8x32xf32> to vector<8x8x32xf32>
    %47 = vector.shape_cast %46 : vector<8x8x32xf32> to vector<64x32xf32>
    %c6 = arith.constant 6 : index
    %c0_50 = arith.constant 0 : index
    %c0_51 = arith.constant 0 : index
    %48 = vector.load %arg2[%c6, %c0_50, %c0_51] : memref<9x32x128xf32, #tpu.memory_space<vmem>>, vector<1x32x128xf32>
    %49 = vector.shape_cast %48 : vector<1x32x128xf32> to vector<32x128xf32>
    %cst_52 = arith.constant dense<0.000000e+00> : vector<64x128xf32>
    %50 = tpu.matmul %47, %49, %cst_52 {dimension_numbers = #tpu.dot_dimension_numbers<[1], [0], [0], [1], [0, 0, 1, 1], [], []>} : vector<64x32xf32>, vector<32x128xf32>, vector<64x128xf32> -> vector<64x128xf32>
    %51 = arith.addf %44, %50 : vector<64x128xf32>
    %c0_53 = arith.constant 0 : index
    %c2_54 = arith.constant 2 : index
    %c1_55 = arith.constant 1 : index
    %c0_56 = arith.constant 0 : index
    %52 = vector.load %arg1[%c0_53, %c2_54, %c1_55, %c0_56] : memref<1x10x10x32xf32, #tpu.memory_space<vmem>>, vector<1x8x8x32xf32>
    %53 = vector.shape_cast %52 : vector<1x8x8x32xf32> to vector<8x8x32xf32>
    %54 = vector.shape_cast %53 : vector<8x8x32xf32> to vector<64x32xf32>
    %c7 = arith.constant 7 : index
    %c0_57 = arith.constant 0 : index
    %c0_58 = arith.constant 0 : index
    %55 = vector.load %arg2[%c7, %c0_57, %c0_58] : memref<9x32x128xf32, #tpu.memory_space<vmem>>, vector<1x32x128xf32>
    %56 = vector.shape_cast %55 : vector<1x32x128xf32> to vector<32x128xf32>
    %cst_59 = arith.constant dense<0.000000e+00> : vector<64x128xf32>
    %57 = tpu.matmul %54, %56, %cst_59 {dimension_numbers = #tpu.dot_dimension_numbers<[1], [0], [0], [1], [0, 0, 1, 1], [], []>} : vector<64x32xf32>, vector<32x128xf32>, vector<64x128xf32> -> vector<64x128xf32>
    %58 = arith.addf %51, %57 : vector<64x128xf32>
    %c0_60 = arith.constant 0 : index
    %c2_61 = arith.constant 2 : index
    %c2_62 = arith.constant 2 : index
    %c0_63 = arith.constant 0 : index
    %59 = vector.load %arg1[%c0_60, %c2_61, %c2_62, %c0_63] : memref<1x10x10x32xf32, #tpu.memory_space<vmem>>, vector<1x8x8x32xf32>
    %60 = vector.shape_cast %59 : vector<1x8x8x32xf32> to vector<8x8x32xf32>
    %61 = vector.shape_cast %60 : vector<8x8x32xf32> to vector<64x32xf32>
    %c8 = arith.constant 8 : index
    %c0_64 = arith.constant 0 : index
    %c0_65 = arith.constant 0 : index
    %62 = vector.load %arg2[%c8, %c0_64, %c0_65] : memref<9x32x128xf32, #tpu.memory_space<vmem>>, vector<1x32x128xf32>
    %63 = vector.shape_cast %62 : vector<1x32x128xf32> to vector<32x128xf32>
    %cst_66 = arith.constant dense<0.000000e+00> : vector<64x128xf32>
    %64 = tpu.matmul %61, %63, %cst_66 {dimension_numbers = #tpu.dot_dimension_numbers<[1], [0], [0], [1], [0, 0, 1, 1], [], []>} : vector<64x32xf32>, vector<32x128xf32>, vector<64x128xf32> -> vector<64x128xf32>
    %65 = arith.addf %58, %64 : vector<64x128xf32>
    %c0_67 = arith.constant 0 : index
    %c0_68 = arith.constant 0 : index
    %66 = vector.load %arg3[%c0_67, %c0_68] : memref<1x128xf32, #tpu.memory_space<vmem>>, vector<1x128xf32>
    %67 = vector.broadcast %66 : vector<1x128xf32> to vector<64x128xf32>
    %68 = arith.addf %65, %67 : vector<64x128xf32>
    %cst_69 = arith.constant 0.000000e+00 : f32
    %69 = vector.broadcast %cst_69 : f32 to vector<64x128xf32>
    %70 = arith.maximumf %68, %69 : vector<64x128xf32>
    %71 = vector.shape_cast %70 : vector<64x128xf32> to vector<8x8x128xf32>
    %c1_70 = arith.constant 1 : index
    %c1_71 = arith.constant 1 : index
    %c0_72 = arith.constant 0 : index
    %72 = vector.load %arg15[%c1_70, %c1_71, %c0_72] : memref<10x10x128xf32, #tpu.memory_space<vmem>>, vector<8x8x128xf32>
    tpu.vector_store %arg15[%c1_70, %c1_71, %c0_72], %71 {strides = array<i32>} : memref<10x10x128xf32, #tpu.memory_space<vmem>>, vector<8x8x128xf32>,
    %cst_73 = arith.constant 0.000000e+00 : f32
    %73 = vector.broadcast %cst_73 : f32 to vector<64x32xf32>
    %c0_74 = arith.constant 0 : index
    %c0_75 = arith.constant 0 : index
    %c0_76 = arith.constant 0 : index
    %74 = vector.load %arg15[%c0_74, %c0_75, %c0_76] : memref<10x10x128xf32, #tpu.memory_space<vmem>>, vector<8x8x128xf32>
    %75 = vector.shape_cast %74 : vector<8x8x128xf32> to vector<64x128xf32>
    %c0_77 = arith.constant 0 : index
    %c0_78 = arith.constant 0 : index
    %c0_79 = arith.constant 0 : index
    %76 = vector.load %arg4[%c0_77, %c0_78, %c0_79] : memref<9x128x32xf32, #tpu.memory_space<vmem>>, vector<1x128x32xf32>
    %77 = vector.shape_cast %76 : vector<1x128x32xf32> to vector<128x32xf32>
    %cst_80 = arith.constant dense<0.000000e+00> : vector<64x32xf32>
    %78 = tpu.matmul %75, %77, %cst_80 {dimension_numbers = #tpu.dot_dimension_numbers<[1], [0], [0], [1], [0, 0, 1, 1], [], []>} : vector<64x128xf32>, vector<128x32xf32>, vector<64x32xf32> -> vector<64x32xf32>
    %79 = arith.addf %73, %78 : vector<64x32xf32>
    %c0_81 = arith.constant 0 : index
    %c1_82 = arith.constant 1 : index
    %c0_83 = arith.constant 0 : index
    %80 = vector.load %arg15[%c0_81, %c1_82, %c0_83] : memref<10x10x128xf32, #tpu.memory_space<vmem>>, vector<8x8x128xf32>
    %81 = vector.shape_cast %80 : vector<8x8x128xf32> to vector<64x128xf32>
    %c1_84 = arith.constant 1 : index
    %c0_85 = arith.constant 0 : index
    %c0_86 = arith.constant 0 : index
    %82 = vector.load %arg4[%c1_84, %c0_85, %c0_86] : memref<9x128x32xf32, #tpu.memory_space<vmem>>, vector<1x128x32xf32>
    %83 = vector.shape_cast %82 : vector<1x128x32xf32> to vector<128x32xf32>
    %cst_87 = arith.constant dense<0.000000e+00> : vector<64x32xf32>
    %84 = tpu.matmul %81, %83, %cst_87 {dimension_numbers = #tpu.dot_dimension_numbers<[1], [0], [0], [1], [0, 0, 1, 1], [], []>} : vector<64x128xf32>, vector<128x32xf32>, vector<64x32xf32> -> vector<64x32xf32>
    %85 = arith.addf %79, %84 : vector<64x32xf32>
    %c0_88 = arith.constant 0 : index
    %c2_89 = arith.constant 2 : index
    %c0_90 = arith.constant 0 : index
    %86 = vector.load %arg15[%c0_88, %c2_89, %c0_90] : memref<10x10x128xf32, #tpu.memory_space<vmem>>, vector<8x8x128xf32>
    %87 = vector.shape_cast %86 : vector<8x8x128xf32> to vector<64x128xf32>
    %c2_91 = arith.constant 2 : index
    %c0_92 = arith.constant 0 : index
    %c0_93 = arith.constant 0 : index
    %88 = vector.load %arg4[%c2_91, %c0_92, %c0_93] : memref<9x128x32xf32, #tpu.memory_space<vmem>>, vector<1x128x32xf32>
    %89 = vector.shape_cast %88 : vector<1x128x32xf32> to vector<128x32xf32>
    %cst_94 = arith.constant dense<0.000000e+00> : vector<64x32xf32>
    %90 = tpu.matmul %87, %89, %cst_94 {dimension_numbers = #tpu.dot_dimension_numbers<[1], [0], [0], [1], [0, 0, 1, 1], [], []>} : vector<64x128xf32>, vector<128x32xf32>, vector<64x32xf32> -> vector<64x32xf32>
    %91 = arith.addf %85, %90 : vector<64x32xf32>
    %c1_95 = arith.constant 1 : index
    %c0_96 = arith.constant 0 : index
    %c0_97 = arith.constant 0 : index
    %92 = vector.load %arg15[%c1_95, %c0_96, %c0_97] : memref<10x10x128xf32, #tpu.memory_space<vmem>>, vector<8x8x128xf32>
    %93 = vector.shape_cast %92 : vector<8x8x128xf32> to vector<64x128xf32>
    %c3_98 = arith.constant 3 : index
    %c0_99 = arith.constant 0 : index
    %c0_100 = arith.constant 0 : index
    %94 = vector.load %arg4[%c3_98, %c0_99, %c0_100] : memref<9x128x32xf32, #tpu.memory_space<vmem>>, vector<1x128x32xf32>
    %95 = vector.shape_cast %94 : vector<1x128x32xf32> to vector<128x32xf32>
    %cst_101 = arith.constant dense<0.000000e+00> : vector<64x32xf32>
    %96 = tpu.matmul %93, %95, %cst_101 {dimension_numbers = #tpu.dot_dimension_numbers<[1], [0], [0], [1], [0, 0, 1, 1], [], []>} : vector<64x128xf32>, vector<128x32xf32>, vector<64x32xf32> -> vector<64x32xf32>
    %97 = arith.addf %91, %96 : vector<64x32xf32>
    %c1_102 = arith.constant 1 : index
    %c1_103 = arith.constant 1 : index
    %c0_104 = arith.constant 0 : index
    %98 = vector.load %arg15[%c1_102, %c1_103, %c0_104] : memref<10x10x128xf32, #tpu.memory_space<vmem>>, vector<8x8x128xf32>
    %99 = vector.shape_cast %98 : vector<8x8x128xf32> to vector<64x128xf32>
    %c4_105 = arith.constant 4 : index
    %c0_106 = arith.constant 0 : index
    %c0_107 = arith.constant 0 : index
    %100 = vector.load %arg4[%c4_105, %c0_106, %c0_107] : memref<9x128x32xf32, #tpu.memory_space<vmem>>, vector<1x128x32xf32>
    %101 = vector.shape_cast %100 : vector<1x128x32xf32> to vector<128x32xf32>
    %cst_108 = arith.constant dense<0.000000e+00> : vector<64x32xf32>
    %102 = tpu.matmul %99, %101, %cst_108 {dimension_numbers = #tpu.dot_dimension_numbers<[1], [0], [0], [1], [0, 0, 1, 1], [], []>} : vector<64x128xf32>, vector<128x32xf32>, vector<64x32xf32> -> vector<64x32xf32>
    %103 = arith.addf %97, %102 : vector<64x32xf32>
    %c1_109 = arith.constant 1 : index
    %c2_110 = arith.constant 2 : index
    %c0_111 = arith.constant 0 : index
    %104 = vector.load %arg15[%c1_109, %c2_110, %c0_111] : memref<10x10x128xf32, #tpu.memory_space<vmem>>, vector<8x8x128xf32>
    %105 = vector.shape_cast %104 : vector<8x8x128xf32> to vector<64x128xf32>
    %c5_112 = arith.constant 5 : index
    %c0_113 = arith.constant 0 : index
    %c0_114 = arith.constant 0 : index
    %106 = vector.load %arg4[%c5_112, %c0_113, %c0_114] : memref<9x128x32xf32, #tpu.memory_space<vmem>>, vector<1x128x32xf32>
    %107 = vector.shape_cast %106 : vector<1x128x32xf32> to vector<128x32xf32>
    %cst_115 = arith.constant dense<0.000000e+00> : vector<64x32xf32>
    %108 = tpu.matmul %105, %107, %cst_115 {dimension_numbers = #tpu.dot_dimension_numbers<[1], [0], [0], [1], [0, 0, 1, 1], [], []>} : vector<64x128xf32>, vector<128x32xf32>, vector<64x32xf32> -> vector<64x32xf32>
    %109 = arith.addf %103, %108 : vector<64x32xf32>
    %c2_116 = arith.constant 2 : index
    %c0_117 = arith.constant 0 : index
    %c0_118 = arith.constant 0 : index
    %110 = vector.load %arg15[%c2_116, %c0_117, %c0_118] : memref<10x10x128xf32, #tpu.memory_space<vmem>>, vector<8x8x128xf32>
    %111 = vector.shape_cast %110 : vector<8x8x128xf32> to vector<64x128xf32>
    %c6_119 = arith.constant 6 : index
    %c0_120 = arith.constant 0 : index
    %c0_121 = arith.constant 0 : index
    %112 = vector.load %arg4[%c6_119, %c0_120, %c0_121] : memref<9x128x32xf32, #tpu.memory_space<vmem>>, vector<1x128x32xf32>
    %113 = vector.shape_cast %112 : vector<1x128x32xf32> to vector<128x32xf32>
    %cst_122 = arith.constant dense<0.000000e+00> : vector<64x32xf32>
    %114 = tpu.matmul %111, %113, %cst_122 {dimension_numbers = #tpu.dot_dimension_numbers<[1], [0], [0], [1], [0, 0, 1, 1], [], []>} : vector<64x128xf32>, vector<128x32xf32>, vector<64x32xf32> -> vector<64x32xf32>
    %115 = arith.addf %109, %114 : vector<64x32xf32>
    %c2_123 = arith.constant 2 : index
    %c1_124 = arith.constant 1 : index
    %c0_125 = arith.constant 0 : index
    %116 = vector.load %arg15[%c2_123, %c1_124, %c0_125] : memref<10x10x128xf32, #tpu.memory_space<vmem>>, vector<8x8x128xf32>
    %117 = vector.shape_cast %116 : vector<8x8x128xf32> to vector<64x128xf32>
    %c7_126 = arith.constant 7 : index
    %c0_127 = arith.constant 0 : index
    %c0_128 = arith.constant 0 : index
    %118 = vector.load %arg4[%c7_126, %c0_127, %c0_128] : memref<9x128x32xf32, #tpu.memory_space<vmem>>, vector<1x128x32xf32>
    %119 = vector.shape_cast %118 : vector<1x128x32xf32> to vector<128x32xf32>
    %cst_129 = arith.constant dense<0.000000e+00> : vector<64x32xf32>
    %120 = tpu.matmul %117, %119, %cst_129 {dimension_numbers = #tpu.dot_dimension_numbers<[1], [0], [0], [1], [0, 0, 1, 1], [], []>} : vector<64x128xf32>, vector<128x32xf32>, vector<64x32xf32> -> vector<64x32xf32>
    %121 = arith.addf %115, %120 : vector<64x32xf32>
    %c2_130 = arith.constant 2 : index
    %c2_131 = arith.constant 2 : index
    %c0_132 = arith.constant 0 : index
    %122 = vector.load %arg15[%c2_130, %c2_131, %c0_132] : memref<10x10x128xf32, #tpu.memory_space<vmem>>, vector<8x8x128xf32>
    %123 = vector.shape_cast %122 : vector<8x8x128xf32> to vector<64x128xf32>
    %c8_133 = arith.constant 8 : index
    %c0_134 = arith.constant 0 : index
    %c0_135 = arith.constant 0 : index
    %124 = vector.load %arg4[%c8_133, %c0_134, %c0_135] : memref<9x128x32xf32, #tpu.memory_space<vmem>>, vector<1x128x32xf32>
    %125 = vector.shape_cast %124 : vector<1x128x32xf32> to vector<128x32xf32>
    %cst_136 = arith.constant dense<0.000000e+00> : vector<64x32xf32>
    %126 = tpu.matmul %123, %125, %cst_136 {dimension_numbers = #tpu.dot_dimension_numbers<[1], [0], [0], [1], [0, 0, 1, 1], [], []>} : vector<64x128xf32>, vector<128x32xf32>, vector<64x32xf32> -> vector<64x32xf32>
    %127 = arith.addf %121, %126 : vector<64x32xf32>
    %c0_137 = arith.constant 0 : index
    %c0_138 = arith.constant 0 : index
    %128 = vector.load %arg5[%c0_137, %c0_138] : memref<1x32xf32, #tpu.memory_space<vmem>>, vector<1x32xf32>
    %129 = vector.broadcast %128 : vector<1x32xf32> to vector<64x32xf32>
    %130 = arith.addf %127, %129 : vector<64x32xf32>
    %cst_139 = arith.constant 0.000000e+00 : f32
    %131 = vector.broadcast %cst_139 : f32 to vector<64x32xf32>
    %132 = arith.maximumf %130, %131 : vector<64x32xf32>
    %c0_140 = arith.constant 0 : index
    %c0_141 = arith.constant 0 : index
    %133 = vector.load %arg6[%c0_140, %c0_141] : memref<32x128xf32, #tpu.memory_space<vmem>>, vector<32x128xf32>
    %cst_142 = arith.constant dense<0.000000e+00> : vector<64x128xf32>
    %134 = tpu.matmul %132, %133, %cst_142 {dimension_numbers = #tpu.dot_dimension_numbers<[1], [0], [0], [1], [0, 0, 1, 1], [], []>} : vector<64x32xf32>, vector<32x128xf32>, vector<64x128xf32> -> vector<64x128xf32>
    %c0_143 = arith.constant 0 : index
    %c0_144 = arith.constant 0 : index
    %135 = vector.load %arg7[%c0_143, %c0_144] : memref<1x128xf32, #tpu.memory_space<vmem>>, vector<1x128xf32>
    %136 = vector.broadcast %135 : vector<1x128xf32> to vector<64x128xf32>
    %137 = arith.addf %134, %136 : vector<64x128xf32>
    %138 = arith.addf %137, %70 : vector<64x128xf32>
    %cst_145 = arith.constant 0.000000e+00 : f32
    %139 = vector.broadcast %cst_145 : f32 to vector<64x128xf32>
    %140 = arith.maximumf %138, %139 : vector<64x128xf32>
    %141 = vector.shape_cast %140 : vector<64x128xf32> to vector<8x8x128xf32>
    %c1_146 = arith.constant 1 : index
    %c1_147 = arith.constant 1 : index
    %c0_148 = arith.constant 0 : index
    %142 = vector.load %arg15[%c1_146, %c1_147, %c0_148] : memref<10x10x128xf32, #tpu.memory_space<vmem>>, vector<8x8x128xf32>
    tpu.vector_store %arg15[%c1_146, %c1_147, %c0_148], %141 {strides = array<i32>} : memref<10x10x128xf32, #tpu.memory_space<vmem>>, vector<8x8x128xf32>,
    %cst_149 = arith.constant 0.000000e+00 : f32
    %143 = vector.broadcast %cst_149 : f32 to vector<64x32xf32>
    %c0_150 = arith.constant 0 : index
    %c0_151 = arith.constant 0 : index
    %c0_152 = arith.constant 0 : index
    %144 = vector.load %arg15[%c0_150, %c0_151, %c0_152] : memref<10x10x128xf32, #tpu.memory_space<vmem>>, vector<8x8x128xf32>
    %145 = vector.shape_cast %144 : vector<8x8x128xf32> to vector<64x128xf32>
    %c0_153 = arith.constant 0 : index
    %c0_154 = arith.constant 0 : index
    %c0_155 = arith.constant 0 : index
    %146 = vector.load %arg8[%c0_153, %c0_154, %c0_155] : memref<9x128x32xf32, #tpu.memory_space<vmem>>, vector<1x128x32xf32>
    %147 = vector.shape_cast %146 : vector<1x128x32xf32> to vector<128x32xf32>
    %cst_156 = arith.constant dense<0.000000e+00> : vector<64x32xf32>
    %148 = tpu.matmul %145, %147, %cst_156 {dimension_numbers = #tpu.dot_dimension_numbers<[1], [0], [0], [1], [0, 0, 1, 1], [], []>} : vector<64x128xf32>, vector<128x32xf32>, vector<64x32xf32> -> vector<64x32xf32>
    %149 = arith.addf %143, %148 : vector<64x32xf32>
    %c0_157 = arith.constant 0 : index
    %c1_158 = arith.constant 1 : index
    %c0_159 = arith.constant 0 : index
    %150 = vector.load %arg15[%c0_157, %c1_158, %c0_159] : memref<10x10x128xf32, #tpu.memory_space<vmem>>, vector<8x8x128xf32>
    %151 = vector.shape_cast %150 : vector<8x8x128xf32> to vector<64x128xf32>
    %c1_160 = arith.constant 1 : index
    %c0_161 = arith.constant 0 : index
    %c0_162 = arith.constant 0 : index
    %152 = vector.load %arg8[%c1_160, %c0_161, %c0_162] : memref<9x128x32xf32, #tpu.memory_space<vmem>>, vector<1x128x32xf32>
    %153 = vector.shape_cast %152 : vector<1x128x32xf32> to vector<128x32xf32>
    %cst_163 = arith.constant dense<0.000000e+00> : vector<64x32xf32>
    %154 = tpu.matmul %151, %153, %cst_163 {dimension_numbers = #tpu.dot_dimension_numbers<[1], [0], [0], [1], [0, 0, 1, 1], [], []>} : vector<64x128xf32>, vector<128x32xf32>, vector<64x32xf32> -> vector<64x32xf32>
    %155 = arith.addf %149, %154 : vector<64x32xf32>
    %c0_164 = arith.constant 0 : index
    %c2_165 = arith.constant 2 : index
    %c0_166 = arith.constant 0 : index
    %156 = vector.load %arg15[%c0_164, %c2_165, %c0_166] : memref<10x10x128xf32, #tpu.memory_space<vmem>>, vector<8x8x128xf32>
    %157 = vector.shape_cast %156 : vector<8x8x128xf32> to vector<64x128xf32>
    %c2_167 = arith.constant 2 : index
    %c0_168 = arith.constant 0 : index
    %c0_169 = arith.constant 0 : index
    %158 = vector.load %arg8[%c2_167, %c0_168, %c0_169] : memref<9x128x32xf32, #tpu.memory_space<vmem>>, vector<1x128x32xf32>
    %159 = vector.shape_cast %158 : vector<1x128x32xf32> to vector<128x32xf32>
    %cst_170 = arith.constant dense<0.000000e+00> : vector<64x32xf32>
    %160 = tpu.matmul %157, %159, %cst_170 {dimension_numbers = #tpu.dot_dimension_numbers<[1], [0], [0], [1], [0, 0, 1, 1], [], []>} : vector<64x128xf32>, vector<128x32xf32>, vector<64x32xf32> -> vector<64x32xf32>
    %161 = arith.addf %155, %160 : vector<64x32xf32>
    %c1_171 = arith.constant 1 : index
    %c0_172 = arith.constant 0 : index
    %c0_173 = arith.constant 0 : index
    %162 = vector.load %arg15[%c1_171, %c0_172, %c0_173] : memref<10x10x128xf32, #tpu.memory_space<vmem>>, vector<8x8x128xf32>
    %163 = vector.shape_cast %162 : vector<8x8x128xf32> to vector<64x128xf32>
    %c3_174 = arith.constant 3 : index
    %c0_175 = arith.constant 0 : index
    %c0_176 = arith.constant 0 : index
    %164 = vector.load %arg8[%c3_174, %c0_175, %c0_176] : memref<9x128x32xf32, #tpu.memory_space<vmem>>, vector<1x128x32xf32>
    %165 = vector.shape_cast %164 : vector<1x128x32xf32> to vector<128x32xf32>
    %cst_177 = arith.constant dense<0.000000e+00> : vector<64x32xf32>
    %166 = tpu.matmul %163, %165, %cst_177 {dimension_numbers = #tpu.dot_dimension_numbers<[1], [0], [0], [1], [0, 0, 1, 1], [], []>} : vector<64x128xf32>, vector<128x32xf32>, vector<64x32xf32> -> vector<64x32xf32>
    %167 = arith.addf %161, %166 : vector<64x32xf32>
    %c1_178 = arith.constant 1 : index
    %c1_179 = arith.constant 1 : index
    %c0_180 = arith.constant 0 : index
    %168 = vector.load %arg15[%c1_178, %c1_179, %c0_180] : memref<10x10x128xf32, #tpu.memory_space<vmem>>, vector<8x8x128xf32>
    %169 = vector.shape_cast %168 : vector<8x8x128xf32> to vector<64x128xf32>
    %c4_181 = arith.constant 4 : index
    %c0_182 = arith.constant 0 : index
    %c0_183 = arith.constant 0 : index
    %170 = vector.load %arg8[%c4_181, %c0_182, %c0_183] : memref<9x128x32xf32, #tpu.memory_space<vmem>>, vector<1x128x32xf32>
    %171 = vector.shape_cast %170 : vector<1x128x32xf32> to vector<128x32xf32>
    %cst_184 = arith.constant dense<0.000000e+00> : vector<64x32xf32>
    %172 = tpu.matmul %169, %171, %cst_184 {dimension_numbers = #tpu.dot_dimension_numbers<[1], [0], [0], [1], [0, 0, 1, 1], [], []>} : vector<64x128xf32>, vector<128x32xf32>, vector<64x32xf32> -> vector<64x32xf32>
    %173 = arith.addf %167, %172 : vector<64x32xf32>
    %c1_185 = arith.constant 1 : index
    %c2_186 = arith.constant 2 : index
    %c0_187 = arith.constant 0 : index
    %174 = vector.load %arg15[%c1_185, %c2_186, %c0_187] : memref<10x10x128xf32, #tpu.memory_space<vmem>>, vector<8x8x128xf32>
    %175 = vector.shape_cast %174 : vector<8x8x128xf32> to vector<64x128xf32>
    %c5_188 = arith.constant 5 : index
    %c0_189 = arith.constant 0 : index
    %c0_190 = arith.constant 0 : index
    %176 = vector.load %arg8[%c5_188, %c0_189, %c0_190] : memref<9x128x32xf32, #tpu.memory_space<vmem>>, vector<1x128x32xf32>
    %177 = vector.shape_cast %176 : vector<1x128x32xf32> to vector<128x32xf32>
    %cst_191 = arith.constant dense<0.000000e+00> : vector<64x32xf32>
    %178 = tpu.matmul %175, %177, %cst_191 {dimension_numbers = #tpu.dot_dimension_numbers<[1], [0], [0], [1], [0, 0, 1, 1], [], []>} : vector<64x128xf32>, vector<128x32xf32>, vector<64x32xf32> -> vector<64x32xf32>
    %179 = arith.addf %173, %178 : vector<64x32xf32>
    %c2_192 = arith.constant 2 : index
    %c0_193 = arith.constant 0 : index
    %c0_194 = arith.constant 0 : index
    %180 = vector.load %arg15[%c2_192, %c0_193, %c0_194] : memref<10x10x128xf32, #tpu.memory_space<vmem>>, vector<8x8x128xf32>
    %181 = vector.shape_cast %180 : vector<8x8x128xf32> to vector<64x128xf32>
    %c6_195 = arith.constant 6 : index
    %c0_196 = arith.constant 0 : index
    %c0_197 = arith.constant 0 : index
    %182 = vector.load %arg8[%c6_195, %c0_196, %c0_197] : memref<9x128x32xf32, #tpu.memory_space<vmem>>, vector<1x128x32xf32>
    %183 = vector.shape_cast %182 : vector<1x128x32xf32> to vector<128x32xf32>
    %cst_198 = arith.constant dense<0.000000e+00> : vector<64x32xf32>
    %184 = tpu.matmul %181, %183, %cst_198 {dimension_numbers = #tpu.dot_dimension_numbers<[1], [0], [0], [1], [0, 0, 1, 1], [], []>} : vector<64x128xf32>, vector<128x32xf32>, vector<64x32xf32> -> vector<64x32xf32>
    %185 = arith.addf %179, %184 : vector<64x32xf32>
    %c2_199 = arith.constant 2 : index
    %c1_200 = arith.constant 1 : index
    %c0_201 = arith.constant 0 : index
    %186 = vector.load %arg15[%c2_199, %c1_200, %c0_201] : memref<10x10x128xf32, #tpu.memory_space<vmem>>, vector<8x8x128xf32>
    %187 = vector.shape_cast %186 : vector<8x8x128xf32> to vector<64x128xf32>
    %c7_202 = arith.constant 7 : index
    %c0_203 = arith.constant 0 : index
    %c0_204 = arith.constant 0 : index
    %188 = vector.load %arg8[%c7_202, %c0_203, %c0_204] : memref<9x128x32xf32, #tpu.memory_space<vmem>>, vector<1x128x32xf32>
    %189 = vector.shape_cast %188 : vector<1x128x32xf32> to vector<128x32xf32>
    %cst_205 = arith.constant dense<0.000000e+00> : vector<64x32xf32>
    %190 = tpu.matmul %187, %189, %cst_205 {dimension_numbers = #tpu.dot_dimension_numbers<[1], [0], [0], [1], [0, 0, 1, 1], [], []>} : vector<64x128xf32>, vector<128x32xf32>, vector<64x32xf32> -> vector<64x32xf32>
    %191 = arith.addf %185, %190 : vector<64x32xf32>
    %c2_206 = arith.constant 2 : index
    %c2_207 = arith.constant 2 : index
    %c0_208 = arith.constant 0 : index
    %192 = vector.load %arg15[%c2_206, %c2_207, %c0_208] : memref<10x10x128xf32, #tpu.memory_space<vmem>>, vector<8x8x128xf32>
    %193 = vector.shape_cast %192 : vector<8x8x128xf32> to vector<64x128xf32>
    %c8_209 = arith.constant 8 : index
    %c0_210 = arith.constant 0 : index
    %c0_211 = arith.constant 0 : index
    %194 = vector.load %arg8[%c8_209, %c0_210, %c0_211] : memref<9x128x32xf32, #tpu.memory_space<vmem>>, vector<1x128x32xf32>
    %195 = vector.shape_cast %194 : vector<1x128x32xf32> to vector<128x32xf32>
    %cst_212 = arith.constant dense<0.000000e+00> : vector<64x32xf32>
    %196 = tpu.matmul %193, %195, %cst_212 {dimension_numbers = #tpu.dot_dimension_numbers<[1], [0], [0], [1], [0, 0, 1, 1], [], []>} : vector<64x128xf32>, vector<128x32xf32>, vector<64x32xf32> -> vector<64x32xf32>
    %197 = arith.addf %191, %196 : vector<64x32xf32>
    %c0_213 = arith.constant 0 : index
    %c0_214 = arith.constant 0 : index
    %198 = vector.load %arg9[%c0_213, %c0_214] : memref<1x32xf32, #tpu.memory_space<vmem>>, vector<1x32xf32>
    %199 = vector.broadcast %198 : vector<1x32xf32> to vector<64x32xf32>
    %200 = arith.addf %197, %199 : vector<64x32xf32>
    %cst_215 = arith.constant 0.000000e+00 : f32
    %201 = vector.broadcast %cst_215 : f32 to vector<64x32xf32>
    %202 = arith.maximumf %200, %201 : vector<64x32xf32>
    %c0_216 = arith.constant 0 : index
    %c0_217 = arith.constant 0 : index
    %203 = vector.load %arg10[%c0_216, %c0_217] : memref<32x128xf32, #tpu.memory_space<vmem>>, vector<32x128xf32>
    %cst_218 = arith.constant dense<0.000000e+00> : vector<64x128xf32>
    %204 = tpu.matmul %202, %203, %cst_218 {dimension_numbers = #tpu.dot_dimension_numbers<[1], [0], [0], [1], [0, 0, 1, 1], [], []>} : vector<64x32xf32>, vector<32x128xf32>, vector<64x128xf32> -> vector<64x128xf32>
    %c0_219 = arith.constant 0 : index
    %c0_220 = arith.constant 0 : index
    %205 = vector.load %arg11[%c0_219, %c0_220] : memref<1x128xf32, #tpu.memory_space<vmem>>, vector<1x128xf32>
    %206 = vector.broadcast %205 : vector<1x128xf32> to vector<64x128xf32>
    %207 = arith.addf %204, %206 : vector<64x128xf32>
    %208 = arith.addf %207, %140 : vector<64x128xf32>
    %cst_221 = arith.constant 0.000000e+00 : f32
    %209 = vector.broadcast %cst_221 : f32 to vector<64x128xf32>
    %210 = arith.maximumf %208, %209 : vector<64x128xf32>
    %211 = vector.shape_cast %210 : vector<64x128xf32> to vector<8x8x128xf32>
    %c1_222 = arith.constant 1 : index
    %c1_223 = arith.constant 1 : index
    %c0_224 = arith.constant 0 : index
    %212 = vector.load %arg15[%c1_222, %c1_223, %c0_224] : memref<10x10x128xf32, #tpu.memory_space<vmem>>, vector<8x8x128xf32>
    tpu.vector_store %arg15[%c1_222, %c1_223, %c0_224], %211 {strides = array<i32>} : memref<10x10x128xf32, #tpu.memory_space<vmem>>, vector<8x8x128xf32>,
    %cst_225 = arith.constant 0.000000e+00 : f32
    %213 = vector.broadcast %cst_225 : f32 to vector<64x256xf32>
    %c0_226 = arith.constant 0 : index
    %c0_227 = arith.constant 0 : index
    %c0_228 = arith.constant 0 : index
    %214 = vector.load %arg15[%c0_226, %c0_227, %c0_228] : memref<10x10x128xf32, #tpu.memory_space<vmem>>, vector<8x8x128xf32>
    %215 = vector.shape_cast %214 : vector<8x8x128xf32> to vector<64x128xf32>
    %c0_229 = arith.constant 0 : index
    %c0_230 = arith.constant 0 : index
    %c0_231 = arith.constant 0 : index
    %216 = vector.load %arg12[%c0_229, %c0_230, %c0_231] : memref<9x128x256xf32, #tpu.memory_space<vmem>>, vector<1x128x256xf32>
    %217 = vector.shape_cast %216 : vector<1x128x256xf32> to vector<128x256xf32>
    %cst_232 = arith.constant dense<0.000000e+00> : vector<64x256xf32>
    %218 = tpu.matmul %215, %217, %cst_232 {dimension_numbers = #tpu.dot_dimension_numbers<[1], [0], [0], [1], [0, 0, 1, 1], [], []>} : vector<64x128xf32>, vector<128x256xf32>, vector<64x256xf32> -> vector<64x256xf32>
    %219 = arith.addf %213, %218 : vector<64x256xf32>
    %c0_233 = arith.constant 0 : index
    %c1_234 = arith.constant 1 : index
    %c0_235 = arith.constant 0 : index
    %220 = vector.load %arg15[%c0_233, %c1_234, %c0_235] : memref<10x10x128xf32, #tpu.memory_space<vmem>>, vector<8x8x128xf32>
    %221 = vector.shape_cast %220 : vector<8x8x128xf32> to vector<64x128xf32>
    %c1_236 = arith.constant 1 : index
    %c0_237 = arith.constant 0 : index
    %c0_238 = arith.constant 0 : index
    %222 = vector.load %arg12[%c1_236, %c0_237, %c0_238] : memref<9x128x256xf32, #tpu.memory_space<vmem>>, vector<1x128x256xf32>
    %223 = vector.shape_cast %222 : vector<1x128x256xf32> to vector<128x256xf32>
    %cst_239 = arith.constant dense<0.000000e+00> : vector<64x256xf32>
    %224 = tpu.matmul %221, %223, %cst_239 {dimension_numbers = #tpu.dot_dimension_numbers<[1], [0], [0], [1], [0, 0, 1, 1], [], []>} : vector<64x128xf32>, vector<128x256xf32>, vector<64x256xf32> -> vector<64x256xf32>
    %225 = arith.addf %219, %224 : vector<64x256xf32>
    %c0_240 = arith.constant 0 : index
    %c2_241 = arith.constant 2 : index
    %c0_242 = arith.constant 0 : index
    %226 = vector.load %arg15[%c0_240, %c2_241, %c0_242] : memref<10x10x128xf32, #tpu.memory_space<vmem>>, vector<8x8x128xf32>
    %227 = vector.shape_cast %226 : vector<8x8x128xf32> to vector<64x128xf32>
    %c2_243 = arith.constant 2 : index
    %c0_244 = arith.constant 0 : index
    %c0_245 = arith.constant 0 : index
    %228 = vector.load %arg12[%c2_243, %c0_244, %c0_245] : memref<9x128x256xf32, #tpu.memory_space<vmem>>, vector<1x128x256xf32>
    %229 = vector.shape_cast %228 : vector<1x128x256xf32> to vector<128x256xf32>
    %cst_246 = arith.constant dense<0.000000e+00> : vector<64x256xf32>
    %230 = tpu.matmul %227, %229, %cst_246 {dimension_numbers = #tpu.dot_dimension_numbers<[1], [0], [0], [1], [0, 0, 1, 1], [], []>} : vector<64x128xf32>, vector<128x256xf32>, vector<64x256xf32> -> vector<64x256xf32>
    %231 = arith.addf %225, %230 : vector<64x256xf32>
    %c1_247 = arith.constant 1 : index
    %c0_248 = arith.constant 0 : index
    %c0_249 = arith.constant 0 : index
    %232 = vector.load %arg15[%c1_247, %c0_248, %c0_249] : memref<10x10x128xf32, #tpu.memory_space<vmem>>, vector<8x8x128xf32>
    %233 = vector.shape_cast %232 : vector<8x8x128xf32> to vector<64x128xf32>
    %c3_250 = arith.constant 3 : index
    %c0_251 = arith.constant 0 : index
    %c0_252 = arith.constant 0 : index
    %234 = vector.load %arg12[%c3_250, %c0_251, %c0_252] : memref<9x128x256xf32, #tpu.memory_space<vmem>>, vector<1x128x256xf32>
    %235 = vector.shape_cast %234 : vector<1x128x256xf32> to vector<128x256xf32>
    %cst_253 = arith.constant dense<0.000000e+00> : vector<64x256xf32>
    %236 = tpu.matmul %233, %235, %cst_253 {dimension_numbers = #tpu.dot_dimension_numbers<[1], [0], [0], [1], [0, 0, 1, 1], [], []>} : vector<64x128xf32>, vector<128x256xf32>, vector<64x256xf32> -> vector<64x256xf32>
    %237 = arith.addf %231, %236 : vector<64x256xf32>
    %c1_254 = arith.constant 1 : index
    %c1_255 = arith.constant 1 : index
    %c0_256 = arith.constant 0 : index
    %238 = vector.load %arg15[%c1_254, %c1_255, %c0_256] : memref<10x10x128xf32, #tpu.memory_space<vmem>>, vector<8x8x128xf32>
    %239 = vector.shape_cast %238 : vector<8x8x128xf32> to vector<64x128xf32>
    %c4_257 = arith.constant 4 : index
    %c0_258 = arith.constant 0 : index
    %c0_259 = arith.constant 0 : index
    %240 = vector.load %arg12[%c4_257, %c0_258, %c0_259] : memref<9x128x256xf32, #tpu.memory_space<vmem>>, vector<1x128x256xf32>
    %241 = vector.shape_cast %240 : vector<1x128x256xf32> to vector<128x256xf32>
    %cst_260 = arith.constant dense<0.000000e+00> : vector<64x256xf32>
    %242 = tpu.matmul %239, %241, %cst_260 {dimension_numbers = #tpu.dot_dimension_numbers<[1], [0], [0], [1], [0, 0, 1, 1], [], []>} : vector<64x128xf32>, vector<128x256xf32>, vector<64x256xf32> -> vector<64x256xf32>
    %243 = arith.addf %237, %242 : vector<64x256xf32>
    %c1_261 = arith.constant 1 : index
    %c2_262 = arith.constant 2 : index
    %c0_263 = arith.constant 0 : index
    %244 = vector.load %arg15[%c1_261, %c2_262, %c0_263] : memref<10x10x128xf32, #tpu.memory_space<vmem>>, vector<8x8x128xf32>
    %245 = vector.shape_cast %244 : vector<8x8x128xf32> to vector<64x128xf32>
    %c5_264 = arith.constant 5 : index
    %c0_265 = arith.constant 0 : index
    %c0_266 = arith.constant 0 : index
    %246 = vector.load %arg12[%c5_264, %c0_265, %c0_266] : memref<9x128x256xf32, #tpu.memory_space<vmem>>, vector<1x128x256xf32>
    %247 = vector.shape_cast %246 : vector<1x128x256xf32> to vector<128x256xf32>
    %cst_267 = arith.constant dense<0.000000e+00> : vector<64x256xf32>
    %248 = tpu.matmul %245, %247, %cst_267 {dimension_numbers = #tpu.dot_dimension_numbers<[1], [0], [0], [1], [0, 0, 1, 1], [], []>} : vector<64x128xf32>, vector<128x256xf32>, vector<64x256xf32> -> vector<64x256xf32>
    %249 = arith.addf %243, %248 : vector<64x256xf32>
    %c2_268 = arith.constant 2 : index
    %c0_269 = arith.constant 0 : index
    %c0_270 = arith.constant 0 : index
    %250 = vector.load %arg15[%c2_268, %c0_269, %c0_270] : memref<10x10x128xf32, #tpu.memory_space<vmem>>, vector<8x8x128xf32>
    %251 = vector.shape_cast %250 : vector<8x8x128xf32> to vector<64x128xf32>
    %c6_271 = arith.constant 6 : index
    %c0_272 = arith.constant 0 : index
    %c0_273 = arith.constant 0 : index
    %252 = vector.load %arg12[%c6_271, %c0_272, %c0_273] : memref<9x128x256xf32, #tpu.memory_space<vmem>>, vector<1x128x256xf32>
    %253 = vector.shape_cast %252 : vector<1x128x256xf32> to vector<128x256xf32>
    %cst_274 = arith.constant dense<0.000000e+00> : vector<64x256xf32>
    %254 = tpu.matmul %251, %253, %cst_274 {dimension_numbers = #tpu.dot_dimension_numbers<[1], [0], [0], [1], [0, 0, 1, 1], [], []>} : vector<64x128xf32>, vector<128x256xf32>, vector<64x256xf32> -> vector<64x256xf32>
    %255 = arith.addf %249, %254 : vector<64x256xf32>
    %c2_275 = arith.constant 2 : index
    %c1_276 = arith.constant 1 : index
    %c0_277 = arith.constant 0 : index
    %256 = vector.load %arg15[%c2_275, %c1_276, %c0_277] : memref<10x10x128xf32, #tpu.memory_space<vmem>>, vector<8x8x128xf32>
    %257 = vector.shape_cast %256 : vector<8x8x128xf32> to vector<64x128xf32>
    %c7_278 = arith.constant 7 : index
    %c0_279 = arith.constant 0 : index
    %c0_280 = arith.constant 0 : index
    %258 = vector.load %arg12[%c7_278, %c0_279, %c0_280] : memref<9x128x256xf32, #tpu.memory_space<vmem>>, vector<1x128x256xf32>
    %259 = vector.shape_cast %258 : vector<1x128x256xf32> to vector<128x256xf32>
    %cst_281 = arith.constant dense<0.000000e+00> : vector<64x256xf32>
    %260 = tpu.matmul %257, %259, %cst_281 {dimension_numbers = #tpu.dot_dimension_numbers<[1], [0], [0], [1], [0, 0, 1, 1], [], []>} : vector<64x128xf32>, vector<128x256xf32>, vector<64x256xf32> -> vector<64x256xf32>
    %261 = arith.addf %255, %260 : vector<64x256xf32>
    %c2_282 = arith.constant 2 : index
    %c2_283 = arith.constant 2 : index
    %c0_284 = arith.constant 0 : index
    %262 = vector.load %arg15[%c2_282, %c2_283, %c0_284] : memref<10x10x128xf32, #tpu.memory_space<vmem>>, vector<8x8x128xf32>
    %263 = vector.shape_cast %262 : vector<8x8x128xf32> to vector<64x128xf32>
    %c8_285 = arith.constant 8 : index
    %c0_286 = arith.constant 0 : index
    %c0_287 = arith.constant 0 : index
    %264 = vector.load %arg12[%c8_285, %c0_286, %c0_287] : memref<9x128x256xf32, #tpu.memory_space<vmem>>, vector<1x128x256xf32>
    %265 = vector.shape_cast %264 : vector<1x128x256xf32> to vector<128x256xf32>
    %cst_288 = arith.constant dense<0.000000e+00> : vector<64x256xf32>
    %266 = tpu.matmul %263, %265, %cst_288 {dimension_numbers = #tpu.dot_dimension_numbers<[1], [0], [0], [1], [0, 0, 1, 1], [], []>} : vector<64x128xf32>, vector<128x256xf32>, vector<64x256xf32> -> vector<64x256xf32>
    %267 = arith.addf %261, %266 : vector<64x256xf32>
    %c0_289 = arith.constant 0 : index
    %c0_290 = arith.constant 0 : index
    %268 = vector.load %arg13[%c0_289, %c0_290] : memref<1x256xf32, #tpu.memory_space<vmem>>, vector<1x256xf32>
    %269 = vector.broadcast %268 : vector<1x256xf32> to vector<64x256xf32>
    %270 = arith.addf %267, %269 : vector<64x256xf32>
    %cst_291 = arith.constant 0.000000e+00 : f32
    %271 = vector.broadcast %cst_291 : f32 to vector<64x256xf32>
    %272 = arith.maximumf %270, %271 : vector<64x256xf32>
    %c0_292 = arith.constant 0 : index
    %c0_293 = arith.constant 0 : index
    %c0_294 = arith.constant 0 : index
    %273 = vector.load %arg14[%c0_292, %c0_293, %c0_294] : memref<1x64x256xf32, #tpu.memory_space<vmem>>, vector<1x64x256xf32>
    %274 = vector.shape_cast %273 : vector<1x64x256xf32> to vector<64x256xf32>
    %275 = vector.shape_cast %272 : vector<64x256xf32> to vector<1x64x256xf32>
    tpu.vector_store %arg14[%c0_292, %c0_293, %c0_294], %275 {strides = array<i32>} : memref<1x64x256xf32, #tpu.memory_space<vmem>>, vector<1x64x256xf32>,
    return
  }
  func.func @transform_0(%arg0: i32) -> (i32, i32, i32, i32) {
    %c0_i32 = arith.constant 0 : i32
    %c0_i32_0 = arith.constant 0 : i32
    %c0_i32_1 = arith.constant 0 : i32
    %c0_i32_2 = arith.constant 0 : i32
    return %arg0, %c0_i32, %c0_i32_0, %c0_i32_1 : i32, i32, i32, i32
  }
  func.func @transform_1(%arg0: i32) -> (i32, i32, i32) {
    %c0_i32 = arith.constant 0 : i32
    %c0_i32_0 = arith.constant 0 : i32
    %c0_i32_1 = arith.constant 0 : i32
    %c0_i32_2 = arith.constant 0 : i32
    return %c0_i32, %c0_i32_0, %c0_i32_1 : i32, i32, i32
  }
  func.func @transform_2(%arg0: i32) -> (i32, i32) {
    %c0_i32 = arith.constant 0 : i32
    %c0_i32_0 = arith.constant 0 : i32
    %c0_i32_1 = arith.constant 0 : i32
    return %c0_i32, %c0_i32_0 : i32, i32
  }
  func.func @transform_3(%arg0: i32) -> (i32, i32, i32) {
    %c0_i32 = arith.constant 0 : i32
    %c0_i32_0 = arith.constant 0 : i32
    %c0_i32_1 = arith.constant 0 : i32
    %c0_i32_2 = arith.constant 0 : i32
    return %c0_i32, %c0_i32_0, %c0_i32_1 : i32, i32, i32
  }
  func.func @transform_4(%arg0: i32) -> (i32, i32) {
    %c0_i32 = arith.constant 0 : i32
    %c0_i32_0 = arith.constant 0 : i32
    %c0_i32_1 = arith.constant 0 : i32
    return %c0_i32, %c0_i32_0 : i32, i32
  }
  func.func @transform_5(%arg0: i32) -> (i32, i32) {
    %c0_i32 = arith.constant 0 : i32
    %c0_i32_0 = arith.constant 0 : i32
    %c0_i32_1 = arith.constant 0 : i32
    return %c0_i32, %c0_i32_0 : i32, i32
  }
  func.func @transform_6(%arg0: i32) -> (i32, i32) {
    %c0_i32 = arith.constant 0 : i32
    %c0_i32_0 = arith.constant 0 : i32
    %c0_i32_1 = arith.constant 0 : i32
    return %c0_i32, %c0_i32_0 : i32, i32
  }
  func.func @transform_7(%arg0: i32) -> (i32, i32, i32) {
    %c0_i32 = arith.constant 0 : i32
    %c0_i32_0 = arith.constant 0 : i32
    %c0_i32_1 = arith.constant 0 : i32
    %c0_i32_2 = arith.constant 0 : i32
    return %c0_i32, %c0_i32_0, %c0_i32_1 : i32, i32, i32
  }
  func.func @transform_8(%arg0: i32) -> (i32, i32) {
    %c0_i32 = arith.constant 0 : i32
    %c0_i32_0 = arith.constant 0 : i32
    %c0_i32_1 = arith.constant 0 : i32
    return %c0_i32, %c0_i32_0 : i32, i32
  }
  func.func @transform_9(%arg0: i32) -> (i32, i32) {
    %c0_i32 = arith.constant 0 : i32
    %c0_i32_0 = arith.constant 0 : i32
    %c0_i32_1 = arith.constant 0 : i32
    return %c0_i32, %c0_i32_0 : i32, i32
  }
  func.func @transform_10(%arg0: i32) -> (i32, i32) {
    %c0_i32 = arith.constant 0 : i32
    %c0_i32_0 = arith.constant 0 : i32
    %c0_i32_1 = arith.constant 0 : i32
    return %c0_i32, %c0_i32_0 : i32, i32
  }
  func.func @transform_11(%arg0: i32) -> (i32, i32, i32) {
    %c0_i32 = arith.constant 0 : i32
    %c0_i32_0 = arith.constant 0 : i32
    %c0_i32_1 = arith.constant 0 : i32
    %c0_i32_2 = arith.constant 0 : i32
    return %c0_i32, %c0_i32_0, %c0_i32_1 : i32, i32, i32
  }
  func.func @transform_12(%arg0: i32) -> (i32, i32) {
    %c0_i32 = arith.constant 0 : i32
    %c0_i32_0 = arith.constant 0 : i32
    %c0_i32_1 = arith.constant 0 : i32
    return %c0_i32, %c0_i32_0 : i32, i32
  }
  func.func @transform_13(%arg0: i32) -> (i32, i32, i32) {
    %c0_i32 = arith.constant 0 : i32
    %c0_i32_0 = arith.constant 0 : i32
    %c0_i32_1 = arith.constant 0 : i32
    return %arg0, %c0_i32, %c0_i32_0 : i32, i32, i32
  }
}

module attributes {stable_mosaic.version = 11 : i64} {
  func.func @_stage2_kernel(%arg0: i32, %arg1: memref<1x18x18x64xf32, #tpu.memory_space<vmem>>, %arg2: memref<9x64x128xf32, #tpu.memory_space<vmem>>, %arg3: memref<1x128xf32, #tpu.memory_space<vmem>>, %arg4: memref<1x256x128xf32, #tpu.memory_space<vmem>>) attributes {dimension_semantics = [#tpu.dimension_semantics<parallel>], iteration_bounds = array<i64: 2>, scalar_prefetch = 0 : i64, scratch_operands = 0 : i64, tpu.core_type = #tpu.core_type<tc>, window_params = [{transform_indices = @transform_0, window_bounds = array<i64: 1, 18, 18, 64>}, {pipeline_mode = #tpu.pipeline_mode<synchronous>, transform_indices = @transform_1, window_bounds = array<i64: 9, 64, 128>}, {pipeline_mode = #tpu.pipeline_mode<synchronous>, transform_indices = @transform_2, window_bounds = array<i64: 1, 128>}, {transform_indices = @transform_3, window_bounds = array<i64: 1, 256, 128>}]} {
    %cst = arith.constant 0.000000e+00 : f32
    %0 = vector.broadcast %cst : f32 to vector<256x128xf32>
    %c0 = arith.constant 0 : index
    %c0_0 = arith.constant 0 : index
    %c0_1 = arith.constant 0 : index
    %c0_2 = arith.constant 0 : index
    %1 = vector.load %arg1[%c0, %c0_0, %c0_1, %c0_2] : memref<1x18x18x64xf32, #tpu.memory_space<vmem>>, vector<1x16x16x64xf32>
    %2 = vector.shape_cast %1 : vector<1x16x16x64xf32> to vector<16x16x64xf32>
    %3 = vector.shape_cast %2 : vector<16x16x64xf32> to vector<256x64xf32>
    %c0_3 = arith.constant 0 : index
    %c0_4 = arith.constant 0 : index
    %c0_5 = arith.constant 0 : index
    %4 = vector.load %arg2[%c0_3, %c0_4, %c0_5] : memref<9x64x128xf32, #tpu.memory_space<vmem>>, vector<1x64x128xf32>
    %5 = vector.shape_cast %4 : vector<1x64x128xf32> to vector<64x128xf32>
    %cst_6 = arith.constant dense<0.000000e+00> : vector<256x128xf32>
    %6 = tpu.matmul %3, %5, %cst_6 {dimension_numbers = #tpu.dot_dimension_numbers<[1], [0], [0], [1], [0, 0, 1, 1], [], []>} : vector<256x64xf32>, vector<64x128xf32>, vector<256x128xf32> -> vector<256x128xf32>
    %7 = arith.addf %0, %6 : vector<256x128xf32>
    %c0_7 = arith.constant 0 : index
    %c0_8 = arith.constant 0 : index
    %c1 = arith.constant 1 : index
    %c0_9 = arith.constant 0 : index
    %8 = vector.load %arg1[%c0_7, %c0_8, %c1, %c0_9] : memref<1x18x18x64xf32, #tpu.memory_space<vmem>>, vector<1x16x16x64xf32>
    %9 = vector.shape_cast %8 : vector<1x16x16x64xf32> to vector<16x16x64xf32>
    %10 = vector.shape_cast %9 : vector<16x16x64xf32> to vector<256x64xf32>
    %c1_10 = arith.constant 1 : index
    %c0_11 = arith.constant 0 : index
    %c0_12 = arith.constant 0 : index
    %11 = vector.load %arg2[%c1_10, %c0_11, %c0_12] : memref<9x64x128xf32, #tpu.memory_space<vmem>>, vector<1x64x128xf32>
    %12 = vector.shape_cast %11 : vector<1x64x128xf32> to vector<64x128xf32>
    %cst_13 = arith.constant dense<0.000000e+00> : vector<256x128xf32>
    %13 = tpu.matmul %10, %12, %cst_13 {dimension_numbers = #tpu.dot_dimension_numbers<[1], [0], [0], [1], [0, 0, 1, 1], [], []>} : vector<256x64xf32>, vector<64x128xf32>, vector<256x128xf32> -> vector<256x128xf32>
    %14 = arith.addf %7, %13 : vector<256x128xf32>
    %c0_14 = arith.constant 0 : index
    %c0_15 = arith.constant 0 : index
    %c2 = arith.constant 2 : index
    %c0_16 = arith.constant 0 : index
    %15 = vector.load %arg1[%c0_14, %c0_15, %c2, %c0_16] : memref<1x18x18x64xf32, #tpu.memory_space<vmem>>, vector<1x16x16x64xf32>
    %16 = vector.shape_cast %15 : vector<1x16x16x64xf32> to vector<16x16x64xf32>
    %17 = vector.shape_cast %16 : vector<16x16x64xf32> to vector<256x64xf32>
    %c2_17 = arith.constant 2 : index
    %c0_18 = arith.constant 0 : index
    %c0_19 = arith.constant 0 : index
    %18 = vector.load %arg2[%c2_17, %c0_18, %c0_19] : memref<9x64x128xf32, #tpu.memory_space<vmem>>, vector<1x64x128xf32>
    %19 = vector.shape_cast %18 : vector<1x64x128xf32> to vector<64x128xf32>
    %cst_20 = arith.constant dense<0.000000e+00> : vector<256x128xf32>
    %20 = tpu.matmul %17, %19, %cst_20 {dimension_numbers = #tpu.dot_dimension_numbers<[1], [0], [0], [1], [0, 0, 1, 1], [], []>} : vector<256x64xf32>, vector<64x128xf32>, vector<256x128xf32> -> vector<256x128xf32>
    %21 = arith.addf %14, %20 : vector<256x128xf32>
    %c0_21 = arith.constant 0 : index
    %c1_22 = arith.constant 1 : index
    %c0_23 = arith.constant 0 : index
    %c0_24 = arith.constant 0 : index
    %22 = vector.load %arg1[%c0_21, %c1_22, %c0_23, %c0_24] : memref<1x18x18x64xf32, #tpu.memory_space<vmem>>, vector<1x16x16x64xf32>
    %23 = vector.shape_cast %22 : vector<1x16x16x64xf32> to vector<16x16x64xf32>
    %24 = vector.shape_cast %23 : vector<16x16x64xf32> to vector<256x64xf32>
    %c3 = arith.constant 3 : index
    %c0_25 = arith.constant 0 : index
    %c0_26 = arith.constant 0 : index
    %25 = vector.load %arg2[%c3, %c0_25, %c0_26] : memref<9x64x128xf32, #tpu.memory_space<vmem>>, vector<1x64x128xf32>
    %26 = vector.shape_cast %25 : vector<1x64x128xf32> to vector<64x128xf32>
    %cst_27 = arith.constant dense<0.000000e+00> : vector<256x128xf32>
    %27 = tpu.matmul %24, %26, %cst_27 {dimension_numbers = #tpu.dot_dimension_numbers<[1], [0], [0], [1], [0, 0, 1, 1], [], []>} : vector<256x64xf32>, vector<64x128xf32>, vector<256x128xf32> -> vector<256x128xf32>
    %28 = arith.addf %21, %27 : vector<256x128xf32>
    %c0_28 = arith.constant 0 : index
    %c1_29 = arith.constant 1 : index
    %c1_30 = arith.constant 1 : index
    %c0_31 = arith.constant 0 : index
    %29 = vector.load %arg1[%c0_28, %c1_29, %c1_30, %c0_31] : memref<1x18x18x64xf32, #tpu.memory_space<vmem>>, vector<1x16x16x64xf32>
    %30 = vector.shape_cast %29 : vector<1x16x16x64xf32> to vector<16x16x64xf32>
    %31 = vector.shape_cast %30 : vector<16x16x64xf32> to vector<256x64xf32>
    %c4 = arith.constant 4 : index
    %c0_32 = arith.constant 0 : index
    %c0_33 = arith.constant 0 : index
    %32 = vector.load %arg2[%c4, %c0_32, %c0_33] : memref<9x64x128xf32, #tpu.memory_space<vmem>>, vector<1x64x128xf32>
    %33 = vector.shape_cast %32 : vector<1x64x128xf32> to vector<64x128xf32>
    %cst_34 = arith.constant dense<0.000000e+00> : vector<256x128xf32>
    %34 = tpu.matmul %31, %33, %cst_34 {dimension_numbers = #tpu.dot_dimension_numbers<[1], [0], [0], [1], [0, 0, 1, 1], [], []>} : vector<256x64xf32>, vector<64x128xf32>, vector<256x128xf32> -> vector<256x128xf32>
    %35 = arith.addf %28, %34 : vector<256x128xf32>
    %c0_35 = arith.constant 0 : index
    %c1_36 = arith.constant 1 : index
    %c2_37 = arith.constant 2 : index
    %c0_38 = arith.constant 0 : index
    %36 = vector.load %arg1[%c0_35, %c1_36, %c2_37, %c0_38] : memref<1x18x18x64xf32, #tpu.memory_space<vmem>>, vector<1x16x16x64xf32>
    %37 = vector.shape_cast %36 : vector<1x16x16x64xf32> to vector<16x16x64xf32>
    %38 = vector.shape_cast %37 : vector<16x16x64xf32> to vector<256x64xf32>
    %c5 = arith.constant 5 : index
    %c0_39 = arith.constant 0 : index
    %c0_40 = arith.constant 0 : index
    %39 = vector.load %arg2[%c5, %c0_39, %c0_40] : memref<9x64x128xf32, #tpu.memory_space<vmem>>, vector<1x64x128xf32>
    %40 = vector.shape_cast %39 : vector<1x64x128xf32> to vector<64x128xf32>
    %cst_41 = arith.constant dense<0.000000e+00> : vector<256x128xf32>
    %41 = tpu.matmul %38, %40, %cst_41 {dimension_numbers = #tpu.dot_dimension_numbers<[1], [0], [0], [1], [0, 0, 1, 1], [], []>} : vector<256x64xf32>, vector<64x128xf32>, vector<256x128xf32> -> vector<256x128xf32>
    %42 = arith.addf %35, %41 : vector<256x128xf32>
    %c0_42 = arith.constant 0 : index
    %c2_43 = arith.constant 2 : index
    %c0_44 = arith.constant 0 : index
    %c0_45 = arith.constant 0 : index
    %43 = vector.load %arg1[%c0_42, %c2_43, %c0_44, %c0_45] : memref<1x18x18x64xf32, #tpu.memory_space<vmem>>, vector<1x16x16x64xf32>
    %44 = vector.shape_cast %43 : vector<1x16x16x64xf32> to vector<16x16x64xf32>
    %45 = vector.shape_cast %44 : vector<16x16x64xf32> to vector<256x64xf32>
    %c6 = arith.constant 6 : index
    %c0_46 = arith.constant 0 : index
    %c0_47 = arith.constant 0 : index
    %46 = vector.load %arg2[%c6, %c0_46, %c0_47] : memref<9x64x128xf32, #tpu.memory_space<vmem>>, vector<1x64x128xf32>
    %47 = vector.shape_cast %46 : vector<1x64x128xf32> to vector<64x128xf32>
    %cst_48 = arith.constant dense<0.000000e+00> : vector<256x128xf32>
    %48 = tpu.matmul %45, %47, %cst_48 {dimension_numbers = #tpu.dot_dimension_numbers<[1], [0], [0], [1], [0, 0, 1, 1], [], []>} : vector<256x64xf32>, vector<64x128xf32>, vector<256x128xf32> -> vector<256x128xf32>
    %49 = arith.addf %42, %48 : vector<256x128xf32>
    %c0_49 = arith.constant 0 : index
    %c2_50 = arith.constant 2 : index
    %c1_51 = arith.constant 1 : index
    %c0_52 = arith.constant 0 : index
    %50 = vector.load %arg1[%c0_49, %c2_50, %c1_51, %c0_52] : memref<1x18x18x64xf32, #tpu.memory_space<vmem>>, vector<1x16x16x64xf32>
    %51 = vector.shape_cast %50 : vector<1x16x16x64xf32> to vector<16x16x64xf32>
    %52 = vector.shape_cast %51 : vector<16x16x64xf32> to vector<256x64xf32>
    %c7 = arith.constant 7 : index
    %c0_53 = arith.constant 0 : index
    %c0_54 = arith.constant 0 : index
    %53 = vector.load %arg2[%c7, %c0_53, %c0_54] : memref<9x64x128xf32, #tpu.memory_space<vmem>>, vector<1x64x128xf32>
    %54 = vector.shape_cast %53 : vector<1x64x128xf32> to vector<64x128xf32>
    %cst_55 = arith.constant dense<0.000000e+00> : vector<256x128xf32>
    %55 = tpu.matmul %52, %54, %cst_55 {dimension_numbers = #tpu.dot_dimension_numbers<[1], [0], [0], [1], [0, 0, 1, 1], [], []>} : vector<256x64xf32>, vector<64x128xf32>, vector<256x128xf32> -> vector<256x128xf32>
    %56 = arith.addf %49, %55 : vector<256x128xf32>
    %c0_56 = arith.constant 0 : index
    %c2_57 = arith.constant 2 : index
    %c2_58 = arith.constant 2 : index
    %c0_59 = arith.constant 0 : index
    %57 = vector.load %arg1[%c0_56, %c2_57, %c2_58, %c0_59] : memref<1x18x18x64xf32, #tpu.memory_space<vmem>>, vector<1x16x16x64xf32>
    %58 = vector.shape_cast %57 : vector<1x16x16x64xf32> to vector<16x16x64xf32>
    %59 = vector.shape_cast %58 : vector<16x16x64xf32> to vector<256x64xf32>
    %c8 = arith.constant 8 : index
    %c0_60 = arith.constant 0 : index
    %c0_61 = arith.constant 0 : index
    %60 = vector.load %arg2[%c8, %c0_60, %c0_61] : memref<9x64x128xf32, #tpu.memory_space<vmem>>, vector<1x64x128xf32>
    %61 = vector.shape_cast %60 : vector<1x64x128xf32> to vector<64x128xf32>
    %cst_62 = arith.constant dense<0.000000e+00> : vector<256x128xf32>
    %62 = tpu.matmul %59, %61, %cst_62 {dimension_numbers = #tpu.dot_dimension_numbers<[1], [0], [0], [1], [0, 0, 1, 1], [], []>} : vector<256x64xf32>, vector<64x128xf32>, vector<256x128xf32> -> vector<256x128xf32>
    %63 = arith.addf %56, %62 : vector<256x128xf32>
    %c0_63 = arith.constant 0 : index
    %c0_64 = arith.constant 0 : index
    %64 = vector.load %arg3[%c0_63, %c0_64] : memref<1x128xf32, #tpu.memory_space<vmem>>, vector<1x128xf32>
    %65 = vector.broadcast %64 : vector<1x128xf32> to vector<256x128xf32>
    %66 = arith.addf %63, %65 : vector<256x128xf32>
    %c0_65 = arith.constant 0 : index
    %c0_66 = arith.constant 0 : index
    %c0_67 = arith.constant 0 : index
    %67 = vector.load %arg4[%c0_65, %c0_66, %c0_67] : memref<1x256x128xf32, #tpu.memory_space<vmem>>, vector<1x256x128xf32>
    %68 = vector.shape_cast %67 : vector<1x256x128xf32> to vector<256x128xf32>
    %69 = vector.shape_cast %66 : vector<256x128xf32> to vector<1x256x128xf32>
    tpu.vector_store %arg4[%c0_65, %c0_66, %c0_67], %69 {strides = array<i32>} : memref<1x256x128xf32, #tpu.memory_space<vmem>>, vector<1x256x128xf32>,
    return
  }
  func.func @transform_0(%arg0: i32) -> (i32, i32, i32, i32) {
    %c0_i32 = arith.constant 0 : i32
    %c0_i32_0 = arith.constant 0 : i32
    %c0_i32_1 = arith.constant 0 : i32
    %c0_i32_2 = arith.constant 0 : i32
    return %arg0, %c0_i32, %c0_i32_0, %c0_i32_1 : i32, i32, i32, i32
  }
  func.func @transform_1(%arg0: i32) -> (i32, i32, i32) {
    %c0_i32 = arith.constant 0 : i32
    %c0_i32_0 = arith.constant 0 : i32
    %c0_i32_1 = arith.constant 0 : i32
    %c0_i32_2 = arith.constant 0 : i32
    return %c0_i32, %c0_i32_0, %c0_i32_1 : i32, i32, i32
  }
  func.func @transform_2(%arg0: i32) -> (i32, i32) {
    %c0_i32 = arith.constant 0 : i32
    %c0_i32_0 = arith.constant 0 : i32
    %c0_i32_1 = arith.constant 0 : i32
    return %c0_i32, %c0_i32_0 : i32, i32
  }
  func.func @transform_3(%arg0: i32) -> (i32, i32, i32) {
    %c0_i32 = arith.constant 0 : i32
    %c0_i32_0 = arith.constant 0 : i32
    %c0_i32_1 = arith.constant 0 : i32
    return %arg0, %c0_i32, %c0_i32_0 : i32, i32, i32
  }
}

</mosaic_0001>

<bundles_post_ra>
// kernel: decoder_forward.3
= control target key start
LH: loop header
LB: loop body
LE: loop exit
PB: predicated region body
PF: predicated region fallthrough
CT: control target
= control target key end

     0   :  { %s5326_s12 = smov 0   ;;  %s6979_s0 = inlined_call_operand.vmem [shape: f32[2,18,18,64], index: 0, kind: input, shape index: {}]   ;;  %s6980_s1 = inlined_call_operand.vmem [shape: f32[9,64,128], index: 1, kind: input, shape index: {}]   ;;  %s6981_s2 = inlined_call_operand.vmem [shape: f32[1,128], index: 2, kind: input, shape index: {}]   ;;  %s6982_s3 = inlined_call_operand.vmem [shape: f32[2,256,128], index: 3, kind: output, shape index: {}]  }
   0x1 LB: > { %s3781_s13 = sadd.s32 4294967295, %s5304_s12   ;;  %p3785_p0 = scmp.ge.s32.totalorder %s5304_s12, 1  ;;  %s5304_s12 = sphi %s5326_s12, %s13_s12  }
   0x2   : > { %p137_p1 = scmp.lt.s32.totalorder %s5304_s12, 3 }
   0x4   : > { %p138_p2 = pnand %p3785_p0, %p137_p1 }
   0x6   : > { %141 = sbr.rel (%p138_p2) target bundleno = 515 (0x203), region = 32 }
   0xb   : > { %v3796_v0 = vld [vmem:[%s6980_s1 + $0x78] sm:$0xff]  ;;  %v3795_v1 = vld [vmem:[%s6980_s1 + $0x70] sm:$0xff]  ;;  %p161_p3 = scmp.lt.s32.totalorder %s3781_s13, 1  ;;  %v3794_v2 = vld [vmem:[%s6980_s1 + $0x68] sm:$0xff]  ;;  %vm252_vm0 = vcmask 523264  }
   0xc   : > { %5273 = vmatprep.subr.mxu1 %v3796_v0  ;;  %4697 = vmatprep.subr.mxu0 %v3796_v0  ;;  %v3793_v3 = vld [vmem:[%s6980_s1 + $0x60] sm:$0xff]  ;;  %v3792_v4 = vld [vmem:[%s6980_s1 + $0x58] sm:$0xff]  ;;  %v3791_v5 = vld [vmem:[%s6980_s1 + $0x50] sm:$0xff] }
   0xd   : > { %5281 = vmatpush3.msra.mxu1 %v3796_v0  ;;  %4698 = vmatpush3.msra.mxu0 %v3796_v0  ;;  %s7152_s13 = smov (!%p161_p3, %s3781_s13), 1  ;;  %v3790_v6 = vld [vmem:[%s6980_s1 + $0x48] sm:$0xff]  ;;  %v3789_v7 = vld [vmem:[%s6980_s1 + $0x40] sm:$0xff]  ;;  %v210_v11 = vld [vmem:[%s6980_s1 + $0x38] sm:$0xff] }
   0xe   : > { %5274 = vmatprep.subr.mxu1 %v3795_v1  ;;  %4699 = vmatprep.subr.mxu0 %v3795_v1  ;;  %s5289_s24 = smul.u32 432, %s7152_s13  ;;  %v3868_v13 = vld [vmem:[%s6980_s1 + $0xb8] sm:$0xff]  ;;  %v209_v17 = vld [vmem:[%s6980_s1 + $0x30] sm:$0xff]  ;;  %v208_v23 = vld [vmem:[%s6980_s1 + $0x28] sm:$0xff] }
   0xf   : > { %5282 = vmatpush3.msra.mxu1 %v3795_v1  ;;  %4700 = vmatpush3.msra.mxu0 %v3795_v1  ;;  %v3867_v19 = vld [vmem:[%s6980_s1 + $0xb0] sm:$0xff]  ;;  %v3866_v25 = vld [vmem:[%s6980_s1 + $0xa8] sm:$0xff]  ;;  %v207_v29 = vld [vmem:[%s6980_s1 + $0x20] sm:$0xff] }
  0x10   : > { %5275 = vmatprep.subr.mxu1 %v3794_v2  ;;  %4701 = vmatprep.subr.mxu0 %v3794_v2  ;;  %s5361_s4 = scalar_lea.vmem %s6979_s0, %s5289_s24  ;;  %v3865_v31 = vld [vmem:[%s6980_s1 + $0xa0] sm:$0xff]  ;;  %v206_v35 = vld [vmem:[%s6980_s1 + $0x18] sm:$0xff]  ;;  %v205_v41 = vld [vmem:[%s6980_s1 + $0x10] sm:$0xff] }
  0x11   : > { %5283 = vmatpush3.msra.mxu1 %v3794_v2  ;;  %4702 = vmatpush3.msra.mxu0 %v3794_v2  ;;  %v5367_v8 = vld [vmem:[%s5361_s4 + $0xc1] sm:$0xff]  ;;  %v5371_v10 = vld [vmem:[%s5361_s4 + $0xc9] sm:$0xff]  ;;  %v5384_v14 = vld [vmem:[%s5361_s4 + $0xd9] sm:$0xff] }
  0x12   : > { %5276 = vmatprep.subr.mxu1 %v3793_v3  ;;  %4703 = vmatprep.subr.mxu0 %v3793_v3  ;;  %v211_v9 = vld [vmem:[%s5361_s4 + $0x1] sm:$0xff]  ;;  %v212_v12 = vld [vmem:[%s5361_s4 + $0x9] sm:$0xff]  ;;  %v5389_v15 = vld [vmem:[%s5361_s4 + $0x19] sm:$0xff] }
  0x13   : > { %5284 = vmatpush3.msra.mxu1 %v3793_v3  ;;  %4704 = vmatpush3.msra.mxu0 %v3793_v3  ;;  %v5393_v16 = vld [vmem:[%s5361_s4 + $0xe1] sm:$0xff]  ;;  %v5409_v20 = vld [vmem:[%s5361_s4 + $0xf1] sm:$0xff]  ;;  %v5419_v22 = vld [vmem:[%s5361_s4 + $0xf9] sm:$0xff] }
  0x14   : > { %5277 = vmatprep.subr.mxu1 %v3792_v4  ;;  %4705 = vmatprep.subr.mxu0 %v3792_v4  ;;  %v5401_v18 = vld [vmem:[%s5361_s4 + $0x21] sm:$0xff]  ;;  %v5414_v21 = vld [vmem:[%s5361_s4 + $0x31] sm:$0xff]  ;;  %v5427_v24 = vld [vmem:[%s5361_s4 + $0x39] sm:$0xff] }
  0x15   : > { %5285 = vmatpush3.msra.mxu1 %v3792_v4  ;;  %4706 = vmatpush3.msra.mxu0 %v3792_v4  ;;  %v5435_v26 = vld [vmem:[%s5361_s4 + $0x109] sm:$0xff]  ;;  %v5445_v28 = vld [vmem:[%s5361_s4 + $0x111] sm:$0xff]  ;;  %v5461_v32 = vld [vmem:[%s5361_s4 + $0x121] sm:$0xff] }
  0x16   : > { %5278 = vmatprep.subr.mxu1 %v3791_v5  ;;  %4707 = vmatprep.subr.mxu0 %v3791_v5  ;;  %v5440_v27 = vld [vmem:[%s5361_s4 + $0x49] sm:$0xff]  ;;  %v5453_v30 = vld [vmem:[%s5361_s4 + $0x51] sm:$0xff]  ;;  %v5466_v33 = vld [vmem:[%s5361_s4 + $0x61] sm:$0xff] }
  0x17   : > { %5286 = vmatpush3.msra.mxu1 %v3791_v5  ;;  %4708 = vmatpush3.msra.mxu0 %v3791_v5  ;;  %v5471_v34 = vld [vmem:[%s5361_s4 + $0x129] sm:$0xff]  ;;  %v3864_v37 = vld [vmem:[%s6980_s1 + $0x98] sm:$0xff]  ;;  %v5497_v40 = vld [vmem:[%s5361_s4 + $0x141] sm:$0xff] }
  0x18   : > { %5279 = vmatprep.subr.mxu1 %v3790_v6  ;;  %4709 = vmatprep.subr.mxu0 %v3790_v6  ;;  %v5479_v36 = vld [vmem:[%s5361_s4 + $0x69] sm:$0xff]  ;;  %v5487_v38 = vld [vmem:[%s5361_s4 + $0x139] sm:$0xff]  ;;  %v5505_v42 = vld [vmem:[%s5361_s4 + $0x81] sm:$0xff] }
  0x19   : > { %5287 = vmatpush3.msra.mxu1 %v3790_v6  ;;  %4710 = vmatpush3.msra.mxu0 %v3790_v6  ;;  %v5492_v39 = vld [vmem:[%s5361_s4 + $0x79] sm:$0xff]  ;;  %v3863_v43 = vld [vmem:[%s6980_s1 + $0x90] sm:$0xff]  ;;  %v204_v47 = vld [vmem:[%s6980_s1 + $0x8] sm:$0xff] }
  0x1a   : > { %5280 = vmatprep.subr.mxu1 %v3789_v7  ;;  %4711 = vmatprep.subr.mxu0 %v3789_v7  ;;  %v5513_v44 = vld [vmem:[%s5361_s4 + $0x151] sm:$0xff]  ;;  %v5523_v46 = vld [vmem:[%s5361_s4 + $0x159] sm:$0xff]  ;;  %v3862_v49 = vld [vmem:[%s6980_s1 + $0x88] sm:$0xff] }
  0x1b   : > { %5288 = vmatpush3.msra.mxu1 %v3789_v7  ;;  %4737 = vmatprep.mubr.msk.f32.mxu1 %vm252_vm0, %v5367_v8  ;;  %v5518_v45 = vld [vmem:[%s5361_s4 + $0x91] sm:$0xff]  ;;  %v5531_v48 = vld [vmem:[%s5361_s4 + $0x99] sm:$0xff]  ;;  %v5539_v50 = vld [vmem:[%s5361_s4 + $0x169] sm:$0xff] }
  0x1c   : > { %4712 = vmatpush3.msra.mxu0 %v3789_v7  ;;  %4713 = vmatprep.mubr.msk.f32.mxu0 %vm252_vm0, %v211_v9  ;;  %v5544_v51 = vld [vmem:[%s5361_s4 + $0xa9] sm:$0xff]  ;;  %v5549_v52 = vld [vmem:[%s5361_s4 + $0x171] sm:$0xff]  ;;  %v203_v53 = vld [vmem:[%s6980_s1] sm:$0xff] }
  0x1d   : > { %4738 = vmatmul.mubr.msk.f32.vlgmr.msra.gmra.mxu1 %vm252_vm0, %v5371_v10  ;;  %4761 = vmatprep.subr.mxu1 %v210_v11  ;;  %7013 = vst [vmem:[#allocation2_spill] sm:$0xff] %v5549_v52  ;;  %v5557_v54 = vld [vmem:[%s5361_s4 + $0xb1] sm:$0xff]  ;;  %v3861_v55 = vld [vmem:[%s6980_s1 + $0x80] sm:$0xff]  ;;  %v172_v58 = vld [vmem:[%s5361_s4 + $0x8] sm:$0xff] }
  0x1e   : > { %4714 = vmatmul.mubr.msk.f32.vlgmr.msra.gmra.mxu0 %vm252_vm0, %v212_v12  ;;  %4762 = vmatpush3.msra.mxu1 %v210_v11  ;;  %v171_v56 = vld [vmem:[%s5361_s4] sm:$0xff]  ;;  %v3940_v59 = vld [vmem:[%s6980_s1 + $0xf8] sm:$0xff]  ;;  %v896_v60 = vld [vmem:[%s5361_s4 + $0xa] sm:$0xff] }
  0x1f   : > { %4825 = vmatprep.subr.mxu0 %v3868_v13  ;;  %4740 = vmatprep.mubr.msk.f32.mxu1 %vm252_vm0, %v5384_v14  ;;  %v895_v57 = vld [vmem:[%s5361_s4 + $0x2] sm:$0xff]  ;;  %v4012_v61 = vld [vmem:[%s6980_s1 + $0x138] sm:$0xff]  ;;  %v3939_v1 = vld [vmem:[%s6980_s1 + $0xf0] sm:$0xff] }
  0x20   : > { %4826 = vmatpush3.msra.mxu0 %v3868_v13  ;;  %4716 = vmatprep.mubr.msk.f32.mxu0 %vm252_vm0, %v5389_v15  ;;  %v5581_v62 = vld [vmem:[%s5361_s4 + $0x18] sm:$0xff]  ;;  %v5589_v0 = vld [vmem:[%s5361_s4 + $0x20] sm:$0xff]  ;;  %v5600_v3 = vld [vmem:[%s5361_s4 + $0x30] sm:$0xff] }
  0x21   : > { %4741 = vmatmul.mubr.msk.f32.gmra.mxu1 %vm252_vm0, %v5393_v16  ;;  %4763 = vmatprep.subr.mxu1 %v209_v17  ;;  %v5585_v63 = vld [vmem:[%s5361_s4 + $0x1a] sm:$0xff]  ;;  %v5597_v2 = vld [vmem:[%s5361_s4 + $0x22] sm:$0xff]  ;;  %v5605_v4 = vld [vmem:[%s5361_s4 + $0x32] sm:$0xff] }
  0x22   : > { %4717 = vmatmul.mubr.msk.f32.gmra.mxu0 %vm252_vm0, %v5401_v18  ;;  %4764 = vmatpush3.msra.mxu1 %v209_v17  ;;  %7014 = vst [vmem:[#allocation3_spill] sm:$0xff] %v5585_v63  ;;  %7015 = vst [vmem:[#allocation4_spill] sm:$0xff] %v5597_v2  ;;  %v4011_v5 = vld [vmem:[%s6980_s1 + $0x130] sm:$0xff]  ;;  %v3938_v6 = vld [vmem:[%s6980_s1 + $0xe8] sm:$0xff] }
  0x23   : > { %4827 = vmatprep.subr.mxu0 %v3867_v19  ;;  %4743 = vmatprep.mubr.msk.f32.mxu1 %vm252_vm0, %v5409_v20  ;;  %7016 = vst [vmem:[#allocation5_spill] sm:$0xff] %v5605_v4  ;;  %v5620_v7 = vld [vmem:[%s5361_s4 + $0x38] sm:$0xff]  ;;  %v5628_v11 = vld [vmem:[%s5361_s4 + $0x48] sm:$0xff]  ;;  %v3937_v17 = vld [vmem:[%s6980_s1 + $0xe0] sm:$0xff] }
  0x24   : > { %4828 = vmatpush3.msra.mxu0 %v3867_v19  ;;  %4719 = vmatprep.mubr.msk.f32.mxu0 %vm252_vm0, %v5414_v21  ;;  %v5625_v9 = vld [vmem:[%s5361_s4 + $0x3a] sm:$0xff]  ;;  %v5631_v12 = vld [vmem:[%s5361_s4 + $0x4a] sm:$0xff] }
  0x25   : > { %4744 = vmatmul.mubr.msk.f32.gmra.mxu1 %vm252_vm0, %v5419_v22  ;;  %4765 = vmatprep.subr.mxu1 %v208_v23  ;;  %7017 = vst [vmem:[#allocation6_spill] sm:$0xff] %v5625_v9  ;;  %7018 = vst [vmem:[#allocation7_spill] sm:$0xff] %v5631_v12  ;;  %v4010_v13 = vld [vmem:[%s6980_s1 + $0x128] sm:$0xff]  ;;  %v5646_v19 = vld [vmem:[%s5361_s4 + $0x50] sm:$0xff] }
  0x26   : > { %4720 = vmatmul.mubr.msk.f32.gmra.mxu0 %vm252_vm0, %v5427_v24  ;;  %4766 = vmatpush3.msra.mxu1 %v208_v23  ;;  %v5651_v23 = vld [vmem:[%s5361_s4 + $0x52] sm:$0xff] }
  0x27   : > { %4829 = vmatprep.subr.mxu0 %v3866_v25  ;;  %4746 = vmatprep.mubr.msk.f32.mxu1 %vm252_vm0, %v5435_v26  ;;  %7019 = vst [vmem:[#allocation8_spill] sm:$0xff] %v5651_v23 }
  0x28   : > { %4830 = vmatpush3.msra.mxu0 %v3866_v25  ;;  %4722 = vmatprep.mubr.msk.f32.mxu0 %vm252_vm0, %v5440_v27  ;;  %v5654_v25 = vld [vmem:[%s5361_s4 + $0x60] sm:$0xff] }
  0x29   : > { %4747 = vmatmul.mubr.msk.f32.gmra.mxu1 %vm252_vm0, %v5445_v28  ;;  %4767 = vmatprep.subr.mxu1 %v207_v29 }
  0x2a   : > { %4723 = vmatmul.mubr.msk.f32.gmra.mxu0 %vm252_vm0, %v5453_v30  ;;  %4768 = vmatpush3.msra.mxu1 %v207_v29  ;;  %v5657_v29 = vld [vmem:[%s5361_s4 + $0x62] sm:$0xff] }
  0x2b   : > { %4831 = vmatprep.subr.mxu0 %v3865_v31  ;;  %4749 = vmatprep.mubr.msk.f32.mxu1 %vm252_vm0, %v5461_v32  ;;  %7020 = vst [vmem:[#allocation9_spill] sm:$0xff] %v5657_v29 }
  0x2c   : > { %4832 = vmatpush3.msra.mxu0 %v3865_v31  ;;  %4725 = vmatprep.mubr.msk.f32.mxu0 %vm252_vm0, %v5466_v33  ;;  %v4009_v31 = vld [vmem:[%s6980_s1 + $0x120] sm:$0xff] }
  0x2d   : > { %4750 = vmatmul.mubr.msk.f32.gmra.mxu1 %vm252_vm0, %v5471_v34  ;;  %4769 = vmatprep.subr.mxu1 %v206_v35 }
  0x2e   : > { %4726 = vmatmul.mubr.msk.f32.gmra.mxu0 %vm252_vm0, %v5479_v36  ;;  %4770 = vmatpush3.msra.mxu1 %v206_v35  ;;  %v3936_v35 = vld [vmem:[%s6980_s1 + $0xd8] sm:$0xff] }
  0x2f   : > { %4833 = vmatprep.subr.mxu0 %v3864_v37  ;;  %4752 = vmatprep.mubr.msk.f32.mxu1 %vm252_vm0, %v5487_v38 }
  0x30   : > { %4834 = vmatpush3.msra.mxu0 %v3864_v37  ;;  %4728 = vmatprep.mubr.msk.f32.mxu0 %vm252_vm0, %v5492_v39  ;;  %v5672_v37 = vld [vmem:[%s5361_s4 + $0x68] sm:$0xff] }
  0x31   : > { %4753 = vmatmul.mubr.msk.f32.gmra.mxu1 %vm252_vm0, %v5497_v40  ;;  %4771 = vmatprep.subr.mxu1 %v205_v41 }
  0x32   : > { %4729 = vmatmul.mubr.msk.f32.gmra.mxu0 %vm252_vm0, %v5505_v42  ;;  %4772 = vmatpush3.msra.mxu1 %v205_v41  ;;  %v5677_v41 = vld [vmem:[%s5361_s4 + $0x6a] sm:$0xff] }
  0x33   : > { %4835 = vmatprep.subr.mxu0 %v3863_v43  ;;  %4755 = vmatprep.mubr.msk.f32.mxu1 %vm252_vm0, %v5513_v44  ;;  %7021 = vst [vmem:[#allocation10_spill] sm:$0xff] %v5677_v41 }
  0x34   : > { %4836 = vmatpush3.msra.mxu0 %v3863_v43  ;;  %4731 = vmatprep.mubr.msk.f32.mxu0 %vm252_vm0, %v5518_v45  ;;  %v5680_v43 = vld [vmem:[%s5361_s4 + $0x78] sm:$0xff] }
  0x35   : > { %4756 = vmatmul.mubr.msk.f32.gmra.mxu1 %vm252_vm0, %v5523_v46  ;;  %4773 = vmatprep.subr.mxu1 %v204_v47 }
  0x36   : > { %4732 = vmatmul.mubr.msk.f32.gmra.mxu0 %vm252_vm0, %v5531_v48  ;;  %4774 = vmatpush3.msra.mxu1 %v204_v47  ;;  %v5683_v47 = vld [vmem:[%s5361_s4 + $0x7a] sm:$0xff] }
  0x37   : > { %4837 = vmatprep.subr.mxu0 %v3862_v49  ;;  %4758 = vmatprep.mubr.msk.f32.mxu1 %vm252_vm0, %v5539_v50  ;;  %7022 = vst [vmem:[#allocation11_spill] sm:$0xff] %v5683_v47 }
  0x38   : > { %4838 = vmatpush3.msra.mxu0 %v3862_v49  ;;  %4734 = vmatprep.mubr.msk.f32.mxu0 %vm252_vm0, %v5544_v51  ;;  %v4008_v49 = vld [vmem:[%s6980_s1 + $0x118] sm:$0xff] }
  0x39   : > { %4759 = vmatmul.mubr.msk.f32.gmra.mxu1 %vm252_vm0, %v5549_v52  ;;  %4775 = vmatprep.subr.mxu1 %v203_v53  ;;  %v5916_v52 = vld [vmem:[%s5361_s4 + $0x16a] sm:$0xff] }
  0x3a   : > { %4735 = vmatmul.mubr.msk.f32.gmra.mxu0 %vm252_vm0, %v5557_v54  ;;  %4776 = vmatpush3.msra.mxu1 %v203_v53  ;;  %v3935_v53 = vld [vmem:[%s6980_s1 + $0xd0] sm:$0xff]  ;;  %7041 = vst [vmem:[#allocation30_spill] sm:$0xff] %v5916_v52 }
  0x3b   : > { %4839 = vmatprep.subr.mxu0 %v3861_v55  ;;  %4777 = vmatprep.mubr.msk.f32.mxu1 %vm252_vm0, %v171_v56  ;;  %v5703_v56 = vld [vmem:[%s5361_s4 + $0x82] sm:$0xff] }
  0x3c   : > { %4840 = vmatpush3.msra.mxu0 %v3861_v55  ;;  %4841 = vmatprep.mubr.msk.f32.mxu0 %vm252_vm0, %v895_v57  ;;  %v5698_v55 = vld [vmem:[%s5361_s4 + $0x80] sm:$0xff]  ;;  %7023 = vst [vmem:[#allocation12_spill] sm:$0xff] %v5703_v56  ;;  %v5706_v57 = vld [vmem:[%s5361_s4 + $0x90] sm:$0xff] }
  0x3d   : > { %4778 = vmatmul.mubr.msk.f32.vlgmr.msra.gmra.mxu1 %vm252_vm0, %v172_v58  ;;  %4889 = vmatprep.subr.mxu1 %v3940_v59  ;;  %v5709_v58 = vld [vmem:[%s5361_s4 + $0x92] sm:$0xff] }
  0x3e   : > { %4842 = vmatmul.mubr.msk.f32.vlgmr.msra.gmra.mxu0 %vm252_vm0, %v896_v60  ;;  %4890 = vmatpush3.msra.mxu1 %v3940_v59  ;;  %7024 = vst [vmem:[#allocation13_spill] sm:$0xff] %v5709_v58  ;;  %v4007_v59 = vld [vmem:[%s6980_s1 + $0x110] sm:$0xff]  ;;  %v3934_v60 = vld [vmem:[%s6980_s1 + $0xc8] sm:$0xff] }
  0x3f   : > { %4953 = vmatprep.subr.mxu0 %v4012_v61  ;;  %4780 = vmatprep.mubr.msk.f32.mxu1 %vm252_vm0, %v5581_v62 }
  0x40   : > { %4954 = vmatpush3.msra.mxu0 %v4012_v61  ;;  %4844 = vmatprep.mubr.msk.f32.mxu0 %vm252_vm0, %v5585_v63  ;;  %v5724_v61 = vld [vmem:[%s5361_s4 + $0x98] sm:$0xff]  ;;  %v5913_v63 = vld [vmem:[%s5361_s4 + $0x168] sm:$0xff] }
  0x41   : > { %4781 = vmatmul.mubr.msk.f32.gmra.mxu1 %vm252_vm0, %v5589_v0  ;;  %4891 = vmatprep.subr.mxu1 %v3939_v1 }
  0x42   : > { %4845 = vmatmul.mubr.msk.f32.gmra.mxu0 %vm252_vm0, %v5597_v2  ;;  %4783 = vmatprep.mubr.msk.f32.mxu1 %vm252_vm0, %v5600_v3  ;;  %v5896_v2 = vld [vmem:[%s5361_s4 + $0x152] sm:$0xff] }
  0x43   : > { %4847 = vmatprep.mubr.msk.f32.mxu0 %vm252_vm0, %v5605_v4  ;;  %4892 = vmatpush3.msra.mxu1 %v3939_v1  ;;  %v5729_v1 = vld [vmem:[%s5361_s4 + $0x9a] sm:$0xff]  ;;  %v5893_v4 = vld [vmem:[%s5361_s4 + $0x150] sm:$0xff]  ;;  %7040 = vst [vmem:[#allocation29_spill] sm:$0xff] %v5896_v2 }
  0x44   : > { %4955 = vmatprep.subr.mxu0 %v4011_v5  ;;  %4893 = vmatprep.subr.mxu1 %v3938_v6  ;;  %7025 = vst [vmem:[#allocation14_spill] sm:$0xff] %v5729_v1 }
  0x45   : > { %4784 = vmatmul.mubr.msk.f32.gmra.mxu1 %vm252_vm0, %v5620_v7  ;;  %4956 = vmatpush3.msra.mxu0 %v4011_v5  ;;  %v5732_v5 = vld [vmem:[%s5361_s4 + $0xa8] sm:$0xff] }
  0x46   : > { %4848 = vmatmul.mubr.msk.f32.gmra.mxu0 %vm252_vm0, %v5625_v9  ;;  %4786 = vmatprep.mubr.msk.f32.mxu1 %vm252_vm0, %v5628_v11  ;;  %v5876_v9 = vld [vmem:[%s5361_s4 + $0x13a] sm:$0xff] }
  0x47   : > { %4850 = vmatprep.mubr.msk.f32.mxu0 %vm252_vm0, %v5631_v12  ;;  %4894 = vmatpush3.msra.mxu1 %v3938_v6  ;;  %v5735_v6 = vld [vmem:[%s5361_s4 + $0xaa] sm:$0xff]  ;;  %v5873_v12 = vld [vmem:[%s5361_s4 + $0x138] sm:$0xff]  ;;  %7038 = vst [vmem:[#allocation27_spill] sm:$0xff] %v5876_v9 }
  0x48   : > { %4957 = vmatprep.subr.mxu0 %v4010_v13  ;;  %4895 = vmatprep.subr.mxu1 %v3937_v17  ;;  %7026 = vst [vmem:[#allocation15_spill] sm:$0xff] %v5735_v6 }
  0x49   : > { %4787 = vmatmul.mubr.msk.f32.gmra.mxu1 %vm252_vm0, %v5646_v19  ;;  %4958 = vmatpush3.msra.mxu0 %v4010_v13  ;;  %v4006_v13 = vld [vmem:[%s6980_s1 + $0x108] sm:$0xff] }
  0x4a   : > { %4851 = vmatmul.mubr.msk.f32.gmra.mxu0 %vm252_vm0, %v5651_v23  ;;  %4789 = vmatprep.mubr.msk.f32.mxu1 %vm252_vm0, %v5654_v25  ;;  %v5856_v23 = vld [vmem:[%s5361_s4 + $0x122] sm:$0xff] }
  0x4b   : > { %4853 = vmatprep.mubr.msk.f32.mxu0 %vm252_vm0, %v5657_v29  ;;  %4896 = vmatpush3.msra.mxu1 %v3937_v17  ;;  %v3933_v17 = vld [vmem:[%s6980_s1 + $0xc0] sm:$0xff]  ;;  %7036 = vst [vmem:[#allocation25_spill] sm:$0xff] %v5856_v23 }
  0x4c   : > { %4959 = vmatprep.subr.mxu0 %v4009_v31  ;;  %4897 = vmatprep.subr.mxu1 %v3936_v35  ;;  %v5853_v29 = vld [vmem:[%s5361_s4 + $0x120] sm:$0xff] }
  0x4d   : > { %4790 = vmatmul.mubr.msk.f32.gmra.mxu1 %vm252_vm0, %v5672_v37  ;;  %4960 = vmatpush3.msra.mxu0 %v4009_v31  ;;  %v5750_v31 = vld [vmem:[%s5361_s4 + $0xb0] sm:$0xff] }
  0x4e   : > { %4854 = vmatmul.mubr.msk.f32.gmra.mxu0 %vm252_vm0, %v5677_v41  ;;  %4792 = vmatprep.mubr.msk.f32.mxu1 %vm252_vm0, %v5680_v43  ;;  %v5836_v41 = vld [vmem:[%s5361_s4 + $0x10a] sm:$0xff] }
  0x4f   : > { %4856 = vmatprep.mubr.msk.f32.mxu0 %vm252_vm0, %v5683_v47  ;;  %4898 = vmatpush3.msra.mxu1 %v3936_v35  ;;  %v5755_v35 = vld [vmem:[%s5361_s4 + $0xb2] sm:$0xff]  ;;  %v5833_v47 = vld [vmem:[%s5361_s4 + $0x108] sm:$0xff]  ;;  %7034 = vst [vmem:[#allocation23_spill] sm:$0xff] %v5836_v41 }
  0x50   : > { %4961 = vmatprep.subr.mxu0 %v4008_v49  ;;  %4899 = vmatprep.subr.mxu1 %v3935_v53  ;;  %7027 = vst [vmem:[#allocation16_spill] sm:$0xff] %v5755_v35 }
  0x51   : > { %4793 = vmatmul.mubr.msk.f32.gmra.mxu1 %vm252_vm0, %v5698_v55  ;;  %4962 = vmatpush3.msra.mxu0 %v4008_v49  ;;  %v5758_v49 = vld [vmem:[%s5361_s4 + $0xc0] sm:$0xff] }
  0x52   : > { %4857 = vmatmul.mubr.msk.f32.gmra.mxu0 %vm252_vm0, %v5703_v56  ;;  %4795 = vmatprep.mubr.msk.f32.mxu1 %vm252_vm0, %v5706_v57  ;;  %v5812_v56 = vld [vmem:[%s5361_s4 + $0xf0] sm:$0xff] }
  0x53   : > { %4859 = vmatprep.mubr.msk.f32.mxu0 %vm252_vm0, %v5709_v58  ;;  %4900 = vmatpush3.msra.mxu1 %v3935_v53  ;;  %v5761_v53 = vld [vmem:[%s5361_s4 + $0xc2] sm:$0xff]  ;;  %v5789_v58 = vld [vmem:[%s5361_s4 + $0xda] sm:$0xff] }
  0x54   : > { %4963 = vmatprep.subr.mxu0 %v4007_v59  ;;  %4901 = vmatprep.subr.mxu1 %v3934_v60  ;;  %7028 = vst [vmem:[#allocation17_spill] sm:$0xff] %v5761_v53  ;;  %7030 = vst [vmem:[#allocation19_spill] sm:$0xff] %v5789_v58 }
  0x55   : > { %4796 = vmatmul.mubr.msk.f32.gmra.mxu1 %vm252_vm0, %v5724_v61  ;;  %4964 = vmatpush3.msra.mxu0 %v4007_v59  ;;  %v4005_v59 = vld [vmem:[%s6980_s1 + $0x100] sm:$0xff] }
  0x56   : > { %4860 = vmatmul.mubr.msk.f32.gmra.mxu0 %vm252_vm0, %v5729_v1  ;;  %4798 = vmatprep.mubr.msk.f32.mxu1 %vm252_vm0, %v5732_v5  ;;  %v5786_v1 = vld [vmem:[%s5361_s4 + $0xd8] sm:$0xff] }
  0x57   : > { %4862 = vmatprep.mubr.msk.f32.mxu0 %vm252_vm0, %v5735_v6  ;;  %4902 = vmatpush3.msra.mxu1 %v3934_v60  ;;  %v5771_v6 = vld [vmem:[%s6980_s1 + $0x178] sm:$0xff]  ;;  %v5778_v60 = vld [vmem:[%s5361_s4 + $0xc8] sm:$0xff] }
  0x58   : > { %4965 = vmatprep.subr.mxu0 %v4006_v13  ;;  %4903 = vmatprep.subr.mxu1 %v3933_v17 }
  0x59   : > { %4799 = vmatmul.mubr.msk.f32.gmra.mxu1 %vm252_vm0, %v5750_v31  ;;  %4966 = vmatpush3.msra.mxu0 %v4006_v13  ;;  %v5783_v13 = vld [vmem:[%s5361_s4 + $0xca] sm:$0xff] }
  0x5a   : > { %4863 = vmatmul.mubr.msk.f32.gmra.mxu0 %vm252_vm0, %v5755_v35  ;;  %4801 = vmatprep.mubr.msk.f32.mxu1 %vm252_vm0, %v5758_v49  ;;  %7029 = vst [vmem:[#allocation18_spill] sm:$0xff] %v5783_v13  ;;  %v5795_v35 = vld [vmem:[%s6980_s1 + $0x1b8] sm:$0xff] }
  0x5b   : > { %4865 = vmatprep.mubr.msk.f32.mxu0 %vm252_vm0, %v5761_v53  ;;  %4904 = vmatpush3.msra.mxu1 %v3933_v17  ;;  %v5804_v17 = vld [vmem:[%s5361_s4 + $0xe0] sm:$0xff] }
  0x5c   : > { %4967 = vmatprep.subr.mxu0 %v4005_v59  ;;  %5017 = vmatprep.subr.mxu1 %v5771_v6  ;;  %v5809_v53 = vld [vmem:[%s5361_s4 + $0xe2] sm:$0xff] }
  0x5d   : > { %4802 = vmatmul.mubr.msk.f32.gmra.mxu1 %vm252_vm0, %v5778_v60  ;;  %4968 = vmatpush3.msra.mxu0 %v4005_v59  ;;  %7031 = vst [vmem:[#allocation20_spill] sm:$0xff] %v5809_v53  ;;  %v5816_v59 = vld [vmem:[%s5361_s4 + $0xf2] sm:$0xff] }
  0x5e   : > { %4866 = vmatmul.mubr.msk.f32.gmra.mxu0 %vm252_vm0, %v5783_v13  ;;  %4804 = vmatprep.mubr.msk.f32.mxu1 %vm252_vm0, %v5786_v1  ;;  %7032 = vst [vmem:[#allocation21_spill] sm:$0xff] %v5816_v59  ;;  %v5830_v13 = vld [vmem:[%s5361_s4 + $0xfa] sm:$0xff] }
  0x5f   : > { %4868 = vmatprep.mubr.msk.f32.mxu0 %vm252_vm0, %v5789_v58  ;;  %5081 = vmatprep.subr.mxu0 %v5795_v35  ;;  %v5825_v58 = vld [vmem:[%s5361_s4 + $0xf8] sm:$0xff]  ;;  %7033 = vst [vmem:[#allocation22_spill] sm:$0xff] %v5830_v13 }
  0x61   : > { %4805 = vmatmul.mubr.msk.f32.gmra.mxu1 %vm252_vm0, %v5804_v17 }
  0x62   : > { %4869 = vmatmul.mubr.msk.f32.gmra.mxu0 %vm252_vm0, %v5809_v53  ;;  %4807 = vmatprep.mubr.msk.f32.mxu1 %vm252_vm0, %v5812_v56  ;;  %v5845_v53 = vld [vmem:[%s5361_s4 + $0x110] sm:$0xff] }
  0x63   : > { %4871 = vmatprep.mubr.msk.f32.mxu0 %vm252_vm0, %v5816_v59  ;;  %v5850_v59 = vld [vmem:[%s5361_s4 + $0x112] sm:$0xff] }
  0x64   : > { %7035 = vst [vmem:[#allocation24_spill] sm:$0xff] %v5850_v59 }
  0x65   : > { %4808 = vmatmul.mubr.msk.f32.gmra.mxu1 %vm252_vm0, %v5825_v58 }
  0x66   : > { %4872 = vmatmul.mubr.msk.f32.gmra.mxu0 %vm252_vm0, %v5830_v13  ;;  %4810 = vmatprep.mubr.msk.f32.mxu1 %vm252_vm0, %v5833_v47  ;;  %v5865_v13 = vld [vmem:[%s5361_s4 + $0x128] sm:$0xff] }
  0x67   : > { %4874 = vmatprep.mubr.msk.f32.mxu0 %vm252_vm0, %v5836_v41  ;;  %v5870_v41 = vld [vmem:[%s5361_s4 + $0x12a] sm:$0xff] }
  0x68   : > { %7037 = vst [vmem:[#allocation26_spill] sm:$0xff] %v5870_v41 }
  0x69   : > { %4811 = vmatmul.mubr.msk.f32.gmra.mxu1 %vm252_vm0, %v5845_v53 }
  0x6a   : > { %4875 = vmatmul.mubr.msk.f32.gmra.mxu0 %vm252_vm0, %v5850_v59  ;;  %4813 = vmatprep.mubr.msk.f32.mxu1 %vm252_vm0, %v5853_v29  ;;  %v5885_v59 = vld [vmem:[%s5361_s4 + $0x140] sm:$0xff] }
  0x6b   : > { %4877 = vmatprep.mubr.msk.f32.mxu0 %vm252_vm0, %v5856_v23  ;;  %v5890_v23 = vld [vmem:[%s5361_s4 + $0x142] sm:$0xff] }
  0x6c   : > { %7039 = vst [vmem:[#allocation28_spill] sm:$0xff] %v5890_v23 }
  0x6d   : > { %4814 = vmatmul.mubr.msk.f32.gmra.mxu1 %vm252_vm0, %v5865_v13 }
  0x6e   : > { %4878 = vmatmul.mubr.msk.f32.gmra.mxu0 %vm252_vm0, %v5870_v41  ;;  %4816 = vmatprep.mubr.msk.f32.mxu1 %vm252_vm0, %v5873_v12  ;;  %v5905_v41 = vld [vmem:[%s5361_s4 + $0x158] sm:$0xff] }
  0x6f   : > { %4880 = vmatprep.mubr.msk.f32.mxu0 %vm252_vm0, %v5876_v9  ;;  %v5910_v9 = vld [vmem:[%s5361_s4 + $0x15a] sm:$0xff] }
  0x71   : > { %4817 = vmatmul.mubr.msk.f32.gmra.mxu1 %vm252_vm0, %v5885_v59 }
  0x72   : > { %4881 = vmatmul.mubr.msk.f32.gmra.mxu0 %vm252_vm0, %v5890_v23  ;;  %4819 = vmatprep.mubr.msk.f32.mxu1 %vm252_vm0, %v5893_v4  ;;  %v5925_v23 = vld [vmem:[%s5361_s4 + $0x170] sm:$0xff] }
  0x73   : > { %4883 = vmatprep.mubr.msk.f32.mxu0 %vm252_vm0, %v5896_v2  ;;  %v5930_v2 = vld [vmem:[%s5361_s4 + $0x172] sm:$0xff] }
  0x74   : > { %7042 = vst [vmem:[#allocation31_spill] sm:$0xff] %v5930_v2 }
  0x75   : > { %4820 = vmatmul.mubr.msk.f32.gmra.mxu1 %vm252_vm0, %v5905_v41 }
  0x76   : > { %4884 = vmatmul.mubr.msk.f32.gmra.mxu0 %vm252_vm0, %v5910_v9  ;;  %4822 = vmatprep.mubr.msk.f32.mxu1 %vm252_vm0, %v5913_v63 }
  0x77   : > { %4886 = vmatprep.mubr.msk.f32.mxu0 %vm252_vm0, %v5916_v52  ;;  %v4083_v52 = vld [vmem:[%s6980_s1 + $0x170] sm:$0xff] }
  0x79   : > { %4823 = vmatmul.mubr.msk.f32.gmra.mxu1 %vm252_vm0, %v5925_v23 }
  0x7a   : > { %4887 = vmatmul.mubr.msk.f32.gmra.mxu0 %vm252_vm0, %v5930_v2  ;;  %4905 = vmatprep.mubr.msk.f32.mxu1 %vm252_vm0, %v5581_v62  ;;  %v4155_v2 = vld [vmem:[%s6980_s1 + $0x1b0] sm:$0xff]  ;;  %v7050_v62 = vld [vmem:[#allocation9_spill] sm:$0xff] }
  0x7b   : > { %4969 = vmatprep.mubr.msk.f32.mxu0 %vm252_vm0, %v5389_v15  ;;  %v4082_v15 = vld [vmem:[%s6980_s1 + $0x168] sm:$0xff] }
  0x7d   : > { %4906 = vmatmul.mubr.msk.f32.vlgmr.msra.gmra.mxu1 %vm252_vm0, %v5589_v0  ;;  %v4297_v0 = vld [vmem:[%s6980_s1 + $0x220] sm:$0xff] }
  0x7e   : > { %4970 = vmatmul.mubr.msk.f32.vlgmr.msra.gmra.mxu0 %vm252_vm0, %v5401_v18  ;;  %5018 = vmatpush3.msra.mxu1 %v5771_v6  ;;  %v4154_v18 = vld [vmem:[%s6980_s1 + $0x1a8] sm:$0xff]  ;;  %v7057_v6 = vld [vmem:[#allocation16_spill] sm:$0xff] }
  0x7f   : > { %4908 = vmatprep.mubr.msk.f32.mxu1 %vm252_vm0, %v5600_v3  ;;  %5082 = vmatpush3.msra.mxu0 %v5795_v35  ;;  %v7058_v35 = vld [vmem:[#allocation17_spill] sm:$0xff] }
  0x80   : > { %4972 = vmatprep.mubr.msk.f32.mxu0 %vm252_vm0, %v5414_v21  ;;  %5019 = vmatprep.subr.mxu1 %v4083_v52  ;;  %v4081_v21 = vld [vmem:[%s6980_s1 + $0x160] sm:$0xff] }
  0x81   : > { %4909 = vmatmul.mubr.msk.f32.gmra.mxu1 %vm252_vm0, %v5620_v7  ;;  %5083 = vmatprep.subr.mxu0 %v4155_v2 }
  0x82   : > { %4973 = vmatmul.mubr.msk.f32.gmra.mxu0 %vm252_vm0, %v5427_v24  ;;  %4911 = vmatprep.mubr.msk.f32.mxu1 %vm252_vm0, %v5628_v11  ;;  %v4153_v24 = vld [vmem:[%s6980_s1 + $0x1a0] sm:$0xff] }
  0x83   : > { %4975 = vmatprep.mubr.msk.f32.mxu0 %vm252_vm0, %v5440_v27  ;;  %5020 = vmatpush3.msra.mxu1 %v4083_v52  ;;  %v4080_v27 = vld [vmem:[%s6980_s1 + $0x158] sm:$0xff]  ;;  %v7049_v52 = vld [vmem:[#allocation8_spill] sm:$0xff] }
  0x84   : > { %5084 = vmatpush3.msra.mxu0 %v4155_v2  ;;  %5021 = vmatprep.subr.mxu1 %v4082_v15  ;;  %v7051_v2 = vld [vmem:[#allocation10_spill] sm:$0xff] }
  0x85   : > { %4912 = vmatmul.mubr.msk.f32.gmra.mxu1 %vm252_vm0, %v5646_v19  ;;  %5085 = vmatprep.subr.mxu0 %v4154_v18 }
  0x86   : > { %4976 = vmatmul.mubr.msk.f32.gmra.mxu0 %vm252_vm0, %v5453_v30  ;;  %4914 = vmatprep.mubr.msk.f32.mxu1 %vm252_vm0, %v5654_v25  ;;  %v4152_v30 = vld [vmem:[%s6980_s1 + $0x198] sm:$0xff] }
  0x87   : > { %4978 = vmatprep.mubr.msk.f32.mxu0 %vm252_vm0, %v5466_v33  ;;  %5022 = vmatpush3.msra.mxu1 %v4082_v15  ;;  %v4079_v33 = vld [vmem:[%s6980_s1 + $0x150] sm:$0xff]  ;;  %v7059_v15 = vld [vmem:[#allocation18_spill] sm:$0xff] }
  0x88   : > { %5086 = vmatpush3.msra.mxu0 %v4154_v18  ;;  %5023 = vmatprep.subr.mxu1 %v4081_v21 }
  0x89   : > { %4915 = vmatmul.mubr.msk.f32.gmra.mxu1 %vm252_vm0, %v5672_v37  ;;  %5087 = vmatprep.subr.mxu0 %v4153_v24 }
  0x8a   : > { %4979 = vmatmul.mubr.msk.f32.gmra.mxu0 %vm252_vm0, %v5479_v36  ;;  %4917 = vmatprep.mubr.msk.f32.mxu1 %vm252_vm0, %v5680_v43  ;;  %v4151_v36 = vld [vmem:[%s6980_s1 + $0x190] sm:$0xff] }
  0x8b   : > { %4981 = vmatprep.mubr.msk.f32.mxu0 %vm252_vm0, %v5492_v39  ;;  %5024 = vmatpush3.msra.mxu1 %v4081_v21  ;;  %v4078_v39 = vld [vmem:[%s6980_s1 + $0x148] sm:$0xff] }
  0x8c   : > { %5088 = vmatpush3.msra.mxu0 %v4153_v24  ;;  %5025 = vmatprep.subr.mxu1 %v4080_v27  ;;  %v7062_v24 = vld [vmem:[#allocation21_spill] sm:$0xff] }
  0x8d   : > { %4918 = vmatmul.mubr.msk.f32.gmra.mxu1 %vm252_vm0, %v5698_v55  ;;  %5089 = vmatprep.subr.mxu0 %v4152_v30 }
  0x8e   : > { %4982 = vmatmul.mubr.msk.f32.gmra.mxu0 %vm252_vm0, %v5505_v42  ;;  %4920 = vmatprep.mubr.msk.f32.mxu1 %vm252_vm0, %v5706_v57  ;;  %v4150_v42 = vld [vmem:[%s6980_s1 + $0x188] sm:$0xff] }
  0x8f   : > { %4984 = vmatprep.mubr.msk.f32.mxu0 %vm252_vm0, %v5518_v45  ;;  %5026 = vmatpush3.msra.mxu1 %v4080_v27  ;;  %v4077_v45 = vld [vmem:[%s6980_s1 + $0x140] sm:$0xff] }
  0x90   : > { %5090 = vmatpush3.msra.mxu0 %v4152_v30  ;;  %5027 = vmatprep.subr.mxu1 %v4079_v33  ;;  %v7063_v30 = vld [vmem:[#allocation22_spill] sm:$0xff] }
  0x91   : > { %4921 = vmatmul.mubr.msk.f32.gmra.mxu1 %vm252_vm0, %v5724_v61  ;;  %5091 = vmatprep.subr.mxu0 %v4151_v36 }
  0x92   : > { %4985 = vmatmul.mubr.msk.f32.gmra.mxu0 %vm252_vm0, %v5531_v48  ;;  %4923 = vmatprep.mubr.msk.f32.mxu1 %vm252_vm0, %v5732_v5  ;;  %v4149_v48 = vld [vmem:[%s6980_s1 + $0x180] sm:$0xff] }
  0x93   : > { %4987 = vmatprep.mubr.msk.f32.mxu0 %vm252_vm0, %v5544_v51  ;;  %5028 = vmatpush3.msra.mxu1 %v4079_v33  ;;  %v4228_v51 = vld [vmem:[%s6980_s1 + $0x1f8] sm:$0xff] }
  0x94   : > { %5092 = vmatpush3.msra.mxu0 %v4151_v36  ;;  %5029 = vmatprep.subr.mxu1 %v4078_v39 }
  0x95   : > { %4924 = vmatmul.mubr.msk.f32.gmra.mxu1 %vm252_vm0, %v5750_v31  ;;  %5093 = vmatprep.subr.mxu0 %v4150_v42 }
  0x96   : > { %4988 = vmatmul.mubr.msk.f32.gmra.mxu0 %vm252_vm0, %v5557_v54  ;;  %4926 = vmatprep.mubr.msk.f32.mxu1 %vm252_vm0, %v5758_v49  ;;  %v4225_v54 = vld [vmem:[%s6980_s1 + $0x1e0] sm:$0xff] }
  0x97   : > { %4990 = vmatprep.mubr.msk.f32.mxu0 %vm252_vm0, %v5367_v8  ;;  %5030 = vmatpush3.msra.mxu1 %v4078_v39  ;;  %v4300_v8 = vld [vmem:[%s6980_s1 + $0x238] sm:$0xff] }
  0x98   : > { %5094 = vmatpush3.msra.mxu0 %v4150_v42  ;;  %5031 = vmatprep.subr.mxu1 %v4077_v45  ;;  %v7065_v42 = vld [vmem:[#allocation24_spill] sm:$0xff] }
  0x99   : > { %4927 = vmatmul.mubr.msk.f32.gmra.mxu1 %vm252_vm0, %v5778_v60  ;;  %5095 = vmatprep.subr.mxu0 %v4149_v48 }
  0x9a   : > { %4991 = vmatmul.mubr.msk.f32.gmra.mxu0 %vm252_vm0, %v5371_v10  ;;  %4929 = vmatprep.mubr.msk.f32.mxu1 %vm252_vm0, %v5786_v1  ;;  %v6103_v10 = vld [vmem:[%s5361_s4 + $0x180] sm:$0xff] }
  0x9b   : > { %4993 = vmatprep.mubr.msk.f32.mxu0 %vm252_vm0, %v5384_v14  ;;  %5032 = vmatpush3.msra.mxu1 %v4077_v45  ;;  %v6106_v14 = vld [vmem:[%s5361_s4 + $0x181] sm:$0xff] }
  0x9c   : > { %5096 = vmatpush3.msra.mxu0 %v4149_v48  ;;  %5145 = vmatprep.subr.mxu1 %v4228_v51 }
  0x9d   : > { %4930 = vmatmul.mubr.msk.f32.gmra.mxu1 %vm252_vm0, %v5804_v17  ;;  %5209 = vmatprep.subr.mxu0 %v4300_v8 }
  0x9e   : > { %4994 = vmatmul.mubr.msk.f32.gmra.mxu0 %vm252_vm0, %v5393_v16  ;;  %4932 = vmatprep.mubr.msk.f32.mxu1 %vm252_vm0, %v5812_v56  ;;  %v7043_v16 = vld [vmem:[#allocation2_spill] sm:$0xff] }
  0x9f   : > { %4996 = vmatprep.mubr.msk.f32.mxu0 %vm252_vm0, %v5409_v20  ;;  %v6115_v20 = vld [vmem:[%s5361_s4 + $0x188] sm:$0xff] }
  0xa1   : > { %4933 = vmatmul.mubr.msk.f32.gmra.mxu1 %vm252_vm0, %v5825_v58 }
  0xa2   : > { %4997 = vmatmul.mubr.msk.f32.gmra.mxu0 %vm252_vm0, %v5419_v22  ;;  %4935 = vmatprep.mubr.msk.f32.mxu1 %vm252_vm0, %v5833_v47  ;;  %v6120_v22 = vld [vmem:[%s5361_s4 + $0x189] sm:$0xff] }
  0xa3   : > { %4999 = vmatprep.mubr.msk.f32.mxu0 %vm252_vm0, %v5435_v26  ;;  %v7044_v26 = vld [vmem:[#allocation3_spill] sm:$0xff] }
  0xa5   : > { %4936 = vmatmul.mubr.msk.f32.gmra.mxu1 %vm252_vm0, %v5845_v53 }
  0xa6   : > { %5000 = vmatmul.mubr.msk.f32.gmra.mxu0 %vm252_vm0, %v5445_v28  ;;  %4938 = vmatprep.mubr.msk.f32.mxu1 %vm252_vm0, %v5853_v29  ;;  %v7045_v28 = vld [vmem:[#allocation4_spill] sm:$0xff] }
  0xa7   : > { %5002 = vmatprep.mubr.msk.f32.mxu0 %vm252_vm0, %v5461_v32  ;;  %v4227_v32 = vld [vmem:[%s6980_s1 + $0x1f0] sm:$0xff] }
  0xa9   : > { %4939 = vmatmul.mubr.msk.f32.gmra.mxu1 %vm252_vm0, %v5865_v13 }
  0xaa   : > { %5003 = vmatmul.mubr.msk.f32.gmra.mxu0 %vm252_vm0, %v5471_v34  ;;  %4941 = vmatprep.mubr.msk.f32.mxu1 %vm252_vm0, %v5873_v12  ;;  %v4299_v34 = vld [vmem:[%s6980_s1 + $0x230] sm:$0xff] }
  0xab   : > { %5005 = vmatprep.mubr.msk.f32.mxu0 %vm252_vm0, %v5487_v38  ;;  %v7046_v38 = vld [vmem:[#allocation5_spill] sm:$0xff] }
  0xad   : > { %4942 = vmatmul.mubr.msk.f32.gmra.mxu1 %vm252_vm0, %v5885_v59 }
  0xae   : > { %5006 = vmatmul.mubr.msk.f32.gmra.mxu0 %vm252_vm0, %v5497_v40  ;;  %4944 = vmatprep.mubr.msk.f32.mxu1 %vm252_vm0, %v5893_v4  ;;  %v7047_v40 = vld [vmem:[#allocation6_spill] sm:$0xff] }
  0xaf   : > { %5008 = vmatprep.mubr.msk.f32.mxu0 %vm252_vm0, %v5513_v44  ;;  %v4226_v44 = vld [vmem:[%s6980_s1 + $0x1e8] sm:$0xff] }
  0xb1   : > { %4945 = vmatmul.mubr.msk.f32.gmra.mxu1 %vm252_vm0, %v5905_v41 }
  0xb2   : > { %5009 = vmatmul.mubr.msk.f32.gmra.mxu0 %vm252_vm0, %v5523_v46  ;;  %4947 = vmatprep.mubr.msk.f32.mxu1 %vm252_vm0, %v5913_v63  ;;  %v7048_v46 = vld [vmem:[#allocation7_spill] sm:$0xff] }
  0xb3   : > { %5011 = vmatprep.mubr.msk.f32.mxu0 %vm252_vm0, %v5539_v50  ;;  %v4298_v50 = vld [vmem:[%s6980_s1 + $0x228] sm:$0xff] }
  0xb5   : > { %4948 = vmatmul.mubr.msk.f32.gmra.mxu1 %vm252_vm0, %v5925_v23 }
  0xb6   : > { %5012 = vmatmul.mubr.msk.f32.gmra.mxu0 %vm252_vm0, %v7043_v16  ;;  %4950 = vmatprep.mubr.msk.f32.mxu1 %vm252_vm0, %v6103_v10 }
  0xb7   : > { %5014 = vmatprep.mubr.msk.f32.mxu0 %vm252_vm0, %v6106_v14 }
  0xb9   : > { %4951 = vmatmul.mubr.msk.f32.gmra.mxu1 %vm252_vm0, %v6115_v20 }
  0xba   : > { %5015 = vmatmul.mubr.msk.f32.gmra.mxu0 %vm252_vm0, %v6120_v22  ;;  %5033 = vmatprep.mubr.msk.f32.mxu1 %vm252_vm0, %v7044_v26 }
  0xbb   : > { %5097 = vmatprep.mubr.msk.f32.mxu0 %vm252_vm0, %v5600_v3  ;;  %v4224_v3 = vld [vmem:[%s6980_s1 + $0x1d8] sm:$0xff] }
  0xbd   : > { %5034 = vmatmul.mubr.msk.f32.vlgmr.msra.gmra.mxu1 %vm252_vm0, %v7045_v28 }
  0xbe   : > { %5098 = vmatmul.mubr.msk.f32.vlgmr.msra.gmra.mxu0 %vm252_vm0, %v5620_v7  ;;  %5146 = vmatpush3.msra.mxu1 %v4228_v51  ;;  %v7052_v7 = vld [vmem:[#allocation11_spill] sm:$0xff] }
  0xbf   : > { %5036 = vmatprep.mubr.msk.f32.mxu1 %vm252_vm0, %v7046_v38  ;;  %5210 = vmatpush3.msra.mxu0 %v4300_v8  ;;  %v7067_v8 = vld [vmem:[#allocation26_spill] sm:$0xff] }
  0xc0   : > { %5100 = vmatprep.mubr.msk.f32.mxu0 %vm252_vm0, %v5628_v11  ;;  %5147 = vmatprep.subr.mxu1 %v4227_v32  ;;  %v4296_v11 = vld [vmem:[%s6980_s1 + $0x218] sm:$0xff] }
  0xc1   : > { %5037 = vmatmul.mubr.msk.f32.gmra.mxu1 %vm252_vm0, %v7047_v40  ;;  %5211 = vmatprep.subr.mxu0 %v4299_v34 }
  0xc2   : > { %5101 = vmatmul.mubr.msk.f32.gmra.mxu0 %vm252_vm0, %v5646_v19  ;;  %5039 = vmatprep.mubr.msk.f32.mxu1 %vm252_vm0, %v7048_v46  ;;  %v7053_v19 = vld [vmem:[#allocation12_spill] sm:$0xff] }
  0xc3   : > { %5103 = vmatprep.mubr.msk.f32.mxu0 %vm252_vm0, %v5654_v25  ;;  %5148 = vmatpush3.msra.mxu1 %v4227_v32  ;;  %v4223_v25 = vld [vmem:[%s6980_s1 + $0x1d0] sm:$0xff] }
  0xc4   : > { %5212 = vmatpush3.msra.mxu0 %v4299_v34  ;;  %5149 = vmatprep.subr.mxu1 %v4226_v44  ;;  %v7069_v32 = vld [vmem:[#allocation28_spill] sm:$0xff] }
  0xc5   : > { %5040 = vmatmul.mubr.msk.f32.gmra.mxu1 %vm252_vm0, %v7049_v52  ;;  %5213 = vmatprep.subr.mxu0 %v4298_v50 }
  0xc6   : > { %5104 = vmatmul.mubr.msk.f32.gmra.mxu0 %vm252_vm0, %v5672_v37  ;;  %5042 = vmatprep.mubr.msk.f32.mxu1 %vm252_vm0, %v7050_v62  ;;  %v7054_v37 = vld [vmem:[#allocation13_spill] sm:$0xff] }
  0xc7   : > { %5106 = vmatprep.mubr.msk.f32.mxu0 %vm252_vm0, %v5680_v43  ;;  %5150 = vmatpush3.msra.mxu1 %v4226_v44  ;;  %v4295_v43 = vld [vmem:[%s6980_s1 + $0x210] sm:$0xff] }
  0xc8   : > { %5214 = vmatpush3.msra.mxu0 %v4298_v50  ;;  %5151 = vmatprep.subr.mxu1 %v4225_v54 }
  0xc9   : > { %5043 = vmatmul.mubr.msk.f32.gmra.mxu1 %vm252_vm0, %v7051_v2  ;;  %5215 = vmatprep.subr.mxu0 %v4297_v0  ;;  %v4189_v2 = vld [vmem:[%s5361_s4 + $0x31] sm:$0xff] }
  0xca   : > { %5107 = vmatmul.mubr.msk.f32.gmra.mxu0 %vm252_vm0, %v5698_v55  ;;  %5045 = vmatprep.mubr.msk.f32.mxu1 %vm252_vm0, %v7052_v7  ;;  %v7055_v55 = vld [vmem:[#allocation14_spill] sm:$0xff]  ;;  %v4261_v7 = vld [vmem:[%s5361_s4 + $0x32] sm:$0xff] }
  0xcb   : > { %5109 = vmatprep.mubr.msk.f32.mxu0 %vm252_vm0, %v5706_v57  ;;  %5152 = vmatpush3.msra.mxu1 %v4225_v54  ;;  %v4222_v57 = vld [vmem:[%s6980_s1 + $0x1c8] sm:$0xff] }
  0xcc   : > { %5216 = vmatpush3.msra.mxu0 %v4297_v0  ;;  %5153 = vmatprep.subr.mxu1 %v4224_v3  ;;  %v7072_v54 = vld [vmem:[#allocation31_spill] sm:$0xff]  ;;  %v4148_v0 = vld [vmem:[%s5361_s4 + $0x1a0] sm:$0xff] }
  0xcd   : > { %5046 = vmatmul.mubr.msk.f32.gmra.mxu1 %vm252_vm0, %v7053_v19  ;;  %5217 = vmatprep.subr.mxu0 %v4296_v11  ;;  %v4190_v19 = vld [vmem:[%s5361_s4 + $0x39] sm:$0xff] }
  0xce   : > { %5110 = vmatmul.mubr.msk.f32.gmra.mxu0 %vm252_vm0, %v5724_v61  ;;  %5048 = vmatprep.mubr.msk.f32.mxu1 %vm252_vm0, %v7054_v37  ;;  %v7056_v61 = vld [vmem:[#allocation15_spill] sm:$0xff]  ;;  %v4262_v37 = vld [vmem:[%s5361_s4 + $0x3a] sm:$0xff] }
  0xcf   : > { %5112 = vmatprep.mubr.msk.f32.mxu0 %vm252_vm0, %v5732_v5  ;;  %5154 = vmatpush3.msra.mxu1 %v4224_v3  ;;  %v4294_v5 = vld [vmem:[%s6980_s1 + $0x208] sm:$0xff] }
  0xd0   : > { %5218 = vmatpush3.msra.mxu0 %v4296_v11  ;;  %5155 = vmatprep.subr.mxu1 %v4223_v25 }
  0xd1   : > { %5049 = vmatmul.mubr.msk.f32.gmra.mxu1 %vm252_vm0, %v7055_v55  ;;  %5219 = vmatprep.subr.mxu0 %v4295_v43 }
  0xd2   : > { %5113 = vmatmul.mubr.msk.f32.gmra.mxu0 %vm252_vm0, %v5750_v31  ;;  %5051 = vmatprep.mubr.msk.f32.mxu1 %vm252_vm0, %v7056_v61  ;;  %v4221_v31 = vld [vmem:[%s6980_s1 + $0x1c0] sm:$0xff] }
  0xd3   : > { %5115 = vmatprep.mubr.msk.f32.mxu0 %vm252_vm0, %v5758_v49  ;;  %5156 = vmatpush3.msra.mxu1 %v4223_v25  ;;  %v4293_v49 = vld [vmem:[%s6980_s1 + $0x200] sm:$0xff] }
  0xd4   : > { %5220 = vmatpush3.msra.mxu0 %v4295_v43  ;;  %5157 = vmatprep.subr.mxu1 %v4222_v57  ;;  %v4191_v43 = vld [vmem:[%s5361_s4 + $0x49] sm:$0xff] }
  0xd5   : > { %5052 = vmatmul.mubr.msk.f32.gmra.mxu1 %vm252_vm0, %v7057_v6  ;;  %5221 = vmatprep.subr.mxu0 %v4294_v5 }
  0xd6   : > { %5116 = vmatmul.mubr.msk.f32.gmra.mxu0 %vm252_vm0, %v5778_v60  ;;  %5054 = vmatprep.mubr.msk.f32.mxu1 %vm252_vm0, %v7058_v35  ;;  %v7060_v60 = vld [vmem:[#allocation19_spill] sm:$0xff] }
  0xd7   : > { %5118 = vmatprep.mubr.msk.f32.mxu0 %vm252_vm0, %v5786_v1  ;;  %5158 = vmatpush3.msra.mxu1 %v4222_v57  ;;  %v7061_v1 = vld [vmem:[#allocation20_spill] sm:$0xff] }
  0xd8   : > { %5222 = vmatpush3.msra.mxu0 %v4294_v5  ;;  %5159 = vmatprep.subr.mxu1 %v4221_v31  ;;  %v4263_v57 = vld [vmem:[%s5361_s4 + $0x4a] sm:$0xff] }
  0xd9   : > { %5055 = vmatmul.mubr.msk.f32.gmra.mxu1 %vm252_vm0, %v7059_v15  ;;  %5223 = vmatprep.subr.mxu0 %v4293_v49  ;;  %v4193_v15 = vld [vmem:[%s5361_s4 + $0x61] sm:$0xff] }
  0xda   : > { %5119 = vmatmul.mubr.msk.f32.gmra.mxu0 %vm252_vm0, %v5804_v17  ;;  %5057 = vmatprep.mubr.msk.f32.mxu1 %vm252_vm0, %v7060_v60 }
  0xdb   : > { %5121 = vmatprep.mubr.msk.f32.mxu0 %vm252_vm0, %v5812_v56  ;;  %5160 = vmatpush3.msra.mxu1 %v4221_v31  ;;  %v4192_v31 = vld [vmem:[%s5361_s4 + $0x51] sm:$0xff] }
  0xdc   : > { %5224 = vmatpush3.msra.mxu0 %v4293_v49  ;;  %v4264_v49 = vld [vmem:[%s5361_s4 + $0x52] sm:$0xff] }
  0xdd   : > { %v6236_v18 = vpop.f32.mrf.mxu1  ;;  %5058 = vmatmul.mubr.msk.f32.gmra.mxu1 %vm252_vm0, %v7061_v1 }
  0xde   : > { %v6240_v21 = vpop.f32.mrf.mxu0  ;;  %5122 = vmatmul.mubr.msk.f32.gmra.mxu0 %vm252_vm0, %v5825_v58  ;;  %5060 = vmatprep.mubr.msk.f32.mxu1 %vm252_vm0, %v7062_v24  ;;  %v7064_v58 = vld [vmem:[#allocation23_spill] sm:$0xff] }
  0xdf   : > { %v6246_v17 = vpop.f32.mrf.mxu1  ;;  %5124 = vmatprep.mubr.msk.f32.mxu0 %vm252_vm0, %v5833_v47 }
  0xe0   : > { %v6250_v56 = vpop.f32.mrf.mxu0 }
  0xe1   : > { %v6252_v27 = vpop.f32.mrf.mxu1  ;;  %5061 = vmatmul.mubr.msk.f32.gmra.mxu1 %vm252_vm0, %v7063_v30 }
  0xe2   : > { %v6256_v33 = vpop.f32.mrf.mxu0  ;;  %5125 = vmatmul.mubr.msk.f32.gmra.mxu0 %vm252_vm0, %v5845_v53  ;;  %5063 = vmatprep.mubr.msk.f32.mxu1 %vm252_vm0, %v7064_v58  ;;  %v7066_v53 = vld [vmem:[#allocation25_spill] sm:$0xff] }
  0xe3   : > { %v6262_v36 = vpop.f32.mrf.mxu1  ;;  %5127 = vmatprep.mubr.msk.f32.mxu0 %vm252_vm0, %v5853_v29 }
  0xe4   : > { %v6266_v47 = vpop.f32.mrf.mxu0 }
  0xe5   : > { %v6268_v39 = vpop.f32.mrf.mxu1  ;;  %5064 = vmatmul.mubr.msk.f32.gmra.mxu1 %vm252_vm0, %v7065_v42 }
  0xe6   : > { %v6272_v45 = vpop.f32.mrf.mxu0  ;;  %5128 = vmatmul.mubr.msk.f32.gmra.mxu0 %vm252_vm0, %v5865_v13  ;;  %5066 = vmatprep.mubr.msk.f32.mxu1 %vm252_vm0, %v7066_v53  ;;  %v7068_v13 = vld [vmem:[#allocation27_spill] sm:$0xff] }
  0xe7   : > { %v6278_v48 = vpop.f32.mrf.mxu1  ;;  %5130 = vmatprep.mubr.msk.f32.mxu0 %vm252_vm0, %v5873_v12 }
  0xe8   : > { %v6282_v29 = vpop.f32.mrf.mxu0 }
  0xe9   : > { %v6284_v51 = vpop.f32.mrf.mxu1  ;;  %5067 = vmatmul.mubr.msk.f32.gmra.mxu1 %vm252_vm0, %v7067_v8  ;;  %v4194_v8 = vld [vmem:[%s5361_s4 + $0x69] sm:$0xff] }
  0xea   : > { %v6288_v16 = vpop.f32.mrf.mxu0  ;;  %5131 = vmatmul.mubr.msk.f32.gmra.mxu0 %vm252_vm0, %v5885_v59  ;;  %5069 = vmatprep.mubr.msk.f32.mxu1 %vm252_vm0, %v7068_v13  ;;  %v7070_v59 = vld [vmem:[#allocation29_spill] sm:$0xff] }
  0xeb   : > { %v6294_v26 = vpop.f32.mrf.mxu1  ;;  %5133 = vmatprep.mubr.msk.f32.mxu0 %vm252_vm0, %v5893_v4 }
  0xec   : > { %v6298_v12 = vpop.f32.mrf.mxu0 }
  0xed   : > { %v6300_v28 = vpop.f32.mrf.mxu1  ;;  %5070 = vmatmul.mubr.msk.f32.gmra.mxu1 %vm252_vm0, %v7069_v32  ;;  %v4195_v32 = vld [vmem:[%s5361_s4 + $0x79] sm:$0xff] }
  0xee   : > { %v6304_v34 = vpop.f32.mrf.mxu0  ;;  %5134 = vmatmul.mubr.msk.f32.gmra.mxu0 %vm252_vm0, %v5905_v41  ;;  %5072 = vmatprep.mubr.msk.f32.mxu1 %vm252_vm0, %v7070_v59  ;;  %v7071_v41 = vld [vmem:[#allocation30_spill] sm:$0xff] }
  0xef   : > { %v6310_v38 = vpop.f32.mrf.mxu1  ;;  %5136 = vmatprep.mubr.msk.f32.mxu0 %vm252_vm0, %v5913_v63  ;;  %v6331_v63 = vld [vmem:[%s5361_s4 + $0x182] sm:$0xff] }
  0xf0   : > { %v6314_v4 = vpop.f32.mrf.mxu0 }
  0xf1   : > { %v6316_v40 = vpop.f32.mrf.mxu1  ;;  %5073 = vmatmul.mubr.msk.f32.gmra.mxu1 %vm252_vm0, %v5910_v9  ;;  %v4147_v9 = vld [vmem:[%s5361_s4 + $0x198] sm:$0xff] }
  0xf2   : > { %v6320_v44 = vpop.f32.mrf.mxu0  ;;  %5137 = vmatmul.mubr.msk.f32.gmra.mxu0 %vm252_vm0, %v5925_v23  ;;  %5075 = vmatprep.mubr.msk.f32.mxu1 %vm252_vm0, %v7071_v41 }
  0xf3   : > { %v6326_v46 = vpop.f32.mrf.mxu1  ;;  %5139 = vmatprep.mubr.msk.f32.mxu0 %vm252_vm0, %v6103_v10  ;;  %v6347_v10 = vld [vmem:[%s5361_s4 + $0x18a] sm:$0xff] }
  0xf4   : > { %v6333_v50 = vpop.f32.mrf.mxu0 }
  0xf5   : > { %v6336_v52 = vpop.f32.mrf.mxu1  ;;  %5076 = vmatmul.mubr.msk.f32.gmra.mxu1 %vm252_vm0, %v7072_v54 }
  0xf6   : > { %v6340_v23 = vpop.f32.mrf.mxu0  ;;  %5140 = vmatmul.mubr.msk.f32.gmra.mxu0 %vm252_vm0, %v6115_v20  ;;  %5078 = vmatprep.mubr.msk.f32.mxu1 %vm252_vm0, %v6331_v63 }
  0xf7   : > { %v6349_v62 = vpop.f32.mrf.mxu1  ;;  %5142 = vmatprep.mubr.msk.f32.mxu0 %vm252_vm0, %v4147_v9 }
  0xf8   : > { %v6354_v3 = vpop.f32.mrf.mxu0 }
  0xf9   : > { %v6357_v11 = vpop.f32.mrf.mxu1  ;;  %5079 = vmatmul.mubr.msk.f32.gmra.mxu1 %vm252_vm0, %v6347_v10 }
  0xfa   : > { %v6361_v20 = vpop.f32.mrf.mxu0  ;;  %5143 = vmatmul.mubr.msk.f32.gmra.mxu0 %vm252_vm0, %v4148_v0  ;;  %5161 = vmatprep.mubr.msk.f32.mxu1 %vm252_vm0, %v4189_v2 }
  0xfb   : > { %v6366_v25 = vpop.f32.mrf.mxu1  ;;  %5225 = vmatprep.mubr.msk.f32.mxu0 %vm252_vm0, %v4261_v7 }
  0xfc   : > { %v6371_v55 = vpop.f32.mrf.mxu0 }
  0xfd   : > { %v4779_v61 = vpop.f32.mrf.mxu1  ;;  %5162 = vmatmul.mubr.msk.f32.vlgmr.msra.gmra.mxu1 %vm252_vm0, %v4190_v19  ;;  %v4196_v19 = vld [vmem:[%s5361_s4 + $0x81] sm:$0xff] }
  0xfe   : > { %v742_v5 = vadd.f32 %v4779_v61, %v6240_v21  ;;  %v4843_v6 = vpop.f32.mrf.mxu0  ;;  %5226 = vmatmul.mubr.msk.f32.vlgmr.msra.gmra.mxu0 %vm252_vm0, %v4262_v37  ;;  %5164 = vmatprep.mubr.msk.f32.mxu1 %vm252_vm0, %v4191_v43  ;;  %v4265_v21 = vld [vmem:[%s5361_s4 + $0x62] sm:$0xff]  ;;  %v4197_v43 = vld [vmem:[%s5361_s4 + $0x91] sm:$0xff] }
  0xff   : > { %v736_v35 = vpop.f32.mrf.mxu1  ;;  %5228 = vmatprep.mubr.msk.f32.mxu0 %vm252_vm0, %v4263_v57 }
 0x100   : > { %v6382_v60 = vadd.f32 %v4843_v6, %v742_v5  ;;  %v737_v1 = vadd.f32 %v736_v35, %v6250_v56  ;;  %v1098_v24 = vpop.f32.mrf.mxu0  ;;  %v4266_v56 = vld [vmem:[%s5361_s4 + $0x6a] sm:$0xff] }
 0x101   : > { %v4782_v30 = vpop.f32.mrf.mxu1  ;;  %5165 = vmatmul.mubr.msk.f32.gmra.mxu1 %vm252_vm0, %v4192_v31 }
 0x102   : > { %v6387_v58 = vadd.f32 %v1098_v24, %v737_v1  ;;  %v752_v42 = vadd.f32 %v4782_v30, %v6256_v33  ;;  %v4846_v53 = vpop.f32.mrf.mxu0  ;;  %5229 = vmatmul.mubr.msk.f32.gmra.mxu0 %vm252_vm0, %v4264_v49  ;;  %5167 = vmatprep.mubr.msk.f32.mxu1 %vm252_vm0, %v4193_v15  ;;  %v4267_v33 = vld [vmem:[%s5361_s4 + $0x7a] sm:$0xff]  ;;  %v4199_v24 = vld [vmem:[%s5361_s4 + $0xa9] sm:$0xff] }
 0x103   : > { %v746_v13 = vpop.f32.mrf.mxu1  ;;  %5231 = vmatprep.mubr.msk.f32.mxu0 %vm252_vm0, %v4265_v21  ;;  %v4198_v15 = vld [vmem:[%s5361_s4 + $0x99] sm:$0xff] }
 0x104   : > { %v6396_v59 = vadd.f32 %v4846_v53, %v752_v42  ;;  %v747_v41 = vadd.f32 %v746_v13, %v6266_v47  ;;  %v1108_v9 = vpop.f32.mrf.mxu0  ;;  %v4268_v47 = vld [vmem:[%s5361_s4 + $0x82] sm:$0xff] }
 0x105   : > { %v4785_v54 = vpop.f32.mrf.mxu1  ;;  %5168 = vmatmul.mubr.msk.f32.gmra.mxu1 %vm252_vm0, %v4194_v8 }
 0x106   : > { %v6401_v0 = vadd.f32 %v1108_v9, %v747_v41  ;;  %v762_v2 = vadd.f32 %v4785_v54, %v6272_v45  ;;  %v4849_v7 = vpop.f32.mrf.mxu0  ;;  %5232 = vmatmul.mubr.msk.f32.gmra.mxu0 %vm252_vm0, %v4266_v56  ;;  %5170 = vmatprep.mubr.msk.f32.mxu1 %vm252_vm0, %v4195_v32  ;;  %v4269_v45 = vld [vmem:[%s5361_s4 + $0x92] sm:$0xff]  ;;  %v4201_v9 = vld [vmem:[%s5361_s4 + $0xc1] sm:$0xff] }
 0x107   : > { %v756_v37 = vpop.f32.mrf.mxu1  ;;  %5234 = vmatprep.mubr.msk.f32.mxu0 %vm252_vm0, %v4267_v33  ;;  %v4200_v32 = vld [vmem:[%s5361_s4 + $0xb1] sm:$0xff] }
 0x108   : > { %v6410_v57 = vadd.f32 %v4849_v7, %v762_v2  ;;  %v757_v61 = vadd.f32 %v756_v37, %v6282_v29  ;;  %v1118_v5 = vpop.f32.mrf.mxu0  ;;  %v4270_v29 = vld [vmem:[%s5361_s4 + $0x9a] sm:$0xff] }
 0x109   : > { %v4788_v6 = vpop.f32.mrf.mxu1  ;;  %5171 = vmatmul.mubr.msk.f32.gmra.mxu1 %vm252_vm0, %v4196_v19 }
 0x10a   : > { %v6415_v31 = vadd.f32 %v1118_v5, %v757_v61  ;;  %v772_v35 = vadd.f32 %v4788_v6, %v6288_v16  ;;  %v4852_v49 = vpop.f32.mrf.mxu0  ;;  %5235 = vmatmul.mubr.msk.f32.gmra.mxu0 %vm252_vm0, %v4268_v47  ;;  %5173 = vmatprep.mubr.msk.f32.mxu1 %vm252_vm0, %v4197_v43  ;;  %v4271_v16 = vld [vmem:[%s5361_s4 + $0xaa] sm:$0xff]  ;;  %v4203_v5 = vld [vmem:[%s5361_s4 + $0xd9] sm:$0xff] }
 0x10b   : > { %v766_v1 = vpop.f32.mrf.mxu1  ;;  %5237 = vmatprep.mubr.msk.f32.mxu0 %vm252_vm0, %v4269_v45  ;;  %v4202_v43 = vld [vmem:[%s5361_s4 + $0xc9] sm:$0xff] }
 0x10c   : > { %v6424_v21 = vadd.f32 %v4852_v49, %v772_v35  ;;  %v767_v30 = vadd.f32 %v766_v1, %v6298_v12  ;;  %v1128_v42 = vpop.f32.mrf.mxu0  ;;  %v4272_v12 = vld [vmem:[%s5361_s4 + $0xb2] sm:$0xff] }
 0x10d   : > { %v4791_v53 = vpop.f32.mrf.mxu1  ;;  %5174 = vmatmul.mubr.msk.f32.gmra.mxu1 %vm252_vm0, %v4198_v15 }
 0x10e   : > { %v6429_v8 = vadd.f32 %v1128_v42, %v767_v30  ;;  %v782_v13 = vadd.f32 %v4791_v53, %v6304_v34  ;;  %v4855_v56 = vpop.f32.mrf.mxu0  ;;  %5238 = vmatmul.mubr.msk.f32.gmra.mxu0 %vm252_vm0, %v4270_v29  ;;  %5176 = vmatprep.mubr.msk.f32.mxu1 %vm252_vm0, %v4199_v24  ;;  %v4273_v34 = vld [vmem:[%s5361_s4 + $0xc2] sm:$0xff]  ;;  %v4205_v42 = vld [vmem:[%s5361_s4 + $0xf1] sm:$0xff] }
 0x10f   : > { %v776_v41 = vpop.f32.mrf.mxu1  ;;  %5240 = vmatprep.mubr.msk.f32.mxu0 %vm252_vm0, %v4271_v16  ;;  %v4204_v24 = vld [vmem:[%s5361_s4 + $0xe1] sm:$0xff] }
 0x110   : > { %v6438_v33 = vadd.f32 %v4855_v56, %v782_v13  ;;  %v777_v54 = vadd.f32 %v776_v41, %v6314_v4  ;;  %v1138_v2 = vpop.f32.mrf.mxu0  ;;  %v4274_v4 = vld [vmem:[%s5361_s4 + $0xca] sm:$0xff] }
 0x111   : > { %v4794_v7 = vpop.f32.mrf.mxu1  ;;  %5177 = vmatmul.mubr.msk.f32.gmra.mxu1 %vm252_vm0, %v4200_v32 }
 0x112   : > { %v6443_v19 = vadd.f32 %v1138_v2, %v777_v54  ;;  %v792_v37 = vadd.f32 %v4794_v7, %v6320_v44  ;;  %v4858_v47 = vpop.f32.mrf.mxu0  ;;  %5241 = vmatmul.mubr.msk.f32.gmra.mxu0 %vm252_vm0, %v4272_v12  ;;  %5179 = vmatprep.mubr.msk.f32.mxu1 %vm252_vm0, %v4201_v9  ;;  %v4275_v44 = vld [vmem:[%s5361_s4 + $0xda] sm:$0xff]  ;;  %v4207_v2 = vld [vmem:[%s5361_s4 + $0x109] sm:$0xff] }
 0x113   : > { %v786_v61 = vpop.f32.mrf.mxu1  ;;  %5243 = vmatprep.mubr.msk.f32.mxu0 %vm252_vm0, %v4273_v34  ;;  %v4206_v9 = vld [vmem:[%s5361_s4 + $0xf9] sm:$0xff] }
 0x114   : > { %v6452_v45 = vadd.f32 %v4858_v47, %v792_v37  ;;  %v787_v6 = vadd.f32 %v786_v61, %v6333_v50  ;;  %v1148_v35 = vpop.f32.mrf.mxu0  ;;  %v4276_v50 = vld [vmem:[%s5361_s4 + $0xe2] sm:$0xff] }
 0x115   : > { %v4797_v49 = vpop.f32.mrf.mxu1  ;;  %5180 = vmatmul.mubr.msk.f32.gmra.mxu1 %vm252_vm0, %v4202_v43 }
 0x116   : > { %v6457_v15 = vadd.f32 %v1148_v35, %v787_v6  ;;  %v802_v1 = vadd.f32 %v4797_v49, %v6340_v23  ;;  %v4861_v29 = vpop.f32.mrf.mxu0  ;;  %5244 = vmatmul.mubr.msk.f32.gmra.mxu0 %vm252_vm0, %v4274_v4  ;;  %5182 = vmatprep.mubr.msk.f32.mxu1 %vm252_vm0, %v4203_v5  ;;  %v4277_v23 = vld [vmem:[%s5361_s4 + $0xf2] sm:$0xff]  ;;  %v4209_v35 = vld [vmem:[%s5361_s4 + $0x121] sm:$0xff] }
 0x117   : > { %v796_v30 = vpop.f32.mrf.mxu1  ;;  %5246 = vmatprep.mubr.msk.f32.mxu0 %vm252_vm0, %v4275_v44  ;;  %v4208_v5 = vld [vmem:[%s5361_s4 + $0x111] sm:$0xff] }
 0x118   : > { %v6466_v16 = vadd.f32 %v4861_v29, %v802_v1  ;;  %v797_v53 = vadd.f32 %v796_v30, %v6354_v3  ;;  %v1158_v13 = vpop.f32.mrf.mxu0  ;;  %v4278_v3 = vld [vmem:[%s5361_s4 + $0xfa] sm:$0xff] }
 0x119   : > { %v4800_v56 = vpop.f32.mrf.mxu1  ;;  %5183 = vmatmul.mubr.msk.f32.gmra.mxu1 %vm252_vm0, %v4204_v24 }
 0x11a   : > { %v6471_v32 = vadd.f32 %v1158_v13, %v797_v53  ;;  %v812_v41 = vadd.f32 %v4800_v56, %v6361_v20  ;;  %v4864_v12 = vpop.f32.mrf.mxu0  ;;  %5247 = vmatmul.mubr.msk.f32.gmra.mxu0 %vm252_vm0, %v4276_v50  ;;  %5185 = vmatprep.mubr.msk.f32.mxu1 %vm252_vm0, %v4205_v42  ;;  %v4279_v20 = vld [vmem:[%s5361_s4 + $0x10a] sm:$0xff]  ;;  %v4211_v13 = vld [vmem:[%s5361_s4 + $0x139] sm:$0xff] }
 0x11b   : > { %v806_v54 = vpop.f32.mrf.mxu1  ;;  %5249 = vmatprep.mubr.msk.f32.mxu0 %vm252_vm0, %v4277_v23  ;;  %v4210_v42 = vld [vmem:[%s5361_s4 + $0x129] sm:$0xff] }
 0x11c   : > { %v6480_v34 = vadd.f32 %v4864_v12, %v812_v41  ;;  %v807_v7 = vadd.f32 %v806_v54, %v6371_v55  ;;  %v1168_v37 = vpop.f32.mrf.mxu0  ;;  %v4280_v55 = vld [vmem:[%s5361_s4 + $0x112] sm:$0xff] }
 0x11d   : > { %v4803_v47 = vpop.f32.mrf.mxu1  ;;  %5186 = vmatmul.mubr.msk.f32.gmra.mxu1 %vm252_vm0, %v4206_v9 }
 0x11e   : > { %v6485_v43 = vadd.f32 %v1168_v37, %v807_v7  ;;  %v822_v61 = vadd.f32 %v4803_v47, %v6236_v18  ;;  %v4867_v4 = vpop.f32.mrf.mxu0  ;;  %5250 = vmatmul.mubr.msk.f32.gmra.mxu0 %vm252_vm0, %v4278_v3  ;;  %5188 = vmatprep.mubr.msk.f32.mxu1 %vm252_vm0, %v4207_v2  ;;  %v4281_v18 = vld [vmem:[%s5361_s4 + $0x122] sm:$0xff]  ;;  %v4213_v37 = vld [vmem:[%s5361_s4 + $0x151] sm:$0xff] }
 0x11f   : > { %v816_v6 = vpop.f32.mrf.mxu1  ;;  %5252 = vmatprep.mubr.msk.f32.mxu0 %vm252_vm0, %v4279_v20  ;;  %v4212_v2 = vld [vmem:[%s5361_s4 + $0x141] sm:$0xff] }
 0x120   : > { %v6494_v44 = vadd.f32 %v4867_v4, %v822_v61  ;;  %v817_v49 = vadd.f32 %v816_v6, %v6246_v17  ;;  %v1178_v1 = vpop.f32.mrf.mxu0  ;;  %v4282_v17 = vld [vmem:[%s5361_s4 + $0x12a] sm:$0xff] }
 0x121   : > { %v4806_v29 = vpop.f32.mrf.mxu1  ;;  %5189 = vmatmul.mubr.msk.f32.gmra.mxu1 %vm252_vm0, %v4208_v5 }
 0x122   : > { %v6499_v24 = vadd.f32 %v1178_v1, %v817_v49  ;;  %v832_v30 = vadd.f32 %v4806_v29, %v6252_v27  ;;  %v4870_v50 = vpop.f32.mrf.mxu0  ;;  %5253 = vmatmul.mubr.msk.f32.gmra.mxu0 %vm252_vm0, %v4280_v55  ;;  %5191 = vmatprep.mubr.msk.f32.mxu1 %vm252_vm0, %v4209_v35  ;;  %v4283_v27 = vld [vmem:[%s5361_s4 + $0x13a] sm:$0xff]  ;;  %v4215_v1 = vld [vmem:[%s5361_s4 + $0x169] sm:$0xff] }
 0x123   : > { %v826_v53 = vpop.f32.mrf.mxu1  ;;  %5255 = vmatprep.mubr.msk.f32.mxu0 %vm252_vm0, %v4281_v18  ;;  %v4214_v35 = vld [vmem:[%s5361_s4 + $0x159] sm:$0xff] }
 0x124   : > { %v6508_v23 = vadd.f32 %v4870_v50, %v832_v30  ;;  %v827_v56 = vadd.f32 %v826_v53, %v6262_v36  ;;  %v1188_v41 = vpop.f32.mrf.mxu0  ;;  %v4284_v36 = vld [vmem:[%s5361_s4 + $0x142] sm:$0xff]  ;;  %v4287_v50 = vld [vmem:[%s5361_s4 + $0x16a] sm:$0xff] }
 0x125   : > { %v4809_v12 = vpop.f32.mrf.mxu1  ;;  %5192 = vmatmul.mubr.msk.f32.gmra.mxu1 %vm252_vm0, %v4210_v42 }
 0x126   : > { %v6513_v9 = vadd.f32 %v1188_v41, %v827_v56  ;;  %v842_v54 = vadd.f32 %v4809_v12, %v6268_v39  ;;  %v4873_v3 = vpop.f32.mrf.mxu0  ;;  %5256 = vmatmul.mubr.msk.f32.gmra.mxu0 %vm252_vm0, %v4282_v17  ;;  %5194 = vmatprep.mubr.msk.f32.mxu1 %vm252_vm0, %v4211_v13  ;;  %v4285_v39 = vld [vmem:[%s5361_s4 + $0x152] sm:$0xff] }
 0x127   : > { %v836_v7 = vpop.f32.mrf.mxu1  ;;  %5258 = vmatprep.mubr.msk.f32.mxu0 %vm252_vm0, %v4283_v27  ;;  %v4216_v13 = vld [vmem:[%s5361_s4 + $0x171] sm:$0xff] }
 0x128   : > { %v6522_v20 = vadd.f32 %v4873_v3, %v842_v54  ;;  %v837_v47 = vadd.f32 %v836_v7, %v6278_v48  ;;  %v1198_v61 = vpop.f32.mrf.mxu0  ;;  %v4286_v48 = vld [vmem:[%s5361_s4 + $0x15a] sm:$0xff] }
 0x129   : > { %v4812_v4 = vpop.f32.mrf.mxu1  ;;  %5195 = vmatmul.mubr.msk.f32.gmra.mxu1 %vm252_vm0, %v4212_v2 }
 0x12a   : > { %v6527_v5 = vadd.f32 %v1198_v61, %v837_v47  ;;  %v852_v6 = vadd.f32 %v4812_v4, %v6284_v51  ;;  %v4876_v55 = vpop.f32.mrf.mxu0  ;;  %5259 = vmatmul.mubr.msk.f32.gmra.mxu0 %vm252_vm0, %v4284_v36  ;;  %5197 = vmatprep.mubr.msk.f32.mxu1 %vm252_vm0, %v4213_v37  ;;  %v4291_v61 = vld [vmem:[%s5361_s4 + $0x19a] sm:$0xff] }
 0x12b   : > { %v846_v49 = vpop.f32.mrf.mxu1  ;;  %5261 = vmatprep.mubr.msk.f32.mxu0 %vm252_vm0, %v4285_v39 }
 0x12c   : > { %v6536_v18 = vadd.f32 %v4876_v55, %v852_v6  ;;  %v847_v29 = vadd.f32 %v846_v49, %v6294_v26  ;;  %v1208_v30 = vpop.f32.mrf.mxu0  ;;  %v4288_v26 = vld [vmem:[%s5361_s4 + $0x172] sm:$0xff] }
 0x12d   : > { %v4815_v51 = vpop.f32.mrf.mxu1  ;;  %5198 = vmatmul.mubr.msk.f32.gmra.mxu1 %vm252_vm0, %v4214_v35 }
 0x12e   : > { %v6541_v42 = vadd.f32 %v1208_v30, %v847_v29  ;;  %v862_v53 = vadd.f32 %v4815_v51, %v6300_v28  ;;  %v4879_v17 = vpop.f32.mrf.mxu0  ;;  %5262 = vmatmul.mubr.msk.f32.gmra.mxu0 %vm252_vm0, %v4286_v48  ;;  %5200 = vmatprep.mubr.msk.f32.mxu1 %vm252_vm0, %v4215_v1 }
 0x12f   : > { %v856_v56 = vpop.f32.mrf.mxu1  ;;  %5264 = vmatprep.mubr.msk.f32.mxu0 %vm252_vm0, %v4287_v50 }
 0x130   : > { %v6549_v41 = vadd.f32 %v4879_v17, %v862_v53  ;;  %v857_v27 = vadd.f32 %v856_v56, %v6310_v38  ;;  %v1218_v12 = vpop.f32.mrf.mxu0  ;;  %v4219_v38 = vld [vmem:[%s5361_s4 + $0x199] sm:$0xff] }
 0x131   : > { %v4818_v54 = vpop.f32.mrf.mxu1  ;;  %5201 = vmatmul.mubr.msk.f32.gmra.mxu1 %vm252_vm0, %v4216_v13 }
 0x132   : > { %v6553_v28 = vadd.f32 %v1218_v12, %v857_v27  ;;  %v872_v3 = vadd.f32 %v4818_v54, %v6316_v40  ;;  %v4882_v2 = vpop.f32.mrf.mxu0  ;;  %5265 = vmatmul.mubr.msk.f32.gmra.mxu0 %vm252_vm0, %v4288_v26  ;;  %5203 = vmatprep.mubr.msk.f32.mxu1 %vm252_vm0, %v6106_v14 }
 0x133   : > { %v866_v7 = vpop.f32.mrf.mxu1  ;;  %5267 = vmatprep.mubr.msk.f32.mxu0 %vm252_vm0, %v6331_v63  ;;  %v4220_v63 = vld [vmem:[%s5361_s4 + $0x1a1] sm:$0xff] }
 0x134   : > { %v6562_v36 = vadd.f32 %v4882_v2, %v872_v3  ;;  %v867_v37 = vadd.f32 %v866_v7, %v6326_v46  ;;  %v1228_v47 = vpop.f32.mrf.mxu0  ;;  %v4292_v46 = vld [vmem:[%s5361_s4 + $0x1a2] sm:$0xff]  ;;  %s4336_s4 = sshll.u32 %s7152_s13, 8 }
 0x135   : > { %v4821_v40 = vpop.f32.mrf.mxu1  ;;  %5204 = vmatmul.mubr.msk.f32.gmra.mxu1 %vm252_vm0, %v6120_v22  ;;  %s6829_s20 = scalar_lea.vmem %s6982_s3, %s4336_s4 }
 0x136   : > { %v6568_v39 = vadd.f32 %v1228_v47, %v867_v37  ;;  %v882_v14 = vadd.f32 %v4821_v40, %v6336_v52  ;;  %v4885_v4 = vpop.f32.mrf.mxu0  ;;  %5268 = vmatmul.mubr.msk.f32.gmra.mxu0 %vm252_vm0, %v6347_v10  ;;  %5206 = vmatprep.mubr.msk.f32.mxu1 %vm252_vm0, %v4219_v38 }
 0x137   : > { %v876_v6 = vpop.f32.mrf.mxu1  ;;  %5270 = vmatprep.mubr.msk.f32.mxu0 %vm252_vm0, %v4291_v61 }
 0x138   : > { %v6577_v55 = vadd.f32 %v4885_v4, %v882_v14  ;;  %v877_v35 = vadd.f32 %v876_v6, %v6349_v62  ;;  %v1238_v22 = vpop.f32.mrf.mxu0 }
 0x139   : > { %v4824_v49 = vpop.f32.mrf.mxu1  ;;  %5207 = vmatmul.mubr.msk.f32.gmra.mxu1 %vm252_vm0, %v4220_v63 }
 0x13a   : > { %v6581_v52 = vadd.f32 %v1238_v22, %v877_v35  ;;  %v892_v48 = vadd.f32 %v4824_v49, %v6357_v11  ;;  %v4888_v10 = vpop.f32.mrf.mxu0  ;;  %5271 = vmatmul.mubr.msk.f32.gmra.mxu0 %vm252_vm0, %v4292_v46 }
 0x13b   : > { %v886_v1 = vpop.f32.mrf.mxu1 }
 0x13c   : > { %v6585_v29 = vadd.f32 %v4888_v10, %v892_v48  ;;  %v887_v30 = vadd.f32 %v886_v1, %v6366_v25  ;;  %v1248_v50 = vpop.f32.mrf.mxu0 }
 0x13d   : > { %v4907_v51 = vpop.f32.mrf.mxu1 }
 0x13e   : > { %v6588_v53 = vadd.f32 %v1248_v50, %v887_v30  ;;  %v1653_v62 = vadd.f32 %v4907_v51, %v6382_v60  ;;  %v4971_v17 = vpop.f32.mrf.mxu0 }
 0x13f   : > { %v1493_v13 = vpop.f32.mrf.mxu1 }
 0x140   : > { %v6591_v56 = vadd.f32 %v4971_v17, %v1653_v62  ;;  %v1652_v11 = vadd.f32 %v1493_v13, %v6387_v58  ;;  %v1887_v26 = vpop.f32.mrf.mxu0 }
 0x141   : > { %v4910_v27 = vpop.f32.mrf.mxu1 }
 0x142   : > { %v6594_v12 = vadd.f32 %v1887_v26, %v1652_v11  ;;  %v1655_v54 = vadd.f32 %v4910_v27, %v6396_v59  ;;  %v4974_v3 = vpop.f32.mrf.mxu0 }
 0x143   : > { %v1503_v25 = vpop.f32.mrf.mxu1 }
 0x144   : > { %v6597_v2 = vadd.f32 %v4974_v3, %v1655_v54  ;;  %v1654_v7 = vadd.f32 %v1503_v25, %v6401_v0  ;;  %v1897_v38 = vpop.f32.mrf.mxu0 }
 0x145   : > { %v4913_v60 = vpop.f32.mrf.mxu1 }
 0x146   : > { %v6600_v37 = vadd.f32 %v1897_v38, %v1654_v7  ;;  %v1657_v47 = vadd.f32 %v4913_v60, %v6410_v57  ;;  %v4977_v61 = vpop.f32.mrf.mxu0 }
 0x147   : > { %v1513_v58 = vpop.f32.mrf.mxu1 }
 0x148   : > { %v6603_v40 = vadd.f32 %v4977_v61, %v1657_v47  ;;  %v1656_v14 = vadd.f32 %v1513_v58, %v6415_v31  ;;  %v1907_v4 = vpop.f32.mrf.mxu0 }
 0x149   : > { %v4916_v59 = vpop.f32.mrf.mxu1 }
 0x14a   : > { %v6606_v63 = vadd.f32 %v1907_v4, %v1656_v14  ;;  %v1659_v6 = vadd.f32 %v4916_v59, %v6424_v21  ;;  %v4980_v46 = vpop.f32.mrf.mxu0 }
 0x14b   : > { %v1523_v0 = vpop.f32.mrf.mxu1 }
 0x14c   : > { %v6609_v35 = vadd.f32 %v4980_v46, %v1659_v6  ;;  %v1658_v22 = vadd.f32 %v1523_v0, %v6429_v8  ;;  %v1917_v49 = vpop.f32.mrf.mxu0 }
 0x14d   : > { %v4919_v57 = vpop.f32.mrf.mxu1 }
 0x14e   : > { %v6612_v48 = vadd.f32 %v1917_v49, %v1658_v22  ;;  %v1661_v10 = vadd.f32 %v4919_v57, %v6438_v33  ;;  %v4983_v1 = vpop.f32.mrf.mxu0 }
 0x14f   : > { %v1533_v31 = vpop.f32.mrf.mxu1 }
 0x150   : > { %v6615_v30 = vadd.f32 %v4983_v1, %v1661_v10  ;;  %v1660_v50 = vadd.f32 %v1533_v31, %v6443_v19  ;;  %v1927_v51 = vpop.f32.mrf.mxu0 }
 0x151   : > { %v4922_v21 = vpop.f32.mrf.mxu1 }
 0x152   : > { %v6618_v62 = vadd.f32 %v1927_v51, %v1660_v50  ;;  %v1663_v17 = vadd.f32 %v4922_v21, %v6452_v45  ;;  %v4986_v13 = vpop.f32.mrf.mxu0 }
 0x153   : > { %v1543_v8 = vpop.f32.mrf.mxu1 }
 0x154   : > { %v6621_v11 = vadd.f32 %v4986_v13, %v1663_v17  ;;  %v1662_v26 = vadd.f32 %v1543_v8, %v6457_v15  ;;  %v1937_v27 = vpop.f32.mrf.mxu0 }
 0x155   : > { %v4925_v33 = vpop.f32.mrf.mxu1 }
 0x156   : > { %v6624_v54 = vadd.f32 %v1937_v27, %v1662_v26  ;;  %v1665_v3 = vadd.f32 %v4925_v33, %v6466_v16  ;;  %v4989_v25 = vpop.f32.mrf.mxu0 }
 0x157   : > { %v1553_v19 = vpop.f32.mrf.mxu1 }
 0x158   : > { %v6627_v7 = vadd.f32 %v4989_v25, %v1665_v3  ;;  %v1664_v38 = vadd.f32 %v1553_v19, %v6471_v32  ;;  %v1947_v60 = vpop.f32.mrf.mxu0 }
 0x159   : > { %v4928_v45 = vpop.f32.mrf.mxu1 }
 0x15a   : > { %v6630_v47 = vadd.f32 %v1947_v60, %v1664_v38  ;;  %v1667_v61 = vadd.f32 %v4928_v45, %v6480_v34  ;;  %v4992_v58 = vpop.f32.mrf.mxu0 }
 0x15b   : > { %v1563_v15 = vpop.f32.mrf.mxu1 }
 0x15c   : > { %v6633_v14 = vadd.f32 %v4992_v58, %v1667_v61  ;;  %v1666_v4 = vadd.f32 %v1563_v15, %v6485_v43  ;;  %v1957_v59 = vpop.f32.mrf.mxu0 }
 0x15d   : > { %v4931_v16 = vpop.f32.mrf.mxu1 }
 0x15e   : > { %v6636_v6 = vadd.f32 %v1957_v59, %v1666_v4  ;;  %v1669_v46 = vadd.f32 %v4931_v16, %v6494_v44  ;;  %v4995_v0 = vpop.f32.mrf.mxu0 }
 0x15f   : > { %v1573_v32 = vpop.f32.mrf.mxu1 }
 0x160   : > { %v6639_v22 = vadd.f32 %v4995_v0, %v1669_v46  ;;  %v1668_v49 = vadd.f32 %v1573_v32, %v6499_v24  ;;  %v1967_v57 = vpop.f32.mrf.mxu0 }
 0x161   : > { %v4934_v34 = vpop.f32.mrf.mxu1 }
 0x162   : > { %v6642_v10 = vadd.f32 %v1967_v57, %v1668_v49  ;;  %v1671_v1 = vadd.f32 %v4934_v34, %v6508_v23  ;;  %v4998_v31 = vpop.f32.mrf.mxu0 }
 0x163   : > { %v1583_v43 = vpop.f32.mrf.mxu1 }
 0x164   : > { %v6645_v50 = vadd.f32 %v4998_v31, %v1671_v1  ;;  %v1670_v51 = vadd.f32 %v1583_v43, %v6513_v9  ;;  %v1977_v21 = vpop.f32.mrf.mxu0 }
 0x165   : > { %v4937_v44 = vpop.f32.mrf.mxu1 }
 0x166   : > { %7073 = vst [vmem:[#allocation2_spill] sm:$0xff] %v6645_v50  ;;  %v6648_v17 = vadd.f32 %v1977_v21, %v1670_v51  ;;  %v1673_v13 = vadd.f32 %v4937_v44, %v6522_v20  ;;  %v5001_v8 = vpop.f32.mrf.mxu0 }
 0x167   : > { %v1593_v24 = vpop.f32.mrf.mxu1 }
 0x168   : > { %7074 = vst [vmem:[#allocation3_spill] sm:$0xff] %v6648_v17  ;;  %v6651_v26 = vadd.f32 %v5001_v8, %v1673_v13  ;;  %v1672_v27 = vadd.f32 %v1593_v24, %v6527_v5  ;;  %v1987_v33 = vpop.f32.mrf.mxu0 }
 0x169   : > { %v4940_v23 = vpop.f32.mrf.mxu1 }
 0x16a   : > { %7075 = vst [vmem:[#allocation4_spill] sm:$0xff] %v6651_v26  ;;  %v6654_v3 = vadd.f32 %v1987_v33, %v1672_v27  ;;  %v1675_v25 = vadd.f32 %v4940_v23, %v6536_v18  ;;  %v5004_v19 = vpop.f32.mrf.mxu0 }
 0x16b   : > { %v1603_v9 = vpop.f32.mrf.mxu1 }
 0x16c   : > { %7076 = vst [vmem:[#allocation5_spill] sm:$0xff] %v6654_v3  ;;  %v6657_v38 = vadd.f32 %v5004_v19, %v1675_v25  ;;  %v1674_v60 = vadd.f32 %v1603_v9, %v6541_v42  ;;  %v1997_v45 = vpop.f32.mrf.mxu0 }
 0x16d   : > { %v4943_v20 = vpop.f32.mrf.mxu1 }
 0x16e   : > { %7077 = vst [vmem:[#allocation6_spill] sm:$0xff] %v6657_v38  ;;  %v6660_v61 = vadd.f32 %v1997_v45, %v1674_v60  ;;  %v1677_v58 = vadd.f32 %v4943_v20, %v6549_v41  ;;  %v5007_v15 = vpop.f32.mrf.mxu0 }
 0x16f   : > { %v1613_v5 = vpop.f32.mrf.mxu1 }
 0x170   : > { %7078 = vst [vmem:[#allocation7_spill] sm:$0xff] %v6660_v61  ;;  %v6663_v4 = vadd.f32 %v5007_v15, %v1677_v58  ;;  %v1676_v59 = vadd.f32 %v1613_v5, %v6553_v28  ;;  %v2007_v16 = vpop.f32.mrf.mxu0 }
 0x171   : > { %v4946_v18 = vpop.f32.mrf.mxu1 }
 0x172   : > { %7079 = vst [vmem:[#allocation8_spill] sm:$0xff] %v6663_v4  ;;  %v6666_v46 = vadd.f32 %v2007_v16, %v1676_v59  ;;  %v1679_v0 = vadd.f32 %v4946_v18, %v6562_v36  ;;  %v5010_v32 = vpop.f32.mrf.mxu0 }
 0x173   : > { %v1623_v42 = vpop.f32.mrf.mxu1 }
 0x174   : > { %7080 = vst [vmem:[#allocation9_spill] sm:$0xff] %v6666_v46  ;;  %v6669_v49 = vadd.f32 %v5010_v32, %v1679_v0  ;;  %v1678_v57 = vadd.f32 %v1623_v42, %v6568_v39  ;;  %v2017_v34 = vpop.f32.mrf.mxu0 }
 0x175   : > { %v4949_v41 = vpop.f32.mrf.mxu1 }
 0x176   : > { %7081 = vst [vmem:[#allocation10_spill] sm:$0xff] %v6669_v49  ;;  %v6672_v1 = vadd.f32 %v2017_v34, %v1678_v57  ;;  %v1681_v31 = vadd.f32 %v4949_v41, %v6577_v55  ;;  %v5013_v43 = vpop.f32.mrf.mxu0 }
 0x177   : > { %v1633_v28 = vpop.f32.mrf.mxu1 }
 0x178   : > { %7082 = vst [vmem:[#allocation11_spill] sm:$0xff] %v6672_v1  ;;  %v6675_v51 = vadd.f32 %v5013_v43, %v1681_v31  ;;  %v1680_v21 = vadd.f32 %v1633_v28, %v6581_v52  ;;  %v2027_v44 = vpop.f32.mrf.mxu0 }
 0x179   : > { %v4952_v36 = vpop.f32.mrf.mxu1 }
 0x17a   : > { %7083 = vst [vmem:[#allocation12_spill] sm:$0xff] %v6675_v51  ;;  %v6678_v13 = vadd.f32 %v2027_v44, %v1680_v21  ;;  %v1683_v8 = vadd.f32 %v4952_v36, %v6585_v29  ;;  %v5016_v24 = vpop.f32.mrf.mxu0 }
 0x17b   : > { %v1643_v39 = vpop.f32.mrf.mxu1 }
 0x17c   : > { %7084 = vst [vmem:[#allocation13_spill] sm:$0xff] %v6678_v13  ;;  %v6681_v27 = vadd.f32 %v5016_v24, %v1683_v8  ;;  %v1682_v33 = vadd.f32 %v1643_v39, %v6588_v53  ;;  %v2037_v23 = vpop.f32.mrf.mxu0 }
 0x17d   : > { %v5035_v55 = vpop.f32.mrf.mxu1 }
 0x17e   : > { %7085 = vst [vmem:[#allocation14_spill] sm:$0xff] %v6681_v27  ;;  %v6684_v25 = vadd.f32 %v2037_v23, %v1682_v33  ;;  %v6686_v19 = vpop.f32.mrf.mxu0 }
 0x17f   : > { %v2281_v9 = vpop.f32.mrf.mxu1 }
 0x180   : > { %7086 = vst [vmem:[#allocation15_spill] sm:$0xff] %v6684_v25  ;;  %v6688_v52 = vpop.f32.mrf.mxu0 }
 0x181   : > { %v5038_v60 = vpop.f32.mrf.mxu1 }
 0x182   : > { %v6690_v45 = vpop.f32.mrf.mxu0 }
 0x183   : > { %v6692_v20 = vpop.f32.mrf.mxu1 }
 0x184   : > { %v6694_v29 = vpop.f32.mrf.mxu0 }
 0x185   : > { %v6696_v58 = vpop.f32.mrf.mxu1 }
 0x186   : > { %v6698_v15 = vpop.f32.mrf.mxu0 }
 0x187   : > { %v6700_v53 = vpop.f32.mrf.mxu1 }
 0x188   : > { %v6702_v5 = vpop.f32.mrf.mxu0 }
 0x189   : > { %v6704_v59 = vpop.f32.mrf.mxu1 }
 0x18a   : > { %v6706_v16 = vpop.f32.mrf.mxu0 }
 0x18b   : > { %v6708_v18 = vpop.f32.mrf.mxu1 }
 0x18c   : > { %v6710_v0 = vpop.f32.mrf.mxu0 }
 0x18d   : > { %v6712_v32 = vpop.f32.mrf.mxu1 }
 0x18e   : > { %v6714_v42 = vpop.f32.mrf.mxu0 }
 0x18f   : > { %v6716_v57 = vpop.f32.mrf.mxu1 }
 0x190   : > { %v6718_v34 = vpop.f32.mrf.mxu0 }
 0x191   : > { %v6720_v41 = vpop.f32.mrf.mxu1 }
 0x192   : > { %v6722_v31 = vpop.f32.mrf.mxu0 }
 0x193   : > { %v6724_v43 = vpop.f32.mrf.mxu1 }
 0x194   : > { %v6726_v28 = vpop.f32.mrf.mxu0 }
 0x195   : > { %v6728_v21 = vpop.f32.mrf.mxu1 }
 0x196   : > { %v6730_v44 = vpop.f32.mrf.mxu0 }
 0x197   : > { %v6732_v36 = vpop.f32.mrf.mxu1 }
 0x198   : > { %v6734_v8 = vpop.f32.mrf.mxu0 }
 0x199   : > { %v6736_v24 = vpop.f32.mrf.mxu1 }
 0x19a   : > { %v6738_v39 = vpop.f32.mrf.mxu0 }
 0x19b   : > { %v6740_v33 = vpop.f32.mrf.mxu1 }
 0x19c   : > { %v6742_v23 = vpop.f32.mrf.mxu0 }
 0x19d   : > { %v6744_v25 = vpop.f32.mrf.mxu1 }
 0x19e   : > { %v6746_v27 = vpop.f32.mrf.mxu0 }
 0x19f   : > { %v6748_v13 = vpop.f32.mrf.mxu1 }
 0x1a0   : > { %v6750_v51 = vpop.f32.mrf.mxu0 }
 0x1a1   : > { %7087 = vst [vmem:[#allocation16_spill] sm:$0xff] %v6750_v51  ;;  %v6752_v1 = vpop.f32.mrf.mxu1 }
 0x1a2   : > { %7088 = vst [vmem:[#allocation17_spill] sm:$0xff] %v6752_v1  ;;  %v6754_v49 = vpop.f32.mrf.mxu0 }
 0x1a3   : > { %7089 = vst [vmem:[#allocation18_spill] sm:$0xff] %v6754_v49  ;;  %v6756_v46 = vpop.f32.mrf.mxu1 }
 0x1a4   : > { %7090 = vst [vmem:[#allocation19_spill] sm:$0xff] %v6756_v46  ;;  %v6758_v4 = vpop.f32.mrf.mxu0 }
 0x1a5   : > { %7091 = vst [vmem:[#allocation20_spill] sm:$0xff] %v6758_v4  ;;  %v6760_v61 = vpop.f32.mrf.mxu1 }
 0x1a6   : > { %7092 = vst [vmem:[#allocation21_spill] sm:$0xff] %v6760_v61  ;;  %v6762_v38 = vpop.f32.mrf.mxu0 }
 0x1a7   : > { %7093 = vst [vmem:[#allocation22_spill] sm:$0xff] %v6762_v38  ;;  %v6764_v3 = vpop.f32.mrf.mxu1 }
 0x1a8   : > { %7094 = vst [vmem:[#allocation23_spill] sm:$0xff] %v6764_v3  ;;  %v6766_v26 = vpop.f32.mrf.mxu0 }
 0x1a9   : > { %7095 = vst [vmem:[#allocation24_spill] sm:$0xff] %v6766_v26  ;;  %v6768_v17 = vpop.f32.mrf.mxu1 }
 0x1aa   : > { %7096 = vst [vmem:[#allocation25_spill] sm:$0xff] %v6768_v17  ;;  %v6770_v50 = vpop.f32.mrf.mxu0 }
 0x1ab   : > { %7097 = vst [vmem:[#allocation26_spill] sm:$0xff] %v6770_v50  ;;  %v6772_v51 = vpop.f32.mrf.mxu1 }
 0x1ac   : > { %7098 = vst [vmem:[#allocation27_spill] sm:$0xff] %v6772_v51  ;;  %v6774_v1 = vpop.f32.mrf.mxu0 }
 0x1ad   : > { %7099 = vst [vmem:[#allocation28_spill] sm:$0xff] %v6774_v1  ;;  %v6776_v49 = vpop.f32.mrf.mxu1 }
 0x1ae   : > { %7100 = vst [vmem:[#allocation29_spill] sm:$0xff] %v6776_v49  ;;  %v6778_v46 = vpop.f32.mrf.mxu0 }
 0x1af   : > { %7101 = vst [vmem:[#allocation30_spill] sm:$0xff] %v6778_v46  ;;  %v6780_v4 = vpop.f32.mrf.mxu1  ;;  %v2441_v46 = vadd.f32 %v5035_v55, %v6591_v56  ;;  %v2442_v56 = vadd.f32 %v6692_v20, %v6600_v37  ;;  %v2444_v37 = vadd.f32 %v6700_v53, %v6606_v63  ;;  %v2447_v63 = vadd.f32 %v6704_v59, %v6609_v35 }
 0x1b0   : > { %7102 = vst [vmem:[#allocation31_spill] sm:$0xff] %v6780_v4  ;;  %v6782_v61 = vpop.f32.mrf.mxu0  ;;  %v2449_v59 = vadd.f32 %v6712_v32, %v6615_v30 }
 0x1b1   : > { %7103 = vst [vmem:[#allocation32_spill] sm:$0xff] %v6782_v61  ;;  %v6784_v38 = vpop.f32.mrf.mxu1 }
 0x1b2   : > { %7104 = vst [vmem:[#allocation33_spill] sm:$0xff] %v6784_v38  ;;  %v6786_v3 = vpop.f32.mrf.mxu0  ;;  %v2440_v38 = vadd.f32 %v2281_v9, %v6594_v12  ;;  %v2445_v12 = vadd.f32 %v6696_v58, %v6603_v40 }
 0x1b3   : > { %7105 = vst [vmem:[#allocation34_spill] sm:$0xff] %v6786_v3  ;;  %v6788_v26 = vpop.f32.mrf.mxu1 }
 0x1b4   : > { %7106 = vst [vmem:[#allocation35_spill] sm:$0xff] %v6788_v26  ;;  %v6790_v17 = vpop.f32.mrf.mxu0 }
 0x1b5   : > { %7107 = vst [vmem:[#allocation36_spill] sm:$0xff] %v6790_v17  ;;  %v6792_v50 = vpop.f32.mrf.mxu1  ;;  %v2836_v17 = vadd.f32 %v6686_v19, %v2441_v46  ;;  %v6821_v46 = vld [vmem:[%s6981_s2] ss:$0 sm:$0xff] }
 0x1b6   : > { %7108 = vst [vmem:[#allocation37_spill] sm:$0xff] %v6792_v50  ;;  %v6794_v1 = vpop.f32.mrf.mxu0  ;;  %v2443_v50 = vadd.f32 %v5038_v60, %v6597_v2 }
 0x1b7   : > { %7109 = vst [vmem:[#allocation38_spill] sm:$0xff] %v6794_v1  ;;  %v6796_v49 = vpop.f32.mrf.mxu1 }
 0x1b8   : > { %7110 = vst [vmem:[#allocation39_spill] sm:$0xff] %v6796_v49  ;;  %v6799_v4 = vpop.f32.mrf.mxu0  ;;  %v2835_v49 = vadd.f32 %v6688_v52, %v2440_v38  ;;  %v2838_v19 = vadd.f32 %v6690_v45, %v2443_v50 }
 0x1b9   : > { %7111 = vst [vmem:[#allocation40_spill] sm:$0xff] %v6799_v4  ;;  %v6801_v61 = vpop.f32.mrf.mxu1 }
 0x1ba   : > { %v6804_v3 = vpop.f32.mrf.mxu0 }
 0x1bb   : > { %v6806_v26 = vpop.f32.mrf.mxu1 }
 0x1bc   : > { %v6810_v51 = vpop.f32.mrf.mxu0 }
 0x1bd   : > { %v5163_v1 = vpop.f32.mrf.mxu1 }
 0x1be   : > { %v3230_v55 = vadd.f32 %v5163_v1, %v2836_v17  ;;  %v5227_v4 = vpop.f32.mrf.mxu0  ;;  %v2837_v17 = vadd.f32 %v6694_v29, %v2442_v56  ;;  %v2839_v29 = vadd.f32 %v6702_v5, %v2444_v37 }
 0x1bf   : > { %v3070_v2 = vpop.f32.mrf.mxu1 }
 0x1c0   : > { %v3624_v9 = vadd.f32 %v5227_v4, %v3230_v55  ;;  %v3229_v60 = vadd.f32 %v3070_v2, %v2835_v49  ;;  %v3464_v38 = vpop.f32.mrf.mxu0  ;;  %v2840_v49 = vadd.f32 %v6698_v15, %v2445_v12  ;;  %v2446_v2 = vadd.f32 %v6708_v18, %v6612_v48 }
 0x1c1   : > { %v5166_v40 = vpop.f32.mrf.mxu1  ;;  %v2448_v18 = vadd.f32 %v6716_v57, %v6618_v62 }
 0x1c2   : > { %v3663_v1 = vadd.f32 %v6821_v46, %v3624_v9  ;;  %v3623_v52 = vadd.f32 %v3464_v38, %v3229_v60  ;;  %v3232_v50 = vadd.f32 %v5166_v40, %v2838_v19  ;;  %v5230_v4 = vpop.f32.mrf.mxu0  ;;  %v2842_v60 = vadd.f32 %v6706_v16, %v2447_v63 }
 0x1c3   : > { %v3080_v45 = vpop.f32.mrf.mxu1 }
 0x1c4   : > { %3695 = vst [vmem:[%s6829_s20 + $0x8] sm:$0xff] %v3663_v1  ;;  %v3662_v20 = vadd.f32 %v6821_v46, %v3623_v52  ;;  %v3626_v58 = vadd.f32 %v5230_v4, %v3232_v50  ;;  %v3231_v53 = vadd.f32 %v3080_v45, %v2837_v17  ;;  %v3474_v55 = vpop.f32.mrf.mxu0  ;;  %v2841_v17 = vadd.f32 %v6710_v0, %v2446_v2 }
 0x1c5   : > { %v5169_v56 = vpop.f32.mrf.mxu1  ;;  %v2844_v52 = vadd.f32 %v6714_v42, %v2449_v59  ;;  %v2451_v4 = vadd.f32 %v6720_v41, %v6621_v11  ;;  %v2843_v45 = vadd.f32 %v6718_v34, %v2448_v18  ;;  %v2453_v41 = vadd.f32 %v6728_v21, %v6627_v7 }
 0x1c6   : > { %3694 = vst [vmem:[%s6829_s20] sm:$0xff] %v3662_v20  ;;  %v3665_v15 = vadd.f32 %v6821_v46, %v3626_v58  ;;  %v3625_v12 = vadd.f32 %v3474_v55, %v3231_v53  ;;  %v3234_v19 = vadd.f32 %v5169_v56, %v2840_v49  ;;  %v5233_v35 = vpop.f32.mrf.mxu0  ;;  %v2450_v20 = vadd.f32 %v6724_v43, %v6624_v54 }
 0x1c7   : > { %v3090_v9 = vpop.f32.mrf.mxu1  ;;  %v2452_v43 = vadd.f32 %v6732_v36, %v6630_v47 }
 0x1c8   : > { %3697 = vst [vmem:[%s6829_s20 + $0x18] sm:$0xff] %v3665_v15  ;;  %v3664_v5 = vadd.f32 %v6821_v46, %v3625_v12  ;;  %v3628_v38 = vadd.f32 %v5233_v35, %v3234_v19  ;;  %v3233_v37 = vadd.f32 %v3090_v9, %v2839_v29  ;;  %v3484_v48 = vpop.f32.mrf.mxu0  ;;  %v2846_v29 = vadd.f32 %v6722_v31, %v2451_v4 }
 0x1c9   : > { %v5172_v40 = vpop.f32.mrf.mxu1  ;;  %v2845_v12 = vadd.f32 %v6726_v28, %v2450_v20  ;;  %v2848_v35 = vadd.f32 %v6730_v44, %v2453_v41  ;;  %v2455_v9 = vadd.f32 %v6736_v24, %v6633_v14  ;;  %v2457_v24 = vadd.f32 %v6744_v25, %v6639_v22 }
 0x1ca   : > { %3696 = vst [vmem:[%s6829_s20 + $0x10] sm:$0xff] %v3664_v5  ;;  %v3667_v30 = vadd.f32 %v6821_v46, %v3628_v38  ;;  %v3627_v32 = vadd.f32 %v3484_v48, %v3233_v37  ;;  %v3236_v1 = vadd.f32 %v5172_v40, %v2842_v60  ;;  %v5236_v16 = vpop.f32.mrf.mxu0  ;;  %v2847_v5 = vadd.f32 %v6734_v8, %v2452_v43 }
 0x1cb   : > { %v3100_v50 = vpop.f32.mrf.mxu1  ;;  %v2454_v37 = vadd.f32 %v6740_v33, %v6636_v6  ;;  %v2456_v33 = vadd.f32 %v6748_v13, %v6642_v10 }
 0x1cc   : > { %3699 = vst [vmem:[%s6829_s20 + $0x28] sm:$0xff] %v3667_v30  ;;  %v3666_v62 = vadd.f32 %v6821_v46, %v3627_v32  ;;  %v3630_v57 = vadd.f32 %v5236_v16, %v3236_v1  ;;  %v3235_v49 = vadd.f32 %v3100_v50, %v2841_v17  ;;  %v3494_v0 = vpop.f32.mrf.mxu0  ;;  %v2850_v17 = vadd.f32 %v6738_v39, %v2455_v9  ;;  %v7122_v9 = vld [vmem:[#allocation20_spill] sm:$0xff] }
 0x1cd   : > { %v5175_v63 = vpop.f32.mrf.mxu1  ;;  %v2849_v16 = vadd.f32 %v6742_v23, %v2454_v37  ;;  %v2852_v50 = vadd.f32 %v6746_v27, %v2457_v24 }
 0x1ce   : > { %3698 = vst [vmem:[%s6829_s20 + $0x20] sm:$0xff] %v3666_v62  ;;  %v3669_v42 = vadd.f32 %v6821_v46, %v3630_v57  ;;  %v3629_v58 = vadd.f32 %v3494_v0, %v3235_v49  ;;  %v3238_v53 = vadd.f32 %v5175_v63, %v2844_v52  ;;  %v5239_v11 = vpop.f32.mrf.mxu0  ;;  %v7112_v62 = vld [vmem:[#allocation2_spill] sm:$0xff]  ;;  %v7113_v57 = vld [vmem:[#allocation17_spill] sm:$0xff] }
 0x1cf   : > { %v3110_v55 = vpop.f32.mrf.mxu1  ;;  %v2459_v49 = vadd.f32 %v7113_v57, %v7112_v62 }
 0x1d0   : > { %3701 = vst [vmem:[%s6829_s20 + $0x38] sm:$0xff] %v3669_v42  ;;  %v3668_v34 = vadd.f32 %v6821_v46, %v3629_v58  ;;  %v3632_v56 = vadd.f32 %v5239_v11, %v3238_v53  ;;  %v3237_v2 = vadd.f32 %v3110_v55, %v2843_v45  ;;  %v3504_v54 = vpop.f32.mrf.mxu0  ;;  %v7114_v45 = vld [vmem:[#allocation16_spill] sm:$0xff]  ;;  %v7115_v42 = vld [vmem:[#allocation3_spill] sm:$0xff] }
 0x1d1   : > { %v5178_v15 = vpop.f32.mrf.mxu1  ;;  %v2851_v63 = vadd.f32 %v7114_v45, %v2456_v33  ;;  %v7116_v58 = vld [vmem:[#allocation19_spill] sm:$0xff] }
 0x1d2   : > { %3700 = vst [vmem:[%s6829_s20 + $0x30] sm:$0xff] %v3668_v34  ;;  %v3671_v7 = vadd.f32 %v6821_v46, %v3632_v56  ;;  %v3631_v21 = vadd.f32 %v3504_v54, %v3237_v2  ;;  %v3240_v19 = vadd.f32 %v5178_v15, %v2846_v29  ;;  %v5242_v31 = vpop.f32.mrf.mxu0  ;;  %v2458_v53 = vadd.f32 %v7116_v58, %v7115_v42  ;;  %v7117_v29 = vld [vmem:[#allocation4_spill] sm:$0xff]  ;;  %v7118_v34 = vld [vmem:[#allocation21_spill] sm:$0xff]  ;;  %v7119_v54 = vld [vmem:[#allocation18_spill] sm:$0xff] }
 0x1d3   : > { %v3120_v59 = vpop.f32.mrf.mxu1  ;;  %v2461_v56 = vadd.f32 %v7118_v34, %v7117_v29  ;;  %v2854_v43 = vadd.f32 %v7119_v54, %v2459_v49  ;;  %v7127_v33 = vld [vmem:[#allocation7_spill] sm:$0xff]  ;;  %v7131_v49 = vld [vmem:[#allocation26_spill] sm:$0xff] }
 0x1d4   : > { %3703 = vst [vmem:[%s6829_s20 + $0x48] sm:$0xff] %v3671_v7  ;;  %v3670_v47 = vadd.f32 %v6821_v46, %v3631_v21  ;;  %v3634_v36 = vadd.f32 %v5242_v31, %v3240_v19  ;;  %v3239_v60 = vadd.f32 %v3120_v59, %v2845_v12  ;;  %v3514_v28 = vpop.f32.mrf.mxu0  ;;  %v7120_v19 = vld [vmem:[#allocation5_spill] sm:$0xff]  ;;  %v7121_v31 = vld [vmem:[#allocation23_spill] sm:$0xff]  ;;  %v7135_v34 = vld [vmem:[#allocation30_spill] sm:$0xff] }
 0x1d5   : > { %v5181_v38 = vpop.f32.mrf.mxu1  ;;  %v7136_v54 = vld [vmem:[#allocation10_spill] sm:$0xff] }
 0x1d6   : > { %3702 = vst [vmem:[%s6829_s20 + $0x40] sm:$0xff] %v3670_v47  ;;  %v3673_v44 = vadd.f32 %v6821_v46, %v3634_v36  ;;  %v3633_v48 = vadd.f32 %v3514_v28, %v3239_v60  ;;  %v3242_v18 = vadd.f32 %v5181_v38, %v2848_v35  ;;  %v5245_v14 = vpop.f32.mrf.mxu0  ;;  %v2460_v35 = vadd.f32 %v7121_v31, %v7120_v19  ;;  %v7123_v38 = vld [vmem:[#allocation22_spill] sm:$0xff]  ;;  %v7138_v31 = vld [vmem:[#allocation32_spill] sm:$0xff] }
 0x1d7   : > { %v3130_v40 = vpop.f32.mrf.mxu1  ;;  %v2853_v47 = vadd.f32 %v7122_v9, %v2458_v53  ;;  %v2856_v37 = vadd.f32 %v7123_v38, %v2461_v56  ;;  %v7134_v53 = vld [vmem:[#allocation28_spill] sm:$0xff]  ;;  %v7139_v9 = vld [vmem:[#allocation11_spill] sm:$0xff] }
 0x1d8   : > { %3705 = vst [vmem:[%s6829_s20 + $0x58] sm:$0xff] %v3673_v44  ;;  %v3672_v8 = vadd.f32 %v6821_v46, %v3633_v48  ;;  %v3636_v30 = vadd.f32 %v5245_v14, %v3242_v18  ;;  %v3241_v32 = vadd.f32 %v3130_v40, %v2847_v5  ;;  %v3524_v6 = vpop.f32.mrf.mxu0  ;;  %v7124_v48 = vld [vmem:[#allocation6_spill] sm:$0xff]  ;;  %v7125_v18 = vld [vmem:[#allocation25_spill] sm:$0xff] }
 0x1d9   : > { %v5184_v1 = vpop.f32.mrf.mxu1  ;;  %v2463_v14 = vadd.f32 %v7125_v18, %v7124_v48 }
 0x1da   : > { %3704 = vst [vmem:[%s6829_s20 + $0x50] sm:$0xff] %v3672_v8  ;;  %v3675_v22 = vadd.f32 %v6821_v46, %v3636_v30  ;;  %v3635_v25 = vadd.f32 %v3524_v6, %v3241_v32  ;;  %v3244_v52 = vadd.f32 %v5184_v1, %v2850_v17  ;;  %v5248_v39 = vpop.f32.mrf.mxu0  ;;  %v7126_v30 = vld [vmem:[#allocation24_spill] sm:$0xff]  ;;  %v7128_v1 = vld [vmem:[#allocation27_spill] sm:$0xff] }
 0x1db   : > { %v3140_v4 = vpop.f32.mrf.mxu1  ;;  %v2855_v32 = vadd.f32 %v7126_v30, %v2460_v35 }
 0x1dc   : > { %3707 = vst [vmem:[%s6829_s20 + $0x68] sm:$0xff] %v3675_v22  ;;  %v3674_v10 = vadd.f32 %v6821_v46, %v3635_v25  ;;  %v3638_v13 = vadd.f32 %v5248_v39, %v3244_v52  ;;  %v3243_v0 = vadd.f32 %v3140_v4, %v2849_v16  ;;  %v3534_v23 = vpop.f32.mrf.mxu0  ;;  %v2462_v16 = vadd.f32 %v7128_v1, %v7127_v33  ;;  %v7130_v4 = vld [vmem:[#allocation29_spill] sm:$0xff] }
 0x1dd   : > { %v5187_v20 = vpop.f32.mrf.mxu1 }
 0x1de   : > { %3706 = vst [vmem:[%s6829_s20 + $0x60] sm:$0xff] %v3674_v10  ;;  %v3677_v27 = vadd.f32 %v6821_v46, %v3638_v13  ;;  %v3637_v11 = vadd.f32 %v3534_v23, %v3243_v0  ;;  %v3246_v41 = vadd.f32 %v5187_v20, %v2852_v50  ;;  %v5251_v55 = vpop.f32.mrf.mxu0  ;;  %v7129_v50 = vld [vmem:[#allocation8_spill] sm:$0xff]  ;;  %v2858_v10 = vadd.f32 %v7131_v49, %v2463_v14  ;;  %v7133_v20 = vld [vmem:[#allocation31_spill] sm:$0xff]  ;;  %v7143_v14 = vld [vmem:[#allocation34_spill] sm:$0xff] }
 0x1df   : > { %v3150_v2 = vpop.f32.mrf.mxu1  ;;  %v2465_v62 = vadd.f32 %v7130_v4, %v7129_v50  ;;  %v7147_v4 = vld [vmem:[#allocation38_spill] sm:$0xff] }
 0x1e0   : > { %3709 = vst [vmem:[%s6829_s20 + $0x78] sm:$0xff] %v3677_v27  ;;  %v3676_v15 = vadd.f32 %v6821_v46, %v3637_v11  ;;  %v3640_v12 = vadd.f32 %v5251_v55, %v3246_v41  ;;  %v3245_v7 = vadd.f32 %v3150_v2, %v2851_v63  ;;  %v3544_v21 = vpop.f32.mrf.mxu0  ;;  %v7132_v63 = vld [vmem:[#allocation9_spill] sm:$0xff]  ;;  %v2857_v27 = vadd.f32 %v7134_v53, %v2462_v16  ;;  %v7146_v16 = vld [vmem:[#allocation36_spill] sm:$0xff]  ;;  %v7148_v49 = vld [vmem:[#allocation14_spill] sm:$0xff] }
 0x1e1   : > { %v5190_v59 = vpop.f32.mrf.mxu1  ;;  %v2464_v42 = vadd.f32 %v7133_v20, %v7132_v63  ;;  %v2860_v56 = vadd.f32 %v7135_v34, %v2465_v62  ;;  %v7149_v63 = vld [vmem:[#allocation40_spill] sm:$0xff] }
 0x1e2   : > { %3708 = vst [vmem:[%s6829_s20 + $0x70] sm:$0xff] %v3676_v15  ;;  %v3679_v36 = vadd.f32 %v6821_v46, %v3640_v12  ;;  %v3639_v60 = vadd.f32 %v3544_v21, %v3245_v7  ;;  %v3248_v28 = vadd.f32 %v5190_v59, %v2854_v43  ;;  %v5254_v5 = vpop.f32.mrf.mxu0  ;;  %v7137_v43 = vld [vmem:[#allocation33_spill] sm:$0xff] }
 0x1e3   : > { %v3160_v44 = vpop.f32.mrf.mxu1  ;;  %v2467_v15 = vadd.f32 %v7137_v43, %v7136_v54  ;;  %v2859_v35 = vadd.f32 %v7138_v31, %v2464_v42 }
 0x1e4   : > { %3711 = vst [vmem:[%s6829_s20 + $0x88] sm:$0xff] %v3679_v36  ;;  %v3678_v24 = vadd.f32 %v6821_v46, %v3639_v60  ;;  %v3642_v40 = vadd.f32 %v5254_v5, %v3248_v28  ;;  %v3247_v17 = vadd.f32 %v3160_v44, %v2853_v47  ;;  %v3554_v8 = vpop.f32.mrf.mxu0  ;;  %v7140_v47 = vld [vmem:[#allocation35_spill] sm:$0xff]  ;;  %v7142_v44 = vld [vmem:[#allocation37_spill] sm:$0xff] }
 0x1e5   : > { %v5193_v6 = vpop.f32.mrf.mxu1  ;;  %v2466_v36 = vadd.f32 %v7140_v47, %v7139_v9 }
 0x1e6   : > { %3710 = vst [vmem:[%s6829_s20 + $0x80] sm:$0xff] %v3678_v24  ;;  %v3681_v22 = vadd.f32 %v6821_v46, %v3642_v40  ;;  %v3641_v25 = vadd.f32 %v3554_v8, %v3247_v17  ;;  %v3250_v52 = vadd.f32 %v5193_v6, %v2856_v37  ;;  %v5257_v39 = vpop.f32.mrf.mxu0  ;;  %v7141_v37 = vld [vmem:[#allocation12_spill] sm:$0xff]  ;;  %v2862_v24 = vadd.f32 %v7143_v14, %v2467_v15  ;;  %v7145_v6 = vld [vmem:[#allocation39_spill] sm:$0xff] }
 0x1e7   : > { %v3170_v57 = vpop.f32.mrf.mxu1  ;;  %v2469_v48 = vadd.f32 %v7142_v44, %v7141_v37 }
 0x1e8   : > { %3713 = vst [vmem:[%s6829_s20 + $0x98] sm:$0xff] %v3681_v22  ;;  %v3680_v13 = vadd.f32 %v6821_v46, %v3641_v25  ;;  %v3644_v0 = vadd.f32 %v5257_v39, %v3250_v52  ;;  %v3249_v23 = vadd.f32 %v3170_v57, %v2855_v32  ;;  %v3564_v45 = vpop.f32.mrf.mxu0  ;;  %v7144_v32 = vld [vmem:[#allocation13_spill] sm:$0xff]  ;;  %v2861_v22 = vadd.f32 %v7146_v16, %v2466_v36 }
 0x1e9   : > { %v5196_v58 = vpop.f32.mrf.mxu1  ;;  %v2468_v33 = vadd.f32 %v7145_v6, %v7144_v32  ;;  %v2864_v62 = vadd.f32 %v7147_v4, %v2469_v48 }
 0x1ea   : > { %3712 = vst [vmem:[%s6829_s20 + $0x90] sm:$0xff] %v3680_v13  ;;  %v3683_v11 = vadd.f32 %v6821_v46, %v3644_v0  ;;  %v3643_v41 = vadd.f32 %v3564_v45, %v3249_v23  ;;  %v3252_v55 = vadd.f32 %v5196_v58, %v2858_v10  ;;  %v5260_v29 = vpop.f32.mrf.mxu0  ;;  %v2471_v10 = vadd.f32 %v6801_v61, %v7148_v49  ;;  %v7150_v58 = vld [vmem:[#allocation15_spill] sm:$0xff] }
 0x1eb   : > { %v3180_v2 = vpop.f32.mrf.mxu1  ;;  %v2863_v20 = vadd.f32 %v7149_v63, %v2468_v33  ;;  %v2470_v53 = vadd.f32 %v6806_v26, %v7150_v58 }
 0x1ec   : > { %3715 = vst [vmem:[%s6829_s20 + $0xa8] sm:$0xff] %v3683_v11  ;;  %v3682_v12 = vadd.f32 %v6821_v46, %v3643_v41  ;;  %v3646_v7 = vadd.f32 %v5260_v29, %v3252_v55  ;;  %v3251_v21 = vadd.f32 %v3180_v2, %v2857_v27  ;;  %v3574_v19 = vpop.f32.mrf.mxu0  ;;  %v2866_v29 = vadd.f32 %v6804_v3, %v2471_v10 }
 0x1ed   : > { %v5199_v59 = vpop.f32.mrf.mxu1  ;;  %v2865_v26 = vadd.f32 %v6810_v51, %v2470_v53 }
 0x1ee   : > { %3714 = vst [vmem:[%s6829_s20 + $0xa0] sm:$0xff] %v3682_v12  ;;  %v3685_v60 = vadd.f32 %v6821_v46, %v3646_v7  ;;  %v3645_v28 = vadd.f32 %v3574_v19, %v3251_v21  ;;  %v3254_v5 = vadd.f32 %v5199_v59, %v2860_v56  ;;  %v5263_v38 = vpop.f32.mrf.mxu0 }
 0x1ef   : > { %v3190_v18 = vpop.f32.mrf.mxu1 }
 0x1f0   : > { %3717 = vst [vmem:[%s6829_s20 + $0xb8] sm:$0xff] %v3685_v60  ;;  %v3684_v40 = vadd.f32 %v6821_v46, %v3645_v28  ;;  %v3648_v17 = vadd.f32 %v5263_v38, %v3254_v5  ;;  %v3253_v8 = vadd.f32 %v3190_v18, %v2859_v35  ;;  %v3584_v30 = vpop.f32.mrf.mxu0 }
 0x1f1   : > { %v5202_v1 = vpop.f32.mrf.mxu1 }
 0x1f2   : > { %3716 = vst [vmem:[%s6829_s20 + $0xb0] sm:$0xff] %v3684_v40  ;;  %v3687_v25 = vadd.f32 %v6821_v46, %v3648_v17  ;;  %v3647_v52 = vadd.f32 %v3584_v30, %v3253_v8  ;;  %v3256_v39 = vadd.f32 %v5202_v1, %v2862_v24  ;;  %v5266_v50 = vpop.f32.mrf.mxu0 }
 0x1f3   : > { %v3200_v57 = vpop.f32.mrf.mxu1 }
 0x1f4   : > { %3719 = vst [vmem:[%s6829_s20 + $0xc8] sm:$0xff] %v3687_v25  ;;  %v3686_v13 = vadd.f32 %v6821_v46, %v3647_v52  ;;  %v3650_v0 = vadd.f32 %v5266_v50, %v3256_v39  ;;  %v3255_v23 = vadd.f32 %v3200_v57, %v2861_v22  ;;  %v3594_v45 = vpop.f32.mrf.mxu0 }
 0x1f5   : > { %v5205_v42 = vpop.f32.mrf.mxu1 }
 0x1f6   : > { %3718 = vst [vmem:[%s6829_s20 + $0xc0] sm:$0xff] %v3686_v13  ;;  %v3689_v27 = vadd.f32 %v6821_v46, %v3650_v0  ;;  %v3649_v11 = vadd.f32 %v3594_v45, %v3255_v23  ;;  %v3258_v41 = vadd.f32 %v5205_v42, %v2864_v62  ;;  %v5269_v61 = vpop.f32.mrf.mxu0 }
 0x1f7   : > { %v3210_v55 = vpop.f32.mrf.mxu1 }
 0x1f8   : > { %3721 = vst [vmem:[%s6829_s20 + $0xd8] sm:$0xff] %v3689_v27  ;;  %v3688_v34 = vadd.f32 %v6821_v46, %v3649_v11  ;;  %v3652_v56 = vadd.f32 %v5269_v61, %v3258_v41  ;;  %v3257_v2 = vadd.f32 %v3210_v55, %v2863_v20  ;;  %v3604_v54 = vpop.f32.mrf.mxu0 }
 0x1f9   : > { %v5208_v43 = vpop.f32.mrf.mxu1 }
 0x1fa   : > { %3720 = vst [vmem:[%s6829_s20 + $0xd0] sm:$0xff] %v3688_v34  ;;  %v3691_v15 = vadd.f32 %v6821_v46, %v3652_v56  ;;  %v3651_v12 = vadd.f32 %v3604_v54, %v3257_v2  ;;  %v3260_v7 = vadd.f32 %v5208_v43, %v2866_v29  ;;  %v5272_v21 = vpop.f32.mrf.mxu0 }
 0x1fb   : > { %v3220_v19 = vpop.f32.mrf.mxu1 }
 0x1fc   : > { %3723 = vst [vmem:[%s6829_s20 + $0xe8] sm:$0xff] %v3691_v15  ;;  %v3690_v3 = vadd.f32 %v6821_v46, %v3651_v12  ;;  %v3654_v31 = vadd.f32 %v5272_v21, %v3260_v7  ;;  %v3259_v35 = vadd.f32 %v3220_v19, %v2865_v26  ;;  %v3614_v59 = vpop.f32.mrf.mxu0 }
 0x1fe   : > { %3722 = vst [vmem:[%s6829_s20 + $0xe0] sm:$0xff] %v3690_v3  ;;  %v3693_v9 = vadd.f32 %v6821_v46, %v3654_v31  ;;  %v3653_v47 = vadd.f32 %v3614_v59, %v3259_v35 }
 0x200   : > { %3725 = vst [vmem:[%s6829_s20 + $0xf8] sm:$0xff] %v3693_v9  ;;  %v3692_v51 = vadd.f32 %v6821_v46, %v3653_v47 }
 0x202   : > { %3724 = vst [vmem:[%s6829_s20 + $0xf0] sm:$0xff] %v3692_v51 }
 0x203 PF: > { %s13_s12 = sadd.s32 1, %s5304_s12  }
 0x204   : > { %p10_p4 = scmp.ge.s32.totalorder %s13_s12, 4  }
 0x206   :  { %12 = sbr.rel (!%p10_p4) target bundleno = 1 (0x1), region = 72 }

// kernel: decoder_forward.2
= control target key start
LH: loop header
LB: loop body
LE: loop exit
PB: predicated region body
PF: predicated region fallthrough
CT: control target
= control target key end

     0   :  { %s8654_s25 = smov 0   ;;  %s11707_s0 = inlined_call_operand.vmem [shape: f32[2,10,10,32], index: 0, kind: input, shape index: {}]   ;;  %s11708_s1 = inlined_call_operand.vmem [shape: f32[9,32,128], index: 1, kind: input, shape index: {}]   ;;  %s11709_s2 = inlined_call_operand.vmem [shape: f32[1,128], index: 2, kind: input, shape index: {}]   ;;  %s11710_s3 = inlined_call_operand.vmem [shape: f32[9,128,32], index: 3, kind: input, shape index: {}]   ;;  %s11711_s4 = inlined_call_operand.vmem [shape: f32[1,32], index: 4, kind: input, shape index: {}]   ;;  %s11712_s5 = inlined_call_operand.vmem [shape: f32[32,128], index: 5, kind: input, shape index: {}]   ;;  %s11713_s6 = inlined_call_operand.vmem [shape: f32[1,128], index: 6, kind: input, shape index: {}]   ;;  %s11714_s7 = inlined_call_operand.vmem [shape: f32[9,128,32], index: 7, kind: input, shape index: {}]   ;;  %s11715_s8 = inlined_call_operand.vmem [shape: f32[1,32], index: 8, kind: input, shape index: {}]   ;;  %s11716_s9 = inlined_call_operand.vmem [shape: f32[32,128], index: 9, kind: input, shape index: {}]   ;;  %s11717_s10 = inlined_call_operand.vmem [shape: f32[1,128], index: 10, kind: input, shape index: {}]   ;;  %s11718_s11 = inlined_call_operand.vmem [shape: f32[9,128,256], index: 11, kind: input, shape index: {}]   ;;  %s11719_s12 = inlined_call_operand.vmem [shape: f32[1,256], index: 12, kind: input, shape index: {}]   ;;  %s11720_s13 = inlined_call_operand.vmem [shape: f32[2,64,256], index: 13, kind: output, shape index: {}]  }
   0x1 LB: > { %s6266_s26 = sadd.s32 4294967295, %s8581_s25   ;;  %p6270_p0 = scmp.ge.s32.totalorder %s8581_s25, 1  ;;  %s8581_s25 = sphi %s8654_s25, %s23_s25  }
   0x2   : > { %p387_p1 = scmp.lt.s32.totalorder %s8581_s25, 3 }
   0x4   : > { %p388_p2 = pnand %p6270_p0, %p387_p1 }
   0x6   : > { %391 = sbr.rel (%p388_p2) target bundleno = 1798 (0x706), region = 72 }
   0xb   : > { %v6277_v0 = vld [vmem:[%s11708_s1 + $0x38] sm:$0xff]  ;;  %v6276_v1 = vld [vmem:[%s11708_s1 + $0x30] sm:$0xff]  ;;  %p431_p3 = scmp.lt.s32.totalorder %s6266_s26, 1  ;;  %v6275_v4 = vld [vmem:[%s11708_s1 + $0x28] sm:$0xff]  ;;  %vm486_vm0 = vcmask 261120  }
   0xc   : > { %7526 = vmatprep.subr.mxu0 %v6277_v0  ;;  %v472_v2 = vld [vmem:[%s11708_s1 + $0x18] sm:$0xff]  ;;  %v471_v3 = vld [vmem:[%s11708_s1 + $0x10] sm:$0xff]  ;;  %v470_v5 = vld [vmem:[%s11708_s1 + $0x8] sm:$0xff] }
   0xd   : > { %7527 = vmatpush3.msra.mxu0 %v6277_v0  ;;  %s11825_s26 = smov (!%p431_p3, %s6266_s26), 1  ;;  %8538 = vmatprep.subr.mxu1 %v472_v2  ;;  %v6274_v6 = vld [vmem:[%s11708_s1 + $0x20] sm:$0xff]  ;;  %v6317_v17 = vld [vmem:[%s11708_s1 + $0x78] sm:$0xff]  ;;  %v6316_v22 = vld [vmem:[%s11708_s1 + $0x70] sm:$0xff] }
   0xe   : > { %7528 = vmatprep.subr.mxu0 %v6276_v1  ;;  %8542 = vmatpush3.msra.mxu1 %v472_v2  ;;  %s8546_s24 = smul.u32 160, %s11825_s26  ;;  %v469_v10 = vld [vmem:[%s11708_s1] sm:$0xff]  ;;  %v6297_v20 = vld [vmem:[%s11708_s1 + $0x58] sm:$0xff]  ;;  %v6315_v25 = vld [vmem:[%s11708_s1 + $0x68] sm:$0xff] }
   0xf   : > { %7529 = vmatpush3.msra.mxu0 %v6276_v1  ;;  %8539 = vmatprep.subr.mxu1 %v471_v3  ;;  %v6314_v26 = vld [vmem:[%s11708_s1 + $0x60] sm:$0xff]  ;;  %v6296_v28 = vld [vmem:[%s11708_s1 + $0x50] sm:$0xff]  ;;  %v6295_v30 = vld [vmem:[%s11708_s1 + $0x48] sm:$0xff] }
  0x10   : > { %7530 = vmatprep.subr.mxu0 %v6275_v4  ;;  %8543 = vmatpush3.msra.mxu1 %v471_v3  ;;  %s8689_s29 = scalar_lea.vmem %s11707_s0, %s8546_s24  ;;  %v6294_v32 = vld [vmem:[%s11708_s1 + $0x40] sm:$0xff]  ;;  %v6337_v34 = vld [vmem:[%s11708_s1 + $0x98] sm:$0xff]  ;;  %v6336_v36 = vld [vmem:[%s11708_s1 + $0x90] sm:$0xff]  ;;  %s6961_s24 = sshll.u32 %s11825_s26, 7 }
  0x11   : > { %7531 = vmatpush3.msra.mxu0 %v6275_v4  ;;  %8540 = vmatprep.subr.mxu1 %v470_v5  ;;  %v473_v7 = vld [vmem:[%s8689_s29 + $0x1] sm:$0xff]  ;;  %v8693_v8 = vld [vmem:[%s8689_s29 + $0x11] sm:$0xff]  ;;  %s11615_s28 = scalar_lea.vmem %s11720_s13, %s6961_s24 }
  0x12   : > { %7532 = vmatprep.subr.mxu0 %v6274_v6  ;;  %v8696_v9 = vld [vmem:[%s8689_s29 + $0x21] sm:$0xff]  ;;  %8544 = vmatpush3.msra.mxu1 %v470_v5  ;;  %v8707_v11 = vld [vmem:[%s8689_s29 + $0x31] sm:$0xff] }
  0x13   : > { %7533 = vmatpush3.msra.mxu0 %v6274_v6  ;;  %7534 = vmatprep.mubr.msk.f32.mxu0 %vm486_vm0, %v473_v7  ;;  %v8710_v12 = vld [vmem:[%s8689_s29 + $0x40] sm:$0xff]  ;;  %v8716_v14 = vld [vmem:[%s8689_s29 + $0x50] sm:$0xff]  ;;  %v6335_v38 = vld [vmem:[%s11708_s1 + $0x88] sm:$0xff] }
  0x14   : > { %7535 = vmatmul.mubr.msk.f32.vlgmr.msra.gmra.mxu0 %vm486_vm0, %v8693_v8  ;;  %7546 = vmatprep.subr.mxu0 %v472_v2  ;;  %v8713_v13 = vld [vmem:[%s8689_s29 + $0x41] sm:$0xff]  ;;  %v8728_v16 = vld [vmem:[%s8689_s29 + $0x51] sm:$0xff] }
  0x15   : > { %7547 = vmatpush3.msra.mxu0 %v472_v2  ;;  %7537 = vmatprep.mubr.msk.f32.mxu0 %vm486_vm0, %v8696_v9  ;;  %v8723_v15 = vld [vmem:[%s8689_s29 + $0x60] sm:$0xff]  ;;  %v8741_v19 = vld [vmem:[%s8689_s29 + $0x70] sm:$0xff]  ;;  %v6357_v40 = vld [vmem:[%s11708_s1 + $0xb8] sm:$0xff] }
  0x16   : > { %7548 = vmatprep.subr.mxu0 %v471_v3  ;;  %8541 = vmatprep.subr.mxu1 %v469_v10  ;;  %v8736_v18 = vld [vmem:[%s8689_s29 + $0x61] sm:$0xff]  ;;  %v8751_v21 = vld [vmem:[%s8689_s29 + $0x71] sm:$0xff] }
  0x17   : > { %7549 = vmatpush3.msra.mxu0 %v471_v3  ;;  %8545 = vmatpush3.msra.mxu1 %v469_v10  ;;  %v461_v23 = vld [vmem:[%s8689_s29] sm:$0xff]  ;;  %v462_v24 = vld [vmem:[%s8689_s29 + $0x10] sm:$0xff]  ;;  %v6377_v45 = vld [vmem:[%s11708_s1 + $0xd8] sm:$0xff] }
  0x18   : > { %7538 = vmatmul.mubr.msk.f32.gmra.mxu0 %vm486_vm0, %v8707_v11  ;;  %7560 = vmatprep.mubr.msk.f32.mxu1 %vm486_vm0, %v8710_v12  ;;  %v8771_v27 = vld [vmem:[%s8689_s29 + $0x20] sm:$0xff]  ;;  %v8780_v29 = vld [vmem:[%s8689_s29 + $0x30] sm:$0xff]  ;;  %v6355_v47 = vld [vmem:[%s11708_s1 + $0xa8] sm:$0xff] }
  0x19   : > { %7540 = vmatprep.mubr.msk.f32.mxu0 %vm486_vm0, %v8713_v13  ;;  %7550 = vmatprep.subr.mxu0 %v470_v5  ;;  %v745_v31 = vld [vmem:[%s8689_s29 + $0x2] sm:$0xff]  ;;  %v746_v33 = vld [vmem:[%s8689_s29 + $0x12] sm:$0xff] }
  0x1a   : > { %7561 = vmatmul.mubr.msk.f32.vlgmr.msra.gmra.mxu1 %vm486_vm0, %v8716_v14  ;;  %7551 = vmatpush3.msra.mxu0 %v470_v5  ;;  %v8799_v35 = vld [vmem:[%s8689_s29 + $0x22] sm:$0xff]  ;;  %v8812_v37 = vld [vmem:[%s8689_s29 + $0x32] sm:$0xff] }
  0x1b   : > { %7563 = vmatprep.mubr.msk.f32.mxu1 %vm486_vm0, %v8723_v15  ;;  %7552 = vmatprep.subr.mxu0 %v469_v10  ;;  %v8818_v39 = vld [vmem:[%s8689_s29 + $0x42] sm:$0xff]  ;;  %v8835_v42 = vld [vmem:[%s8689_s29 + $0x52] sm:$0xff] }
  0x1c   : > { %7541 = vmatmul.mubr.msk.f32.gmra.mxu0 %vm486_vm0, %v8728_v16  ;;  %7586 = vmatprep.subr.mxu1 %v6317_v17  ;;  %v6334_v41 = vld [vmem:[%s11708_s1 + $0x80] sm:$0xff]  ;;  %v6356_v43 = vld [vmem:[%s11708_s1 + $0xb0] sm:$0xff]  ;;  %v6397_v50 = vld [vmem:[%s11708_s1 + $0xf8] sm:$0xff] }
  0x1d   : > { %7543 = vmatprep.mubr.msk.f32.mxu0 %vm486_vm0, %v8736_v18  ;;  %7553 = vmatpush3.msra.mxu0 %v469_v10  ;;  %v8841_v44 = vld [vmem:[%s8689_s29 + $0x62] sm:$0xff]  ;;  %v8859_v48 = vld [vmem:[%s8689_s29 + $0x72] sm:$0xff] }
  0x1e   : > { %7564 = vmatmul.mubr.msk.f32.gmra.mxu1 %vm486_vm0, %v8741_v19  ;;  %7566 = vmatprep.subr.mxu0 %v6297_v20  ;;  %v8851_v46 = vld [vmem:[%s8689_s29 + $0x80] sm:$0xff]  ;;  %v6376_v51 = vld [vmem:[%s11708_s1 + $0xd0] sm:$0xff]  ;;  %v6375_v52 = vld [vmem:[%s11708_s1 + $0xc8] sm:$0xff] }
  0x1f   : > { %7587 = vmatpush3.msra.mxu1 %v6317_v17  ;;  %7594 = vmatprep.mubr.msk.f32.mxu1 %vm486_vm0, %v462_v24  ;;  %v6354_v49 = vld [vmem:[%s11708_s1 + $0xa0] sm:$0xff]  ;;  %v6396_v53 = vld [vmem:[%s11708_s1 + $0xf0] sm:$0xff]  ;;  %v6417_v55 = vld [vmem:[%s11708_s1 + $0x118] sm:$0xff] }
  0x20   : > { %7544 = vmatmul.mubr.msk.f32.gmra.mxu0 %vm486_vm0, %v8751_v21  ;;  %7588 = vmatprep.subr.mxu1 %v6316_v22  ;;  %v6374_v54 = vld [vmem:[%s11708_s1 + $0xc0] sm:$0xff]  ;;  %v6395_v57 = vld [vmem:[%s11708_s1 + $0xe8] sm:$0xff]  ;;  %v6416_v60 = vld [vmem:[%s11708_s1 + $0x110] sm:$0xff] }
  0x21   : > { %7554 = vmatprep.mubr.msk.f32.mxu0 %vm486_vm0, %v461_v23  ;;  %7589 = vmatpush3.msra.mxu1 %v6316_v22  ;;  %v6353_v56 = vld [vmem:[%s8689_s29 + $0x82] sm:$0xff]  ;;  %v6393_v63 = vld [vmem:[%s8689_s29 + $0x91] sm:$0xff] }
  0x22   : > { %7590 = vmatprep.subr.mxu1 %v6315_v25  ;;  %v6333_v58 = vld [vmem:[%s8689_s29 + $0x81] sm:$0xff]  ;;  %v6373_v0 = vld [vmem:[%s8689_s29 + $0x90] sm:$0xff]  ;;  %v6442_v2 = vld [vmem:[%s11710_s3 + $0xf8] sm:$0xff] }
  0x23   : > { %7591 = vmatpush3.msra.mxu1 %v6315_v25  ;;  %v6394_v59 = vld [vmem:[%s11708_s1 + $0xe0] sm:$0xff]  ;;  %v6415_v61 = vld [vmem:[%s11708_s1 + $0x108] sm:$0xff]  ;;  %v6413_v1 = vld [vmem:[%s8689_s29 + $0x92] sm:$0xff] }
  0x24   : > { %7555 = vmatmul.mubr.msk.f32.vlgmr.msra.gmra.mxu0 %vm486_vm0, %v462_v24  ;;  %7592 = vmatprep.subr.mxu1 %v6314_v26  ;;  %v6414_v62 = vld [vmem:[%s11708_s1 + $0x100] sm:$0xff]  ;;  %v6441_v3 = vld [vmem:[%s11710_s3 + $0xf0] sm:$0xff]  ;;  %v6440_v4 = vld [vmem:[%s11710_s3 + $0xe8] sm:$0xff]  ;;  %v8583_v24 = vmov 0.0  }
  0x25   : > { %7567 = vmatpush3.msra.mxu0 %v6297_v20  ;;  %7557 = vmatprep.mubr.msk.f32.mxu0 %vm486_vm0, %v8771_v27  ;;  %v6439_v5 = vld [vmem:[%s11710_s3 + $0xe0] sm:$0xff]  ;;  %v1852_v6 = vld [vmem:[%s11710_s3 + $0x78] sm:$0xff]  ;;  %v1850_v10 = vld [vmem:[%s11710_s3 + $0x68] sm:$0xff]  ;;  %445 = vst [vmem:[#allocation2 + $0x20] sm:$0xff] %v8583_v24 }
  0x26   : > { %7568 = vmatprep.subr.mxu0 %v6296_v28  ;;  %7593 = vmatpush3.msra.mxu1 %v6314_v26  ;;  %v6438_v7 = vld [vmem:[%s11710_s3 + $0xd8] sm:$0xff]  ;;  %v6433_v17 = vld [vmem:[%s11710_s3 + $0xb0] sm:$0xff]  ;;  %v1845_v20 = vld [vmem:[%s11710_s3 + $0x40] sm:$0xff]  ;;  %446 = vst [vmem:[#allocation2 + $0x28] sm:$0x3] %v8583_v24 }
  0x27   : > { %7569 = vmatpush3.msra.mxu0 %v6296_v28  ;;  %7595 = vmatmul.mubr.msk.f32.vlgmr.msra.gmra.mxu1 %vm486_vm0, %v8771_v27  ;;  %v1844_v22 = vld [vmem:[%s11710_s3 + $0x38] sm:$0xff]  ;;  %441 = vst [vmem:[#allocation2] sm:$0xff] %v8583_v24  ;;  %442 = vst [vmem:[#allocation2 + $0x8] sm:$0x3] %v8583_v24  ;;  %v1843_v25 = vld [vmem:[%s11710_s3 + $0x30] sm:$0xff] }
  0x28   : > { %7558 = vmatmul.mubr.msk.f32.gmra.mxu0 %vm486_vm0, %v8780_v29  ;;  %7570 = vmatprep.subr.mxu0 %v6295_v30  ;;  %v6430_v23 = vld [vmem:[%s11710_s3 + $0x98] sm:$0xff]  ;;  %443 = vst [vmem:[#allocation2 + $0x10] sm:$0xff] %v8583_v24  ;;  %444 = vst [vmem:[#allocation2 + $0x18] sm:$0x3] %v8583_v24  ;;  %v6429_v26 = vld [vmem:[%s11710_s3 + $0x90] sm:$0xff] }
  0x29   : > { %7571 = vmatpush3.msra.mxu0 %v6295_v30  ;;  %7574 = vmatprep.mubr.msk.f32.mxu0 %vm486_vm0, %v745_v31  ;;  %447 = vst [vmem:[#allocation2 + $0x30] sm:$0xff] %v8583_v24  ;;  %448 = vst [vmem:[#allocation2 + $0x38] sm:$0x3] %v8583_v24  ;;  %v6428_v28 = vld [vmem:[%s11710_s3 + $0x88] sm:$0xff]  ;;  %v6427_v30 = vld [vmem:[%s11710_s3 + $0x80] sm:$0xff] }
  0x2a   : > { %7572 = vmatprep.subr.mxu0 %v6294_v32  ;;  %7597 = vmatprep.mubr.msk.f32.mxu1 %vm486_vm0, %v8780_v29  ;;  %449 = vst [vmem:[#allocation2 + $0x40] sm:$0xff] %v8583_v24  ;;  %450 = vst [vmem:[#allocation2 + $0x48] sm:$0x3] %v8583_v24  ;;  %v1840_v31 = vld [vmem:[%s11710_s3 + $0x18] sm:$0xff] }
  0x2b   : > { %7573 = vmatpush3.msra.mxu0 %v6294_v32  ;;  %7598 = vmatmul.mubr.msk.f32.gmra.mxu1 %vm486_vm0, %v8710_v12  ;;  %451 = vst [vmem:[#allocation2 + $0x50] sm:$0xff] %v8583_v24  ;;  %452 = vst [vmem:[#allocation2 + $0x58] sm:$0x3] %v8583_v24 }
  0x2c   : > { %7575 = vmatmul.mubr.msk.f32.vlgmr.msra.gmra.mxu0 %vm486_vm0, %v746_v33  ;;  %7606 = vmatprep.subr.mxu0 %v6337_v34  ;;  %453 = vst [vmem:[#allocation2 + $0x60] sm:$0xff] %v8583_v24  ;;  %454 = vst [vmem:[#allocation2 + $0x68] sm:$0x3] %v8583_v24 }
  0x2d   : > { %7607 = vmatpush3.msra.mxu0 %v6337_v34  ;;  %7577 = vmatprep.mubr.msk.f32.mxu0 %vm486_vm0, %v8799_v35  ;;  %455 = vst [vmem:[#allocation2 + $0x70] sm:$0xff] %v8583_v24  ;;  %456 = vst [vmem:[#allocation2 + $0x78] sm:$0x3] %v8583_v24  ;;  %v1839_v34 = vld [vmem:[%s11710_s3 + $0x10] sm:$0xff] }
  0x2e   : > { %7608 = vmatprep.subr.mxu0 %v6336_v36  ;;  %7600 = vmatprep.mubr.msk.f32.mxu1 %vm486_vm0, %v8716_v14  ;;  %457 = vst [vmem:[#allocation2 + $0x80] sm:$0xff] %v8583_v24  ;;  %458 = vst [vmem:[#allocation2 + $0x88] sm:$0x3] %v8583_v24  ;;  %v1853_v32 = vld [vmem:[#allocation2 + $0x1] sm:$0xff] }
  0x2f   : > { %7609 = vmatpush3.msra.mxu0 %v6336_v36  ;;  %7601 = vmatmul.mubr.msk.f32.gmra.mxu1 %vm486_vm0, %v8723_v15  ;;  %459 = vst [vmem:[#allocation2 + $0x90] sm:$0xff] %v8583_v24  ;;  %460 = vst [vmem:[#allocation2 + $0x98] sm:$0x3] %v8583_v24  ;;  %v1837_v36 = vld [vmem:[%s11710_s3] sm:$0xff] }
  0x30   : > { %7578 = vmatmul.mubr.msk.f32.gmra.mxu0 %vm486_vm0, %v8812_v37  ;;  %7610 = vmatprep.subr.mxu0 %v6335_v38 }
  0x31   : > { %7580 = vmatprep.mubr.msk.f32.mxu0 %vm486_vm0, %v8818_v39  ;;  %7611 = vmatpush3.msra.mxu0 %v6335_v38 }
  0x32   : > { %7626 = vmatprep.subr.mxu1 %v6357_v40  ;;  %7612 = vmatprep.subr.mxu0 %v6334_v41 }
  0x33   : > { %7627 = vmatpush3.msra.mxu1 %v6357_v40  ;;  %7603 = vmatprep.mubr.msk.f32.mxu1 %vm486_vm0, %v8741_v19 }
  0x34   : > { %7581 = vmatmul.mubr.msk.f32.gmra.mxu0 %vm486_vm0, %v8835_v42  ;;  %7628 = vmatprep.subr.mxu1 %v6356_v43 }
  0x35   : > { %7583 = vmatprep.mubr.msk.f32.mxu0 %vm486_vm0, %v8841_v44  ;;  %7613 = vmatpush3.msra.mxu0 %v6334_v41 }
  0x36   : > { %7629 = vmatpush3.msra.mxu1 %v6356_v43  ;;  %7646 = vmatprep.subr.mxu0 %v6377_v45 }
  0x37   : > { %7604 = vmatmul.mubr.msk.f32.gmra.mxu1 %vm486_vm0, %v8851_v46  ;;  %7630 = vmatprep.subr.mxu1 %v6355_v47 }
  0x38   : > { %7584 = vmatmul.mubr.msk.f32.gmra.mxu0 %vm486_vm0, %v8859_v48  ;;  %7631 = vmatpush3.msra.mxu1 %v6355_v47 }
  0x39   : > { %7614 = vmatprep.mubr.msk.f32.mxu0 %vm486_vm0, %v8693_v8  ;;  %7632 = vmatprep.subr.mxu1 %v6354_v49  ;;  %v1851_v8 = vld [vmem:[%s11710_s3 + $0x70] sm:$0xff] }
  0x3a   : > { %7633 = vmatpush3.msra.mxu1 %v6354_v49  ;;  %7634 = vmatprep.mubr.msk.f32.mxu1 %vm486_vm0, %v746_v33  ;;  %v9068_v33 = vld [vmem:[%s11710_s3 + $0x178] sm:$0xff] }
  0x3b   : > { %7635 = vmatmul.mubr.msk.f32.vlgmr.msra.gmra.mxu1 %vm486_vm0, %v8799_v35  ;;  %7666 = vmatprep.subr.mxu1 %v6397_v50  ;;  %11726 = vst [vmem:[#allocation3_spill] sm:$0xff] %v9068_v33 }
  0x3c   : > { %7615 = vmatmul.mubr.msk.f32.vlgmr.msra.gmra.mxu0 %vm486_vm0, %v8696_v9  ;;  %7637 = vmatprep.mubr.msk.f32.mxu1 %vm486_vm0, %v8812_v37 }
  0x3d   : > { %7647 = vmatpush3.msra.mxu0 %v6377_v45  ;;  %7617 = vmatprep.mubr.msk.f32.mxu0 %vm486_vm0, %v8707_v11 }
  0x3e   : > { %7648 = vmatprep.subr.mxu0 %v6376_v51  ;;  %7667 = vmatpush3.msra.mxu1 %v6397_v50 }
  0x3f   : > { %7649 = vmatpush3.msra.mxu0 %v6376_v51  ;;  %7638 = vmatmul.mubr.msk.f32.gmra.mxu1 %vm486_vm0, %v8818_v39 }
  0x40   : > { %7618 = vmatmul.mubr.msk.f32.gmra.mxu0 %vm486_vm0, %v8713_v13  ;;  %7650 = vmatprep.subr.mxu0 %v6375_v52 }
  0x41   : > { %7620 = vmatprep.mubr.msk.f32.mxu0 %vm486_vm0, %v8728_v16  ;;  %7640 = vmatprep.mubr.msk.f32.mxu1 %vm486_vm0, %v8835_v42 }
  0x42   : > { %7651 = vmatpush3.msra.mxu0 %v6375_v52  ;;  %7668 = vmatprep.subr.mxu1 %v6396_v53 }
  0x43   : > { %7641 = vmatmul.mubr.msk.f32.gmra.mxu1 %vm486_vm0, %v8841_v44  ;;  %7652 = vmatprep.subr.mxu0 %v6374_v54 }
  0x44   : > { %7621 = vmatmul.mubr.msk.f32.gmra.mxu0 %vm486_vm0, %v8736_v18  ;;  %7643 = vmatprep.mubr.msk.f32.mxu1 %vm486_vm0, %v8859_v48 }
  0x45   : > { %7623 = vmatprep.mubr.msk.f32.mxu0 %vm486_vm0, %v8751_v21  ;;  %7653 = vmatpush3.msra.mxu0 %v6374_v54 }
  0x46   : > { %7669 = vmatpush3.msra.mxu1 %v6396_v53  ;;  %7686 = vmatprep.subr.mxu0 %v6417_v55 }
  0x47   : > { %7644 = vmatmul.mubr.msk.f32.gmra.mxu1 %vm486_vm0, %v6353_v56  ;;  %7670 = vmatprep.subr.mxu1 %v6395_v57 }
  0x48   : > { %7624 = vmatmul.mubr.msk.f32.gmra.mxu0 %vm486_vm0, %v6333_v58  ;;  %7671 = vmatpush3.msra.mxu1 %v6395_v57 }
  0x49   : > { %7654 = vmatprep.mubr.msk.f32.mxu0 %vm486_vm0, %v8771_v27  ;;  %7672 = vmatprep.subr.mxu1 %v6394_v59  ;;  %v1842_v27 = vld [vmem:[%s11710_s3 + $0x28] sm:$0xff] }
  0x4a   : > { %7673 = vmatpush3.msra.mxu1 %v6394_v59  ;;  %7674 = vmatprep.mubr.msk.f32.mxu1 %vm486_vm0, %v8696_v9  ;;  %v6437_v9 = vld [vmem:[%s11710_s3 + $0xd0] sm:$0xff] }
  0x4b   : > { %7675 = vmatmul.mubr.msk.f32.vlgmr.msra.gmra.mxu1 %vm486_vm0, %v8707_v11  ;;  %7706 = vmatprep.subr.mxu1 %v6442_v2  ;;  %v6436_v11 = vld [vmem:[%s11710_s3 + $0xc8] sm:$0xff] }
  0x4c   : > { %7655 = vmatmul.mubr.msk.f32.vlgmr.msra.gmra.mxu0 %vm486_vm0, %v8780_v29  ;;  %7677 = vmatprep.mubr.msk.f32.mxu1 %vm486_vm0, %v8713_v13  ;;  %v6435_v13 = vld [vmem:[%s11710_s3 + $0xc0] sm:$0xff] }
  0x4d   : > { %7687 = vmatpush3.msra.mxu0 %v6417_v55  ;;  %7657 = vmatprep.mubr.msk.f32.mxu0 %vm486_vm0, %v8710_v12  ;;  %v1849_v12 = vld [vmem:[%s11710_s3 + $0x60] sm:$0xff] }
  0x4e   : > { %7688 = vmatprep.subr.mxu0 %v6416_v60  ;;  %7707 = vmatpush3.msra.mxu1 %v6442_v2  ;;  %v1841_v29 = vld [vmem:[%s11710_s3 + $0x20] sm:$0xff] }
  0x4f   : > { %7689 = vmatpush3.msra.mxu0 %v6416_v60  ;;  %7678 = vmatmul.mubr.msk.f32.gmra.mxu1 %vm486_vm0, %v8728_v16  ;;  %v1847_v16 = vld [vmem:[%s11710_s3 + $0x50] sm:$0xff] }
  0x50   : > { %7658 = vmatmul.mubr.msk.f32.gmra.mxu0 %vm486_vm0, %v8716_v14  ;;  %7690 = vmatprep.subr.mxu0 %v6415_v61  ;;  %v1848_v14 = vld [vmem:[%s11710_s3 + $0x58] sm:$0xff] }
  0x51   : > { %7660 = vmatprep.mubr.msk.f32.mxu0 %vm486_vm0, %v8723_v15  ;;  %7680 = vmatprep.mubr.msk.f32.mxu1 %vm486_vm0, %v8736_v18  ;;  %v6434_v15 = vld [vmem:[%s11710_s3 + $0xb8] sm:$0xff]  ;;  %v1846_v18 = vld [vmem:[%s11710_s3 + $0x48] sm:$0xff] }
  0x52   : > { %7691 = vmatpush3.msra.mxu0 %v6415_v61  ;;  %7708 = vmatprep.subr.mxu1 %v6441_v3 }
  0x53   : > { %7681 = vmatmul.mubr.msk.f32.gmra.mxu1 %vm486_vm0, %v8751_v21  ;;  %7692 = vmatprep.subr.mxu0 %v6414_v62  ;;  %v6431_v21 = vld [vmem:[%s11710_s3 + $0xa0] sm:$0xff] }
  0x54   : > { %7661 = vmatmul.mubr.msk.f32.gmra.mxu0 %vm486_vm0, %v8741_v19  ;;  %7683 = vmatprep.mubr.msk.f32.mxu1 %vm486_vm0, %v6333_v58  ;;  %v6432_v19 = vld [vmem:[%s11710_s3 + $0xa8] sm:$0xff] }
  0x55   : > { %7663 = vmatprep.mubr.msk.f32.mxu0 %vm486_vm0, %v8851_v46  ;;  %7693 = vmatpush3.msra.mxu0 %v6414_v62 }
  0x56   : > { %7709 = vmatpush3.msra.mxu1 %v6441_v3  ;;  %7750 = vmatprep.subr.mxu0 %v1852_v6 }
  0x57   : > { %7684 = vmatmul.mubr.msk.f32.gmra.mxu1 %vm486_vm0, %v6393_v63  ;;  %7710 = vmatprep.subr.mxu1 %v6440_v4 }
  0x58   : > { %7664 = vmatmul.mubr.msk.f32.gmra.mxu0 %vm486_vm0, %v6373_v0  ;;  %7711 = vmatpush3.msra.mxu1 %v6440_v4 }
  0x59   : > { %7694 = vmatprep.mubr.msk.f32.mxu0 %vm486_vm0, %v8799_v35  ;;  %7712 = vmatprep.subr.mxu1 %v6439_v5  ;;  %v1838_v35 = vld [vmem:[%s11710_s3 + $0x8] sm:$0xff] }
  0x5a   : > { %7713 = vmatpush3.msra.mxu1 %v6439_v5  ;;  %7738 = vmatprep.mubr.f32.mxu1 %v1853_v32 }
  0x5b   : > { %7714 = vmatprep.subr.mxu1 %v6438_v7 }
  0x5c   : > { %7695 = vmatmul.mubr.msk.f32.vlgmr.msra.gmra.mxu0 %vm486_vm0, %v8812_v37  ;;  %7715 = vmatpush3.msra.mxu1 %v6438_v7  ;;  %v9083_v37 = vld [vmem:[%s11710_s3 + $0x1f8] sm:$0xff] }
  0x5d   : > { %7697 = vmatprep.mubr.msk.f32.mxu0 %vm486_vm0, %v8818_v39  ;;  %7751 = vmatpush3.msra.mxu0 %v1852_v6  ;;  %11727 = vst [vmem:[#allocation4_spill] sm:$0xff] %v9083_v37 }
  0x5e   : > { %7752 = vmatprep.subr.mxu0 %v1851_v8  ;;  %7716 = vmatprep.subr.mxu1 %v6437_v9 }
  0x5f   : > { %7753 = vmatpush3.msra.mxu0 %v1851_v8  ;;  %7717 = vmatpush3.msra.mxu1 %v6437_v9 }
  0x60   : > { %7698 = vmatmul.mubr.msk.f32.gmra.mxu0 %vm486_vm0, %v8835_v42  ;;  %7754 = vmatprep.subr.mxu0 %v1850_v10 }
  0x61   : > { %7700 = vmatprep.mubr.msk.f32.mxu0 %vm486_vm0, %v8841_v44  ;;  %7718 = vmatprep.subr.mxu1 %v6436_v11 }
  0x62   : > { %7755 = vmatpush3.msra.mxu0 %v1850_v10  ;;  %7719 = vmatpush3.msra.mxu1 %v6436_v11 }
  0x63   : > { %7756 = vmatprep.subr.mxu0 %v1849_v12  ;;  %7720 = vmatprep.subr.mxu1 %v6435_v13 }
  0x64   : > { %7701 = vmatmul.mubr.msk.f32.gmra.mxu0 %vm486_vm0, %v8859_v48  ;;  %7721 = vmatpush3.msra.mxu1 %v6435_v13 }
  0x65   : > { %7703 = vmatprep.mubr.msk.f32.mxu0 %vm486_vm0, %v6353_v56  ;;  %7757 = vmatpush3.msra.mxu0 %v1849_v12 }
  0x66   : > { %7758 = vmatprep.subr.mxu0 %v1848_v14  ;;  %7722 = vmatprep.subr.mxu1 %v6434_v15 }
  0x67   : > { %7759 = vmatpush3.msra.mxu0 %v1848_v14  ;;  %7723 = vmatpush3.msra.mxu1 %v6434_v15 }
  0x68   : > { %7704 = vmatmul.mubr.msk.f32.gmra.mxu0 %vm486_vm0, %v6413_v1  ;;  %7760 = vmatprep.subr.mxu0 %v1847_v16 }
  0x69   : > { %7724 = vmatprep.subr.mxu1 %v6433_v17  ;;  %7761 = vmatpush3.msra.mxu0 %v1847_v16 }
  0x6a   : > { %7725 = vmatpush3.msra.mxu1 %v6433_v17  ;;  %7762 = vmatprep.subr.mxu0 %v1846_v18 }
  0x6b   : > { %7726 = vmatprep.subr.mxu1 %v6432_v19  ;;  %7763 = vmatpush3.msra.mxu0 %v1846_v18 }
  0x6c   : > { %7727 = vmatpush3.msra.mxu1 %v6432_v19  ;;  %7764 = vmatprep.subr.mxu0 %v1845_v20 }
  0x6d   : > { %7728 = vmatprep.subr.mxu1 %v6431_v21  ;;  %7765 = vmatpush3.msra.mxu0 %v1845_v20 }
  0x6e   : > { %7729 = vmatpush3.msra.mxu1 %v6431_v21  ;;  %7766 = vmatprep.subr.mxu0 %v1844_v22 }
  0x6f   : > { %7730 = vmatprep.subr.mxu1 %v6430_v23  ;;  %7767 = vmatpush3.msra.mxu0 %v1844_v22 }
  0x70   : > { %7731 = vmatpush3.msra.mxu1 %v6430_v23  ;;  %7768 = vmatprep.subr.mxu0 %v1843_v25 }
  0x71   : > { %7732 = vmatprep.subr.mxu1 %v6429_v26  ;;  %7769 = vmatpush3.msra.mxu0 %v1843_v25 }
  0x72   : > { %7733 = vmatpush3.msra.mxu1 %v6429_v26  ;;  %7770 = vmatprep.subr.mxu0 %v1842_v27 }
  0x73   : > { %7734 = vmatprep.subr.mxu1 %v6428_v28  ;;  %7771 = vmatpush3.msra.mxu0 %v1842_v27 }
  0x74   : > { %7735 = vmatpush3.msra.mxu1 %v6428_v28  ;;  %7772 = vmatprep.subr.mxu0 %v1841_v29 }
  0x75   : > { %7736 = vmatprep.subr.mxu1 %v6427_v30  ;;  %7773 = vmatpush3.msra.mxu0 %v1841_v29 }
  0x76   : > { %7737 = vmatpush3.msra.mxu1 %v6427_v30  ;;  %7774 = vmatprep.subr.mxu0 %v1840_v31 }
  0x77   : > { %7775 = vmatpush3.msra.mxu0 %v1840_v31  ;;  %7782 = vmatprep.mubr.f32.mxu0 %v8583_v24 }
  0x78   : > { %7776 = vmatprep.subr.mxu0 %v1839_v34  ;;  %7794 = vmatprep.subr.mxu1 %v9068_v33 }
  0x79   : > { %7777 = vmatpush3.msra.mxu0 %v1839_v34 }
  0x7a   : > { %7778 = vmatprep.subr.mxu0 %v1838_v35 }
  0x7b   : > { %7779 = vmatpush3.msra.mxu0 %v1838_v35 }
  0x7c   : > { %7780 = vmatprep.subr.mxu0 %v1837_v36 }
  0x7d   : > { %7781 = vmatpush3.msra.mxu0 %v1837_v36 }
  0x7e   : > { %7838 = vmatprep.subr.mxu0 %v9083_v37 }
  0xd4   : > { %v7536_v38 = vpop.f32.mrf.mxu0 }
  0xd6   : > { %v577_v39 = vpop.f32.mrf.mxu0 }
  0xd8   : > { %v7539_v40 = vpop.f32.mrf.mxu0 }
  0xda   : > { %v587_v41 = vpop.f32.mrf.mxu0  ;;  %v7562_v42 = vpop.f32.mrf.mxu1 }
  0xdc   : > { %v7542_v43 = vpop.f32.mrf.mxu0  ;;  %v726_v44 = vpop.f32.mrf.mxu1 }
  0xdd   : > { %v732_v35 = vadd.f32 %v7562_v42, %v7542_v43 }
  0xde   : > { %v597_v45 = vpop.f32.mrf.mxu0  ;;  %v7565_v47 = vpop.f32.mrf.mxu1 }
  0xe0   : > { %v9086_v46 = vpop.f32.mrf.mxu0  ;;  %v9090_v50 = vpop.f32.mrf.mxu1 }
  0xe2   : > { %v9088_v48 = vpop.f32.mrf.mxu0 }
  0xe3   : > { %v737_v42 = vadd.f32 %v9090_v50, %v9088_v48 }
  0xe4   : > { %v7556_v49 = vpop.f32.mrf.mxu0 }
  0xe5   : > { %v712_v20 = vadd.f32 %v7556_v49, %v7536_v38  ;;  %v727_v38 = vadd.f32 %v726_v44, %v597_v45 }
  0xe6   : > { %v706_v51 = vpop.f32.mrf.mxu0 }
  0xe7   : > { %v7596_v52 = vpop.f32.mrf.mxu1  ;;  %v707_v23 = vadd.f32 %v706_v51, %v577_v39 }
  0xe8   : > { %v7559_v53 = vpop.f32.mrf.mxu0 }
  0xe9   : > { %v999_v54 = vpop.f32.mrf.mxu1  ;;  %v722_v27 = vadd.f32 %v7559_v53, %v7539_v40 }
  0xea   : > { %v716_v55 = vpop.f32.mrf.mxu0 }
  0xeb   : > { %v7599_v56 = vpop.f32.mrf.mxu1  ;;  %v717_v31 = vadd.f32 %v716_v55, %v587_v41 }
  0xec   : > { %v7576_v57 = vpop.f32.mrf.mxu0 }
  0xed   : > { %v1009_v58 = vpop.f32.mrf.mxu1  ;;  %v888_v24 = vadd.f32 %v7576_v57, %v712_v20  ;;  %v742_v57 = vadd.f32 %v7565_v47, %v9086_v46 }
  0xee   : > { %v848_v59 = vpop.f32.mrf.mxu0 }
  0xef   : > { %v7602_v60 = vpop.f32.mrf.mxu1  ;;  %v887_v28 = vadd.f32 %v848_v59, %v707_v23  ;;  %v1039_v32 = vadd.f32 %v7596_v52, %v888_v24 }
  0xf0   : > { %v7579_v61 = vpop.f32.mrf.mxu0 }
  0xf1   : > { %v1019_v63 = vpop.f32.mrf.mxu1  ;;  %v890_v34 = vadd.f32 %v7579_v61, %v722_v27  ;;  %v1038_v37 = vadd.f32 %v999_v54, %v887_v28 }
  0xf2   : > { %v858_v62 = vpop.f32.mrf.mxu0 }
  0xf3   : > { %v889_v33 = vadd.f32 %v858_v62, %v717_v31  ;;  %v1041_v39 = vadd.f32 %v7599_v56, %v890_v34 }
  0xf4   : > { %v7582_v0 = vpop.f32.mrf.mxu0 }
  0xf5   : > { %v892_v49 = vadd.f32 %v7582_v0, %v732_v35  ;;  %v1040_v59 = vadd.f32 %v1009_v58, %v889_v33 }
  0xf6   : > { %v868_v1 = vpop.f32.mrf.mxu0 }
  0xf7   : > { %v9092_v2 = vpop.f32.mrf.mxu1  ;;  %v891_v40 = vadd.f32 %v868_v1, %v727_v38  ;;  %v1043_v43 = vadd.f32 %v7602_v60, %v892_v49 }
  0xf8   : > { %v7585_v3 = vpop.f32.mrf.mxu0 }
  0xf9   : > { %v9094_v4 = vpop.f32.mrf.mxu1  ;;  %v894_v52 = vadd.f32 %v7585_v3, %v742_v57  ;;  %v1042_v62 = vadd.f32 %v1019_v63, %v891_v40  ;;  %v9110_v63 = vld [vmem:[%s11709_s2] ss:$0 sm:$0xff] }
  0xfa   : > { %v878_v5 = vpop.f32.mrf.mxu0 }
  0xfb   : > { %v7636_v6 = vpop.f32.mrf.mxu1  ;;  %v893_v56 = vadd.f32 %v878_v5, %v737_v42  ;;  %v1045_v33 = vadd.f32 %v9092_v2, %v894_v52  ;;  %v11734_v42 = vld [vmem:[#allocation3_spill] sm:$0xff] }
  0xfc   : > { %v7616_v7 = vpop.f32.mrf.mxu0 }
  0xfd   : > { %v1299_v8 = vpop.f32.mrf.mxu1  ;;  %v1044_v60 = vadd.f32 %v9094_v4, %v893_v56 }
  0xfe   : > { %v1149_v9 = vpop.f32.mrf.mxu0 }
  0xff   : > { %v7639_v10 = vpop.f32.mrf.mxu1  ;;  %v1188_v51 = vadd.f32 %v1149_v9, %v1038_v37 }
 0x100   : > { %v7619_v11 = vpop.f32.mrf.mxu0 }
 0x101   : > { %v1309_v12 = vpop.f32.mrf.mxu1  ;;  %v1191_v41 = vadd.f32 %v7619_v11, %v1041_v39  ;;  %v1338_v44 = vadd.f32 %v1299_v8, %v1188_v51  ;;  %v6457_v51 = vld [vmem:[%s11710_s3 + $0x170] sm:$0xff] }
 0x102   : > { %v1159_v13 = vpop.f32.mrf.mxu0 }
 0x103   : > { %v7642_v14 = vpop.f32.mrf.mxu1  ;;  %v1190_v45 = vadd.f32 %v1159_v13, %v1040_v59  ;;  %v1341_v46 = vadd.f32 %v7639_v10, %v1191_v41 }
 0x104   : > { %v7622_v15 = vpop.f32.mrf.mxu0 }
 0x105   : > { %v9096_v16 = vpop.f32.mrf.mxu1  ;;  %v1193_v37 = vadd.f32 %v7622_v15, %v1043_v43  ;;  %v6456_v43 = vld [vmem:[%s11710_s3 + $0x168] sm:$0xff] }
 0x106   : > { %11728 = vst [vmem:[#allocation5_spill] sm:$0xff] %v9096_v16  ;;  %v1169_v17 = vpop.f32.mrf.mxu0 }
 0x107   : > { %v9098_v18 = vpop.f32.mrf.mxu1  ;;  %v1192_v58 = vadd.f32 %v1169_v17, %v1042_v62  ;;  %v1343_v3 = vadd.f32 %v7642_v14, %v1193_v37 }
 0x108   : > { %11729 = vst [vmem:[#allocation6_spill] sm:$0xff] %v9098_v18  ;;  %v7625_v19 = vpop.f32.mrf.mxu0  ;;  %v1189_v18 = vadd.f32 %v7616_v7, %v1039_v32  ;;  %v1340_v7 = vadd.f32 %v1309_v12, %v1190_v45 }
 0x109   : > { %v9100_v21 = vpop.f32.mrf.mxu1  ;;  %v1195_v8 = vadd.f32 %v7625_v19, %v1045_v33 }
 0x10a   : > { %11730 = vst [vmem:[#allocation7_spill] sm:$0xff] %v9100_v21  ;;  %v1179_v22 = vpop.f32.mrf.mxu0  ;;  %v1339_v20 = vadd.f32 %v7636_v6, %v1189_v18 }
 0x10b   : > { %v7676_v25 = vpop.f32.mrf.mxu1  ;;  %v1194_v15 = vadd.f32 %v1179_v22, %v1044_v60 }
 0x10c   : > { %v7656_v26 = vpop.f32.mrf.mxu0 }
 0x10d   : > { %v1600_v30 = vpop.f32.mrf.mxu1  ;;  %v1490_v61 = vadd.f32 %v7656_v26, %v1339_v20  ;;  %v11731_v2 = vld [vmem:[#allocation5_spill] sm:$0xff] }
 0x10e   : > { %v1450_v29 = vpop.f32.mrf.mxu0  ;;  %v1342_v13 = vadd.f32 %v11731_v2, %v1192_v58  ;;  %v6470_v2 = vld [vmem:[%s11710_s3 + $0x1d8] sm:$0xff] }
 0x10f   : > { %v7679_v16 = vpop.f32.mrf.mxu1  ;;  %v1489_v47 = vadd.f32 %v1450_v29, %v1338_v44  ;;  %v1640_v48 = vadd.f32 %v7676_v25, %v1490_v61  ;;  %v11732_v19 = vld [vmem:[#allocation6_spill] sm:$0xff]  ;;  %v6455_v61 = vld [vmem:[%s11710_s3 + $0x160] sm:$0xff] }
 0x110   : > { %v7659_v36 = vpop.f32.mrf.mxu0  ;;  %v1345_v24 = vadd.f32 %v11732_v19, %v1195_v8  ;;  %v6472_v8 = vld [vmem:[%s11710_s3 + $0x1e8] sm:$0xff]  ;;  %v6450_v19 = vld [vmem:[%s11710_s3 + $0x138] sm:$0xff] }
 0x111   : > { %v1610_v54 = vpop.f32.mrf.mxu1  ;;  %v1492_v50 = vadd.f32 %v7659_v36, %v1341_v46  ;;  %v1639_v5 = vadd.f32 %v1600_v30, %v1489_v47  ;;  %v11733_v30 = vld [vmem:[#allocation7_spill] sm:$0xff]  ;;  %v6454_v47 = vld [vmem:[%s11710_s3 + $0x158] sm:$0xff] }
 0x112   : > { %v1460_v21 = vpop.f32.mrf.mxu0  ;;  %v1344_v31 = vadd.f32 %v11733_v30, %v1194_v15  ;;  %v6469_v15 = vld [vmem:[%s11710_s3 + $0x1d0] sm:$0xff]  ;;  %v6463_v30 = vld [vmem:[%s11710_s3 + $0x1a0] sm:$0xff] }
 0x113   : > { %v7682_v1 = vpop.f32.mrf.mxu1  ;;  %v1491_v10 = vadd.f32 %v1460_v21, %v1340_v7  ;;  %v1642_v23 = vadd.f32 %v7679_v16, %v1492_v50  ;;  %v6473_v7 = vld [vmem:[%s11710_s3 + $0x1f0] sm:$0xff] }
 0x114   : > { %v7662_v53 = vpop.f32.mrf.mxu0 }
 0x115   : > { %v1494_v17 = vadd.f32 %v7662_v53, %v1343_v3  ;;  %v1620_v12 = vpop.f32.mrf.mxu1  ;;  %v1641_v27 = vadd.f32 %v1610_v54, %v1491_v10  ;;  %v11735_v3 = vld [vmem:[#allocation4_spill] sm:$0xff] }
 0x116   : > { %v1470_v55 = vpop.f32.mrf.mxu0 }
 0x117   : > { %v1493_v25 = vadd.f32 %v1470_v55, %v1342_v13  ;;  %v1644_v22 = vadd.f32 %v7682_v1, %v1494_v17  ;;  %v7685_v32 = vpop.f32.mrf.mxu1 }
 0x118   : > { %v7665_v0 = vpop.f32.mrf.mxu0 }
 0x119   : > { %v1496_v35 = vadd.f32 %v7665_v0, %v1345_v24  ;;  %v1643_v49 = vadd.f32 %v1620_v12, %v1493_v25  ;;  %v1630_v20 = vpop.f32.mrf.mxu1  ;;  %v6452_v12 = vld [vmem:[%s11710_s3 + $0x148] sm:$0xff]  ;;  %v6466_v24 = vld [vmem:[%s11710_s3 + $0x1b8] sm:$0xff]  ;;  %v6449_v25 = vld [vmem:[%s11710_s3 + $0x130] sm:$0xff] }
 0x11a   : > { %v1480_v6 = vpop.f32.mrf.mxu0 }
 0x11b   : > { %v1495_v57 = vadd.f32 %v1480_v6, %v1344_v31  ;;  %v1646_v52 = vadd.f32 %v7685_v32, %v1496_v35  ;;  %v6446_v31 = vld [vmem:[%s11710_s3 + $0x118] sm:$0xff]  ;;  %v6445_v32 = vld [vmem:[%s11710_s3 + $0x110] sm:$0xff]  ;;  %v6444_v35 = vld [vmem:[%s11710_s3 + $0x108] sm:$0xff] }
 0x11c   : > { %v7696_v9 = vpop.f32.mrf.mxu0 }
 0x11d   : > { %v1790_v11 = vadd.f32 %v7696_v9, %v1640_v48  ;;  %v1645_v62 = vadd.f32 %v1630_v20, %v1495_v57  ;;  %v6489_v20 = vld [vmem:[%s11710_s3 + $0x270] sm:$0xff] }
 0x11e   : > { %v1750_v18 = vpop.f32.mrf.mxu0 }
 0x11f   : > { %v1805_v4 = vadd.f32 %v9110_v63, %v1790_v11  ;;  %v1789_v14 = vadd.f32 %v1750_v18, %v1639_v5  ;;  %v6471_v5 = vld [vmem:[%s11710_s3 + $0x1e0] sm:$0xff]  ;;  %v6453_v11 = vld [vmem:[%s11710_s3 + $0x150] sm:$0xff]  ;;  %v6468_v18 = vld [vmem:[%s11710_s3 + $0x1c8] sm:$0xff] }
 0x120   : > { %v7699_v26 = vpop.f32.mrf.mxu0 }
 0x121   : > { %v9115_v28 = vmax.f32 %v1805_v4, 0.0  ;;  %v1804_v21 = vadd.f32 %v9110_v63, %v1789_v14  ;;  %v1792_v29 = vadd.f32 %v7699_v26, %v1642_v23  ;;  %v6451_v4 = vld [vmem:[%s11710_s3 + $0x140] sm:$0xff]  ;;  %v6465_v26 = vld [vmem:[%s11710_s3 + $0x1b0] sm:$0xff] }
 0x122   : > { %v1760_v34 = vpop.f32.mrf.mxu0  ;;  %v6467_v14 = vld [vmem:[%s11710_s3 + $0x1c0] sm:$0xff] }
 0x123   : > { %1822 = vst [vmem:[#allocation2 + $0x21] sm:$0xff] %v9115_v28  ;;  %v9120_v16 = vmax.f32 %v1804_v21, 0.0  ;;  %v1807_v36 = vadd.f32 %v9110_v63, %v1792_v29  ;;  %v1791_v38 = vadd.f32 %v1760_v34, %v1641_v27  ;;  %v6448_v27 = vld [vmem:[%s11710_s3 + $0x128] sm:$0xff]  ;;  %v6447_v29 = vld [vmem:[%s11710_s3 + $0x120] sm:$0xff]  ;;  %v6461_v34 = vld [vmem:[%s11710_s3 + $0x190] sm:$0xff] }
 0x124   : > { %v7702_v39 = vpop.f32.mrf.mxu0  ;;  %v6464_v21 = vld [vmem:[%s11710_s3 + $0x1a8] sm:$0xff] }
 0x125   : > { %1821 = vst [vmem:[#allocation2 + $0x11] sm:$0xff] %v9120_v16  ;;  %v9127_v40 = vmax.f32 %v1807_v36, 0.0  ;;  %v1806_v53 = vadd.f32 %v9110_v63, %v1791_v38  ;;  %v1794_v59 = vadd.f32 %v7702_v39, %v1644_v22  ;;  %7739 = vmatmul.mubr.f32.vlgmr.msra.gmra.mxu1 %v9120_v16  ;;  %v6462_v22 = vld [vmem:[%s11710_s3 + $0x198] sm:$0xff]  ;;  %v6460_v36 = vld [vmem:[%s11710_s3 + $0x188] sm:$0xff]  ;;  %v6443_v38 = vld [vmem:[%s11710_s3 + $0x100] sm:$0xff] }
 0x126   : > { %v1770_v41 = vpop.f32.mrf.mxu0  ;;  %7795 = vmatpush3.msra.mxu1 %v11734_v42  ;;  %7741 = vmatprep.mubr.f32.mxu1 %v9115_v28  ;;  %v2088_v39 = vld [vmem:[#allocation2 + $0x2] sm:$0xff] }
 0x127   : > { %1824 = vst [vmem:[#allocation2 + $0x41] sm:$0xff] %v9127_v40  ;;  %v9137_v54 = vmax.f32 %v1806_v53, 0.0  ;;  %v1809_v55 = vadd.f32 %v9110_v63, %v1794_v59  ;;  %v1793_v44 = vadd.f32 %v1770_v41, %v1643_v49  ;;  %7796 = vmatprep.subr.mxu1 %v6457_v51  ;;  %v6459_v49 = vld [vmem:[%s11710_s3 + $0x180] sm:$0xff]  ;;  %v6506_v53 = vld [vmem:[%s11710_s3 + $0x2f8] sm:$0xff]  ;;  %v6505_v41 = vld [vmem:[%s11710_s3 + $0x2f0] sm:$0xff] }
 0x128   : > { %v7705_v45 = vpop.f32.mrf.mxu0  ;;  %7797 = vmatpush3.msra.mxu1 %v6457_v51  ;;  %v6490_v51 = vld [vmem:[%s11710_s3 + $0x278] sm:$0xff]  ;;  %v6488_v42 = vld [vmem:[%s11710_s3 + $0x268] sm:$0xff] }
 0x129   : > { %1823 = vst [vmem:[#allocation2 + $0x31] sm:$0xff] %v9137_v54  ;;  %v9144_v56 = vmax.f32 %v1809_v55, 0.0  ;;  %v1808_v37 = vadd.f32 %v9110_v63, %v1793_v44  ;;  %v1796_v0 = vadd.f32 %v7705_v45, %v1646_v52  ;;  %7798 = vmatprep.subr.mxu1 %v6456_v43  ;;  %7742 = vmatmul.mubr.f32.gmra.mxu1 %v9137_v54  ;;  %v6504_v52 = vld [vmem:[%s11710_s3 + $0x2e8] sm:$0xff]  ;;  %v6487_v44 = vld [vmem:[%s11710_s3 + $0x260] sm:$0xff] }
 0x12a   : > { %v1780_v46 = vpop.f32.mrf.mxu0  ;;  %7799 = vmatpush3.msra.mxu1 %v6456_v43  ;;  %7744 = vmatprep.mubr.f32.mxu1 %v9127_v40  ;;  %v9163_v60 = vld [vmem:[#allocation2 + $0x20] sm:$0xff] }
 0x12b   : > { %1826 = vst [vmem:[#allocation2 + $0x61] sm:$0xff] %v9144_v56  ;;  %v9153_v33 = vmax.f32 %v1808_v37, 0.0  ;;  %v1811_v58 = vadd.f32 %v9110_v63, %v1796_v0  ;;  %v1795_v1 = vadd.f32 %v1780_v46, %v1645_v62  ;;  %7800 = vmatprep.subr.mxu1 %v6455_v61  ;;  %v9274_v59 = vld [vmem:[#allocation2 + $0x22] sm:$0xff]  ;;  %v6502_v37 = vld [vmem:[%s11710_s3 + $0x2d8] sm:$0xff]  ;;  %v6485_v46 = vld [vmem:[%s11710_s3 + $0x250] sm:$0xff] }
 0x12c   : > { %v1830_v6 = vld [vmem:[#allocation2 + $0x10] sm:$0xff]  ;;  %7801 = vmatpush3.msra.mxu1 %v6455_v61  ;;  %v6503_v45 = vld [vmem:[%s11710_s3 + $0x2e0] sm:$0xff]  ;;  %v6486_v61 = vld [vmem:[%s11710_s3 + $0x258] sm:$0xff] }
 0x12d   : > { %1825 = vst [vmem:[#allocation2 + $0x51] sm:$0xff] %v9153_v33  ;;  %v9160_v48 = vmax.f32 %v1811_v58, 0.0  ;;  %v1810_v50 = vadd.f32 %v9110_v63, %v1795_v1  ;;  %7783 = vmatmul.mubr.f32.vlgmr.msra.gmra.mxu0 %v1830_v6  ;;  %7802 = vmatprep.subr.mxu1 %v6454_v47  ;;  %v9267_v57 = vld [vmem:[#allocation2 + $0x12] sm:$0xff]  ;;  %v6484_v58 = vld [vmem:[%s11710_s3 + $0x248] sm:$0xff] }
 0x12e   : > { %7839 = vmatpush3.msra.mxu0 %v11735_v3  ;;  %7785 = vmatprep.mubr.f32.mxu0 %v9163_v60  ;;  %v9181_v10 = vld [vmem:[#allocation2 + $0x40] sm:$0xff] }
 0x12f   : > { %1828 = vst [vmem:[#allocation2 + $0x81] sm:$0xff] %v9160_v48  ;;  %v9171_v9 = vmax.f32 %v1810_v50, 0.0  ;;  %7840 = vmatprep.subr.mxu0 %v6473_v7  ;;  %7745 = vmatmul.mubr.f32.gmra.mxu1 %v9153_v33  ;;  %v9294_v55 = vld [vmem:[#allocation2 + $0x42] sm:$0xff] }
 0x130   : > { %7841 = vmatpush3.msra.mxu0 %v6473_v7  ;;  %v9174_v63 = vld [vmem:[#allocation2 + $0x30] sm:$0xff]  ;;  %7803 = vmatpush3.msra.mxu1 %v6454_v47  ;;  %v6483_v50 = vld [vmem:[%s11710_s3 + $0x240] sm:$0xff] }
 0x131   : > { %1827 = vst [vmem:[#allocation2 + $0x71] sm:$0xff] %v9171_v9  ;;  %7842 = vmatprep.subr.mxu0 %v6472_v8  ;;  %7786 = vmatmul.mubr.f32.gmra.mxu0 %v9174_v63  ;;  %v9287_v43 = vld [vmem:[#allocation2 + $0x32] sm:$0xff]  ;;  %v6499_v3 = vld [vmem:[%s11710_s3 + $0x2c0] sm:$0xff] }
 0x132   : > { %7843 = vmatpush3.msra.mxu0 %v6472_v8  ;;  %7788 = vmatprep.mubr.f32.mxu0 %v9181_v10  ;;  %v9197_v17 = vld [vmem:[#allocation2 + $0x60] sm:$0xff]  ;;  %v6501_v47 = vld [vmem:[%s11710_s3 + $0x2d0] sm:$0xff]  ;;  %v6482_v8 = vld [vmem:[%s11710_s3 + $0x238] sm:$0xff] }
 0x133   : > { %7844 = vmatprep.subr.mxu0 %v6471_v5  ;;  %7747 = vmatprep.mubr.f32.mxu1 %v9144_v56  ;;  %v9314_v0 = vld [vmem:[#allocation2 + $0x62] sm:$0xff] }
 0x134   : > { %7845 = vmatpush3.msra.mxu0 %v6471_v5  ;;  %v9191_v13 = vld [vmem:[#allocation2 + $0x50] sm:$0xff]  ;;  %7804 = vmatprep.subr.mxu1 %v6453_v11  ;;  %v6498_v5 = vld [vmem:[%s11710_s3 + $0x2b8] sm:$0xff] }
 0x135   : > { %7846 = vmatprep.subr.mxu0 %v6470_v2  ;;  %7789 = vmatmul.mubr.f32.gmra.mxu0 %v9191_v13  ;;  %v9307_v62 = vld [vmem:[#allocation2 + $0x52] sm:$0xff] }
 0x136   : > { %7847 = vmatpush3.msra.mxu0 %v6470_v2  ;;  %7791 = vmatprep.mubr.f32.mxu0 %v9197_v17  ;;  %v9333_v7 = vld [vmem:[#allocation2 + $0x80] sm:$0xff]  ;;  %v6480_v2 = vld [vmem:[%s11710_s3 + $0x228] sm:$0xff] }
 0x137   : > { %7848 = vmatprep.subr.mxu0 %v6469_v15  ;;  %7805 = vmatpush3.msra.mxu1 %v6453_v11  ;;  %v6481_v11 = vld [vmem:[%s11710_s3 + $0x230] sm:$0xff] }
 0x138   : > { %7849 = vmatpush3.msra.mxu0 %v6469_v15  ;;  %7806 = vmatprep.subr.mxu1 %v6452_v12  ;;  %v9206_v23 = vld [vmem:[#allocation2 + $0x70] sm:$0xff]  ;;  %v6496_v15 = vld [vmem:[%s11710_s3 + $0x2a8] sm:$0xff] }
 0x139   : > { %7850 = vmatprep.subr.mxu0 %v6468_v18  ;;  %7748 = vmatmul.mubr.f32.gmra.mxu1 %v9171_v9  ;;  %v9327_v1 = vld [vmem:[#allocation2 + $0x72] sm:$0xff] }
 0x13a   : > { %7792 = vmatmul.mubr.f32.gmra.mxu0 %v9206_v23  ;;  %7807 = vmatpush3.msra.mxu1 %v6452_v12  ;;  %v6479_v12 = vld [vmem:[%s11710_s3 + $0x220] sm:$0xff] }
 0x13b   : > { %7851 = vmatpush3.msra.mxu0 %v6468_v18  ;;  %7808 = vmatprep.subr.mxu1 %v6451_v4  ;;  %v6495_v18 = vld [vmem:[%s11710_s3 + $0x2a0] sm:$0xff] }
 0x13c   : > { %7852 = vmatprep.subr.mxu0 %v6467_v14  ;;  %7870 = vmatprep.mubr.f32.mxu0 %v1830_v6  ;;  %v6500_v6 = vld [vmem:[%s11710_s3 + $0x2c8] sm:$0xff] }
 0x13d   : > { %7809 = vmatpush3.msra.mxu1 %v6451_v4  ;;  %7853 = vmatpush3.msra.mxu0 %v6467_v14  ;;  %v6478_v4 = vld [vmem:[%s11710_s3 + $0x218] sm:$0xff] }
 0x13e   : > { %7810 = vmatprep.subr.mxu1 %v6450_v19  ;;  %7854 = vmatprep.subr.mxu0 %v6466_v24  ;;  %v6494_v14 = vld [vmem:[%s11710_s3 + $0x298] sm:$0xff] }
 0x13f   : > { %7811 = vmatpush3.msra.mxu1 %v6450_v19  ;;  %7855 = vmatpush3.msra.mxu0 %v6466_v24  ;;  %v6477_v19 = vld [vmem:[%s11710_s3 + $0x210] sm:$0xff] }
 0x140   : > { %7812 = vmatprep.subr.mxu1 %v6449_v25  ;;  %7856 = vmatprep.subr.mxu0 %v6465_v26  ;;  %v6493_v24 = vld [vmem:[%s11710_s3 + $0x290] sm:$0xff] }
 0x141   : > { %7813 = vmatpush3.msra.mxu1 %v6449_v25  ;;  %7857 = vmatpush3.msra.mxu0 %v6465_v26  ;;  %v6476_v25 = vld [vmem:[%s11710_s3 + $0x208] sm:$0xff] }
 0x142   : > { %7814 = vmatprep.subr.mxu1 %v6448_v27  ;;  %7858 = vmatprep.subr.mxu0 %v6464_v21  ;;  %v6492_v26 = vld [vmem:[%s11710_s3 + $0x288] sm:$0xff] }
 0x143   : > { %7815 = vmatpush3.msra.mxu1 %v6448_v27  ;;  %7859 = vmatpush3.msra.mxu0 %v6464_v21  ;;  %v6475_v27 = vld [vmem:[%s11710_s3 + $0x200] sm:$0xff] }
 0x144   : > { %7816 = vmatprep.subr.mxu1 %v6447_v29  ;;  %7860 = vmatprep.subr.mxu0 %v6463_v30  ;;  %v6491_v21 = vld [vmem:[%s11710_s3 + $0x280] sm:$0xff] }
 0x145   : > { %7817 = vmatpush3.msra.mxu1 %v6447_v29  ;;  %7861 = vmatpush3.msra.mxu0 %v6463_v30  ;;  %v6522_v29 = vld [vmem:[%s11710_s3 + $0x378] sm:$0xff] }
 0x146   : > { %7818 = vmatprep.subr.mxu1 %v6446_v31  ;;  %7862 = vmatprep.subr.mxu0 %v6462_v22  ;;  %v6538_v30 = vld [vmem:[%s11710_s3 + $0x3f8] sm:$0xff] }
 0x147   : > { %7819 = vmatpush3.msra.mxu1 %v6446_v31  ;;  %7863 = vmatpush3.msra.mxu0 %v6462_v22  ;;  %v6521_v31 = vld [vmem:[%s11710_s3 + $0x370] sm:$0xff] }
 0x148   : > { %7820 = vmatprep.subr.mxu1 %v6445_v32  ;;  %7864 = vmatprep.subr.mxu0 %v6461_v34  ;;  %v6537_v22 = vld [vmem:[%s11710_s3 + $0x3f0] sm:$0xff] }
 0x149   : > { %7821 = vmatpush3.msra.mxu1 %v6445_v32  ;;  %7865 = vmatpush3.msra.mxu0 %v6461_v34  ;;  %v6520_v32 = vld [vmem:[%s11710_s3 + $0x368] sm:$0xff] }
 0x14a   : > { %7822 = vmatprep.subr.mxu1 %v6444_v35  ;;  %7866 = vmatprep.subr.mxu0 %v6460_v36  ;;  %v6536_v34 = vld [vmem:[%s11710_s3 + $0x3e8] sm:$0xff] }
 0x14b   : > { %7823 = vmatpush3.msra.mxu1 %v6444_v35  ;;  %7867 = vmatpush3.msra.mxu0 %v6460_v36  ;;  %v6519_v35 = vld [vmem:[%s11710_s3 + $0x360] sm:$0xff] }
 0x14c   : > { %7824 = vmatprep.subr.mxu1 %v6443_v38  ;;  %7868 = vmatprep.subr.mxu0 %v6459_v49  ;;  %v6535_v36 = vld [vmem:[%s11710_s3 + $0x3e0] sm:$0xff] }
 0x14d   : > { %7825 = vmatpush3.msra.mxu1 %v6443_v38  ;;  %7826 = vmatprep.mubr.f32.mxu1 %v2088_v39  ;;  %v6518_v38 = vld [vmem:[%s11710_s3 + $0x358] sm:$0xff]  ;;  %v6517_v39 = vld [vmem:[%s11710_s3 + $0x350] sm:$0xff] }
 0x14e   : > { %7869 = vmatpush3.msra.mxu0 %v6459_v49  ;;  %7827 = vmatmul.mubr.f32.vlgmr.msra.gmra.mxu1 %v9267_v57  ;;  %v6534_v49 = vld [vmem:[%s11710_s3 + $0x3d8] sm:$0xff] }
 0x14f   : > { %7871 = vmatmul.mubr.f32.vlgmr.msra.gmra.mxu0 %v9163_v60  ;;  %7882 = vmatprep.subr.mxu1 %v6490_v51 }
 0x150   : > { %7926 = vmatprep.subr.mxu0 %v6506_v53  ;;  %7829 = vmatprep.mubr.f32.mxu1 %v9274_v59 }
 0x151   : > { %7873 = vmatprep.mubr.f32.mxu0 %v9174_v63  ;;  %7883 = vmatpush3.msra.mxu1 %v6490_v51  ;;  %v6533_v51 = vld [vmem:[%s11710_s3 + $0x3d0] sm:$0xff] }
 0x152   : > { %7927 = vmatpush3.msra.mxu0 %v6506_v53  ;;  %7884 = vmatprep.subr.mxu1 %v6489_v20  ;;  %v6532_v53 = vld [vmem:[%s11710_s3 + $0x3c8] sm:$0xff] }
 0x153   : > { %7928 = vmatprep.subr.mxu0 %v6505_v41  ;;  %7885 = vmatpush3.msra.mxu1 %v6489_v20  ;;  %v9447_v20 = vld [vmem:[#allocation2 + $0x82] sm:$0xff] }
 0x154   : > { %7929 = vmatpush3.msra.mxu0 %v6505_v41  ;;  %7830 = vmatmul.mubr.f32.gmra.mxu1 %v9287_v43  ;;  %v6515_v41 = vld [vmem:[%s11710_s3 + $0x340] sm:$0xff] }
 0x155   : > { %7874 = vmatmul.mubr.f32.gmra.mxu0 %v9181_v10  ;;  %7886 = vmatprep.subr.mxu1 %v6488_v42 }
 0x156   : > { %7930 = vmatprep.subr.mxu0 %v6504_v52  ;;  %7832 = vmatprep.mubr.f32.mxu1 %v9294_v55 }
 0x157   : > { %7876 = vmatprep.mubr.f32.mxu0 %v9191_v13  ;;  %7887 = vmatpush3.msra.mxu1 %v6488_v42  ;;  %v6531_v42 = vld [vmem:[%s11710_s3 + $0x3c0] sm:$0xff] }
 0x158   : > { %7931 = vmatpush3.msra.mxu0 %v6504_v52  ;;  %7888 = vmatprep.subr.mxu1 %v6487_v44  ;;  %v6514_v52 = vld [vmem:[%s11710_s3 + $0x338] sm:$0xff] }
 0x159   : > { %7932 = vmatprep.subr.mxu0 %v6503_v45  ;;  %7889 = vmatpush3.msra.mxu1 %v6487_v44  ;;  %v6530_v44 = vld [vmem:[%s11710_s3 + $0x3b8] sm:$0xff] }
 0x15a   : > { %7933 = vmatpush3.msra.mxu0 %v6503_v45  ;;  %7833 = vmatmul.mubr.f32.gmra.mxu1 %v9307_v62  ;;  %v6513_v45 = vld [vmem:[%s11710_s3 + $0x330] sm:$0xff] }
 0x15b   : > { %7877 = vmatmul.mubr.f32.gmra.mxu0 %v9197_v17  ;;  %7890 = vmatprep.subr.mxu1 %v6486_v61 }
 0x15c   : > { %7934 = vmatprep.subr.mxu0 %v6502_v37  ;;  %7835 = vmatprep.mubr.f32.mxu1 %v9314_v0 }
 0x15d   : > { %7879 = vmatprep.mubr.f32.mxu0 %v9206_v23  ;;  %7891 = vmatpush3.msra.mxu1 %v6486_v61  ;;  %v6528_v61 = vld [vmem:[%s11710_s3 + $0x3a8] sm:$0xff] }
 0x15e   : > { %7935 = vmatpush3.msra.mxu0 %v6502_v37  ;;  %7892 = vmatprep.subr.mxu1 %v6485_v46  ;;  %v6511_v37 = vld [vmem:[%s11710_s3 + $0x320] sm:$0xff] }
 0x15f   : > { %7936 = vmatprep.subr.mxu0 %v6501_v47  ;;  %7893 = vmatpush3.msra.mxu1 %v6485_v46  ;;  %v6527_v46 = vld [vmem:[%s11710_s3 + $0x3a0] sm:$0xff] }
 0x160   : > { %7937 = vmatpush3.msra.mxu0 %v6501_v47  ;;  %7836 = vmatmul.mubr.f32.gmra.mxu1 %v9327_v1  ;;  %v6510_v47 = vld [vmem:[%s11710_s3 + $0x318] sm:$0xff] }
 0x161   : > { %7880 = vmatmul.mubr.f32.gmra.mxu0 %v9333_v7  ;;  %7894 = vmatprep.subr.mxu1 %v6484_v58 }
 0x162   : > { %7938 = vmatprep.subr.mxu0 %v6500_v6  ;;  %7895 = vmatpush3.msra.mxu1 %v6484_v58  ;;  %v6526_v58 = vld [vmem:[%s11710_s3 + $0x398] sm:$0xff] }
 0x163   : > { %7914 = vmatprep.mubr.f32.mxu1 %v9120_v16  ;;  %7939 = vmatpush3.msra.mxu0 %v6500_v6  ;;  %v6497_v16 = vld [vmem:[%s11710_s3 + $0x2b0] sm:$0xff] }
 0x164   : > { %7958 = vmatprep.mubr.f32.mxu0 %v9267_v57  ;;  %7896 = vmatprep.subr.mxu1 %v6483_v50  ;;  %v6516_v57 = vld [vmem:[%s11710_s3 + $0x348] sm:$0xff]  ;;  %v6509_v6 = vld [vmem:[%s11710_s3 + $0x310] sm:$0xff] }
 0x165   : > { %7940 = vmatprep.subr.mxu0 %v6499_v3  ;;  %7897 = vmatpush3.msra.mxu1 %v6483_v50  ;;  %v6525_v50 = vld [vmem:[%s11710_s3 + $0x390] sm:$0xff] }
 0x166   : > { %7941 = vmatpush3.msra.mxu0 %v6499_v3  ;;  %7898 = vmatprep.subr.mxu1 %v6482_v8  ;;  %v6508_v3 = vld [vmem:[%s11710_s3 + $0x308] sm:$0xff] }
 0x167   : > { %7942 = vmatprep.subr.mxu0 %v6498_v5  ;;  %7899 = vmatpush3.msra.mxu1 %v6482_v8  ;;  %v6524_v8 = vld [vmem:[%s11710_s3 + $0x388] sm:$0xff] }
 0x168   : > { %7943 = vmatpush3.msra.mxu0 %v6498_v5  ;;  %7900 = vmatprep.subr.mxu1 %v6481_v11  ;;  %v6507_v5 = vld [vmem:[%s11710_s3 + $0x300] sm:$0xff] }
 0x169   : > { %7944 = vmatprep.subr.mxu0 %v6497_v16  ;;  %7901 = vmatpush3.msra.mxu1 %v6481_v11  ;;  %v6523_v11 = vld [vmem:[%s11710_s3 + $0x380] sm:$0xff] }
 0x16a   : > { %7945 = vmatpush3.msra.mxu0 %v6497_v16  ;;  %7902 = vmatprep.subr.mxu1 %v6480_v2  ;;  %v6554_v16 = vld [vmem:[%s11710_s3 + $0x478] sm:$0xff] }
 0x16b   : > { %7946 = vmatprep.subr.mxu0 %v6496_v15  ;;  %7903 = vmatpush3.msra.mxu1 %v6480_v2  ;;  %v6553_v2 = vld [vmem:[%s11710_s3 + $0x470] sm:$0xff] }
 0x16c   : > { %7947 = vmatpush3.msra.mxu0 %v6496_v15  ;;  %7904 = vmatprep.subr.mxu1 %v6479_v12  ;;  %v6552_v15 = vld [vmem:[%s11710_s3 + $0x468] sm:$0xff] }
 0x16d   : > { %7948 = vmatprep.subr.mxu0 %v6495_v18  ;;  %7905 = vmatpush3.msra.mxu1 %v6479_v12  ;;  %v6540_v12 = vld [vmem:[%s11710_s3 + $0x408] sm:$0xff] }
 0x16e   : > { %7949 = vmatpush3.msra.mxu0 %v6495_v18  ;;  %7906 = vmatprep.subr.mxu1 %v6478_v4  ;;  %v6539_v18 = vld [vmem:[%s11710_s3 + $0x400] sm:$0xff] }
 0x16f   : > { %7950 = vmatprep.subr.mxu0 %v6494_v14  ;;  %7907 = vmatpush3.msra.mxu1 %v6478_v4  ;;  %v2924_v4 = vld [vmem:[#allocation2 + $0x92] sm:$0xff] }
 0x170   : > { %7951 = vmatpush3.msra.mxu0 %v6494_v14  ;;  %7908 = vmatprep.subr.mxu1 %v6477_v19  ;;  %v3081_v14 = vld [vmem:[%s11712_s5 + $0x18] sm:$0xff] }
 0x171   : > { %7952 = vmatprep.subr.mxu0 %v6493_v24  ;;  %7909 = vmatpush3.msra.mxu1 %v6477_v19 }
 0x172   : > { %7953 = vmatpush3.msra.mxu0 %v6493_v24  ;;  %7910 = vmatprep.subr.mxu1 %v6476_v25 }
 0x173   : > { %7954 = vmatprep.subr.mxu0 %v6492_v26  ;;  %7911 = vmatpush3.msra.mxu1 %v6476_v25 }
 0x174   : > { %7955 = vmatpush3.msra.mxu0 %v6492_v26  ;;  %7912 = vmatprep.subr.mxu1 %v6475_v27  ;;  %v9598_v26 = vld [vmem:[%s11714_s7 + $0xf8] sm:$0xff] }
 0x175   : > { %7956 = vmatprep.subr.mxu0 %v6491_v21  ;;  %7913 = vmatpush3.msra.mxu1 %v6475_v27  ;;  %11736 = vst [vmem:[#allocation5_spill] sm:$0xff] %v9598_v26  ;;  %v3265_v27 = vld [vmem:[%s11714_s7 + $0x78] sm:$0xff] }
 0x176   : > { %7957 = vmatpush3.msra.mxu0 %v6491_v21  ;;  %7915 = vmatmul.mubr.f32.vlgmr.msra.gmra.mxu1 %v9115_v28  ;;  %v3264_v21 = vld [vmem:[%s11714_s7 + $0x70] sm:$0xff] }
 0x177   : > { %7959 = vmatmul.mubr.f32.vlgmr.msra.gmra.mxu0 %v9274_v59  ;;  %7970 = vmatprep.subr.mxu1 %v6522_v29 }
 0x178   : > { %8014 = vmatprep.subr.mxu0 %v6538_v30  ;;  %7917 = vmatprep.mubr.f32.mxu1 %v9137_v54 }
 0x179   : > { %7961 = vmatprep.mubr.f32.mxu0 %v9287_v43  ;;  %7971 = vmatpush3.msra.mxu1 %v6522_v29 }
 0x17a   : > { %8015 = vmatpush3.msra.mxu0 %v6538_v30  ;;  %7972 = vmatprep.subr.mxu1 %v6521_v31 }
 0x17b   : > { %8016 = vmatprep.subr.mxu0 %v6537_v22  ;;  %7973 = vmatpush3.msra.mxu1 %v6521_v31  ;;  %v3263_v31 = vld [vmem:[%s11714_s7 + $0x68] sm:$0xff] }
 0x17c   : > { %8017 = vmatpush3.msra.mxu0 %v6537_v22  ;;  %7918 = vmatmul.mubr.f32.gmra.mxu1 %v9127_v40  ;;  %v3262_v22 = vld [vmem:[%s11714_s7 + $0x60] sm:$0xff] }
 0x17d   : > { %7962 = vmatmul.mubr.f32.gmra.mxu0 %v9294_v55  ;;  %7974 = vmatprep.subr.mxu1 %v6520_v32 }
 0x17e   : > { %8018 = vmatprep.subr.mxu0 %v6536_v34  ;;  %7920 = vmatprep.mubr.f32.mxu1 %v9153_v33 }
 0x17f   : > { %7964 = vmatprep.mubr.f32.mxu0 %v9307_v62  ;;  %7975 = vmatpush3.msra.mxu1 %v6520_v32 }
 0x180   : > { %8019 = vmatpush3.msra.mxu0 %v6536_v34  ;;  %7976 = vmatprep.subr.mxu1 %v6519_v35 }
 0x181   : > { %8020 = vmatprep.subr.mxu0 %v6535_v36  ;;  %7977 = vmatpush3.msra.mxu1 %v6519_v35  ;;  %v3261_v35 = vld [vmem:[%s11714_s7 + $0x58] sm:$0xff] }
 0x182   : > { %8021 = vmatpush3.msra.mxu0 %v6535_v36  ;;  %7921 = vmatmul.mubr.f32.gmra.mxu1 %v9144_v56  ;;  %v3260_v36 = vld [vmem:[%s11714_s7 + $0x50] sm:$0xff] }
 0x183   : > { %7965 = vmatmul.mubr.f32.gmra.mxu0 %v9314_v0  ;;  %7978 = vmatprep.subr.mxu1 %v6518_v38 }
 0x184   : > { %8022 = vmatprep.subr.mxu0 %v6534_v49  ;;  %7923 = vmatprep.mubr.f32.mxu1 %v9171_v9 }
 0x185   : > { %7967 = vmatprep.mubr.f32.mxu0 %v9327_v1  ;;  %7979 = vmatpush3.msra.mxu1 %v6518_v38 }
 0x186   : > { %8023 = vmatpush3.msra.mxu0 %v6534_v49  ;;  %7980 = vmatprep.subr.mxu1 %v6517_v39 }
 0x187   : > { %8024 = vmatprep.subr.mxu0 %v6533_v51  ;;  %7981 = vmatpush3.msra.mxu1 %v6517_v39  ;;  %v3259_v39 = vld [vmem:[%s11714_s7 + $0x48] sm:$0xff] }
 0x188   : > { %8025 = vmatpush3.msra.mxu0 %v6533_v51  ;;  %7924 = vmatmul.mubr.f32.gmra.mxu1 %v9160_v48  ;;  %v3258_v51 = vld [vmem:[%s11714_s7 + $0x40] sm:$0xff] }
 0x189   : > { %7968 = vmatmul.mubr.f32.gmra.mxu0 %v9447_v20  ;;  %7982 = vmatprep.subr.mxu1 %v6516_v57 }
 0x18a   : > { %8026 = vmatprep.subr.mxu0 %v6532_v53  ;;  %7983 = vmatpush3.msra.mxu1 %v6516_v57 }
 0x18b   : > { %8002 = vmatprep.mubr.f32.mxu1 %v9163_v60  ;;  %8027 = vmatpush3.msra.mxu0 %v6532_v53  ;;  %v6529_v60 = vld [vmem:[%s11710_s3 + $0x3b0] sm:$0xff] }
 0x18c   : > { %8046 = vmatprep.mubr.f32.mxu0 %v9115_v28  ;;  %7984 = vmatprep.subr.mxu1 %v6515_v41  ;;  %v6512_v28 = vld [vmem:[%s11710_s3 + $0x328] sm:$0xff] }
 0x18d   : > { %8028 = vmatprep.subr.mxu0 %v6531_v42  ;;  %7985 = vmatpush3.msra.mxu1 %v6515_v41 }
 0x18e   : > { %8029 = vmatpush3.msra.mxu0 %v6531_v42  ;;  %7986 = vmatprep.subr.mxu1 %v6514_v52 }
 0x18f   : > { %8030 = vmatprep.subr.mxu0 %v6530_v44  ;;  %7987 = vmatpush3.msra.mxu1 %v6514_v52 }
 0x190   : > { %8031 = vmatpush3.msra.mxu0 %v6530_v44  ;;  %7988 = vmatprep.subr.mxu1 %v6513_v45 }
 0x191   : > { %8032 = vmatprep.subr.mxu0 %v6529_v60  ;;  %7989 = vmatpush3.msra.mxu1 %v6513_v45 }
 0x192   : > { %8033 = vmatpush3.msra.mxu0 %v6529_v60  ;;  %7990 = vmatprep.subr.mxu1 %v6512_v28 }
 0x193   : > { %8034 = vmatprep.subr.mxu0 %v6528_v61  ;;  %7991 = vmatpush3.msra.mxu1 %v6512_v28 }
 0x194   : > { %8035 = vmatpush3.msra.mxu0 %v6528_v61  ;;  %7992 = vmatprep.subr.mxu1 %v6511_v37 }
 0x195   : > { %8036 = vmatprep.subr.mxu0 %v6527_v46  ;;  %7993 = vmatpush3.msra.mxu1 %v6511_v37 }
 0x196   : > { %8037 = vmatpush3.msra.mxu0 %v6527_v46  ;;  %7994 = vmatprep.subr.mxu1 %v6510_v47 }
 0x197   : > { %8038 = vmatprep.subr.mxu0 %v6526_v58  ;;  %7995 = vmatpush3.msra.mxu1 %v6510_v47 }
 0x198   : > { %8039 = vmatpush3.msra.mxu0 %v6526_v58  ;;  %7996 = vmatprep.subr.mxu1 %v6509_v6 }
 0x199   : > { %8040 = vmatprep.subr.mxu0 %v6525_v50  ;;  %7997 = vmatpush3.msra.mxu1 %v6509_v6 }
 0x19a   : > { %8041 = vmatpush3.msra.mxu0 %v6525_v50  ;;  %7998 = vmatprep.subr.mxu1 %v6508_v3 }
 0x19b   : > { %8042 = vmatprep.subr.mxu0 %v6524_v8  ;;  %7999 = vmatpush3.msra.mxu1 %v6508_v3 }
 0x19c   : > { %8043 = vmatpush3.msra.mxu0 %v6524_v8  ;;  %8000 = vmatprep.subr.mxu1 %v6507_v5 }
 0x19d   : > { %8044 = vmatprep.subr.mxu0 %v6523_v11  ;;  %8001 = vmatpush3.msra.mxu1 %v6507_v5 }
 0x19e   : > { %8045 = vmatpush3.msra.mxu0 %v6523_v11  ;;  %8003 = vmatmul.mubr.f32.vlgmr.msra.gmra.mxu1 %v9174_v63  ;;  %v2786_v63 = vld [vmem:[#allocation2 + $0x91] sm:$0xff] }
 0x19f   : > { %8047 = vmatmul.mubr.f32.vlgmr.msra.gmra.mxu0 %v9137_v54  ;;  %8058 = vmatprep.subr.mxu1 %v6554_v16  ;;  %v6551_v54 = vld [vmem:[%s11710_s3 + $0x460] sm:$0xff] }
 0x1a0   : > { %8005 = vmatprep.mubr.f32.mxu1 %v9181_v10  ;;  %8049 = vmatprep.mubr.f32.mxu0 %v9127_v40  ;;  %v6550_v40 = vld [vmem:[%s11710_s3 + $0x458] sm:$0xff]  ;;  %v8556_v10 = vld [vmem:[#allocation2] sm:$0xff] }
 0x1a1   : > { %8059 = vmatpush3.msra.mxu1 %v6554_v16  ;;  %8102 = vmatprep.subr.mxu0 %v3081_v14 }
 0x1a2   : > { %8060 = vmatprep.subr.mxu1 %v6553_v2  ;;  %8006 = vmatmul.mubr.f32.gmra.mxu1 %v9191_v13  ;;  %v6545_v13 = vld [vmem:[%s11710_s3 + $0x430] sm:$0xff] }
 0x1a3   : > { %8061 = vmatpush3.msra.mxu1 %v6553_v2  ;;  %8050 = vmatmul.mubr.f32.gmra.mxu0 %v9153_v33  ;;  %v6549_v33 = vld [vmem:[%s11710_s3 + $0x450] sm:$0xff] }
 0x1a4   : > { %8062 = vmatprep.subr.mxu1 %v6552_v15  ;;  %8008 = vmatprep.mubr.f32.mxu1 %v9197_v17  ;;  %v6544_v17 = vld [vmem:[%s11710_s3 + $0x428] sm:$0xff] }
 0x1a5   : > { %8052 = vmatprep.mubr.f32.mxu0 %v9144_v56  ;;  %8063 = vmatpush3.msra.mxu1 %v6552_v15  ;;  %v6548_v56 = vld [vmem:[%s11710_s3 + $0x448] sm:$0xff] }
 0x1a6   : > { %8064 = vmatprep.subr.mxu1 %v6551_v54  ;;  %8009 = vmatmul.mubr.f32.gmra.mxu1 %v9206_v23  ;;  %v6543_v23 = vld [vmem:[%s11710_s3 + $0x420] sm:$0xff] }
 0x1a7   : > { %8065 = vmatpush3.msra.mxu1 %v6551_v54  ;;  %8053 = vmatmul.mubr.f32.gmra.mxu0 %v9171_v9  ;;  %v6547_v9 = vld [vmem:[%s11710_s3 + $0x440] sm:$0xff] }
 0x1a8   : > { %8066 = vmatprep.subr.mxu1 %v6550_v40  ;;  %8011 = vmatprep.mubr.f32.mxu1 %v9333_v7  ;;  %v6541_v7 = vld [vmem:[%s11710_s3 + $0x410] sm:$0xff] }
 0x1a9   : > { %8055 = vmatprep.mubr.f32.mxu0 %v9160_v48  ;;  %8067 = vmatpush3.msra.mxu1 %v6550_v40  ;;  %v6546_v48 = vld [vmem:[%s11710_s3 + $0x438] sm:$0xff] }
 0x1aa   : > { %8068 = vmatprep.subr.mxu1 %v6549_v33  ;;  %8012 = vmatmul.mubr.f32.gmra.mxu1 %v8556_v10 }
 0x1ab   : > { %8069 = vmatpush3.msra.mxu1 %v6549_v33  ;;  %8090 = vmatprep.mubr.f32.mxu1 %v9274_v59  ;;  %v6542_v59 = vld [vmem:[%s11710_s3 + $0x418] sm:$0xff] }
 0x1ac   : > { %8070 = vmatprep.subr.mxu1 %v6548_v56  ;;  %8056 = vmatmul.mubr.f32.gmra.mxu0 %v2786_v63 }
 0x1ad   : > { %8071 = vmatpush3.msra.mxu1 %v6548_v56  ;;  %8103 = vmatpush3.msra.mxu0 %v3081_v14 }
 0x1ae   : > { %8072 = vmatprep.subr.mxu1 %v6547_v9 }
 0x1af   : > { %8073 = vmatpush3.msra.mxu1 %v6547_v9 }
 0x1b0   : > { %8074 = vmatprep.subr.mxu1 %v6546_v48 }
 0x1b1   : > { %8075 = vmatpush3.msra.mxu1 %v6546_v48 }
 0x1b2   : > { %8076 = vmatprep.subr.mxu1 %v6545_v13 }
 0x1b3   : > { %8077 = vmatpush3.msra.mxu1 %v6545_v13 }
 0x1b4   : > { %8078 = vmatprep.subr.mxu1 %v6544_v17 }
 0x1b5   : > { %8079 = vmatpush3.msra.mxu1 %v6544_v17 }
 0x1b6   : > { %8080 = vmatprep.subr.mxu1 %v6543_v23 }
 0x1b7   : > { %8081 = vmatpush3.msra.mxu1 %v6543_v23 }
 0x1b8   : > { %8082 = vmatprep.subr.mxu1 %v6542_v59 }
 0x1b9   : > { %8083 = vmatpush3.msra.mxu1 %v6542_v59 }
 0x1ba   : > { %8084 = vmatprep.subr.mxu1 %v6541_v7 }
 0x1bb   : > { %8085 = vmatpush3.msra.mxu1 %v6541_v7 }
 0x1bc   : > { %8086 = vmatprep.subr.mxu1 %v6540_v12 }
 0x1bd   : > { %8087 = vmatpush3.msra.mxu1 %v6540_v12 }
 0x1be   : > { %8088 = vmatprep.subr.mxu1 %v6539_v18 }
 0x1bf   : > { %8089 = vmatpush3.msra.mxu1 %v6539_v18 }
 0x1c0   : > { %8091 = vmatmul.mubr.f32.vlgmr.msra.gmra.mxu1 %v9287_v43  ;;  %v3080_v43 = vld [vmem:[%s11712_s5 + $0x10] sm:$0xff]  ;;  %8166 = vmatprep.subr.mxu1 %v3265_v27 }
 0x1c1   : > { %8093 = vmatprep.mubr.f32.mxu1 %v9294_v55  ;;  %8104 = vmatprep.subr.mxu0 %v3080_v43  ;;  %v3079_v55 = vld [vmem:[%s11712_s5 + $0x8] sm:$0xff] }
 0x1c2   : > { %8105 = vmatpush3.msra.mxu0 %v3080_v43  ;;  %8167 = vmatpush3.msra.mxu1 %v3265_v27 }
 0x1c3   : > { %8106 = vmatprep.subr.mxu0 %v3079_v55  ;;  %8168 = vmatprep.subr.mxu1 %v3264_v21 }
 0x1c4   : > { %8094 = vmatmul.mubr.f32.gmra.mxu1 %v9307_v62  ;;  %8107 = vmatpush3.msra.mxu0 %v3079_v55  ;;  %v3078_v62 = vld [vmem:[%s11712_s5] sm:$0xff] }
 0x1c5   : > { %8096 = vmatprep.mubr.f32.mxu1 %v9314_v0  ;;  %8108 = vmatprep.subr.mxu0 %v3078_v62 }
 0x1c6   : > { %8109 = vmatpush3.msra.mxu0 %v3078_v62  ;;  %8169 = vmatpush3.msra.mxu1 %v3264_v21 }
 0x1c7   : > { %8122 = vmatprep.subr.mxu0 %v9598_v26  ;;  %8170 = vmatprep.subr.mxu1 %v3263_v31 }
 0x1c8   : > { %8097 = vmatmul.mubr.f32.gmra.mxu1 %v9327_v1 }
 0x1c9   : > { %8099 = vmatprep.mubr.f32.mxu1 %v9447_v20  ;;  %8171 = vmatpush3.msra.mxu1 %v3263_v31 }
 0x1ca   : > { %8172 = vmatprep.subr.mxu1 %v3262_v22 }
 0x1cb   : > { %8173 = vmatpush3.msra.mxu1 %v3262_v22 }
 0x1cc   : > { %8100 = vmatmul.mubr.f32.gmra.mxu1 %v2924_v4  ;;  %8174 = vmatprep.subr.mxu1 %v3261_v35 }
 0x1cd   : > { %8198 = vmatprep.mubr.f32.mxu1 %v8556_v10  ;;  %8175 = vmatpush3.msra.mxu1 %v3261_v35 }
 0x1ce   : > { %8176 = vmatprep.subr.mxu1 %v3260_v36 }
 0x1cf   : > { %8177 = vmatpush3.msra.mxu1 %v3260_v36 }
 0x1d0   : > { %8178 = vmatprep.subr.mxu1 %v3259_v39 }
 0x1d1   : > { %8179 = vmatpush3.msra.mxu1 %v3259_v39 }
 0x1d2   : > { %8180 = vmatprep.subr.mxu1 %v3258_v51 }
 0x1d3   : > { %8181 = vmatpush3.msra.mxu1 %v3258_v51 }
 0x1e5   : > { %v9585_v0 = vpop.f32.mrf.mxu1 }
 0x1e7   : > { %v9587_v1 = vpop.f32.mrf.mxu1 }
 0x1e9   : > { %v9589_v19 = vpop.f32.mrf.mxu1 }
 0x1eb   : > { %v9593_v25 = vpop.f32.mrf.mxu1 }
 0x1ed   : > { %v9591_v24 = vpop.f32.mrf.mxu0 }
 0x1ee   : > { %v2055_v27 = vadd.f32 %v9591_v24, %v9585_v0 }
 0x1ef   : > { %v9607_v29 = vpop.f32.mrf.mxu0  ;;  %v9609_v30 = vpop.f32.mrf.mxu1 }
 0x1f0   : > { %v2050_v21 = vadd.f32 %v9607_v29, %v9587_v1 }
 0x1f1   : > { %v9617_v32 = vpop.f32.mrf.mxu0  ;;  %v9619_v34 = vpop.f32.mrf.mxu1 }
 0x1f2   : > { %v2065_v36 = vadd.f32 %v9617_v32, %v9589_v19 }
 0x1f3   : > { %v9627_v38 = vpop.f32.mrf.mxu0 }
 0x1f4   : > { %v2060_v26 = vadd.f32 %v9627_v38, %v9593_v25 }
 0x1f5   : > { %v7790_v57 = vpop.f32.mrf.mxu0 }
 0x1f6   : > { %v2075_v1 = vadd.f32 %v7790_v57, %v9609_v30 }
 0x1f7   : > { %v2069_v41 = vpop.f32.mrf.mxu0 }
 0x1f9   : > { %v9629_v49 = vpop.f32.mrf.mxu1 }
 0x1fa   : > { %v9639_v52 = vpop.f32.mrf.mxu0 }
 0x1fb   : > { %v9637_v53 = vpop.f32.mrf.mxu1  ;;  %v2085_v25 = vadd.f32 %v9639_v52, %v9629_v49  ;;  %v9681_v52 = vld [vmem:[%s11711_s4] ss:$0 sm:$0xff] }
 0x1fc   : > { %v9641_v45 = vpop.f32.mrf.mxu0 }
 0x20e   : > { %v7828_v20 = vpop.f32.mrf.mxu1 }
 0x20f   : > { %v7872_v60 = vpop.f32.mrf.mxu0  ;;  %v2219_v31 = vadd.f32 %v7828_v20, %v2055_v27 }
 0x210   : > { %v2179_v42 = vpop.f32.mrf.mxu1 }
 0x211   : > { %v2317_v61 = vpop.f32.mrf.mxu0  ;;  %v2357_v39 = vadd.f32 %v7872_v60, %v2219_v31  ;;  %v2218_v51 = vadd.f32 %v2179_v42, %v2050_v21 }
 0x214   : > { %v7831_v44 = vpop.f32.mrf.mxu1 }
 0x215   : > { %v7875_v46 = vpop.f32.mrf.mxu0 }
 0x216   : > { %v2189_v28 = vpop.f32.mrf.mxu1 }
 0x217   : > { %v2327_v58 = vpop.f32.mrf.mxu0 }
 0x21a   : > { %v7834_v37 = vpop.f32.mrf.mxu1 }
 0x21b   : > { %v7878_v50 = vpop.f32.mrf.mxu0  ;;  %v2223_v19 = vadd.f32 %v7834_v37, %v2075_v1 }
 0x21c   : > { %v2199_v47 = vpop.f32.mrf.mxu1 }
 0x21d   : > { %v2337_v5 = vpop.f32.mrf.mxu0 }
 0x220   : > { %v9643_v6 = vpop.f32.mrf.mxu1 }
 0x221   : > { %v9647_v16 = vpop.f32.mrf.mxu0 }
 0x222   : > { %v9645_v3 = vpop.f32.mrf.mxu1 }
 0x223   : > { %v9649_v15 = vpop.f32.mrf.mxu0 }
 0x236   : > { %v7916_v8 = vpop.f32.mrf.mxu1 }
 0x237   : > { %v7960_v54 = vpop.f32.mrf.mxu0 }
 0x238   : > { %v2455_v11 = vpop.f32.mrf.mxu1 }
 0x239   : > { %v2593_v33 = vpop.f32.mrf.mxu0 }
 0x23c   : > { %v7919_v2 = vpop.f32.mrf.mxu1 }
 0x23d   : > { %v7963_v63 = vpop.f32.mrf.mxu0 }
 0x23e   : > { %v2465_v40 = vpop.f32.mrf.mxu1 }
 0x23f   : > { %v2603_v9 = vpop.f32.mrf.mxu0 }
 0x242   : > { %v7922_v56 = vpop.f32.mrf.mxu1 }
 0x243   : > { %v7966_v13 = vpop.f32.mrf.mxu0 }
 0x244   : > { %v2475_v10 = vpop.f32.mrf.mxu1 }
 0x245   : > { %v9655_v59 = vpop.f32.mrf.mxu0 }
 0x246   : > { %11739 = vst [vmem:[#allocation3_spill] sm:$0xff] %v9655_v59 }
 0x248   : > { %v9651_v48 = vpop.f32.mrf.mxu1 }
 0x249   : > { %11737 = vst [vmem:[#allocation6_spill] sm:$0xff] %v9651_v48  ;;  %v9657_v12 = vpop.f32.mrf.mxu0  ;;  %v2220_v48 = vadd.f32 %v2189_v28, %v2060_v26 }
 0x24a   : > { %v9653_v17 = vpop.f32.mrf.mxu1  ;;  %11740 = vst [vmem:[#allocation4_spill] sm:$0xff] %v9657_v12  ;;  %v2495_v12 = vadd.f32 %v7916_v8, %v2357_v39 }
 0x24b   : > { %11738 = vst [vmem:[#allocation7_spill] sm:$0xff] %v9653_v17  ;;  %v9659_v4 = vpop.f32.mrf.mxu0  ;;  %v2221_v17 = vadd.f32 %v7831_v44, %v2065_v36  ;;  %v2358_v59 = vadd.f32 %v2327_v58, %v2220_v48 }
 0x24c   : > { %11741 = vst [vmem:[#allocation8_spill] sm:$0xff] %v9659_v4  ;;  %v2356_v4 = vadd.f32 %v2317_v61, %v2218_v51  ;;  %v2633_v20 = vadd.f32 %v7960_v54, %v2495_v12  ;;  %v2361_v61 = vadd.f32 %v7878_v50, %v2223_v19  ;;  %v6579_v19 = vld [vmem:[%s11714_s7 + $0xf0] sm:$0xff] }
 0x24d   : > { %v2359_v29 = vadd.f32 %v7875_v46, %v2221_v17  ;;  %v2496_v44 = vadd.f32 %v2465_v40, %v2358_v59  ;;  %v2080_v46 = vadd.f32 %v9641_v45, %v9637_v53 }
 0x24e   : > { %v2494_v27 = vadd.f32 %v2455_v11, %v2356_v4  ;;  %v2499_v11 = vadd.f32 %v7922_v56, %v2361_v61 }
 0x24f   : > { %v2497_v42 = vadd.f32 %v7919_v2, %v2359_v29  ;;  %v2634_v37 = vadd.f32 %v2603_v9, %v2496_v44  ;;  %v2224_v50 = vadd.f32 %v9645_v3, %v2080_v46  ;;  %v11743_v9 = vld [vmem:[#allocation3_spill] sm:$0xff] }
 0x250   : > { %v2632_v32 = vadd.f32 %v2593_v33, %v2494_v27  ;;  %v11744_v17 = vld [vmem:[#allocation6_spill] sm:$0xff] }
 0x251   : > { %v2635_v8 = vadd.f32 %v7963_v63, %v2497_v42  ;;  %v2362_v56 = vadd.f32 %v9649_v15, %v2224_v50 }
 0x253   : > { %v11748_v36 = vld [vmem:[#allocation8_spill] sm:$0xff] }
 0x25e   : > { %v8004_v23 = vpop.f32.mrf.mxu1 }
 0x25f   : > { %v8048_v14 = vpop.f32.mrf.mxu0  ;;  %v2772_v60 = vadd.f32 %v8004_v23, %v2633_v20 }
 0x260   : > { %v2732_v7 = vpop.f32.mrf.mxu1 }
 0x261   : > { %v2870_v55 = vpop.f32.mrf.mxu0  ;;  %v2910_v30 = vadd.f32 %v8048_v14, %v2772_v60  ;;  %v2771_v57 = vadd.f32 %v2732_v7, %v2632_v32 }
 0x262   : > { %v8007_v18 = vpop.f32.mrf.mxu1 }
 0x263   : > { %v8051_v22 = vpop.f32.mrf.mxu0  ;;  %v2909_v2 = vadd.f32 %v2870_v55, %v2771_v57  ;;  %v2774_v54 = vadd.f32 %v8007_v18, %v2635_v8  ;;  %v11745_v18 = vld [vmem:[#allocation4_spill] sm:$0xff] }
 0x264   : > { %v2742_v43 = vpop.f32.mrf.mxu1 }
 0x265   : > { %v2880_v0 = vpop.f32.mrf.mxu0  ;;  %v2773_v33 = vadd.f32 %v2742_v43, %v2634_v37 }
 0x266   : > { %v8010_v62 = vpop.f32.mrf.mxu1 }
 0x267   : > { %v8054_v26 = vpop.f32.mrf.mxu0  ;;  %v2911_v12 = vadd.f32 %v2880_v0, %v2773_v33  ;;  %v6569_v33 = vld [vmem:[%s11714_s7 + $0xa0] sm:$0xff] }
 0x268   : > { %v9665_v35 = vpop.f32.mrf.mxu1 }
 0x269   : > { %11742 = vst [vmem:[#allocation9_spill] sm:$0xff] %v9665_v35  ;;  %v2070_v35 = vadd.f32 %v2069_v41, %v9619_v34  ;;  %v2225_v41 = vadd.f32 %v9643_v6, %v2085_v25  ;;  %v2890_v53 = vpop.f32.mrf.mxu0  ;;  %v2912_v6 = vadd.f32 %v8051_v22, %v2774_v54 }
 0x26a   : > { %v8013_v24 = vpop.f32.mrf.mxu1 }
 0x26b   : > { %v2222_v38 = vadd.f32 %v2199_v47, %v2070_v35  ;;  %v2363_v47 = vadd.f32 %v9647_v16, %v2225_v41 }
 0x26c   : > { %v2762_v28 = vpop.f32.mrf.mxu1  ;;  %v8057_v43 = vpop.f32.mrf.mxu0 }
 0x26d   : > { %v2360_v34 = vadd.f32 %v2337_v5, %v2222_v38  ;;  %v2637_v5 = vadd.f32 %v7966_v13, %v2499_v11  ;;  %v2501_v23 = vadd.f32 %v11744_v17, %v2363_v47  ;;  %v11746_v13 = vld [vmem:[#allocation7_spill] sm:$0xff]  ;;  %v6576_v11 = vld [vmem:[%s11714_s7 + $0xd8] sm:$0xff]  ;;  %v6575_v47 = vld [vmem:[%s11714_s7 + $0xd0] sm:$0xff] }
 0x26e   : > { %v2500_v14 = vadd.f32 %v11746_v13, %v2362_v56  ;;  %v2900_v32 = vpop.f32.mrf.mxu0  ;;  %v6568_v56 = vld [vmem:[%s11714_s7 + $0x98] sm:$0xff]  ;;  %v3255_v17 = vld [vmem:[%s11714_s7 + $0x28] sm:$0xff] }
 0x26f   : > { %v2498_v40 = vadd.f32 %v2475_v10, %v2360_v34  ;;  %v2776_v16 = vadd.f32 %v8010_v62, %v2637_v5  ;;  %v2639_v4 = vadd.f32 %v11745_v18, %v2501_v23  ;;  %v6571_v5 = vld [vmem:[%s11714_s7 + $0xb0] sm:$0xff]  ;;  %v6566_v23 = vld [vmem:[%s11714_s7 + $0x88] sm:$0xff]  ;;  %v9784_v13 = vld [vmem:[%s11714_s7 + $0x1f8] sm:$0xff] }
 0x270   : > { %v11747_v15 = vld [vmem:[#allocation9_spill] sm:$0xff]  ;;  %v2638_v39 = vadd.f32 %v11748_v36, %v2500_v14  ;;  %v3251_v18 = vld [vmem:[%s11714_s7 + $0x8] sm:$0xff]  ;;  %v6556_v14 = vld [vmem:[%s11713_s6] ss:$0 sm:$0xff] }
 0x271   : > { %v2636_v48 = vadd.f32 %v11743_v9, %v2498_v40  ;;  %v2914_v21 = vadd.f32 %v8054_v26, %v2776_v16  ;;  %v2778_v29 = vadd.f32 %v8013_v24, %v2639_v4  ;;  %v11749_v26 = vld [vmem:[#allocation5_spill] sm:$0xff]  ;;  %v6578_v24 = vld [vmem:[%s11714_s7 + $0xe8] sm:$0xff]  ;;  %v3250_v4 = vld [vmem:[%s11714_s7] sm:$0xff] }
 0x272   : > { %v2777_v60 = vadd.f32 %v2762_v28, %v2638_v39  ;;  %v6577_v28 = vld [vmem:[%s11714_s7 + $0xe0] sm:$0xff]  ;;  %v6574_v40 = vld [vmem:[%s11714_s7 + $0xc8] sm:$0xff]  ;;  %v3256_v9 = vld [vmem:[%s11714_s7 + $0x30] sm:$0xff] }
 0x273   : > { %v2775_v31 = vadd.f32 %v11747_v15, %v2636_v48  ;;  %v2916_v25 = vadd.f32 %v8057_v43, %v2778_v29  ;;  %v6567_v48 = vld [vmem:[%s11714_s7 + $0x90] sm:$0xff]  ;;  %v3266_v16 = vld [vmem:[#allocation2 + $0x1] sm:$0xff] }
 0x274   : > { %v2915_v57 = vadd.f32 %v2900_v32, %v2777_v60  ;;  %v8557_v15 = vld [vmem:[#allocation2 + $0x21] sm:$0xff]  ;;  %v8558_v39 = vld [vmem:[#allocation2 + $0x11] sm:$0xff] }
 0x275   : > { %v2913_v1 = vadd.f32 %v2890_v53, %v2775_v31  ;;  %v8559_v29 = vld [vmem:[#allocation2 + $0x41] sm:$0xff]  ;;  %v6595_v32 = vld [vmem:[%s11714_s7 + $0x170] sm:$0xff] }
 0x276   : > { %v8560_v60 = vld [vmem:[#allocation2 + $0x31] sm:$0xff] }
 0x280   : > { %v8092_v58 = vpop.f32.mrf.mxu1 }
 0x281   : > { %v3048_v49 = vadd.f32 %v8092_v58, %v2910_v30 }
 0x282   : > { %v3008_v45 = vpop.f32.mrf.mxu1 }
 0x283   : > { %v3047_v63 = vadd.f32 %v3008_v45, %v2909_v2  ;;  %v3063_v59 = vadd.f32 %v9681_v52, %v3048_v49  ;;  %v6572_v45 = vld [vmem:[%s11714_s7 + $0xb8] sm:$0xff] }
 0x284   : > { %v8095_v7 = vpop.f32.mrf.mxu1 }
 0x285   : > { %v3062_v3 = vadd.f32 %v9681_v52, %v3047_v63  ;;  %v3050_v10 = vadd.f32 %v8095_v7, %v2912_v6  ;;  %v3071_v51 = vmax.f32 %v3063_v59, 0.0  ;;  %v6570_v6 = vld [vmem:[%s11714_s7 + $0xa8] sm:$0xff]  ;;  %v3257_v63 = vld [vmem:[%s11714_s7 + $0x38] sm:$0xff]  ;;  %v3254_v59 = vld [vmem:[%s11714_s7 + $0x20] sm:$0xff] }
 0x286   : > { %v3018_v55 = vpop.f32.mrf.mxu1  ;;  %8182 = vmatprep.subr.mxu1 %v3257_v63  ;;  %v6565_v7 = vld [vmem:[%s11714_s7 + $0x80] sm:$0xff] }
 0x287   : > { %v3070_v22 = vmax.f32 %v3062_v3, 0.0  ;;  %v3049_v35 = vadd.f32 %v3018_v55, %v2911_v12  ;;  %v3065_v0 = vadd.f32 %v9681_v52, %v3050_v10  ;;  %8183 = vmatpush3.msra.mxu1 %v3257_v63  ;;  %v3253_v12 = vld [vmem:[%s11714_s7 + $0x18] sm:$0xff]  ;;  %v3252_v10 = vld [vmem:[%s11714_s7 + $0x10] sm:$0xff] }
 0x288   : > { %v8098_v62 = vpop.f32.mrf.mxu1  ;;  %8184 = vmatprep.subr.mxu1 %v3256_v9  ;;  %v6596_v3 = vld [vmem:[%s11714_s7 + $0x178] sm:$0xff] }
 0x289   : > { %v3064_v20 = vadd.f32 %v9681_v52, %v3049_v35  ;;  %v3052_v27 = vadd.f32 %v8098_v62, %v2914_v21  ;;  %8110 = vmatprep.mubr.msk.f32.mxu0 %vm486_vm0, %v3070_v22  ;;  %v3073_v61 = vmax.f32 %v3065_v0, 0.0  ;;  %8185 = vmatpush3.msra.mxu1 %v3256_v9 }
 0x28a   : > { %v3028_v42 = vpop.f32.mrf.mxu1  ;;  %8111 = vmatmul.mubr.msk.f32.vlgmr.msra.gmra.mxu0 %vm486_vm0, %v3071_v51  ;;  %8186 = vmatprep.subr.mxu1 %v3255_v17 }
 0x28b   : > { %v3072_v38 = vmax.f32 %v3064_v20, 0.0  ;;  %v3051_v44 = vadd.f32 %v3028_v42, %v2913_v1  ;;  %8123 = vmatpush3.msra.mxu0 %v11749_v26  ;;  %v3067_v8 = vadd.f32 %v9681_v52, %v3052_v27  ;;  %8187 = vmatpush3.msra.mxu1 %v3255_v17  ;;  %v6594_v26 = vld [vmem:[%s11714_s7 + $0x168] sm:$0xff]  ;;  %v6608_v17 = vld [vmem:[%s11714_s7 + $0x1d8] sm:$0xff] }
 0x28c   : > { %v8101_v30 = vpop.f32.mrf.mxu1  ;;  %8124 = vmatprep.subr.mxu0 %v6579_v19  ;;  %8188 = vmatprep.subr.mxu1 %v3254_v59 }
 0x28d   : > { %v3066_v46 = vadd.f32 %v9681_v52, %v3051_v44  ;;  %v3054_v34 = vadd.f32 %v8101_v30, %v2916_v25  ;;  %8113 = vmatprep.mubr.msk.f32.mxu0 %vm486_vm0, %v3072_v38  ;;  %8125 = vmatpush3.msra.mxu0 %v6579_v19  ;;  %v3075_v2 = vmax.f32 %v3067_v8, 0.0 }
 0x28e   : > { %v3038_v41 = vpop.f32.mrf.mxu1  ;;  %8114 = vmatmul.mubr.msk.f32.gmra.mxu0 %vm486_vm0, %v3073_v61  ;;  %8126 = vmatprep.subr.mxu0 %v6578_v24  ;;  %v8561_v61 = vld [vmem:[#allocation2 + $0x61] sm:$0xff] }
 0x28f   : > { %v3074_v37 = vmax.f32 %v3066_v46, 0.0  ;;  %v3053_v58 = vadd.f32 %v3038_v41, %v2915_v57  ;;  %8127 = vmatpush3.msra.mxu0 %v6578_v24  ;;  %v3069_v54 = vadd.f32 %v9681_v52, %v3054_v34  ;;  %8189 = vmatpush3.msra.mxu1 %v3254_v59  ;;  %v6593_v46 = vld [vmem:[%s11714_s7 + $0x160] sm:$0xff]  ;;  %v6607_v59 = vld [vmem:[%s11714_s7 + $0x1d0] sm:$0xff] }
 0x290   : > { %8128 = vmatprep.subr.mxu0 %v6577_v28  ;;  %8190 = vmatprep.subr.mxu1 %v3253_v12 }
 0x291   : > { %v3068_v49 = vadd.f32 %v9681_v52, %v3053_v58  ;;  %8116 = vmatprep.mubr.msk.f32.mxu0 %vm486_vm0, %v3074_v37  ;;  %8129 = vmatpush3.msra.mxu0 %v6577_v28  ;;  %v3077_v53 = vmax.f32 %v3069_v54, 0.0  ;;  %v6573_v52 = vld [vmem:[%s11714_s7 + $0xc0] sm:$0xff]  ;;  %v8562_v28 = vld [vmem:[#allocation2 + $0x51] sm:$0xff] }
 0x292   : > { %8117 = vmatmul.mubr.msk.f32.gmra.mxu0 %vm486_vm0, %v3075_v2  ;;  %8130 = vmatprep.subr.mxu0 %v6576_v11  ;;  %v8563_v54 = vld [vmem:[#allocation2 + $0x81] sm:$0xff] }
 0x293   : > { %v3076_v50 = vmax.f32 %v3068_v49, 0.0  ;;  %8131 = vmatpush3.msra.mxu0 %v6576_v11  ;;  %8191 = vmatpush3.msra.mxu1 %v3253_v12  ;;  %v6592_v11 = vld [vmem:[%s11714_s7 + $0x158] sm:$0xff]  ;;  %v6590_v12 = vld [vmem:[%s11714_s7 + $0x148] sm:$0xff] }
 0x294   : > { %8132 = vmatprep.subr.mxu0 %v6575_v47  ;;  %8192 = vmatprep.subr.mxu1 %v3252_v10 }
 0x295   : > { %8119 = vmatprep.mubr.msk.f32.mxu0 %vm486_vm0, %v3076_v50  ;;  %8133 = vmatpush3.msra.mxu0 %v6575_v47 }
 0x296   : > { %8120 = vmatmul.mubr.msk.f32.gmra.mxu0 %vm486_vm0, %v3077_v53  ;;  %8134 = vmatprep.subr.mxu0 %v6574_v40 }
 0x297   : > { %8135 = vmatpush3.msra.mxu0 %v6574_v40  ;;  %8154 = vmatprep.mubr.f32.mxu0 %v3266_v16  ;;  %v6611_v40 = vld [vmem:[%s11714_s7 + $0x1f0] sm:$0xff]  ;;  %v6606_v16 = vld [vmem:[%s11714_s7 + $0x1c8] sm:$0xff] }
 0x298   : > { %8136 = vmatprep.subr.mxu0 %v6573_v52  ;;  %8193 = vmatpush3.msra.mxu1 %v3252_v10  ;;  %v6589_v10 = vld [vmem:[%s11714_s7 + $0x140] sm:$0xff] }
 0x299   : > { %8137 = vmatpush3.msra.mxu0 %v6573_v52  ;;  %8194 = vmatprep.subr.mxu1 %v3251_v18  ;;  %v8564_v52 = vld [vmem:[#allocation2 + $0x71] sm:$0xff] }
 0x29a   : > { %8138 = vmatprep.subr.mxu0 %v6572_v45  ;;  %8195 = vmatpush3.msra.mxu1 %v3251_v18  ;;  %v6605_v18 = vld [vmem:[%s11714_s7 + $0x1c0] sm:$0xff] }
 0x29b   : > { %8139 = vmatpush3.msra.mxu0 %v6572_v45  ;;  %8196 = vmatprep.subr.mxu1 %v3250_v4 }
 0x29c   : > { %8140 = vmatprep.subr.mxu0 %v6571_v5  ;;  %8197 = vmatpush3.msra.mxu1 %v3250_v4  ;;  %v6588_v4 = vld [vmem:[%s11714_s7 + $0x138] sm:$0xff] }
 0x29d   : > { %8141 = vmatpush3.msra.mxu0 %v6571_v5  ;;  %8254 = vmatprep.subr.mxu1 %v9784_v13 }
 0x29e   : > { %8142 = vmatprep.subr.mxu0 %v6570_v6 }
 0x29f   : > { %8143 = vmatpush3.msra.mxu0 %v6570_v6  ;;  %v6610_v6 = vld [vmem:[%s11714_s7 + $0x1e8] sm:$0xff] }
 0x2a0   : > { %8144 = vmatprep.subr.mxu0 %v6569_v33 }
 0x2a1   : > { %8145 = vmatpush3.msra.mxu0 %v6569_v33 }
 0x2a2   : > { %8146 = vmatprep.subr.mxu0 %v6568_v56 }
 0x2a3   : > { %8147 = vmatpush3.msra.mxu0 %v6568_v56  ;;  %v6609_v56 = vld [vmem:[%s11714_s7 + $0x1e0] sm:$0xff] }
 0x2a4   : > { %8148 = vmatprep.subr.mxu0 %v6567_v48 }
 0x2a5   : > { %8149 = vmatpush3.msra.mxu0 %v6567_v48  ;;  %v6591_v48 = vld [vmem:[%s11714_s7 + $0x150] sm:$0xff] }
 0x2a6   : > { %8150 = vmatprep.subr.mxu0 %v6566_v23 }
 0x2a7   : > { %8151 = vmatpush3.msra.mxu0 %v6566_v23 }
 0x2a8   : > { %8152 = vmatprep.subr.mxu0 %v6565_v7 }
 0x2a9   : > { %8153 = vmatpush3.msra.mxu0 %v6565_v7 }
 0x2aa   : > { %8210 = vmatprep.subr.mxu0 %v6596_v3 }
 0x34a   : > { %v8112_v43 = vpop.f32.mrf.mxu0 }
 0x34b   : > { %v3185_v55 = vadd.f32 %v8112_v43, %v6556_v14  ;;  %v6603_v43 = vld [vmem:[%s11714_s7 + $0x1b0] sm:$0xff] }
 0x34c   : > { %v3179_v21 = vpop.f32.mrf.mxu0 }
 0x34d   : > { %v3219_v31 = vadd.f32 %v8557_v15, %v3185_v55  ;;  %v3180_v22 = vadd.f32 %v6556_v14, %v3179_v21  ;;  %v6586_v55 = vld [vmem:[%s11714_s7 + $0x128] sm:$0xff]  ;;  %v6585_v15 = vld [vmem:[%s11714_s7 + $0x120] sm:$0xff] }
 0x34e   : > { %v8115_v35 = vpop.f32.mrf.mxu0  ;;  %v6602_v21 = vld [vmem:[%s11714_s7 + $0x1a8] sm:$0xff] }
 0x34f   : > { %v9790_v36 = vmax.f32 %v3219_v31, 0.0  ;;  %v3218_v51 = vadd.f32 %v8558_v39, %v3180_v22  ;;  %v3195_v0 = vadd.f32 %v8115_v35, %v6556_v14  ;;  %v6601_v31 = vld [vmem:[%s11714_s7 + $0x1a0] sm:$0xff]  ;;  %v6584_v22 = vld [vmem:[%s11714_s7 + $0x118] sm:$0xff]  ;;  %v6583_v39 = vld [vmem:[%s11714_s7 + $0x110] sm:$0xff] }
 0x350   : > { %v3189_v62 = vpop.f32.mrf.mxu0  ;;  %v6600_v35 = vld [vmem:[%s11714_s7 + $0x198] sm:$0xff] }
 0x351   : > { %3235 = vst [vmem:[#allocation2 + $0x21] sm:$0xff] %v9790_v36  ;;  %v9793_v1 = vmax.f32 %v3218_v51, 0.0  ;;  %v3221_v20 = vadd.f32 %v8559_v29, %v3195_v0  ;;  %v3190_v27 = vadd.f32 %v6556_v14, %v3189_v62  ;;  %v6599_v51 = vld [vmem:[%s11714_s7 + $0x190] sm:$0xff]  ;;  %v6582_v0 = vld [vmem:[%s11714_s7 + $0x108] sm:$0xff]  ;;  %v6581_v29 = vld [vmem:[%s11714_s7 + $0x100] sm:$0xff] }
 0x352   : > { %v8118_v19 = vpop.f32.mrf.mxu0  ;;  %v6598_v62 = vld [vmem:[%s11714_s7 + $0x188] sm:$0xff] }
 0x353   : > { %3234 = vst [vmem:[#allocation2 + $0x11] sm:$0xff] %v9793_v1  ;;  %v9799_v42 = vmax.f32 %v3221_v20, 0.0  ;;  %v3220_v25 = vadd.f32 %v8560_v60, %v3190_v27  ;;  %v3205_v38 = vadd.f32 %v8118_v19, %v6556_v14  ;;  %8155 = vmatmul.mubr.f32.vlgmr.msra.gmra.mxu0 %v9793_v1  ;;  %v6597_v20 = vld [vmem:[%s11714_s7 + $0x180] sm:$0xff]  ;;  %v6628_v19 = vld [vmem:[%s11714_s7 + $0x278] sm:$0xff] }
 0x354   : > { %v3199_v44 = vpop.f32.mrf.mxu0  ;;  %8211 = vmatpush3.msra.mxu0 %v6596_v3  ;;  %8157 = vmatprep.mubr.f32.mxu0 %v9790_v36  ;;  %v3501_v27 = vld [vmem:[#allocation2 + $0x2] sm:$0xff]  ;;  %v6644_v60 = vld [vmem:[%s11714_s7 + $0x2f8] sm:$0xff] }
 0x355   : > { %3237 = vst [vmem:[#allocation2 + $0x41] sm:$0xff] %v9799_v42  ;;  %v9807_v24 = vmax.f32 %v3220_v25, 0.0  ;;  %v3223_v8 = vadd.f32 %v8561_v61, %v3205_v38  ;;  %v3200_v30 = vadd.f32 %v6556_v14, %v3199_v44  ;;  %8212 = vmatprep.subr.mxu0 %v6595_v32  ;;  %v6627_v38 = vld [vmem:[%s11714_s7 + $0x270] sm:$0xff] }
 0x356   : > { %v8121_v57 = vpop.f32.mrf.mxu0  ;;  %8213 = vmatpush3.msra.mxu0 %v6595_v32  ;;  %v6643_v44 = vld [vmem:[%s11714_s7 + $0x2f0] sm:$0xff] }
 0x357   : > { %3236 = vst [vmem:[#allocation2 + $0x31] sm:$0xff] %v9807_v24  ;;  %v9813_v34 = vmax.f32 %v3223_v8, 0.0  ;;  %v3222_v41 = vadd.f32 %v8562_v28, %v3200_v30  ;;  %v3215_v37 = vadd.f32 %v8121_v57, %v6556_v14  ;;  %8214 = vmatprep.subr.mxu0 %v6594_v26  ;;  %8158 = vmatmul.mubr.f32.gmra.mxu0 %v9807_v24  ;;  %v6642_v8 = vld [vmem:[%s11714_s7 + $0x2e8] sm:$0xff]  ;;  %v6625_v57 = vld [vmem:[%s11714_s7 + $0x260] sm:$0xff]  ;;  %v6624_v28 = vld [vmem:[%s11714_s7 + $0x258] sm:$0xff] }
 0x358   : > { %v3209_v58 = vpop.f32.mrf.mxu0  ;;  %8215 = vmatpush3.msra.mxu0 %v6594_v26  ;;  %8160 = vmatprep.mubr.f32.mxu0 %v9799_v42  ;;  %v9829_v5 = vld [vmem:[#allocation2 + $0x20] sm:$0xff]  ;;  %v6626_v26 = vld [vmem:[%s11714_s7 + $0x268] sm:$0xff] }
 0x359   : > { %3239 = vst [vmem:[#allocation2 + $0x61] sm:$0xff] %v9813_v34  ;;  %v9821_v2 = vmax.f32 %v3222_v41, 0.0  ;;  %v3225_v49 = vadd.f32 %v8563_v54, %v3215_v37  ;;  %v3210_v47 = vadd.f32 %v6556_v14, %v3209_v58  ;;  %8216 = vmatprep.subr.mxu0 %v6593_v46  ;;  %v6587_v14 = vld [vmem:[%s11714_s7 + $0x130] sm:$0xff]  ;;  %v9940_v25 = vld [vmem:[#allocation2 + $0x22] sm:$0xff]  ;;  %v6640_v37 = vld [vmem:[%s11714_s7 + $0x2d8] sm:$0xff] }
 0x35a   : > { %v3243_v50 = vld [vmem:[#allocation2 + $0x10] sm:$0xff]  ;;  %8217 = vmatpush3.msra.mxu0 %v6593_v46  ;;  %v6641_v46 = vld [vmem:[%s11714_s7 + $0x2e0] sm:$0xff] }
 0x35b   : > { %3238 = vst [vmem:[#allocation2 + $0x51] sm:$0xff] %v9821_v2  ;;  %v9827_v53 = vmax.f32 %v3225_v49, 0.0  ;;  %v3224_v45 = vadd.f32 %v8564_v52, %v3210_v47  ;;  %8199 = vmatmul.mubr.f32.vlgmr.msra.gmra.mxu1 %v3243_v50  ;;  %8218 = vmatprep.subr.mxu0 %v6592_v11  ;;  %v9933_v32 = vld [vmem:[#allocation2 + $0x12] sm:$0xff]  ;;  %v6622_v49 = vld [vmem:[%s11714_s7 + $0x248] sm:$0xff]  ;;  %v6621_v52 = vld [vmem:[%s11714_s7 + $0x240] sm:$0xff] }
 0x35c   : > { %8255 = vmatpush3.msra.mxu1 %v9784_v13  ;;  %8201 = vmatprep.mubr.f32.mxu1 %v9829_v5  ;;  %v9847_v9 = vld [vmem:[#allocation2 + $0x40] sm:$0xff]  ;;  %v6604_v13 = vld [vmem:[%s11714_s7 + $0x1b8] sm:$0xff]  ;;  %v6639_v54 = vld [vmem:[%s11714_s7 + $0x2d0] sm:$0xff] }
 0x35d   : > { %3241 = vst [vmem:[#allocation2 + $0x81] sm:$0xff] %v9827_v53  ;;  %v9837_v33 = vmax.f32 %v3224_v45, 0.0  ;;  %8256 = vmatprep.subr.mxu1 %v6611_v40  ;;  %8161 = vmatmul.mubr.f32.gmra.mxu0 %v9821_v2  ;;  %v9960_v30 = vld [vmem:[#allocation2 + $0x42] sm:$0xff] }
 0x35e   : > { %8257 = vmatpush3.msra.mxu1 %v6611_v40  ;;  %v9840_v63 = vld [vmem:[#allocation2 + $0x30] sm:$0xff]  ;;  %8219 = vmatpush3.msra.mxu0 %v6592_v11  ;;  %v6637_v45 = vld [vmem:[%s11714_s7 + $0x2c0] sm:$0xff] }
 0x35f   : > { %3240 = vst [vmem:[#allocation2 + $0x71] sm:$0xff] %v9837_v33  ;;  %8258 = vmatprep.subr.mxu1 %v6610_v6  ;;  %8202 = vmatmul.mubr.f32.gmra.mxu1 %v9840_v63  ;;  %v9953_v61 = vld [vmem:[#allocation2 + $0x32] sm:$0xff] }
 0x360   : > { %8259 = vmatpush3.msra.mxu1 %v6610_v6  ;;  %8204 = vmatprep.mubr.f32.mxu1 %v9847_v9  ;;  %v9863_v7 = vld [vmem:[#allocation2 + $0x60] sm:$0xff]  ;;  %v6623_v11 = vld [vmem:[%s11714_s7 + $0x250] sm:$0xff]  ;;  %v6620_v6 = vld [vmem:[%s11714_s7 + $0x238] sm:$0xff] }
 0x361   : > { %8260 = vmatprep.subr.mxu1 %v6609_v56  ;;  %8163 = vmatprep.mubr.f32.mxu0 %v9813_v34  ;;  %v9980_v58 = vld [vmem:[#allocation2 + $0x62] sm:$0xff] }
 0x362   : > { %8261 = vmatpush3.msra.mxu1 %v6609_v56  ;;  %v9857_v23 = vld [vmem:[#allocation2 + $0x50] sm:$0xff]  ;;  %8220 = vmatprep.subr.mxu0 %v6591_v48  ;;  %v6636_v56 = vld [vmem:[%s11714_s7 + $0x2b8] sm:$0xff] }
 0x363   : > { %8262 = vmatprep.subr.mxu1 %v6608_v17  ;;  %8205 = vmatmul.mubr.f32.gmra.mxu1 %v9857_v23  ;;  %v9973_v41 = vld [vmem:[#allocation2 + $0x52] sm:$0xff] }
 0x364   : > { %8263 = vmatpush3.msra.mxu1 %v6608_v17  ;;  %8207 = vmatprep.mubr.f32.mxu1 %v9863_v7  ;;  %v9999_v40 = vld [vmem:[#allocation2 + $0x80] sm:$0xff]  ;;  %v6618_v17 = vld [vmem:[%s11714_s7 + $0x228] sm:$0xff] }
 0x365   : > { %8264 = vmatprep.subr.mxu1 %v6607_v59  ;;  %8221 = vmatpush3.msra.mxu0 %v6591_v48  ;;  %v6619_v48 = vld [vmem:[%s11714_s7 + $0x230] sm:$0xff] }
 0x366   : > { %8265 = vmatpush3.msra.mxu1 %v6607_v59  ;;  %8222 = vmatprep.subr.mxu0 %v6590_v12  ;;  %v9872_v3 = vld [vmem:[#allocation2 + $0x70] sm:$0xff]  ;;  %v6634_v59 = vld [vmem:[%s11714_s7 + $0x2a8] sm:$0xff] }
 0x367   : > { %8266 = vmatprep.subr.mxu1 %v6606_v16  ;;  %8164 = vmatmul.mubr.f32.gmra.mxu0 %v9837_v33  ;;  %v9993_v47 = vld [vmem:[#allocation2 + $0x72] sm:$0xff] }
 0x368   : > { %8208 = vmatmul.mubr.f32.gmra.mxu1 %v9872_v3  ;;  %8223 = vmatpush3.msra.mxu0 %v6590_v12  ;;  %v6617_v12 = vld [vmem:[%s11714_s7 + $0x220] sm:$0xff] }
 0x369   : > { %8267 = vmatpush3.msra.mxu1 %v6606_v16  ;;  %8224 = vmatprep.subr.mxu0 %v6589_v10  ;;  %v6633_v16 = vld [vmem:[%s11714_s7 + $0x2a0] sm:$0xff] }
 0x36a   : > { %8268 = vmatprep.subr.mxu1 %v6605_v18  ;;  %8286 = vmatprep.mubr.f32.mxu1 %v3243_v50  ;;  %v6638_v50 = vld [vmem:[%s11714_s7 + $0x2c8] sm:$0xff] }
 0x36b   : > { %8225 = vmatpush3.msra.mxu0 %v6589_v10  ;;  %8269 = vmatpush3.msra.mxu1 %v6605_v18  ;;  %v6616_v10 = vld [vmem:[%s11714_s7 + $0x218] sm:$0xff] }
 0x36c   : > { %8226 = vmatprep.subr.mxu0 %v6588_v4  ;;  %8270 = vmatprep.subr.mxu1 %v6604_v13  ;;  %v6632_v18 = vld [vmem:[%s11714_s7 + $0x298] sm:$0xff] }
 0x36d   : > { %8227 = vmatpush3.msra.mxu0 %v6588_v4  ;;  %8271 = vmatpush3.msra.mxu1 %v6604_v13  ;;  %v6615_v4 = vld [vmem:[%s11714_s7 + $0x210] sm:$0xff] }
 0x36e   : > { %8228 = vmatprep.subr.mxu0 %v6587_v14  ;;  %8272 = vmatprep.subr.mxu1 %v6603_v43  ;;  %v6631_v13 = vld [vmem:[%s11714_s7 + $0x290] sm:$0xff] }
 0x36f   : > { %8229 = vmatpush3.msra.mxu0 %v6587_v14  ;;  %8273 = vmatpush3.msra.mxu1 %v6603_v43  ;;  %v6614_v14 = vld [vmem:[%s11714_s7 + $0x208] sm:$0xff] }
 0x370   : > { %8230 = vmatprep.subr.mxu0 %v6586_v55  ;;  %8274 = vmatprep.subr.mxu1 %v6602_v21  ;;  %v6630_v43 = vld [vmem:[%s11714_s7 + $0x288] sm:$0xff] }
 0x371   : > { %8231 = vmatpush3.msra.mxu0 %v6586_v55  ;;  %8275 = vmatpush3.msra.mxu1 %v6602_v21  ;;  %v6613_v55 = vld [vmem:[%s11714_s7 + $0x200] sm:$0xff] }
 0x372   : > { %8232 = vmatprep.subr.mxu0 %v6585_v15  ;;  %8276 = vmatprep.subr.mxu1 %v6601_v31  ;;  %v6629_v21 = vld [vmem:[%s11714_s7 + $0x280] sm:$0xff] }
 0x373   : > { %8233 = vmatpush3.msra.mxu0 %v6585_v15  ;;  %8277 = vmatpush3.msra.mxu1 %v6601_v31  ;;  %v6660_v15 = vld [vmem:[%s11714_s7 + $0x378] sm:$0xff] }
 0x374   : > { %8234 = vmatprep.subr.mxu0 %v6584_v22  ;;  %8278 = vmatprep.subr.mxu1 %v6600_v35  ;;  %v6676_v31 = vld [vmem:[%s11714_s7 + $0x3f8] sm:$0xff] }
 0x375   : > { %8235 = vmatpush3.msra.mxu0 %v6584_v22  ;;  %8279 = vmatpush3.msra.mxu1 %v6600_v35  ;;  %v6659_v22 = vld [vmem:[%s11714_s7 + $0x370] sm:$0xff] }
 0x376   : > { %8236 = vmatprep.subr.mxu0 %v6583_v39  ;;  %8280 = vmatprep.subr.mxu1 %v6599_v51  ;;  %v6675_v35 = vld [vmem:[%s11714_s7 + $0x3f0] sm:$0xff] }
 0x377   : > { %8237 = vmatpush3.msra.mxu0 %v6583_v39  ;;  %8281 = vmatpush3.msra.mxu1 %v6599_v51  ;;  %v6658_v39 = vld [vmem:[%s11714_s7 + $0x368] sm:$0xff] }
 0x378   : > { %8238 = vmatprep.subr.mxu0 %v6582_v0  ;;  %8282 = vmatprep.subr.mxu1 %v6598_v62  ;;  %v6674_v51 = vld [vmem:[%s11714_s7 + $0x3e8] sm:$0xff] }
 0x379   : > { %8239 = vmatpush3.msra.mxu0 %v6582_v0  ;;  %8283 = vmatpush3.msra.mxu1 %v6598_v62  ;;  %v6657_v0 = vld [vmem:[%s11714_s7 + $0x360] sm:$0xff] }
 0x37a   : > { %8240 = vmatprep.subr.mxu0 %v6581_v29  ;;  %8284 = vmatprep.subr.mxu1 %v6597_v20  ;;  %v6673_v62 = vld [vmem:[%s11714_s7 + $0x3e0] sm:$0xff] }
 0x37b   : > { %8241 = vmatpush3.msra.mxu0 %v6581_v29  ;;  %8242 = vmatprep.mubr.f32.mxu0 %v3501_v27  ;;  %v6656_v29 = vld [vmem:[%s11714_s7 + $0x358] sm:$0xff]  ;;  %v6655_v27 = vld [vmem:[%s11714_s7 + $0x350] sm:$0xff] }
 0x37c   : > { %8285 = vmatpush3.msra.mxu1 %v6597_v20  ;;  %8243 = vmatmul.mubr.f32.vlgmr.msra.gmra.mxu0 %v9933_v32  ;;  %v6672_v20 = vld [vmem:[%s11714_s7 + $0x3d8] sm:$0xff] }
 0x37d   : > { %8287 = vmatmul.mubr.f32.vlgmr.msra.gmra.mxu1 %v9829_v5  ;;  %8298 = vmatprep.subr.mxu0 %v6628_v19 }
 0x37e   : > { %8342 = vmatprep.subr.mxu1 %v6644_v60  ;;  %8245 = vmatprep.mubr.f32.mxu0 %v9940_v25 }
 0x37f   : > { %8289 = vmatprep.mubr.f32.mxu1 %v9840_v63  ;;  %8299 = vmatpush3.msra.mxu0 %v6628_v19  ;;  %v6671_v19 = vld [vmem:[%s11714_s7 + $0x3d0] sm:$0xff] }
 0x380   : > { %8343 = vmatpush3.msra.mxu1 %v6644_v60  ;;  %8300 = vmatprep.subr.mxu0 %v6627_v38  ;;  %v6670_v60 = vld [vmem:[%s11714_s7 + $0x3c8] sm:$0xff] }
 0x381   : > { %8344 = vmatprep.subr.mxu1 %v6643_v44  ;;  %8301 = vmatpush3.msra.mxu0 %v6627_v38  ;;  %v10113_v38 = vld [vmem:[#allocation2 + $0x82] sm:$0xff] }
 0x382   : > { %8345 = vmatpush3.msra.mxu1 %v6643_v44  ;;  %8246 = vmatmul.mubr.f32.gmra.mxu0 %v9953_v61  ;;  %v6653_v44 = vld [vmem:[%s11714_s7 + $0x340] sm:$0xff] }
 0x383   : > { %8290 = vmatmul.mubr.f32.gmra.mxu1 %v9847_v9  ;;  %8302 = vmatprep.subr.mxu0 %v6626_v26 }
 0x384   : > { %8346 = vmatprep.subr.mxu1 %v6642_v8  ;;  %8248 = vmatprep.mubr.f32.mxu0 %v9960_v30 }
 0x385   : > { %8292 = vmatprep.mubr.f32.mxu1 %v9857_v23  ;;  %8303 = vmatpush3.msra.mxu0 %v6626_v26  ;;  %v6669_v26 = vld [vmem:[%s11714_s7 + $0x3c0] sm:$0xff] }
 0x386   : > { %8347 = vmatpush3.msra.mxu1 %v6642_v8  ;;  %8304 = vmatprep.subr.mxu0 %v6625_v57  ;;  %v6652_v8 = vld [vmem:[%s11714_s7 + $0x338] sm:$0xff] }
 0x387   : > { %8348 = vmatprep.subr.mxu1 %v6641_v46  ;;  %8305 = vmatpush3.msra.mxu0 %v6625_v57  ;;  %v6668_v57 = vld [vmem:[%s11714_s7 + $0x3b8] sm:$0xff] }
 0x388   : > { %8349 = vmatpush3.msra.mxu1 %v6641_v46  ;;  %8249 = vmatmul.mubr.f32.gmra.mxu0 %v9973_v41  ;;  %v6651_v46 = vld [vmem:[%s11714_s7 + $0x330] sm:$0xff] }
 0x389   : > { %8293 = vmatmul.mubr.f32.gmra.mxu1 %v9863_v7  ;;  %8306 = vmatprep.subr.mxu0 %v6624_v28 }
 0x38a   : > { %8350 = vmatprep.subr.mxu1 %v6640_v37  ;;  %8251 = vmatprep.mubr.f32.mxu0 %v9980_v58 }
 0x38b   : > { %8295 = vmatprep.mubr.f32.mxu1 %v9872_v3  ;;  %8307 = vmatpush3.msra.mxu0 %v6624_v28  ;;  %v6666_v28 = vld [vmem:[%s11714_s7 + $0x3a8] sm:$0xff] }
 0x38c   : > { %8351 = vmatpush3.msra.mxu1 %v6640_v37  ;;  %8308 = vmatprep.subr.mxu0 %v6623_v11  ;;  %v6649_v37 = vld [vmem:[%s11714_s7 + $0x320] sm:$0xff] }
 0x38d   : > { %8352 = vmatprep.subr.mxu1 %v6639_v54  ;;  %8309 = vmatpush3.msra.mxu0 %v6623_v11  ;;  %v6665_v11 = vld [vmem:[%s11714_s7 + $0x3a0] sm:$0xff] }
 0x38e   : > { %8353 = vmatpush3.msra.mxu1 %v6639_v54  ;;  %8252 = vmatmul.mubr.f32.gmra.mxu0 %v9993_v47  ;;  %v6648_v54 = vld [vmem:[%s11714_s7 + $0x318] sm:$0xff] }
 0x38f   : > { %8296 = vmatmul.mubr.f32.gmra.mxu1 %v9999_v40  ;;  %8310 = vmatprep.subr.mxu0 %v6622_v49 }
 0x390   : > { %8354 = vmatprep.subr.mxu1 %v6638_v50  ;;  %8311 = vmatpush3.msra.mxu0 %v6622_v49  ;;  %v6664_v49 = vld [vmem:[%s11714_s7 + $0x398] sm:$0xff] }
 0x391   : > { %8330 = vmatprep.mubr.f32.mxu0 %v9793_v1  ;;  %8355 = vmatpush3.msra.mxu1 %v6638_v50  ;;  %v6635_v1 = vld [vmem:[%s11714_s7 + $0x2b0] sm:$0xff] }
 0x392   : > { %8374 = vmatprep.mubr.f32.mxu1 %v9933_v32  ;;  %8312 = vmatprep.subr.mxu0 %v6621_v52  ;;  %v6654_v32 = vld [vmem:[%s11714_s7 + $0x348] sm:$0xff]  ;;  %v6647_v50 = vld [vmem:[%s11714_s7 + $0x310] sm:$0xff] }
 0x393   : > { %8356 = vmatprep.subr.mxu1 %v6637_v45  ;;  %8313 = vmatpush3.msra.mxu0 %v6621_v52  ;;  %v6663_v52 = vld [vmem:[%s11714_s7 + $0x390] sm:$0xff] }
 0x394   : > { %8357 = vmatpush3.msra.mxu1 %v6637_v45  ;;  %8314 = vmatprep.subr.mxu0 %v6620_v6  ;;  %v6646_v45 = vld [vmem:[%s11714_s7 + $0x308] sm:$0xff] }
 0x395   : > { %8358 = vmatprep.subr.mxu1 %v6636_v56  ;;  %8315 = vmatpush3.msra.mxu0 %v6620_v6  ;;  %v6662_v6 = vld [vmem:[%s11714_s7 + $0x388] sm:$0xff] }
 0x396   : > { %8359 = vmatpush3.msra.mxu1 %v6636_v56  ;;  %8316 = vmatprep.subr.mxu0 %v6619_v48  ;;  %v6645_v56 = vld [vmem:[%s11714_s7 + $0x300] sm:$0xff] }
 0x397   : > { %8360 = vmatprep.subr.mxu1 %v6635_v1  ;;  %8317 = vmatpush3.msra.mxu0 %v6619_v48  ;;  %v6661_v48 = vld [vmem:[%s11714_s7 + $0x380] sm:$0xff] }
 0x398   : > { %8361 = vmatpush3.msra.mxu1 %v6635_v1  ;;  %8318 = vmatprep.subr.mxu0 %v6618_v17  ;;  %v6692_v1 = vld [vmem:[%s11714_s7 + $0x478] sm:$0xff] }
 0x399   : > { %8362 = vmatprep.subr.mxu1 %v6634_v59  ;;  %8319 = vmatpush3.msra.mxu0 %v6618_v17  ;;  %v6691_v17 = vld [vmem:[%s11714_s7 + $0x470] sm:$0xff] }
 0x39a   : > { %8363 = vmatpush3.msra.mxu1 %v6634_v59  ;;  %8320 = vmatprep.subr.mxu0 %v6617_v12  ;;  %v6690_v59 = vld [vmem:[%s11714_s7 + $0x468] sm:$0xff] }
 0x39b   : > { %8364 = vmatprep.subr.mxu1 %v6633_v16  ;;  %8321 = vmatpush3.msra.mxu0 %v6617_v12  ;;  %v6678_v12 = vld [vmem:[%s11714_s7 + $0x408] sm:$0xff] }
 0x39c   : > { %8365 = vmatpush3.msra.mxu1 %v6633_v16  ;;  %8322 = vmatprep.subr.mxu0 %v6616_v10  ;;  %v6677_v16 = vld [vmem:[%s11714_s7 + $0x400] sm:$0xff] }
 0x39d   : > { %8366 = vmatprep.subr.mxu1 %v6632_v18  ;;  %8323 = vmatpush3.msra.mxu0 %v6616_v10  ;;  %v4336_v10 = vld [vmem:[#allocation2 + $0x92] sm:$0xff] }
 0x39e   : > { %8367 = vmatpush3.msra.mxu1 %v6632_v18  ;;  %8324 = vmatprep.subr.mxu0 %v6615_v4  ;;  %v4493_v18 = vld [vmem:[%s11716_s9 + $0x18] sm:$0xff] }
 0x39f   : > { %8368 = vmatprep.subr.mxu1 %v6631_v13  ;;  %8325 = vmatpush3.msra.mxu0 %v6615_v4 }
 0x3a0   : > { %8369 = vmatpush3.msra.mxu1 %v6631_v13  ;;  %8326 = vmatprep.subr.mxu0 %v6614_v14 }
 0x3a1   : > { %8370 = vmatprep.subr.mxu1 %v6630_v43  ;;  %8327 = vmatpush3.msra.mxu0 %v6614_v14 }
 0x3a2   : > { %8371 = vmatpush3.msra.mxu1 %v6630_v43  ;;  %8328 = vmatprep.subr.mxu0 %v6613_v55  ;;  %v6734_v43 = vld [vmem:[%s11718_s11 + $0x1f8] sm:$0xff] }
 0x3a3   : > { %8372 = vmatprep.subr.mxu1 %v6629_v21  ;;  %8329 = vmatpush3.msra.mxu0 %v6613_v55  ;;  %v4693_v55 = vld [vmem:[%s11718_s11 + $0xf8] sm:$0xff] }
 0x3a4   : > { %8373 = vmatpush3.msra.mxu1 %v6629_v21  ;;  %8331 = vmatmul.mubr.f32.vlgmr.msra.gmra.mxu0 %v9790_v36  ;;  %v4692_v21 = vld [vmem:[%s11718_s11 + $0xf0] sm:$0xff] }
 0x3a5   : > { %8375 = vmatmul.mubr.f32.vlgmr.msra.gmra.mxu1 %v9940_v25  ;;  %8386 = vmatprep.subr.mxu0 %v6660_v15 }
 0x3a6   : > { %8430 = vmatprep.subr.mxu1 %v6676_v31  ;;  %8333 = vmatprep.mubr.f32.mxu0 %v9807_v24 }
 0x3a7   : > { %8377 = vmatprep.mubr.f32.mxu1 %v9953_v61  ;;  %8387 = vmatpush3.msra.mxu0 %v6660_v15  ;;  %v4691_v15 = vld [vmem:[%s11718_s11 + $0xe8] sm:$0xff] }
 0x3a8   : > { %8431 = vmatpush3.msra.mxu1 %v6676_v31  ;;  %8388 = vmatprep.subr.mxu0 %v6659_v22 }
 0x3a9   : > { %8432 = vmatprep.subr.mxu1 %v6675_v35  ;;  %8389 = vmatpush3.msra.mxu0 %v6659_v22 }
 0x3aa   : > { %8433 = vmatpush3.msra.mxu1 %v6675_v35  ;;  %8334 = vmatmul.mubr.f32.gmra.mxu0 %v9799_v42  ;;  %v4690_v35 = vld [vmem:[%s11718_s11 + $0xe0] sm:$0xff] }
 0x3ab   : > { %8378 = vmatmul.mubr.f32.gmra.mxu1 %v9960_v30  ;;  %8390 = vmatprep.subr.mxu0 %v6658_v39 }
 0x3ac   : > { %8434 = vmatprep.subr.mxu1 %v6674_v51  ;;  %8336 = vmatprep.mubr.f32.mxu0 %v9821_v2 }
 0x3ad   : > { %8380 = vmatprep.mubr.f32.mxu1 %v9973_v41  ;;  %8391 = vmatpush3.msra.mxu0 %v6658_v39  ;;  %v4689_v39 = vld [vmem:[%s11718_s11 + $0xd8] sm:$0xff] }
 0x3ae   : > { %8435 = vmatpush3.msra.mxu1 %v6674_v51  ;;  %8392 = vmatprep.subr.mxu0 %v6657_v0  ;;  %v4688_v51 = vld [vmem:[%s11718_s11 + $0xd0] sm:$0xff] }
 0x3af   : > { %8436 = vmatprep.subr.mxu1 %v6673_v62  ;;  %8393 = vmatpush3.msra.mxu0 %v6657_v0  ;;  %v4687_v0 = vld [vmem:[%s11718_s11 + $0xc8] sm:$0xff] }
 0x3b0   : > { %8437 = vmatpush3.msra.mxu1 %v6673_v62  ;;  %8337 = vmatmul.mubr.f32.gmra.mxu0 %v9813_v34  ;;  %v4686_v62 = vld [vmem:[%s11718_s11 + $0xc0] sm:$0xff] }
 0x3b1   : > { %8381 = vmatmul.mubr.f32.gmra.mxu1 %v9980_v58  ;;  %8394 = vmatprep.subr.mxu0 %v6656_v29 }
 0x3b2   : > { %8438 = vmatprep.subr.mxu1 %v6672_v20  ;;  %8339 = vmatprep.mubr.f32.mxu0 %v9837_v33 }
 0x3b3   : > { %8383 = vmatprep.mubr.f32.mxu1 %v9993_v47  ;;  %8395 = vmatpush3.msra.mxu0 %v6656_v29 }
 0x3b4   : > { %8439 = vmatpush3.msra.mxu1 %v6672_v20  ;;  %8396 = vmatprep.subr.mxu0 %v6655_v27 }
 0x3b5   : > { %8440 = vmatprep.subr.mxu1 %v6671_v19  ;;  %8397 = vmatpush3.msra.mxu0 %v6655_v27  ;;  %v4685_v27 = vld [vmem:[%s11718_s11 + $0xb8] sm:$0xff] }
 0x3b6   : > { %8441 = vmatpush3.msra.mxu1 %v6671_v19  ;;  %8340 = vmatmul.mubr.f32.gmra.mxu0 %v9827_v53  ;;  %v4684_v19 = vld [vmem:[%s11718_s11 + $0xb0] sm:$0xff] }
 0x3b7   : > { %8384 = vmatmul.mubr.f32.gmra.mxu1 %v10113_v38  ;;  %8398 = vmatprep.subr.mxu0 %v6654_v32 }
 0x3b8   : > { %8442 = vmatprep.subr.mxu1 %v6670_v60  ;;  %8399 = vmatpush3.msra.mxu0 %v6654_v32  ;;  %v4683_v32 = vld [vmem:[%s11718_s11 + $0xa8] sm:$0xff] }
 0x3b9   : > { %8418 = vmatprep.mubr.f32.mxu0 %v9829_v5  ;;  %8443 = vmatpush3.msra.mxu1 %v6670_v60  ;;  %v6667_v5 = vld [vmem:[%s11714_s7 + $0x3b0] sm:$0xff]  ;;  %v4682_v60 = vld [vmem:[%s11718_s11 + $0xa0] sm:$0xff] }
 0x3ba   : > { %8462 = vmatprep.mubr.f32.mxu1 %v9790_v36  ;;  %8400 = vmatprep.subr.mxu0 %v6653_v44  ;;  %v6650_v36 = vld [vmem:[%s11714_s7 + $0x328] sm:$0xff] }
 0x3bb   : > { %8444 = vmatprep.subr.mxu1 %v6669_v26  ;;  %8401 = vmatpush3.msra.mxu0 %v6653_v44 }
 0x3bc   : > { %8445 = vmatpush3.msra.mxu1 %v6669_v26  ;;  %8402 = vmatprep.subr.mxu0 %v6652_v8  ;;  %v4681_v26 = vld [vmem:[%s11718_s11 + $0x98] sm:$0xff] }
 0x3bd   : > { %8446 = vmatprep.subr.mxu1 %v6668_v57  ;;  %8403 = vmatpush3.msra.mxu0 %v6652_v8  ;;  %v4680_v8 = vld [vmem:[%s11718_s11 + $0x90] sm:$0xff] }
 0x3be   : > { %8447 = vmatpush3.msra.mxu1 %v6668_v57  ;;  %8404 = vmatprep.subr.mxu0 %v6651_v46  ;;  %v4679_v57 = vld [vmem:[%s11718_s11 + $0x88] sm:$0xff] }
 0x3bf   : > { %8448 = vmatprep.subr.mxu1 %v6667_v5  ;;  %8405 = vmatpush3.msra.mxu0 %v6651_v46  ;;  %v4678_v46 = vld [vmem:[%s11718_s11 + $0x80] sm:$0xff] }
 0x3c0   : > { %8449 = vmatpush3.msra.mxu1 %v6667_v5  ;;  %8406 = vmatprep.subr.mxu0 %v6650_v36 }
 0x3c1   : > { %8450 = vmatprep.subr.mxu1 %v6666_v28  ;;  %8407 = vmatpush3.msra.mxu0 %v6650_v36 }
 0x3c2   : > { %8451 = vmatpush3.msra.mxu1 %v6666_v28  ;;  %8408 = vmatprep.subr.mxu0 %v6649_v37  ;;  %v4677_v28 = vld [vmem:[%s11718_s11 + $0x78] sm:$0xff] }
 0x3c3   : > { %8452 = vmatprep.subr.mxu1 %v6665_v11  ;;  %8409 = vmatpush3.msra.mxu0 %v6649_v37  ;;  %v4676_v37 = vld [vmem:[%s11718_s11 + $0x70] sm:$0xff] }
 0x3c4   : > { %8453 = vmatpush3.msra.mxu1 %v6665_v11  ;;  %8410 = vmatprep.subr.mxu0 %v6648_v54 }
 0x3c5   : > { %8454 = vmatprep.subr.mxu1 %v6664_v49  ;;  %8411 = vmatpush3.msra.mxu0 %v6648_v54  ;;  %v4675_v54 = vld [vmem:[%s11718_s11 + $0x68] sm:$0xff] }
 0x3c6   : > { %8455 = vmatpush3.msra.mxu1 %v6664_v49  ;;  %8412 = vmatprep.subr.mxu0 %v6647_v50  ;;  %v4674_v49 = vld [vmem:[%s11718_s11 + $0x60] sm:$0xff] }
 0x3c7   : > { %8456 = vmatprep.subr.mxu1 %v6663_v52  ;;  %8413 = vmatpush3.msra.mxu0 %v6647_v50 }
 0x3c8   : > { %8457 = vmatpush3.msra.mxu1 %v6663_v52  ;;  %8414 = vmatprep.subr.mxu0 %v6646_v45 }
 0x3c9   : > { %8458 = vmatprep.subr.mxu1 %v6662_v6  ;;  %8415 = vmatpush3.msra.mxu0 %v6646_v45 }
 0x3ca   : > { %8459 = vmatpush3.msra.mxu1 %v6662_v6  ;;  %8416 = vmatprep.subr.mxu0 %v6645_v56 }
 0x3cb   : > { %8460 = vmatprep.subr.mxu1 %v6661_v48  ;;  %8417 = vmatpush3.msra.mxu0 %v6645_v56 }
 0x3cc   : > { %8461 = vmatpush3.msra.mxu1 %v6661_v48  ;;  %8419 = vmatmul.mubr.f32.vlgmr.msra.gmra.mxu0 %v9840_v63  ;;  %v4198_v63 = vld [vmem:[#allocation2 + $0x91] sm:$0xff] }
 0x3cd   : > { %8463 = vmatmul.mubr.f32.vlgmr.msra.gmra.mxu1 %v9807_v24  ;;  %8474 = vmatprep.subr.mxu0 %v6692_v1  ;;  %v6689_v24 = vld [vmem:[%s11714_s7 + $0x460] sm:$0xff] }
 0x3ce   : > { %8421 = vmatprep.mubr.f32.mxu0 %v9847_v9  ;;  %8465 = vmatprep.mubr.f32.mxu1 %v9799_v42  ;;  %v6688_v42 = vld [vmem:[%s11714_s7 + $0x458] sm:$0xff]  ;;  %v10205_v9 = vld [vmem:[#allocation2] sm:$0xff] }
 0x3cf   : > { %8475 = vmatpush3.msra.mxu0 %v6692_v1  ;;  %11750 = vst [vmem:[#allocation3_spill] sm:$0xff] %v10205_v9  ;;  %8518 = vmatprep.subr.mxu1 %v4493_v18 }
 0x3d0   : > { %8476 = vmatprep.subr.mxu0 %v6691_v17  ;;  %8422 = vmatmul.mubr.f32.gmra.mxu0 %v9857_v23  ;;  %v6683_v23 = vld [vmem:[%s11714_s7 + $0x430] sm:$0xff] }
 0x3d1   : > { %8477 = vmatpush3.msra.mxu0 %v6691_v17  ;;  %8466 = vmatmul.mubr.f32.gmra.mxu1 %v9821_v2  ;;  %v6687_v2 = vld [vmem:[%s11714_s7 + $0x450] sm:$0xff] }
 0x3d2   : > { %8478 = vmatprep.subr.mxu0 %v6690_v59  ;;  %8424 = vmatprep.mubr.f32.mxu0 %v9863_v7  ;;  %v6682_v7 = vld [vmem:[%s11714_s7 + $0x428] sm:$0xff] }
 0x3d3   : > { %8468 = vmatprep.mubr.f32.mxu1 %v9813_v34  ;;  %8479 = vmatpush3.msra.mxu0 %v6690_v59  ;;  %v6686_v34 = vld [vmem:[%s11714_s7 + $0x448] sm:$0xff] }
 0x3d4   : > { %8480 = vmatprep.subr.mxu0 %v6689_v24  ;;  %8425 = vmatmul.mubr.f32.gmra.mxu0 %v9872_v3  ;;  %v6681_v3 = vld [vmem:[%s11714_s7 + $0x420] sm:$0xff] }
 0x3d5   : > { %8481 = vmatpush3.msra.mxu0 %v6689_v24  ;;  %8469 = vmatmul.mubr.f32.gmra.mxu1 %v9837_v33  ;;  %v6685_v33 = vld [vmem:[%s11714_s7 + $0x440] sm:$0xff] }
 0x3d6   : > { %8482 = vmatprep.subr.mxu0 %v6688_v42  ;;  %8427 = vmatprep.mubr.f32.mxu0 %v9999_v40  ;;  %v6679_v40 = vld [vmem:[%s11714_s7 + $0x410] sm:$0xff] }
 0x3d7   : > { %8471 = vmatprep.mubr.f32.mxu1 %v9827_v53  ;;  %8483 = vmatpush3.msra.mxu0 %v6688_v42  ;;  %v6684_v53 = vld [vmem:[%s11714_s7 + $0x438] sm:$0xff] }
 0x3d8   : > { %8484 = vmatprep.subr.mxu0 %v6687_v2  ;;  %8428 = vmatmul.mubr.f32.gmra.mxu0 %v10205_v9 }
 0x3d9   : > { %8485 = vmatpush3.msra.mxu0 %v6687_v2  ;;  %8506 = vmatprep.mubr.f32.mxu0 %v9940_v25  ;;  %v6680_v25 = vld [vmem:[%s11714_s7 + $0x418] sm:$0xff] }
 0x3da   : > { %8486 = vmatprep.subr.mxu0 %v6686_v34  ;;  %8472 = vmatmul.mubr.f32.gmra.mxu1 %v4198_v63 }
 0x3db   : > { %8487 = vmatpush3.msra.mxu0 %v6686_v34  ;;  %8519 = vmatpush3.msra.mxu1 %v4493_v18 }
 0x3dc   : > { %8488 = vmatprep.subr.mxu0 %v6685_v33 }
 0x3dd   : > { %8489 = vmatpush3.msra.mxu0 %v6685_v33 }
 0x3de   : > { %8490 = vmatprep.subr.mxu0 %v6684_v53 }
 0x3df   : > { %8491 = vmatpush3.msra.mxu0 %v6684_v53 }
 0x3e0   : > { %8492 = vmatprep.subr.mxu0 %v6683_v23 }
 0x3e1   : > { %8493 = vmatpush3.msra.mxu0 %v6683_v23 }
 0x3e2   : > { %8494 = vmatprep.subr.mxu0 %v6682_v7 }
 0x3e3   : > { %8495 = vmatpush3.msra.mxu0 %v6682_v7 }
 0x3e4   : > { %8496 = vmatprep.subr.mxu0 %v6681_v3 }
 0x3e5   : > { %8497 = vmatpush3.msra.mxu0 %v6681_v3 }
 0x3e6   : > { %8498 = vmatprep.subr.mxu0 %v6680_v25 }
 0x3e7   : > { %8499 = vmatpush3.msra.mxu0 %v6680_v25 }
 0x3e8   : > { %8500 = vmatprep.subr.mxu0 %v6679_v40 }
 0x3e9   : > { %8501 = vmatpush3.msra.mxu0 %v6679_v40 }
 0x3ea   : > { %8502 = vmatprep.subr.mxu0 %v6678_v12 }
 0x3eb   : > { %8503 = vmatpush3.msra.mxu0 %v6678_v12 }
 0x3ec   : > { %8504 = vmatprep.subr.mxu0 %v6677_v16 }
 0x3ed   : > { %8505 = vmatpush3.msra.mxu0 %v6677_v16 }
 0x3ee   : > { %8507 = vmatmul.mubr.f32.vlgmr.msra.gmra.mxu0 %v9953_v61  ;;  %v4492_v61 = vld [vmem:[%s11716_s9 + $0x10] sm:$0xff]  ;;  %4848 = vmatprep.subr.mxu0 %v4693_v55 }
 0x3ef   : > { %8509 = vmatprep.mubr.f32.mxu0 %v9960_v30  ;;  %8520 = vmatprep.subr.mxu1 %v4492_v61  ;;  %v4491_v30 = vld [vmem:[%s11716_s9 + $0x8] sm:$0xff] }
 0x3f0   : > { %8521 = vmatpush3.msra.mxu1 %v4492_v61  ;;  %4849 = vmatpush1.msra.mxu0 %v4692_v21 }
 0x3f1   : > { %8522 = vmatprep.subr.mxu1 %v4491_v30  ;;  %4850 = vmatprep.subr.mxu0 %v4691_v15 }
 0x3f2   : > { %8510 = vmatmul.mubr.f32.gmra.mxu0 %v9973_v41  ;;  %8523 = vmatpush3.msra.mxu1 %v4491_v30  ;;  %v4490_v41 = vld [vmem:[%s11716_s9] sm:$0xff] }
 0x3f3   : > { %8512 = vmatprep.mubr.f32.mxu0 %v9980_v58  ;;  %8524 = vmatprep.subr.mxu1 %v4490_v41 }
 0x3f4   : > { %8525 = vmatpush3.msra.mxu1 %v4490_v41  ;;  %4851 = vmatpush1.msra.mxu0 %v4690_v35 }
 0x3f5   : > { %4735 = vmatprep.subr.mxu1 %v6734_v43  ;;  %4852 = vmatprep.subr.mxu0 %v4689_v39 }
 0x3f6   : > { %8513 = vmatmul.mubr.f32.gmra.mxu0 %v9993_v47 }
 0x3f7   : > { %8515 = vmatprep.mubr.f32.mxu0 %v10113_v38  ;;  %4853 = vmatpush1.msra.mxu0 %v4688_v51 }
 0x3f8   : > { %4854 = vmatprep.subr.mxu0 %v4687_v0 }
 0x3f9   : > { %4855 = vmatpush1.msra.mxu0 %v4686_v62 }
 0x3fa   : > { %8516 = vmatmul.mubr.f32.gmra.mxu0 %v4336_v10  ;;  %4856 = vmatprep.subr.mxu0 %v4685_v27 }
 0x3fb   : > { %4912 = vmatprep.mubr.f32.mxu0 %v10205_v9  ;;  %4857 = vmatpush1.msra.mxu0 %v4684_v19 }
 0x3fc   : > { %4858 = vmatprep.subr.mxu0 %v4683_v32 }
 0x3fd   : > { %4859 = vmatpush1.msra.mxu0 %v4682_v60 }
 0x3fe   : > { %4860 = vmatprep.subr.mxu0 %v4681_v26 }
 0x3ff   : > { %4861 = vmatpush1.msra.mxu0 %v4680_v8 }
 0x400   : > { %4862 = vmatprep.subr.mxu0 %v4679_v57 }
 0x401   : > { %4863 = vmatpush1.msra.mxu0 %v4678_v46 }
 0x402   : > { %4864 = vmatprep.subr.mxu0 %v4677_v28 }
 0x403   : > { %4865 = vmatpush1.msra.mxu0 %v4676_v37 }
 0x404   : > { %4866 = vmatprep.subr.mxu0 %v4675_v54 }
 0x405   : > { %4867 = vmatpush1.msra.mxu0 %v4674_v49 }
 0x413   : > { %v10255_v58 = vpop.f32.mrf.mxu0 }
 0x415   : > { %v10257_v47 = vpop.f32.mrf.mxu0 }
 0x417   : > { %v10259_v4 = vpop.f32.mrf.mxu0 }
 0x419   : > { %v10263_v14 = vpop.f32.mrf.mxu0 }
 0x41b   : > { %v10261_v13 = vpop.f32.mrf.mxu1 }
 0x41c   : > { %v3468_v26 = vadd.f32 %v10261_v13, %v10255_v58 }
 0x41d   : > { %v10277_v31 = vpop.f32.mrf.mxu1  ;;  %v10279_v22 = vpop.f32.mrf.mxu0 }
 0x41e   : > { %v3463_v8 = vadd.f32 %v10277_v31, %v10257_v47 }
 0x41f   : > { %v10296_v29 = vpop.f32.mrf.mxu1  ;;  %v10298_v20 = vpop.f32.mrf.mxu0 }
 0x420   : > { %v3478_v37 = vadd.f32 %v10296_v29, %v10259_v4 }
 0x421   : > { %v10312_v38 = vpop.f32.mrf.mxu1 }
 0x422   : > { %v3473_v9 = vadd.f32 %v10312_v38, %v10263_v14 }
 0x423   : > { %v10328_v5 = vpop.f32.mrf.mxu1 }
 0x424   : > { %v3488_v47 = vadd.f32 %v10328_v5, %v10279_v22 }
 0x425   : > { %v10344_v50 = vpop.f32.mrf.mxu1 }
 0x426   : > { %v3483_v4 = vadd.f32 %v10344_v50, %v10298_v20 }
 0x427   : > { %v10314_v44 = vpop.f32.mrf.mxu0 }
 0x428   : > { %v10346_v45 = vpop.f32.mrf.mxu1 }
 0x429   : > { %v10330_v36 = vpop.f32.mrf.mxu0  ;;  %v3498_v38 = vadd.f32 %v10346_v45, %v10314_v44  ;;  %v10390_v45 = vld [vmem:[%s11715_s8] ss:$0 sm:$0xff] }
 0x42a   : > { %v10348_v56 = vpop.f32.mrf.mxu1 }
 0x43c   : > { %v8244_v11 = vpop.f32.mrf.mxu0 }
 0x43d   : > { %v8288_v48 = vpop.f32.mrf.mxu1  ;;  %v3632_v57 = vadd.f32 %v8244_v11, %v3468_v26 }
 0x43e   : > { %v3592_v52 = vpop.f32.mrf.mxu0 }
 0x43f   : > { %v3730_v17 = vpop.f32.mrf.mxu1  ;;  %v3770_v54 = vadd.f32 %v8288_v48, %v3632_v57  ;;  %v3631_v49 = vadd.f32 %v3592_v52, %v3463_v8 }
 0x442   : > { %v8247_v6 = vpop.f32.mrf.mxu0 }
 0x443   : > { %v8291_v24 = vpop.f32.mrf.mxu1 }
 0x444   : > { %v3602_v1 = vpop.f32.mrf.mxu0 }
 0x445   : > { %v3740_v2 = vpop.f32.mrf.mxu1 }
 0x448   : > { %v8250_v59 = vpop.f32.mrf.mxu0 }
 0x449   : > { %v8294_v63 = vpop.f32.mrf.mxu1  ;;  %v3636_v52 = vadd.f32 %v8250_v59, %v3488_v47 }
 0x44a   : > { %v3612_v42 = vpop.f32.mrf.mxu0 }
 0x44b   : > { %v3750_v23 = vpop.f32.mrf.mxu1 }
 0x44e   : > { %v10350_v34 = vpop.f32.mrf.mxu0 }
 0x44f   : > { %v10354_v3 = vpop.f32.mrf.mxu1  ;;  %v3638_v50 = vadd.f32 %v10350_v34, %v3498_v38 }
 0x450   : > { %v10352_v33 = vpop.f32.mrf.mxu0 }
 0x451   : > { %v10356_v40 = vpop.f32.mrf.mxu1 }
 0x464   : > { %v8332_v53 = vpop.f32.mrf.mxu0 }
 0x465   : > { %v8376_v12 = vpop.f32.mrf.mxu1 }
 0x466   : > { %v3868_v7 = vpop.f32.mrf.mxu0 }
 0x467   : > { %v4006_v10 = vpop.f32.mrf.mxu1 }
 0x46a   : > { %v8335_v25 = vpop.f32.mrf.mxu0 }
 0x46b   : > { %v8379_v61 = vpop.f32.mrf.mxu1 }
 0x46c   : > { %v3878_v16 = vpop.f32.mrf.mxu0 }
 0x46d   : > { %v4016_v41 = vpop.f32.mrf.mxu1 }
 0x470   : > { %v8338_v18 = vpop.f32.mrf.mxu0 }
 0x471   : > { %v8382_v55 = vpop.f32.mrf.mxu1 }
 0x472   : > { %v3888_v30 = vpop.f32.mrf.mxu0 }
 0x473   : > { %v10362_v35 = vpop.f32.mrf.mxu1 }
 0x476   : > { %v10358_v43 = vpop.f32.mrf.mxu0 }
 0x477   : > { %11751 = vst [vmem:[#allocation6_spill] sm:$0xff] %v10358_v43  ;;  %v10364_v51 = vpop.f32.mrf.mxu1  ;;  %v3633_v43 = vadd.f32 %v3602_v1, %v3473_v9  ;;  %v3635_v9 = vadd.f32 %v3612_v42, %v3483_v4  ;;  %v3776_v42 = vadd.f32 %v10354_v3, %v3638_v50 }
 0x478   : > { %v10360_v21 = vpop.f32.mrf.mxu0  ;;  %11753 = vst [vmem:[#allocation7_spill] sm:$0xff] %v10364_v51  ;;  %v3908_v51 = vadd.f32 %v8332_v53, %v3770_v54  ;;  %v3774_v53 = vadd.f32 %v8294_v63, %v3636_v52 }
 0x479   : > { %11752 = vst [vmem:[#allocation4_spill] sm:$0xff] %v10360_v21  ;;  %v10366_v62 = vpop.f32.mrf.mxu1  ;;  %v3634_v21 = vadd.f32 %v8247_v6, %v3478_v37  ;;  %v3771_v29 = vadd.f32 %v3740_v2, %v3633_v43  ;;  %v3773_v20 = vadd.f32 %v3750_v23, %v3635_v9 }
 0x47a   : > { %11754 = vst [vmem:[#allocation9_spill] sm:$0xff] %v10366_v62  ;;  %v3769_v62 = vadd.f32 %v3730_v17, %v3631_v49  ;;  %v4046_v11 = vadd.f32 %v8376_v12, %v3908_v51 }
 0x47b   : > { %v3772_v31 = vadd.f32 %v8291_v24, %v3634_v21  ;;  %v3909_v6 = vadd.f32 %v3878_v16, %v3771_v29  ;;  %v3911_v16 = vadd.f32 %v3888_v30, %v3773_v20  ;;  %v6728_v20 = vld [vmem:[%s11718_s11 + $0x1c8] sm:$0xff] }
 0x47c   : > { %v3907_v26 = vadd.f32 %v3868_v7, %v3769_v62  ;;  %v3493_v7 = vadd.f32 %v10348_v56, %v10330_v36 }
 0x47d   : > { %v3910_v8 = vadd.f32 %v8335_v25, %v3772_v31  ;;  %v4047_v59 = vadd.f32 %v4016_v41, %v3909_v6  ;;  %v3912_v25 = vadd.f32 %v8338_v18, %v3774_v53  ;;  %v4049_v43 = vadd.f32 %v10362_v35, %v3911_v16  ;;  %v6733_v31 = vld [vmem:[%s11718_s11 + $0x1f0] sm:$0xff]  ;;  %v6730_v6 = vld [vmem:[%s11718_s11 + $0x1d8] sm:$0xff]  ;;  %v6724_v16 = vld [vmem:[%s11718_s11 + $0x1a8] sm:$0xff] }
 0x47e   : > { %v4045_v48 = vadd.f32 %v4006_v10, %v3907_v26  ;;  %v3637_v63 = vadd.f32 %v10352_v33, %v3493_v7  ;;  %v11755_v21 = vld [vmem:[#allocation6_spill] sm:$0xff] }
 0x47f   : > { %v4048_v22 = vadd.f32 %v8379_v61, %v3910_v8  ;;  %v4050_v23 = vadd.f32 %v8382_v55, %v3912_v25  ;;  %v11756_v62 = vld [vmem:[#allocation7_spill] sm:$0xff] }
 0x480   : > { %v3775_v18 = vadd.f32 %v10356_v40, %v3637_v63  ;;  %v11757_v55 = vld [vmem:[#allocation4_spill] sm:$0xff]  ;;  %v6731_v8 = vld [vmem:[%s11718_s11 + $0x1e0] sm:$0xff] }
 0x481   : > { %v11758_v54 = vld [vmem:[#allocation9_spill] sm:$0xff] }
 0x48c   : > { %v8420_v15 = vpop.f32.mrf.mxu0 }
 0x48d   : > { %v8464_v27 = vpop.f32.mrf.mxu1  ;;  %v4184_v14 = vadd.f32 %v8420_v15, %v4046_v11  ;;  %v3914_v15 = vadd.f32 %v11755_v21, %v3776_v42  ;;  %v6725_v42 = vld [vmem:[%s11718_s11 + $0x1b0] sm:$0xff] }
 0x48e   : > { %v4144_v39 = vpop.f32.mrf.mxu0  ;;  %v6717_v21 = vld [vmem:[%s11718_s11 + $0x170] sm:$0xff] }
 0x48f   : > { %v4282_v32 = vpop.f32.mrf.mxu1  ;;  %v4322_v5 = vadd.f32 %v8464_v27, %v4184_v14  ;;  %v4183_v24 = vadd.f32 %v4144_v39, %v4045_v48  ;;  %v4052_v27 = vadd.f32 %v11756_v62, %v3914_v15  ;;  %v6716_v15 = vld [vmem:[%s11718_s11 + $0x168] sm:$0xff] }
 0x490   : > { %v8423_v0 = vpop.f32.mrf.mxu0  ;;  %v4671_v62 = vld [vmem:[%s11718_s11 + $0x48] sm:$0xff] }
 0x491   : > { %v8467_v46 = vpop.f32.mrf.mxu1  ;;  %v4321_v12 = vadd.f32 %v4282_v32, %v4183_v24  ;;  %v4186_v10 = vadd.f32 %v8423_v0, %v4048_v22  ;;  %v3913_v32 = vadd.f32 %v11757_v55, %v3775_v18  ;;  %v6718_v18 = vld [vmem:[%s11718_s11 + $0x178] sm:$0xff]  ;;  %v4670_v55 = vld [vmem:[%s11718_s11 + $0x40] sm:$0xff] }
 0x492   : > { %v4154_v19 = vpop.f32.mrf.mxu0 }
 0x493   : > { %v4292_v58 = vpop.f32.mrf.mxu1  ;;  %v4324_v34 = vadd.f32 %v8467_v46, %v4186_v10  ;;  %v4185_v61 = vadd.f32 %v4154_v19, %v4047_v59  ;;  %v4051_v49 = vadd.f32 %v11758_v54, %v3913_v32  ;;  %v6727_v59 = vld [vmem:[%s11718_s11 + $0x1c0] sm:$0xff]  ;;  %v6710_v32 = vld [vmem:[%s11718_s11 + $0x138] sm:$0xff] }
 0x494   : > { %v8426_v60 = vpop.f32.mrf.mxu0  ;;  %v4666_v54 = vld [vmem:[%s11718_s11 + $0x20] sm:$0xff] }
 0x495   : > { %v8470_v1 = vpop.f32.mrf.mxu1  ;;  %v4323_v0 = vadd.f32 %v4292_v58, %v4185_v61  ;;  %v4188_v3 = vadd.f32 %v8426_v60, %v4050_v23  ;;  %v6720_v61 = vld [vmem:[%s11718_s11 + $0x188] sm:$0xff] }
 0x496   : > { %v10372_v28 = vpop.f32.mrf.mxu0 }
 0x497   : > { %v4302_v36 = vpop.f32.mrf.mxu1  ;;  %v4326_v46 = vadd.f32 %v8470_v1, %v4188_v3  ;;  %v4187_v40 = vadd.f32 %v10372_v28, %v4049_v43  ;;  %v6732_v28 = vld [vmem:[%s11718_s11 + $0x1e8] sm:$0xff]  ;;  %v11759_v43 = vld [vmem:[#allocation3_spill] sm:$0xff]  ;;  %v6713_v3 = vld [vmem:[%s11718_s11 + $0x150] sm:$0xff] }
 0x498   : > { %v8429_v13 = vpop.f32.mrf.mxu0 }
 0x499   : > { %v4325_v11 = vadd.f32 %v4302_v36, %v4187_v40  ;;  %v4190_v26 = vadd.f32 %v8429_v13, %v4052_v27  ;;  %v6723_v36 = vld [vmem:[%s11718_s11 + $0x1a0] sm:$0xff]  ;;  %v6708_v40 = vld [vmem:[%s11718_s11 + $0x128] sm:$0xff] }
 0x49a   : > { %v4174_v17 = vpop.f32.mrf.mxu0  ;;  %v8473_v19 = vpop.f32.mrf.mxu1  ;;  %v6711_v27 = vld [vmem:[%s11718_s11 + $0x140] sm:$0xff] }
 0x49b   : > { %v4189_v14 = vadd.f32 %v4174_v17, %v4051_v49  ;;  %v4328_v38 = vadd.f32 %v8473_v19, %v4190_v26  ;;  %v4669_v19 = vld [vmem:[%s11718_s11 + $0x38] sm:$0xff]  ;;  %v6703_v26 = vld [vmem:[%s11718_s11 + $0x100] sm:$0xff] }
 0x49c   : > { %v4312_v52 = vpop.f32.mrf.mxu1  ;;  %v6706_v49 = vld [vmem:[%s11718_s11 + $0x118] sm:$0xff] }
 0x49d   : > { %v4327_v24 = vadd.f32 %v4312_v52, %v4189_v14  ;;  %v6765_v52 = vld [vmem:[%s11718_s11 + $0x2f0] sm:$0xff]  ;;  %v6762_v14 = vld [vmem:[%s11718_s11 + $0x2d8] sm:$0xff] }
 0x4ae   : > { %v8508_v2 = vpop.f32.mrf.mxu0 }
 0x4af   : > { %v4460_v44 = vadd.f32 %v8508_v2, %v4322_v5  ;;  %v6729_v5 = vld [vmem:[%s11718_s11 + $0x1d0] sm:$0xff] }
 0x4b0   : > { %v4420_v56 = vpop.f32.mrf.mxu0 }
 0x4b1   : > { %v4459_v41 = vadd.f32 %v4420_v56, %v4321_v12  ;;  %v4475_v39 = vadd.f32 %v10390_v45, %v4460_v44  ;;  %v6726_v12 = vld [vmem:[%s11718_s11 + $0x1b8] sm:$0xff] }
 0x4b2   : > { %v8511_v51 = vpop.f32.mrf.mxu0 }
 0x4b3   : > { %v4474_v33 = vadd.f32 %v10390_v45, %v4459_v41  ;;  %v4462_v30 = vadd.f32 %v8511_v51, %v4324_v34  ;;  %v4483_v47 = vmax.f32 %v4475_v39, 0.0  ;;  %v6721_v34 = vld [vmem:[%s11718_s11 + $0x190] sm:$0xff]  ;;  %v6719_v41 = vld [vmem:[%s11718_s11 + $0x180] sm:$0xff]  ;;  %v6714_v51 = vld [vmem:[%s11718_s11 + $0x158] sm:$0xff] }
 0x4b4   : > { %v4430_v57 = vpop.f32.mrf.mxu0  ;;  %v6715_v39 = vld [vmem:[%s11718_s11 + $0x160] sm:$0xff] }
 0x4b5   : > { %v4482_v35 = vmax.f32 %v4474_v33, 0.0  ;;  %v4461_v37 = vadd.f32 %v4430_v57, %v4323_v0  ;;  %v4477_v58 = vadd.f32 %v10390_v45, %v4462_v30  ;;  %v4673_v0 = vld [vmem:[%s11718_s11 + $0x58] sm:$0xff]  ;;  %v4672_v33 = vld [vmem:[%s11718_s11 + $0x50] sm:$0xff]  ;;  %v6712_v30 = vld [vmem:[%s11718_s11 + $0x148] sm:$0xff] }
 0x4b6   : > { %v8514_v60 = vpop.f32.mrf.mxu0  ;;  %4868 = vmatprep.subr.mxu0 %v4673_v0  ;;  %v6709_v57 = vld [vmem:[%s11718_s11 + $0x130] sm:$0xff]  ;;  %v6743_v0 = vld [vmem:[%s11718_s11 + $0x240] sm:$0xff] }
 0x4b7   : > { %v4476_v4 = vadd.f32 %v10390_v45, %v4461_v37  ;;  %v4464_v29 = vadd.f32 %v8514_v60, %v4326_v46  ;;  %8526 = vmatprep.mubr.msk.f32.mxu1 %vm486_vm0, %v4482_v35  ;;  %v4485_v1 = vmax.f32 %v4477_v58, 0.0  ;;  %4869 = vmatpush1.msra.mxu0 %v4672_v33  ;;  %v4668_v46 = vld [vmem:[%s11718_s11 + $0x30] sm:$0xff]  ;;  %v4667_v35 = vld [vmem:[%s11718_s11 + $0x28] sm:$0xff]  ;;  %v6707_v37 = vld [vmem:[%s11718_s11 + $0x120] sm:$0xff] }
 0x4b8   : > { %v4440_v48 = vpop.f32.mrf.mxu0  ;;  %8527 = vmatmul.mubr.msk.f32.vlgmr.msra.gmra.mxu1 %vm486_vm0, %v4483_v47  ;;  %4870 = vmatprep.subr.mxu0 %v4671_v62  ;;  %v4665_v47 = vld [vmem:[%s11718_s11 + $0x18] sm:$0xff]  ;;  %v6705_v58 = vld [vmem:[%s11718_s11 + $0x110] sm:$0xff]  ;;  %v6780_v62 = vld [vmem:[%s11718_s11 + $0x368] sm:$0xff] }
 0x4b9   : > { %v4484_v13 = vmax.f32 %v4476_v4, 0.0  ;;  %v4463_v9 = vadd.f32 %v4440_v48, %v4325_v11  ;;  %4736 = vmatpush1.msra.mxu1 %v6733_v31  ;;  %v4479_v53 = vadd.f32 %v10390_v45, %v4464_v29  ;;  %4871 = vmatpush1.msra.mxu0 %v4670_v55  ;;  %v4664_v60 = vld [vmem:[%s11718_s11 + $0x10] sm:$0xff]  ;;  %v6704_v31 = vld [vmem:[%s11718_s11 + $0x108] sm:$0xff]  ;;  %v4662_v4 = vld [vmem:[%s11718_s11] sm:$0xff] }
 0x4ba   : > { %v8517_v22 = vpop.f32.mrf.mxu0  ;;  %4737 = vmatprep.subr.mxu1 %v6732_v28  ;;  %4872 = vmatprep.subr.mxu0 %v4669_v19  ;;  %v4663_v11 = vld [vmem:[%s11718_s11 + $0x8] sm:$0xff]  ;;  %v6766_v28 = vld [vmem:[%s11718_s11 + $0x2f8] sm:$0xff]  ;;  %v6779_v55 = vld [vmem:[%s11718_s11 + $0x360] sm:$0xff] }
 0x4bb   : > { %v4478_v17 = vadd.f32 %v10390_v45, %v4463_v9  ;;  %v4466_v7 = vadd.f32 %v8517_v22, %v4328_v38  ;;  %8529 = vmatprep.mubr.msk.f32.mxu1 %vm486_vm0, %v4484_v13  ;;  %4738 = vmatpush1.msra.mxu1 %v6731_v8  ;;  %v4487_v10 = vmax.f32 %v4479_v53, 0.0  ;;  %v4694_v29 = vld [vmem:[#allocation2 + $0x1] sm:$0xff]  ;;  %v6761_v38 = vld [vmem:[%s11718_s11 + $0x2d0] sm:$0xff]  ;;  %v6742_v33 = vld [vmem:[%s11718_s11 + $0x238] sm:$0xff] }
 0x4bc   : > { %v4450_v50 = vpop.f32.mrf.mxu0  ;;  %8530 = vmatmul.mubr.msk.f32.gmra.mxu1 %vm486_vm0, %v4485_v1  ;;  %4739 = vmatprep.subr.mxu1 %v6730_v6  ;;  %v6764_v48 = vld [vmem:[%s11718_s11 + $0x2e8] sm:$0xff]  ;;  %v6763_v8 = vld [vmem:[%s11718_s11 + $0x2e0] sm:$0xff]  ;;  %v6798_v6 = vld [vmem:[%s11718_s11 + $0x3f8] sm:$0xff] }
 0x4bd   : > { %v4486_v2 = vmax.f32 %v4478_v17, 0.0  ;;  %v4465_v25 = vadd.f32 %v4450_v50, %v4327_v24  ;;  %4740 = vmatpush1.msra.mxu1 %v6729_v5  ;;  %v4481_v44 = vadd.f32 %v10390_v45, %v4466_v7  ;;  %4873 = vmatpush1.msra.mxu0 %v4668_v46  ;;  %v6760_v13 = vld [vmem:[%s11718_s11 + $0x2c8] sm:$0xff]  ;;  %v6759_v9 = vld [vmem:[%s11718_s11 + $0x2c0] sm:$0xff]  ;;  %v6758_v1 = vld [vmem:[%s11718_s11 + $0x2b8] sm:$0xff] }
 0x4be   : > { %4741 = vmatprep.subr.mxu1 %v6728_v20  ;;  %4874 = vmatprep.subr.mxu0 %v4667_v35  ;;  %v6797_v53 = vld [vmem:[%s11718_s11 + $0x3f0] sm:$0xff]  ;;  %v6796_v5 = vld [vmem:[%s11718_s11 + $0x3e8] sm:$0xff]  ;;  %v6795_v17 = vld [vmem:[%s11718_s11 + $0x3e0] sm:$0xff] }
 0x4bf   : > { %v4480_v63 = vadd.f32 %v10390_v45, %v4465_v25  ;;  %8532 = vmatprep.mubr.msk.f32.mxu1 %vm486_vm0, %v4486_v2  ;;  %4742 = vmatpush1.msra.mxu1 %v6727_v59  ;;  %v6722_v45 = vld [vmem:[%s11718_s11 + $0x198] sm:$0xff]  ;;  %v4489_v23 = vmax.f32 %v4481_v44, 0.0  ;;  %v6757_v22 = vld [vmem:[%s11718_s11 + $0x2b0] sm:$0xff]  ;;  %v6756_v24 = vld [vmem:[%s11718_s11 + $0x2a8] sm:$0xff] }
 0x4c0   : > { %8533 = vmatmul.mubr.msk.f32.gmra.mxu1 %vm486_vm0, %v4487_v10  ;;  %4743 = vmatprep.subr.mxu1 %v6726_v12  ;;  %v6755_v7 = vld [vmem:[%s11718_s11 + $0x2a0] sm:$0xff]  ;;  %v6794_v20 = vld [vmem:[%s11718_s11 + $0x3d8] sm:$0xff]  ;;  %v6793_v59 = vld [vmem:[%s11718_s11 + $0x3d0] sm:$0xff] }
 0x4c1   : > { %v4488_v56 = vmax.f32 %v4480_v63, 0.0  ;;  %4744 = vmatpush1.msra.mxu1 %v6725_v42  ;;  %4875 = vmatpush1.msra.mxu0 %v4666_v54  ;;  %v6754_v50 = vld [vmem:[%s11718_s11 + $0x298] sm:$0xff]  ;;  %v6753_v2 = vld [vmem:[%s11718_s11 + $0x290] sm:$0xff]  ;;  %v6792_v25 = vld [vmem:[%s11718_s11 + $0x3c8] sm:$0xff] }
 0x4c2   : > { %4745 = vmatprep.subr.mxu1 %v6724_v16  ;;  %4876 = vmatprep.subr.mxu0 %v4665_v47  ;;  %v6752_v12 = vld [vmem:[%s11718_s11 + $0x288] sm:$0xff]  ;;  %v6791_v10 = vld [vmem:[%s11718_s11 + $0x3c0] sm:$0xff]  ;;  %v6790_v42 = vld [vmem:[%s11718_s11 + $0x3b8] sm:$0xff] }
 0x4c3   : > { %8535 = vmatprep.mubr.msk.f32.mxu1 %vm486_vm0, %v4488_v56  ;;  %4746 = vmatpush1.msra.mxu1 %v6723_v36  ;;  %v6751_v44 = vld [vmem:[%s11718_s11 + $0x280] sm:$0xff]  ;;  %v6750_v63 = vld [vmem:[%s11718_s11 + $0x278] sm:$0xff]  ;;  %v6789_v16 = vld [vmem:[%s11718_s11 + $0x3b0] sm:$0xff] }
 0x4c4   : > { %8536 = vmatmul.mubr.msk.f32.gmra.mxu1 %vm486_vm0, %v4489_v23  ;;  %4747 = vmatprep.subr.mxu1 %v6722_v45  ;;  %v6788_v36 = vld [vmem:[%s11718_s11 + $0x3a8] sm:$0xff]  ;;  %v6749_v56 = vld [vmem:[%s11718_s11 + $0x270] sm:$0xff]  ;;  %v6787_v45 = vld [vmem:[%s11718_s11 + $0x3a0] sm:$0xff] }
 0x4c5   : > { %4748 = vmatpush1.msra.mxu1 %v6721_v34  ;;  %4799 = vmatprep.mubr.f32.mxu1 %v11759_v43  ;;  %v6748_v23 = vld [vmem:[%s11718_s11 + $0x268] sm:$0xff]  ;;  %v6747_v34 = vld [vmem:[%s11718_s11 + $0x260] sm:$0xff]  ;;  %v6738_v46 = vld [vmem:[%s11718_s11 + $0x218] sm:$0xff] }
 0x4c6   : > { %4749 = vmatprep.subr.mxu1 %v6720_v61  ;;  %4877 = vmatpush1.msra.mxu0 %v4664_v60  ;;  %v6786_v61 = vld [vmem:[%s11718_s11 + $0x398] sm:$0xff]  ;;  %v6739_v19 = vld [vmem:[%s11718_s11 + $0x220] sm:$0xff]  ;;  %v6776_v35 = vld [vmem:[%s11718_s11 + $0x348] sm:$0xff] }
 0x4c7   : > { %4750 = vmatpush1.msra.mxu1 %v6719_v41  ;;  %4878 = vmatprep.subr.mxu0 %v4663_v11  ;;  %v6746_v41 = vld [vmem:[%s11718_s11 + $0x258] sm:$0xff]  ;;  %v6775_v54 = vld [vmem:[%s11718_s11 + $0x340] sm:$0xff]  ;;  %v6772_v11 = vld [vmem:[%s11718_s11 + $0x328] sm:$0xff] }
 0x4c8   : > { %4751 = vmatprep.subr.mxu1 %v6718_v18  ;;  %4879 = vmatpush1.msra.mxu0 %v4662_v4  ;;  %v6785_v18 = vld [vmem:[%s11718_s11 + $0x390] sm:$0xff]  ;;  %v6735_v47 = vld [vmem:[%s11718_s11 + $0x200] sm:$0xff]  ;;  %v6830_v60 = vld [vmem:[%s11718_s11 + $0x4f8] sm:$0xff] }
 0x4c9   : > { %4752 = vmatpush1.msra.mxu1 %v6717_v21  ;;  %4913 = vmatmul.mubr.f32.vlgmr.msra.gmra.mxu0 %v11759_v43  ;;  %v6784_v21 = vld [vmem:[%s11718_s11 + $0x388] sm:$0xff]  ;;  %v6770_v4 = vld [vmem:[%s11718_s11 + $0x318] sm:$0xff] }
 0x4ca   : > { %4753 = vmatprep.subr.mxu1 %v6716_v15  ;;  %4918 = vmatprep.mubr.f32.mxu0 %v11759_v43  ;;  %v6745_v15 = vld [vmem:[%s11718_s11 + $0x250] sm:$0xff] }
 0x4cb   : > { %4754 = vmatpush1.msra.mxu1 %v6715_v39  ;;  %5172 = vmatprep.subr.mxu0 %v6798_v6  ;;  %v6783_v39 = vld [vmem:[%s11718_s11 + $0x380] sm:$0xff] }
 0x4cc   : > { %4755 = vmatprep.subr.mxu1 %v6714_v51  ;;  %5173 = vmatpush1.msra.mxu0 %v6797_v53  ;;  %v6744_v51 = vld [vmem:[%s11718_s11 + $0x248] sm:$0xff] }
 0x4cd   : > { %4756 = vmatpush1.msra.mxu1 %v6713_v3  ;;  %5174 = vmatprep.subr.mxu0 %v6796_v5  ;;  %v6782_v3 = vld [vmem:[%s11718_s11 + $0x378] sm:$0xff] }
 0x4ce   : > { %4757 = vmatprep.subr.mxu1 %v6712_v30  ;;  %5175 = vmatpush1.msra.mxu0 %v6795_v17  ;;  %v6781_v30 = vld [vmem:[%s11718_s11 + $0x370] sm:$0xff] }
 0x4cf   : > { %4758 = vmatpush1.msra.mxu1 %v6711_v27  ;;  %5176 = vmatprep.subr.mxu0 %v6794_v20  ;;  %v6741_v27 = vld [vmem:[%s11718_s11 + $0x230] sm:$0xff] }
 0x4d0   : > { %4759 = vmatprep.subr.mxu1 %v6710_v32  ;;  %5177 = vmatpush1.msra.mxu0 %v6793_v59  ;;  %v6740_v32 = vld [vmem:[%s11718_s11 + $0x228] sm:$0xff]  ;;  %v8567_v5 = vld [vmem:[#allocation2 + $0x11] sm:$0xff] }
 0x4d1   : > { %4760 = vmatpush1.msra.mxu1 %v6709_v57  ;;  %5178 = vmatprep.subr.mxu0 %v6792_v25  ;;  %v6778_v57 = vld [vmem:[%s11718_s11 + $0x358] sm:$0xff] }
 0x4d2   : > { %4761 = vmatprep.subr.mxu1 %v6708_v40  ;;  %5179 = vmatpush1.msra.mxu0 %v6791_v10  ;;  %v6777_v40 = vld [vmem:[%s11718_s11 + $0x350] sm:$0xff] }
 0x4d3   : > { %4762 = vmatpush1.msra.mxu1 %v6707_v37  ;;  %5180 = vmatprep.subr.mxu0 %v6790_v42  ;;  %v6737_v37 = vld [vmem:[%s11718_s11 + $0x210] sm:$0xff] }
 0x4d4   : > { %4763 = vmatprep.subr.mxu1 %v6706_v49  ;;  %5181 = vmatpush1.msra.mxu0 %v6789_v16  ;;  %v6736_v49 = vld [vmem:[%s11718_s11 + $0x208] sm:$0xff]  ;;  %v8569_v10 = vld [vmem:[#allocation2 + $0x31] sm:$0xff] }
 0x4d5   : > { %4764 = vmatpush1.msra.mxu1 %v6705_v58  ;;  %5182 = vmatprep.subr.mxu0 %v6788_v36  ;;  %v6774_v58 = vld [vmem:[%s11718_s11 + $0x338] sm:$0xff]  ;;  %v8570_v36 = vld [vmem:[#allocation2 + $0x61] sm:$0xff] }
 0x4d6   : > { %4765 = vmatprep.subr.mxu1 %v6704_v31  ;;  %5183 = vmatpush1.msra.mxu0 %v6787_v45  ;;  %v6773_v31 = vld [vmem:[%s11718_s11 + $0x330] sm:$0xff] }
 0x4d7   : > { %4766 = vmatpush1.msra.mxu1 %v6703_v26  ;;  %5184 = vmatprep.subr.mxu0 %v6786_v61  ;;  %v6771_v26 = vld [vmem:[%s11718_s11 + $0x320] sm:$0xff]  ;;  %v8571_v61 = vld [vmem:[#allocation2 + $0x51] sm:$0xff] }
 0x4d8   : > { %4800 = vmatmul.mubr.f32.vlgmr.msra.gmra.mxu1 %v4694_v29  ;;  %5002 = vmatprep.subr.mxu1 %v6766_v28  ;;  %v6769_v29 = vld [vmem:[%s11718_s11 + $0x310] sm:$0xff]  ;;  %v6768_v28 = vld [vmem:[%s11718_s11 + $0x308] sm:$0xff] }
 0x4d9   : > { %4805 = vmatprep.mubr.f32.mxu1 %v11759_v43  ;;  %5003 = vmatpush1.msra.mxu1 %v6765_v52  ;;  %v6767_v52 = vld [vmem:[%s11718_s11 + $0x300] sm:$0xff] }
 0x4da   : > { %5004 = vmatprep.subr.mxu1 %v6764_v48  ;;  %5185 = vmatpush1.msra.mxu0 %v6785_v18  ;;  %v6862_v48 = vld [vmem:[%s11718_s11 + $0x5f8] sm:$0xff] }
 0x4db   : > { %5005 = vmatpush1.msra.mxu1 %v6763_v8  ;;  %5186 = vmatprep.subr.mxu0 %v6784_v21  ;;  %v6694_v8 = vld [vmem:[%s11717_s10] ss:$0 sm:$0xff] }
 0x4dc   : > { %5006 = vmatprep.subr.mxu1 %v6762_v14  ;;  %5187 = vmatpush1.msra.mxu0 %v6783_v39  ;;  %v8573_v39 = vld [vmem:[#allocation2 + $0x81] sm:$0xff] }
 0x4dd   : > { %5007 = vmatpush1.msra.mxu1 %v6761_v38  ;;  %5188 = vmatprep.subr.mxu0 %v6782_v3 }
 0x4de   : > { %5008 = vmatprep.subr.mxu1 %v6760_v13  ;;  %5189 = vmatpush1.msra.mxu0 %v6781_v30  ;;  %v8574_v30 = vld [vmem:[#allocation2 + $0x71] sm:$0xff] }
 0x4df   : > { %5009 = vmatpush1.msra.mxu1 %v6759_v9  ;;  %5190 = vmatprep.subr.mxu0 %v6780_v62  ;;  %v8566_v9 = vld [vmem:[#allocation2 + $0x21] sm:$0xff] }
 0x4e0   : > { %5010 = vmatprep.subr.mxu1 %v6758_v1  ;;  %5191 = vmatpush1.msra.mxu0 %v6779_v55 }
 0x4e1   : > { %5011 = vmatpush1.msra.mxu1 %v6757_v22  ;;  %5192 = vmatprep.subr.mxu0 %v6778_v57 }
 0x4e2   : > { %5012 = vmatprep.subr.mxu1 %v6756_v24  ;;  %5193 = vmatpush1.msra.mxu0 %v6777_v40  ;;  %v6829_v40 = vld [vmem:[%s11718_s11 + $0x4f0] sm:$0xff] }
 0x4e3   : > { %5013 = vmatpush1.msra.mxu1 %v6755_v7  ;;  %5194 = vmatprep.subr.mxu0 %v6776_v35 }
 0x4e4   : > { %5014 = vmatprep.subr.mxu1 %v6754_v50  ;;  %5195 = vmatpush1.msra.mxu0 %v6775_v54  ;;  %v8568_v50 = vld [vmem:[#allocation2 + $0x41] sm:$0xff] }
 0x4e5   : > { %5015 = vmatpush1.msra.mxu1 %v6753_v2  ;;  %5196 = vmatprep.subr.mxu0 %v6774_v58  ;;  %v6827_v54 = vld [vmem:[%s11718_s11 + $0x4e0] sm:$0xff] }
 0x4e6   : > { %5016 = vmatprep.subr.mxu1 %v6752_v12  ;;  %5197 = vmatpush1.msra.mxu0 %v6773_v31  ;;  %v6824_v31 = vld [vmem:[%s11718_s11 + $0x4c8] sm:$0xff] }
 0x4e7   : > { %5017 = vmatpush1.msra.mxu1 %v6751_v44  ;;  %5198 = vmatprep.subr.mxu0 %v6772_v11  ;;  %v6823_v11 = vld [vmem:[%s11718_s11 + $0x4c0] sm:$0xff] }
 0x4e8   : > { %5018 = vmatprep.subr.mxu1 %v6750_v63  ;;  %5199 = vmatpush1.msra.mxu0 %v6771_v26  ;;  %v6861_v26 = vld [vmem:[%s11718_s11 + $0x5f0] sm:$0xff] }
 0x4e9   : > { %5019 = vmatpush1.msra.mxu1 %v6749_v56  ;;  %5200 = vmatprep.subr.mxu0 %v6770_v4  ;;  %v6860_v4 = vld [vmem:[%s11718_s11 + $0x5e8] sm:$0xff] }
 0x4ea   : > { %5020 = vmatprep.subr.mxu1 %v6748_v23  ;;  %5201 = vmatpush1.msra.mxu0 %v6769_v29  ;;  %v6859_v29 = vld [vmem:[%s11718_s11 + $0x5e0] sm:$0xff] }
 0x4eb   : > { %5021 = vmatpush1.msra.mxu1 %v6747_v34  ;;  %5202 = vmatprep.subr.mxu0 %v6768_v28  ;;  %v6822_v28 = vld [vmem:[%s11718_s11 + $0x4b8] sm:$0xff] }
 0x4ec   : > { %5022 = vmatprep.subr.mxu1 %v6746_v41  ;;  %5203 = vmatpush1.msra.mxu0 %v6767_v52  ;;  %v6858_v52 = vld [vmem:[%s11718_s11 + $0x5d8] sm:$0xff] }
 0x4ed   : > { %5023 = vmatpush1.msra.mxu1 %v6745_v15  ;;  %5512 = vmatprep.subr.mxu0 %v6862_v48  ;;  %v10768_v15 = vld [vmem:[#allocation2] sm:$0xff] }
 0x4ee   : > { %5024 = vmatprep.subr.mxu1 %v6744_v51 }
 0x4ef   : > { %5025 = vmatpush1.msra.mxu1 %v6743_v0 }
 0x4f0   : > { %5026 = vmatprep.subr.mxu1 %v6742_v33 }
 0x4f1   : > { %5027 = vmatpush1.msra.mxu1 %v6741_v27 }
 0x4f2   : > { %5028 = vmatprep.subr.mxu1 %v6740_v32 }
 0x4f3   : > { %5029 = vmatpush1.msra.mxu1 %v6739_v19 }
 0x4f4   : > { %5030 = vmatprep.subr.mxu1 %v6738_v46  ;;  %v4961_v46 = vld [vmem:[#allocation2 + $0x2] sm:$0xff] }
 0x4f5   : > { %5031 = vmatpush1.msra.mxu1 %v6737_v37  ;;  %v6828_v37 = vld [vmem:[%s11718_s11 + $0x4e8] sm:$0xff] }
 0x4f6   : > { %5032 = vmatprep.subr.mxu1 %v6736_v49  ;;  %v6826_v49 = vld [vmem:[%s11718_s11 + $0x4d8] sm:$0xff] }
 0x4f7   : > { %5033 = vmatpush1.msra.mxu1 %v6735_v47 }
 0x4f8   : > { %5342 = vmatprep.subr.mxu1 %v6830_v60  ;;  %v6825_v60 = vld [vmem:[%s11718_s11 + $0x4d0] sm:$0xff] }
 0x578   : > { %v8528_v14 = vpop.f32.mrf.mxu1 }
 0x579   : > { %v4597_v38 = vadd.f32 %v8528_v14, %v6694_v8  ;;  %v6856_v14 = vld [vmem:[%s11718_s11 + $0x5c8] sm:$0xff] }
 0x57a   : > { %v4591_v13 = vpop.f32.mrf.mxu1 }
 0x57b   : > { %v4631_v6 = vadd.f32 %v8566_v9, %v4597_v38  ;;  %v4592_v1 = vadd.f32 %v6694_v8, %v4591_v13  ;;  %v6821_v38 = vld [vmem:[%s11718_s11 + $0x4b0] sm:$0xff]  ;;  %v6855_v13 = vld [vmem:[%s11718_s11 + $0x5c0] sm:$0xff]  ;;  %v6820_v9 = vld [vmem:[%s11718_s11 + $0x4a8] sm:$0xff] }
 0x57c   : > { %v8531_v53 = vpop.f32.mrf.mxu1 }
 0x57d   : > { %v10751_v22 = vmax.f32 %v4631_v6, 0.0  ;;  %v4630_v24 = vadd.f32 %v8567_v5, %v4592_v1  ;;  %v4607_v17 = vadd.f32 %v8531_v53, %v6694_v8  ;;  %v6854_v6 = vld [vmem:[%s11718_s11 + $0x5b8] sm:$0xff]  ;;  %v6853_v1 = vld [vmem:[%s11718_s11 + $0x5b0] sm:$0xff]  ;;  %v6852_v53 = vld [vmem:[%s11718_s11 + $0x5a8] sm:$0xff] }
 0x57e   : > { %v4601_v7 = vpop.f32.mrf.mxu1  ;;  %v6819_v5 = vld [vmem:[%s11718_s11 + $0x4a0] sm:$0xff] }
 0x57f   : > { %4647 = vst [vmem:[#allocation2 + $0x21] sm:$0xff] %v10751_v22  ;;  %v10754_v20 = vmax.f32 %v4630_v24, 0.0  ;;  %v4633_v59 = vadd.f32 %v8568_v50, %v4607_v17  ;;  %v4602_v2 = vadd.f32 %v6694_v8, %v4601_v7  ;;  %v6851_v24 = vld [vmem:[%s11718_s11 + $0x5a0] sm:$0xff]  ;;  %v6818_v17 = vld [vmem:[%s11718_s11 + $0x498] sm:$0xff] }
 0x580   : > { %v8534_v25 = vpop.f32.mrf.mxu1  ;;  %v6850_v7 = vld [vmem:[%s11718_s11 + $0x598] sm:$0xff] }
 0x581   : > { %4646 = vst [vmem:[#allocation2 + $0x11] sm:$0xff] %v10754_v20  ;;  %v10757_v12 = vmax.f32 %v4633_v59, 0.0  ;;  %v4632_v44 = vadd.f32 %v8569_v10, %v4602_v2  ;;  %v4617_v42 = vadd.f32 %v8534_v25, %v6694_v8  ;;  %4806 = vmatmul.mubr.f32.gmra.mxu1 %v10754_v20  ;;  %v6817_v59 = vld [vmem:[%s11718_s11 + $0x490] sm:$0xff]  ;;  %v6816_v25 = vld [vmem:[%s11718_s11 + $0x488] sm:$0xff] }
 0x582   : > { %v4611_v63 = vpop.f32.mrf.mxu1  ;;  %4811 = vmatprep.mubr.f32.mxu1 %v11759_v43  ;;  %v6849_v2 = vld [vmem:[%s11718_s11 + $0x590] sm:$0xff]  ;;  %v6848_v10 = vld [vmem:[%s11718_s11 + $0x588] sm:$0xff] }
 0x583   : > { %4649 = vst [vmem:[#allocation2 + $0x41] sm:$0xff] %v10757_v12  ;;  %v10762_v16 = vmax.f32 %v4632_v44, 0.0  ;;  %v4635_v56 = vadd.f32 %v8570_v36, %v4617_v42  ;;  %v4612_v45 = vadd.f32 %v6694_v8, %v4611_v63  ;;  %v6815_v44 = vld [vmem:[%s11718_s11 + $0x480] sm:$0xff]  ;;  %v6814_v63 = vld [vmem:[%s11718_s11 + $0x478] sm:$0xff] }
 0x584   : > { %v8537_v23 = vpop.f32.mrf.mxu1  ;;  %v6847_v42 = vld [vmem:[%s11718_s11 + $0x580] sm:$0xff]  ;;  %v6846_v36 = vld [vmem:[%s11718_s11 + $0x578] sm:$0xff] }
 0x585   : > { %4648 = vst [vmem:[#allocation2 + $0x31] sm:$0xff] %v10762_v16  ;;  %v10765_v34 = vmax.f32 %v4635_v56, 0.0  ;;  %v4634_v41 = vadd.f32 %v8571_v61, %v4612_v45  ;;  %v4627_v18 = vadd.f32 %v8537_v23, %v6694_v8  ;;  %4812 = vmatmul.mubr.f32.gmra.mxu1 %v10751_v22  ;;  %v6813_v45 = vld [vmem:[%s11718_s11 + $0x470] sm:$0xff]  ;;  %v6812_v61 = vld [vmem:[%s11718_s11 + $0x468] sm:$0xff] }
 0x586   : > { %v4621_v21 = vpop.f32.mrf.mxu1  ;;  %4817 = vmatprep.mubr.f32.mxu1 %v10768_v15  ;;  %v10785_v55 = vld [vmem:[#allocation2 + $0x20] sm:$0xff]  ;;  %v6845_v23 = vld [vmem:[%s11718_s11 + $0x570] sm:$0xff] }
 0x587   : > { %4651 = vst [vmem:[#allocation2 + $0x61] sm:$0xff] %v10765_v34  ;;  %v10772_v43 = vmax.f32 %v4634_v41, 0.0  ;;  %v10774_v51 = vadd.f32 %v8573_v39, %v4627_v18  ;;  %v4622_v0 = vadd.f32 %v6694_v8, %v4621_v21  ;;  %v10860_v48 = vld [vmem:[#allocation2 + $0x22] sm:$0xff]  ;;  %v6857_v8 = vld [vmem:[%s11718_s11 + $0x5d0] sm:$0xff]  ;;  %v6810_v39 = vld [vmem:[%s11718_s11 + $0x458] sm:$0xff] }
 0x588   : > { %v4655_v3 = vld [vmem:[#allocation2 + $0x10] sm:$0xff]  ;;  %v6844_v41 = vld [vmem:[%s11718_s11 + $0x568] sm:$0xff]  ;;  %v6811_v18 = vld [vmem:[%s11718_s11 + $0x460] sm:$0xff] }
 0x589   : > { %4650 = vst [vmem:[#allocation2 + $0x51] sm:$0xff] %v10772_v43  ;;  %v4645_v33 = vmax.f32 %v10774_v51, 0.0  ;;  %v4636_v62 = vadd.f32 %v8574_v30, %v4622_v0  ;;  %4919 = vmatmul.mubr.f32.gmra.mxu0 %v4655_v3  ;;  %4818 = vmatmul.mubr.f32.gmra.mxu1 %v10762_v16  ;;  %v10829_v58 = vld [vmem:[#allocation2 + $0x12] sm:$0xff]  ;;  %v6843_v21 = vld [vmem:[%s11718_s11 + $0x560] sm:$0xff] }
 0x58a   : > { %4924 = vmatprep.mubr.f32.mxu0 %v10768_v15  ;;  %4823 = vmatprep.mubr.f32.mxu1 %v10768_v15  ;;  %v10798_v19 = vld [vmem:[#allocation2 + $0x40] sm:$0xff]  ;;  %v6842_v0 = vld [vmem:[%s11718_s11 + $0x558] sm:$0xff]  ;;  %v6809_v30 = vld [vmem:[%s11718_s11 + $0x450] sm:$0xff] }
 0x58b   : > { %4653 = vst [vmem:[#allocation2 + $0x81] sm:$0xff] %v4645_v33  ;;  %v10783_v27 = vmax.f32 %v4636_v62, 0.0  ;;  %v10934_v56 = vld [vmem:[#allocation2 + $0x42] sm:$0xff]  ;;  %v6841_v62 = vld [vmem:[%s11718_s11 + $0x550] sm:$0xff] }
 0x58c   : > { %v10792_v32 = vld [vmem:[#allocation2 + $0x30] sm:$0xff]  ;;  %v6895_v51 = vld [vmem:[%s11718_s11 + $0x700] sm:$0xff] }
 0x58d   : > { %4652 = vst [vmem:[#allocation2 + $0x71] sm:$0xff] %v10783_v27  ;;  %4925 = vmatmul.mubr.f32.gmra.mxu0 %v10785_v55  ;;  %4824 = vmatmul.mubr.f32.gmra.mxu1 %v10757_v12  ;;  %v10904_v50 = vld [vmem:[#allocation2 + $0x32] sm:$0xff] }
 0x58e   : > { %4930 = vmatprep.mubr.f32.mxu0 %v10768_v15  ;;  %4829 = vmatprep.mubr.f32.mxu1 %v10768_v15  ;;  %v10813_v35 = vld [vmem:[#allocation2 + $0x60] sm:$0xff] }
 0x590   : > { %v10804_v57 = vld [vmem:[#allocation2 + $0x50] sm:$0xff] }
 0x591   : > { %4931 = vmatmul.mubr.f32.gmra.mxu0 %v10792_v32  ;;  %4830 = vmatmul.mubr.f32.gmra.mxu1 %v10772_v43 }
 0x592   : > { %4936 = vmatprep.mubr.f32.mxu0 %v10768_v15  ;;  %4835 = vmatprep.mubr.f32.mxu1 %v10768_v15 }
 0x594   : > { %v10827_v47 = vld [vmem:[#allocation2 + $0x70] sm:$0xff] }
 0x595   : > { %4937 = vmatmul.mubr.f32.gmra.mxu0 %v10798_v19  ;;  %4836 = vmatmul.mubr.f32.gmra.mxu1 %v10765_v34 }
 0x596   : > { %4942 = vmatprep.mubr.f32.mxu0 %v10768_v15  ;;  %4841 = vmatprep.mubr.f32.mxu1 %v10768_v15 }
 0x599   : > { %4943 = vmatmul.mubr.f32.gmra.mxu0 %v10804_v57  ;;  %4842 = vmatmul.mubr.f32.gmra.mxu1 %v10783_v27 }
 0x59a   : > { %4948 = vmatprep.mubr.f32.mxu0 %v10768_v15  ;;  %5066 = vmatprep.mubr.f32.mxu1 %v10768_v15 }
 0x59d   : > { %4949 = vmatmul.mubr.f32.gmra.mxu0 %v10813_v35  ;;  %5067 = vmatmul.mubr.f32.vlgmr.msra.gmra.mxu1 %v4961_v46  ;;  %v4801_v46 = vpop.f32.mrf.mxu1 }
 0x59e   : > { %4954 = vmatprep.mubr.f32.mxu0 %v10768_v15  ;;  %5343 = vmatpush1.msra.mxu1 %v6829_v40  ;;  %v4914_v40 = vpop.f32.mrf.mxu0 }
 0x59f   : > { %5344 = vmatprep.subr.mxu1 %v6828_v37  ;;  %5072 = vmatprep.mubr.f32.mxu1 %v10768_v15  ;;  %v6808_v37 = vld [vmem:[%s11718_s11 + $0x448] sm:$0xff] }
 0x5a0   : > { %5345 = vmatpush1.msra.mxu1 %v6827_v54  ;;  %v6840_v54 = vld [vmem:[%s11718_s11 + $0x548] sm:$0xff] }
 0x5a1   : > { %4955 = vmatmul.mubr.f32.gmra.mxu0 %v10827_v47  ;;  %5073 = vmatmul.mubr.f32.gmra.mxu1 %v10829_v58 }
 0x5a2   : > { %5236 = vmatprep.mubr.f32.mxu0 %v10768_v15  ;;  %5346 = vmatprep.subr.mxu1 %v6826_v49  ;;  %v10980_v49 = vadd.f32 %v4914_v40, %v4801_v46  ;;  %v6884_v46 = vld [vmem:[%s11718_s11 + $0x6a8] sm:$0xff] }
 0x5a3   : > { %5347 = vmatpush1.msra.mxu1 %v6825_v60  ;;  %5078 = vmatprep.mubr.f32.mxu1 %v10768_v15  ;;  %v6807_v60 = vld [vmem:[%s11718_s11 + $0x440] sm:$0xff]  ;;  %v6916_v40 = vld [vmem:[%s11718_s11 + $0x7a8] sm:$0xff] }
 0x5a4   : > { %5348 = vmatprep.subr.mxu1 %v6824_v31  ;;  %v6839_v31 = vld [vmem:[%s11718_s11 + $0x540] sm:$0xff] }
 0x5a5   : > { %5237 = vmatmul.mubr.f32.vlgmr.msra.gmra.mxu0 %v4655_v3  ;;  %5349 = vmatpush1.msra.mxu1 %v6823_v11  ;;  %v10964_v3 = vld [vmem:[#allocation2 + $0x52] sm:$0xff] }
 0x5a6   : > { %5513 = vmatpush1.msra.mxu0 %v6861_v26  ;;  %5242 = vmatprep.mubr.f32.mxu0 %v10768_v15  ;;  %v6806_v11 = vld [vmem:[%s11718_s11 + $0x438] sm:$0xff] }
 0x5a7   : > { %5514 = vmatprep.subr.mxu0 %v6860_v4  ;;  %5079 = vmatmul.mubr.f32.gmra.mxu1 %v10860_v48  ;;  %v6838_v26 = vld [vmem:[%s11718_s11 + $0x538] sm:$0xff]  ;;  %v10996_v4 = vld [vmem:[#allocation2 + $0x62] sm:$0xff] }
 0x5a8   : > { %5515 = vmatpush1.msra.mxu0 %v6859_v29  ;;  %5350 = vmatprep.subr.mxu1 %v6822_v28  ;;  %v6805_v29 = vld [vmem:[%s11718_s11 + $0x430] sm:$0xff] }
 0x5a9   : > { %5243 = vmatmul.mubr.f32.gmra.mxu0 %v10785_v55  ;;  %5516 = vmatprep.subr.mxu0 %v6858_v52  ;;  %v6837_v28 = vld [vmem:[%s11718_s11 + $0x530] sm:$0xff]  ;;  %v6804_v52 = vld [vmem:[%s11718_s11 + $0x428] sm:$0xff] }
 0x5aa   : > { %5517 = vmatpush1.msra.mxu0 %v6857_v8  ;;  %5248 = vmatprep.mubr.f32.mxu0 %v10768_v15  ;;  %v6836_v8 = vld [vmem:[%s11718_s11 + $0x528] sm:$0xff] }
 0x5ab   : > { %5518 = vmatprep.subr.mxu0 %v6856_v14  ;;  %5351 = vmatpush1.msra.mxu1 %v6821_v38  ;;  %v6803_v14 = vld [vmem:[%s11718_s11 + $0x420] sm:$0xff] }
 0x5ac   : > { %5519 = vmatpush1.msra.mxu0 %v6855_v13  ;;  %5352 = vmatprep.subr.mxu1 %v6820_v9  ;;  %v6835_v38 = vld [vmem:[%s11718_s11 + $0x520] sm:$0xff]  ;;  %v6802_v13 = vld [vmem:[%s11718_s11 + $0x418] sm:$0xff] }
 0x5ad   : > { %5249 = vmatmul.mubr.f32.gmra.mxu0 %v10792_v32  ;;  %5520 = vmatprep.subr.mxu0 %v6854_v6  ;;  %v6834_v9 = vld [vmem:[%s11718_s11 + $0x518] sm:$0xff]  ;;  %v6801_v6 = vld [vmem:[%s11718_s11 + $0x410] sm:$0xff] }
 0x5ae   : > { %5521 = vmatpush1.msra.mxu0 %v6853_v1  ;;  %5084 = vmatprep.mubr.f32.mxu1 %v10768_v15  ;;  %v11029_v1 = vld [vmem:[#allocation2 + $0x72] sm:$0xff] }
 0x5af   : > { %5522 = vmatprep.subr.mxu0 %v6852_v53  ;;  %5254 = vmatprep.mubr.f32.mxu0 %v10768_v15  ;;  %v11031_v53 = vld [vmem:[#allocation2 + $0x80] sm:$0xff] }
 0x5b0   : > { %5353 = vmatpush1.msra.mxu1 %v6819_v5  ;;  %5523 = vmatpush1.msra.mxu0 %v6851_v24  ;;  %v6833_v5 = vld [vmem:[%s11718_s11 + $0x510] sm:$0xff]  ;;  %v6800_v24 = vld [vmem:[%s11718_s11 + $0x408] sm:$0xff] }
 0x5b1   : > { %5085 = vmatmul.mubr.f32.gmra.mxu1 %v10904_v50  ;;  %5255 = vmatmul.mubr.f32.gmra.mxu0 %v10798_v19 }
 0x5b2   : > { %5354 = vmatprep.subr.mxu1 %v6818_v17  ;;  %5524 = vmatprep.subr.mxu0 %v6850_v7  ;;  %v6832_v17 = vld [vmem:[%s11718_s11 + $0x508] sm:$0xff]  ;;  %v6799_v7 = vld [vmem:[%s11718_s11 + $0x400] sm:$0xff] }
 0x5b3   : > { %5355 = vmatpush1.msra.mxu1 %v6817_v59  ;;  %5525 = vmatpush1.msra.mxu0 %v6849_v2  ;;  %v6831_v59 = vld [vmem:[%s11718_s11 + $0x500] sm:$0xff]  ;;  %v6894_v2 = vld [vmem:[%s11718_s11 + $0x6f8] sm:$0xff] }
 0x5b4   : > { %5356 = vmatprep.subr.mxu1 %v6816_v25  ;;  %5526 = vmatprep.subr.mxu0 %v6848_v10  ;;  %v6926_v25 = vld [vmem:[%s11718_s11 + $0x7f8] sm:$0xff]  ;;  %v6893_v10 = vld [vmem:[%s11718_s11 + $0x6f0] sm:$0xff] }
 0x5b5   : > { %5090 = vmatprep.mubr.f32.mxu1 %v10768_v15  ;;  %5260 = vmatprep.mubr.f32.mxu0 %v10768_v15 }
 0x5b6   : > { %5357 = vmatpush1.msra.mxu1 %v6815_v44  ;;  %5527 = vmatpush1.msra.mxu0 %v6847_v42  ;;  %v6925_v44 = vld [vmem:[%s11718_s11 + $0x7f0] sm:$0xff]  ;;  %v6892_v42 = vld [vmem:[%s11718_s11 + $0x6e8] sm:$0xff] }
 0x5b7   : > { %5091 = vmatmul.mubr.f32.gmra.mxu1 %v10934_v56  ;;  %5261 = vmatmul.mubr.f32.gmra.mxu0 %v10804_v57 }
 0x5b8   : > { %5358 = vmatprep.subr.mxu1 %v6814_v63  ;;  %5528 = vmatprep.subr.mxu0 %v6846_v36  ;;  %v6924_v63 = vld [vmem:[%s11718_s11 + $0x7e8] sm:$0xff]  ;;  %v6891_v36 = vld [vmem:[%s11718_s11 + $0x6e0] sm:$0xff] }
 0x5b9   : > { %5359 = vmatpush1.msra.mxu1 %v6813_v45  ;;  %5529 = vmatpush1.msra.mxu0 %v6845_v23  ;;  %v6922_v45 = vld [vmem:[%s11718_s11 + $0x7d8] sm:$0xff]  ;;  %v6889_v23 = vld [vmem:[%s11718_s11 + $0x6d0] sm:$0xff] }
 0x5ba   : > { %5360 = vmatprep.subr.mxu1 %v6812_v61  ;;  %5530 = vmatprep.subr.mxu0 %v6844_v41  ;;  %v6921_v61 = vld [vmem:[%s11718_s11 + $0x7d0] sm:$0xff]  ;;  %v6888_v41 = vld [vmem:[%s11718_s11 + $0x6c8] sm:$0xff] }
 0x5bb   : > { %5096 = vmatprep.mubr.f32.mxu1 %v10768_v15  ;;  %5266 = vmatprep.mubr.f32.mxu0 %v10768_v15 }
 0x5bc   : > { %5361 = vmatpush1.msra.mxu1 %v6811_v18  ;;  %5531 = vmatpush1.msra.mxu0 %v6843_v21  ;;  %v6920_v18 = vld [vmem:[%s11718_s11 + $0x7c8] sm:$0xff]  ;;  %v6887_v21 = vld [vmem:[%s11718_s11 + $0x6c0] sm:$0xff] }
 0x5bd   : > { %5097 = vmatmul.mubr.f32.gmra.mxu1 %v10964_v3  ;;  %5267 = vmatmul.mubr.f32.gmra.mxu0 %v10813_v35 }
 0x5be   : > { %5362 = vmatprep.subr.mxu1 %v6810_v39  ;;  %5532 = vmatprep.subr.mxu0 %v6842_v0  ;;  %v6886_v39 = vld [vmem:[%s11718_s11 + $0x6b8] sm:$0xff] }
 0x5bf   : > { %5363 = vmatpush1.msra.mxu1 %v6809_v30  ;;  %5533 = vmatpush1.msra.mxu0 %v6841_v62  ;;  %v6918_v0 = vld [vmem:[%s11718_s11 + $0x7b8] sm:$0xff]  ;;  %v6885_v30 = vld [vmem:[%s11718_s11 + $0x6b0] sm:$0xff] }
 0x5c0   : > { %5364 = vmatprep.subr.mxu1 %v6808_v37  ;;  %5534 = vmatprep.subr.mxu0 %v6840_v54  ;;  %v6917_v62 = vld [vmem:[%s11718_s11 + $0x7b0] sm:$0xff]  ;;  %v6883_v37 = vld [vmem:[%s11718_s11 + $0x6a0] sm:$0xff]  ;;  %v6882_v54 = vld [vmem:[%s11718_s11 + $0x698] sm:$0xff] }
 0x5c1   : > { %5102 = vmatprep.mubr.f32.mxu1 %v10768_v15  ;;  %5272 = vmatprep.mubr.f32.mxu0 %v10768_v15 }
 0x5c2   : > { %5365 = vmatpush1.msra.mxu1 %v6807_v60  ;;  %5535 = vmatpush1.msra.mxu0 %v6839_v31  ;;  %v6914_v60 = vld [vmem:[%s11718_s11 + $0x798] sm:$0xff]  ;;  %v6881_v31 = vld [vmem:[%s11718_s11 + $0x690] sm:$0xff] }
 0x5c3   : > { %5103 = vmatmul.mubr.f32.gmra.mxu1 %v10996_v4  ;;  %5273 = vmatmul.mubr.f32.gmra.mxu0 %v10827_v47 }
 0x5c4   : > { %5366 = vmatprep.subr.mxu1 %v6806_v11  ;;  %5536 = vmatprep.subr.mxu0 %v6838_v26  ;;  %v6913_v11 = vld [vmem:[%s11718_s11 + $0x790] sm:$0xff]  ;;  %v6880_v26 = vld [vmem:[%s11718_s11 + $0x688] sm:$0xff] }
 0x5c5   : > { %5367 = vmatpush1.msra.mxu1 %v6805_v29  ;;  %5537 = vmatpush1.msra.mxu0 %v6837_v28  ;;  %v6912_v29 = vld [vmem:[%s11718_s11 + $0x788] sm:$0xff]  ;;  %v6879_v28 = vld [vmem:[%s11718_s11 + $0x680] sm:$0xff] }
 0x5c6   : > { %5368 = vmatprep.subr.mxu1 %v6804_v52  ;;  %5538 = vmatprep.subr.mxu0 %v6836_v8  ;;  %v6878_v52 = vld [vmem:[%s11718_s11 + $0x678] sm:$0xff] }
 0x5c7   : > { %5108 = vmatprep.mubr.f32.mxu1 %v10768_v15  ;;  %5278 = vmatprep.mubr.f32.mxu0 %v10768_v15  ;;  %v6910_v8 = vld [vmem:[%s11718_s11 + $0x778] sm:$0xff] }
 0x5c8   : > { %5369 = vmatpush1.msra.mxu1 %v6803_v14  ;;  %5539 = vmatpush1.msra.mxu0 %v6835_v38  ;;  %v6877_v14 = vld [vmem:[%s11718_s11 + $0x670] sm:$0xff] }
 0x5c9   : > { %5109 = vmatmul.mubr.f32.gmra.mxu1 %v11029_v1  ;;  %5279 = vmatmul.mubr.f32.gmra.mxu0 %v11031_v53  ;;  %v6909_v38 = vld [vmem:[%s11718_s11 + $0x770] sm:$0xff] }
 0x5ca   : > { %5370 = vmatprep.subr.mxu1 %v6802_v13  ;;  %5540 = vmatprep.subr.mxu0 %v6834_v9  ;;  %v6876_v13 = vld [vmem:[%s11718_s11 + $0x668] sm:$0xff] }
 0x5cb   : > { %5371 = vmatpush1.msra.mxu1 %v6801_v6  ;;  %5541 = vmatpush1.msra.mxu0 %v6833_v5  ;;  %v6908_v9 = vld [vmem:[%s11718_s11 + $0x768] sm:$0xff]  ;;  %v6875_v6 = vld [vmem:[%s11718_s11 + $0x660] sm:$0xff]  ;;  %v6874_v5 = vld [vmem:[%s11718_s11 + $0x658] sm:$0xff] }
 0x5cc   : > { %5372 = vmatprep.subr.mxu1 %v6800_v24  ;;  %5542 = vmatprep.subr.mxu0 %v6832_v17  ;;  %v6906_v24 = vld [vmem:[%s11718_s11 + $0x758] sm:$0xff]  ;;  %v6873_v17 = vld [vmem:[%s11718_s11 + $0x650] sm:$0xff] }
 0x5cd   : > { %5373 = vmatpush1.msra.mxu1 %v6799_v7  ;;  %5406 = vmatprep.mubr.f32.mxu1 %v10768_v15  ;;  %v6905_v7 = vld [vmem:[%s11718_s11 + $0x750] sm:$0xff] }
 0x5ce   : > { %5543 = vmatpush1.msra.mxu0 %v6831_v59  ;;  %5576 = vmatprep.mubr.f32.mxu0 %v10768_v15  ;;  %v6872_v59 = vld [vmem:[%s11718_s11 + $0x648] sm:$0xff] }
 0x5cf   : > { %5407 = vmatmul.mubr.f32.vlgmr.msra.gmra.mxu1 %v10754_v20  ;;  %5577 = vmatmul.mubr.f32.vlgmr.msra.gmra.mxu0 %v10829_v58  ;;  %v6923_v20 = vld [vmem:[%s11718_s11 + $0x7e0] sm:$0xff]  ;;  %v6890_v58 = vld [vmem:[%s11718_s11 + $0x6d8] sm:$0xff] }
 0x5d0   : > { %5682 = vmatprep.subr.mxu1 %v6894_v2  ;;  %5852 = vmatprep.subr.mxu0 %v6926_v25  ;;  %v6904_v2 = vld [vmem:[%s11718_s11 + $0x748] sm:$0xff]  ;;  %v6871_v25 = vld [vmem:[%s11718_s11 + $0x640] sm:$0xff] }
 0x5d1   : > { %5683 = vmatpush1.msra.mxu1 %v6893_v10  ;;  %5853 = vmatpush1.msra.mxu0 %v6925_v44  ;;  %v6870_v10 = vld [vmem:[%s11718_s11 + $0x638] sm:$0xff] }
 0x5d2   : > { %5684 = vmatprep.subr.mxu1 %v6892_v42  ;;  %5854 = vmatprep.subr.mxu0 %v6924_v63  ;;  %v6902_v44 = vld [vmem:[%s11718_s11 + $0x738] sm:$0xff]  ;;  %v6869_v42 = vld [vmem:[%s11718_s11 + $0x630] sm:$0xff] }
 0x5d3   : > { %5412 = vmatprep.mubr.f32.mxu1 %v10768_v15  ;;  %5582 = vmatprep.mubr.f32.mxu0 %v10768_v15  ;;  %v6901_v63 = vld [vmem:[%s11718_s11 + $0x730] sm:$0xff] }
 0x5d4   : > { %5685 = vmatpush1.msra.mxu1 %v6891_v36  ;;  %5855 = vmatpush1.msra.mxu0 %v6923_v20  ;;  %v6868_v36 = vld [vmem:[%s11718_s11 + $0x628] sm:$0xff] }
 0x5d5   : > { %5413 = vmatmul.mubr.f32.gmra.mxu1 %v10751_v22  ;;  %5583 = vmatmul.mubr.f32.gmra.mxu0 %v10860_v48  ;;  %v6919_v22 = vld [vmem:[%s11718_s11 + $0x7c0] sm:$0xff]  ;;  %v6900_v20 = vld [vmem:[%s11718_s11 + $0x728] sm:$0xff] }
 0x5d6   : > { %5686 = vmatprep.subr.mxu1 %v6890_v58  ;;  %5856 = vmatprep.subr.mxu0 %v6922_v45  ;;  %v6867_v58 = vld [vmem:[%s11718_s11 + $0x620] sm:$0xff]  ;;  %v6866_v45 = vld [vmem:[%s11718_s11 + $0x618] sm:$0xff] }
 0x5d7   : > { %5687 = vmatpush1.msra.mxu1 %v6889_v23  ;;  %5857 = vmatpush1.msra.mxu0 %v6921_v61  ;;  %v6898_v23 = vld [vmem:[%s11718_s11 + $0x718] sm:$0xff]  ;;  %v11254_v61 = vld [vmem:[#allocation2 + $0x82] sm:$0xff] }
 0x5d8   : > { %5688 = vmatprep.subr.mxu1 %v6888_v41  ;;  %5858 = vmatprep.subr.mxu0 %v6920_v18  ;;  %v6865_v41 = vld [vmem:[%s11718_s11 + $0x610] sm:$0xff] }
 0x5d9   : > { %5418 = vmatprep.mubr.f32.mxu1 %v10768_v15  ;;  %5588 = vmatprep.mubr.f32.mxu0 %v10768_v15  ;;  %v6897_v18 = vld [vmem:[%s11718_s11 + $0x710] sm:$0xff] }
 0x5da   : > { %5689 = vmatpush1.msra.mxu1 %v6887_v21  ;;  %5859 = vmatpush1.msra.mxu0 %v6919_v22  ;;  %v6864_v21 = vld [vmem:[%s11718_s11 + $0x608] sm:$0xff] }
 0x5db   : > { %5419 = vmatmul.mubr.f32.gmra.mxu1 %v10762_v16  ;;  %5589 = vmatmul.mubr.f32.gmra.mxu0 %v10904_v50  ;;  %v6915_v16 = vld [vmem:[%s11718_s11 + $0x7a0] sm:$0xff]  ;;  %v6896_v22 = vld [vmem:[%s11718_s11 + $0x708] sm:$0xff] }
 0x5dc   : > { %5690 = vmatprep.subr.mxu1 %v6886_v39  ;;  %5860 = vmatprep.subr.mxu0 %v6918_v0  ;;  %v6863_v39 = vld [vmem:[%s11718_s11 + $0x600] sm:$0xff] }
 0x5dd   : > { %5691 = vmatpush1.msra.mxu1 %v6885_v30  ;;  %5861 = vmatpush1.msra.mxu0 %v6917_v62  ;;  %v5811_v0 = vld [vmem:[#allocation2 + $0x21] sm:$0xff]  ;;  %v6957_v30 = vld [vmem:[%s11718_s11 + $0x8f0] sm:$0xff] }
 0x5de   : > { %5692 = vmatprep.subr.mxu1 %v6884_v46  ;;  %5862 = vmatprep.subr.mxu0 %v6916_v40  ;;  %v6956_v62 = vld [vmem:[%s11718_s11 + $0x8e8] sm:$0xff]  ;;  %v6955_v46 = vld [vmem:[%s11718_s11 + $0x8e0] sm:$0xff]  ;;  %v6954_v40 = vld [vmem:[%s11718_s11 + $0x8d8] sm:$0xff] }
 0x5df   : > { %5424 = vmatprep.mubr.f32.mxu1 %v10768_v15  ;;  %5594 = vmatprep.mubr.f32.mxu0 %v10768_v15 }
 0x5e0   : > { %5693 = vmatpush1.msra.mxu1 %v6883_v37  ;;  %5863 = vmatpush1.msra.mxu0 %v6915_v16  ;;  %v6953_v37 = vld [vmem:[%s11718_s11 + $0x8d0] sm:$0xff]  ;;  %v6952_v16 = vld [vmem:[%s11718_s11 + $0x8c8] sm:$0xff] }
 0x5e1   : > { %5425 = vmatmul.mubr.f32.gmra.mxu1 %v10757_v12  ;;  %5595 = vmatmul.mubr.f32.gmra.mxu0 %v10934_v56  ;;  %v6911_v12 = vld [vmem:[%s11718_s11 + $0x780] sm:$0xff] }
 0x5e2   : > { %5694 = vmatprep.subr.mxu1 %v6882_v54  ;;  %5864 = vmatprep.subr.mxu0 %v6914_v60  ;;  %v6951_v54 = vld [vmem:[%s11718_s11 + $0x8c0] sm:$0xff]  ;;  %v6950_v60 = vld [vmem:[%s11718_s11 + $0x8b8] sm:$0xff] }
 0x5e3   : > { %5695 = vmatpush1.msra.mxu1 %v6881_v31  ;;  %5865 = vmatpush1.msra.mxu0 %v6913_v11  ;;  %v5813_v31 = vld [vmem:[#allocation2 + $0x41] sm:$0xff] }
 0x5e4   : > { %5696 = vmatprep.subr.mxu1 %v6880_v26  ;;  %5866 = vmatprep.subr.mxu0 %v6912_v29  ;;  %v6948_v11 = vld [vmem:[%s11718_s11 + $0x8a8] sm:$0xff]  ;;  %v6947_v26 = vld [vmem:[%s11718_s11 + $0x8a0] sm:$0xff]  ;;  %v6946_v29 = vld [vmem:[%s11718_s11 + $0x898] sm:$0xff] }
 0x5e5   : > { %5430 = vmatprep.mubr.f32.mxu1 %v10768_v15  ;;  %5600 = vmatprep.mubr.f32.mxu0 %v10768_v15 }
 0x5e6   : > { %5697 = vmatpush1.msra.mxu1 %v6879_v28  ;;  %5867 = vmatpush1.msra.mxu0 %v6911_v12  ;;  %v5814_v28 = vld [vmem:[#allocation2 + $0x51] sm:$0xff]  ;;  %v6944_v12 = vld [vmem:[%s11718_s11 + $0x888] sm:$0xff] }
 0x5e7   : > { %5431 = vmatmul.mubr.f32.gmra.mxu1 %v10772_v43  ;;  %5601 = vmatmul.mubr.f32.gmra.mxu0 %v10964_v3  ;;  %v6907_v43 = vld [vmem:[%s11718_s11 + $0x760] sm:$0xff] }
 0x5e8   : > { %5698 = vmatprep.subr.mxu1 %v6878_v52  ;;  %5868 = vmatprep.subr.mxu0 %v6910_v8  ;;  %v6943_v52 = vld [vmem:[%s11718_s11 + $0x880] sm:$0xff]  ;;  %v6942_v8 = vld [vmem:[%s11718_s11 + $0x878] sm:$0xff] }
 0x5e9   : > { %5699 = vmatpush1.msra.mxu1 %v6877_v14  ;;  %5869 = vmatpush1.msra.mxu0 %v6909_v38  ;;  %v5815_v14 = vld [vmem:[#allocation2 + $0x61] sm:$0xff] }
 0x5ea   : > { %5700 = vmatprep.subr.mxu1 %v6876_v13  ;;  %5870 = vmatprep.subr.mxu0 %v6908_v9  ;;  %v6940_v38 = vld [vmem:[%s11718_s11 + $0x868] sm:$0xff]  ;;  %v6939_v13 = vld [vmem:[%s11718_s11 + $0x860] sm:$0xff]  ;;  %v6938_v9 = vld [vmem:[%s11718_s11 + $0x858] sm:$0xff] }
 0x5eb   : > { %5436 = vmatprep.mubr.f32.mxu1 %v10768_v15  ;;  %5606 = vmatprep.mubr.f32.mxu0 %v10768_v15 }
 0x5ec   : > { %5701 = vmatpush1.msra.mxu1 %v6875_v6  ;;  %5871 = vmatpush1.msra.mxu0 %v6907_v43  ;;  %v5816_v6 = vld [vmem:[#allocation2 + $0x71] sm:$0xff]  ;;  %v6936_v43 = vld [vmem:[%s11718_s11 + $0x848] sm:$0xff] }
 0x5ed   : > { %5437 = vmatmul.mubr.f32.gmra.mxu1 %v10765_v34  ;;  %5607 = vmatmul.mubr.f32.gmra.mxu0 %v10996_v4  ;;  %v6903_v34 = vld [vmem:[%s11718_s11 + $0x740] sm:$0xff] }
 0x5ee   : > { %5702 = vmatprep.subr.mxu1 %v6874_v5  ;;  %5872 = vmatprep.subr.mxu0 %v6906_v24  ;;  %v6935_v5 = vld [vmem:[%s11718_s11 + $0x840] sm:$0xff]  ;;  %v6934_v24 = vld [vmem:[%s11718_s11 + $0x838] sm:$0xff] }
 0x5ef   : > { %5703 = vmatpush1.msra.mxu1 %v6873_v17  ;;  %5873 = vmatpush1.msra.mxu0 %v6905_v7  ;;  %v5817_v17 = vld [vmem:[#allocation2 + $0x81] sm:$0xff] }
 0x5f0   : > { %5704 = vmatprep.subr.mxu1 %v6872_v59  ;;  %5874 = vmatprep.subr.mxu0 %v6904_v2  ;;  %v6932_v7 = vld [vmem:[%s11718_s11 + $0x828] sm:$0xff]  ;;  %v6931_v59 = vld [vmem:[%s11718_s11 + $0x820] sm:$0xff]  ;;  %v5818_v2 = vld [vmem:[#allocation2 + $0x91] sm:$0xff] }
 0x5f1   : > { %5442 = vmatprep.mubr.f32.mxu1 %v10768_v15  ;;  %5612 = vmatprep.mubr.f32.mxu0 %v10768_v15 }
 0x5f2   : > { %5705 = vmatpush1.msra.mxu1 %v6871_v25  ;;  %5875 = vmatpush1.msra.mxu0 %v6903_v34  ;;  %v6930_v25 = vld [vmem:[%s11718_s11 + $0x818] sm:$0xff]  ;;  %v6928_v34 = vld [vmem:[%s11718_s11 + $0x808] sm:$0xff] }
 0x5f3   : > { %5443 = vmatmul.mubr.f32.gmra.mxu1 %v10783_v27  ;;  %5613 = vmatmul.mubr.f32.gmra.mxu0 %v11029_v1  ;;  %v6899_v27 = vld [vmem:[%s11718_s11 + $0x720] sm:$0xff] }
 0x5f4   : > { %5706 = vmatprep.subr.mxu1 %v6870_v10  ;;  %5876 = vmatprep.subr.mxu0 %v6902_v44  ;;  %v6927_v10 = vld [vmem:[%s11718_s11 + $0x800] sm:$0xff] }
 0x5f5   : > { %5707 = vmatpush1.msra.mxu1 %v6869_v42  ;;  %5877 = vmatpush1.msra.mxu0 %v6901_v63  ;;  %v11414_v42 = vpop.f32.mrf.mxu0 }
 0x5f6   : > { %5708 = vmatprep.subr.mxu1 %v6868_v36  ;;  %5878 = vmatprep.subr.mxu0 %v6900_v20 }
 0x5f7   : > { %5448 = vmatprep.mubr.f32.mxu1 %v10768_v15  ;;  %5618 = vmatprep.mubr.f32.mxu0 %v10768_v15 }
 0x5f8   : > { %5709 = vmatpush1.msra.mxu1 %v6867_v58  ;;  %5879 = vmatpush1.msra.mxu0 %v6899_v27 }
 0x5f9   : > { %5449 = vmatmul.mubr.f32.gmra.mxu1 %v4645_v33  ;;  %5619 = vmatmul.mubr.f32.gmra.mxu0 %v11254_v61  ;;  %v6958_v33 = vld [vmem:[%s11718_s11 + $0x8f8] sm:$0xff] }
 0x5fa   : > { %5710 = vmatprep.subr.mxu1 %v6866_v45  ;;  %5880 = vmatprep.subr.mxu0 %v6898_v23 }
 0x5fb   : > { %5711 = vmatpush1.msra.mxu1 %v6865_v41  ;;  %5881 = vmatpush1.msra.mxu0 %v6897_v18 }
 0x5fc   : > { %5712 = vmatprep.subr.mxu1 %v6864_v21  ;;  %5882 = vmatprep.subr.mxu0 %v6896_v22 }
 0x5fd   : > { %5713 = vmatpush1.msra.mxu1 %v6863_v39  ;;  %5746 = vmatprep.mubr.f32.mxu1 %v10768_v15 }
 0x5fe   : > { %5883 = vmatpush1.msra.mxu0 %v6895_v51  ;;  %5916 = vmatprep.mubr.f32.mxu0 %v10768_v15 }
 0x5ff   : > { %5747 = vmatmul.mubr.f32.vlgmr.msra.gmra.mxu1 %v10785_v55  ;;  %5917 = vmatmul.mubr.f32.vlgmr.msra.gmra.mxu0 %v5811_v0  ;;  %v5812_v55 = vld [vmem:[#allocation2 + $0x31] sm:$0xff] }
 0x600   : > { %6022 = vmatprep.subr.mxu1 %v6958_v33  ;;  %5752 = vmatprep.mubr.f32.mxu1 %v10768_v15 }
 0x601   : > { %6023 = vmatpush1.msra.mxu1 %v6957_v30  ;;  %5922 = vmatprep.mubr.f32.mxu0 %v10768_v15 }
 0x602   : > { %6024 = vmatprep.subr.mxu1 %v6956_v62 }
 0x603   : > { %6025 = vmatpush1.msra.mxu1 %v6955_v46  ;;  %5923 = vmatmul.mubr.f32.gmra.mxu0 %v5812_v55 }
 0x604   : > { %5753 = vmatmul.mubr.f32.gmra.mxu1 %v10792_v32  ;;  %6026 = vmatprep.subr.mxu1 %v6954_v40  ;;  %v6949_v32 = vld [vmem:[%s11718_s11 + $0x8b0] sm:$0xff] }
 0x605   : > { %6027 = vmatpush1.msra.mxu1 %v6953_v37  ;;  %5758 = vmatprep.mubr.f32.mxu1 %v10768_v15 }
 0x606   : > { %6028 = vmatprep.subr.mxu1 %v6952_v16  ;;  %5928 = vmatprep.mubr.f32.mxu0 %v10768_v15 }
 0x607   : > { %6029 = vmatpush1.msra.mxu1 %v6951_v54  ;;  %5929 = vmatmul.mubr.f32.gmra.mxu0 %v5813_v31 }
 0x608   : > { %5759 = vmatmul.mubr.f32.gmra.mxu1 %v10798_v19  ;;  %6030 = vmatprep.subr.mxu1 %v6950_v60  ;;  %v6945_v19 = vld [vmem:[%s11718_s11 + $0x890] sm:$0xff] }
 0x609   : > { %6031 = vmatpush1.msra.mxu1 %v6949_v32  ;;  %5764 = vmatprep.mubr.f32.mxu1 %v10768_v15 }
 0x60a   : > { %6032 = vmatprep.subr.mxu1 %v6948_v11  ;;  %5934 = vmatprep.mubr.f32.mxu0 %v10768_v15 }
 0x60b   : > { %6033 = vmatpush1.msra.mxu1 %v6947_v26  ;;  %5935 = vmatmul.mubr.f32.gmra.mxu0 %v5814_v28 }
 0x60c   : > { %5765 = vmatmul.mubr.f32.gmra.mxu1 %v10804_v57  ;;  %6034 = vmatprep.subr.mxu1 %v6946_v29  ;;  %v6941_v57 = vld [vmem:[%s11718_s11 + $0x870] sm:$0xff] }
 0x60d   : > { %6035 = vmatpush1.msra.mxu1 %v6945_v19  ;;  %5770 = vmatprep.mubr.f32.mxu1 %v10768_v15 }
 0x60e   : > { %6036 = vmatprep.subr.mxu1 %v6944_v12  ;;  %5940 = vmatprep.mubr.f32.mxu0 %v10768_v15 }
 0x60f   : > { %6037 = vmatpush1.msra.mxu1 %v6943_v52  ;;  %5941 = vmatmul.mubr.f32.gmra.mxu0 %v5815_v14 }
 0x610   : > { %5771 = vmatmul.mubr.f32.gmra.mxu1 %v10813_v35  ;;  %6038 = vmatprep.subr.mxu1 %v6942_v8  ;;  %v6937_v35 = vld [vmem:[%s11718_s11 + $0x850] sm:$0xff] }
 0x611   : > { %6039 = vmatpush1.msra.mxu1 %v6941_v57  ;;  %5776 = vmatprep.mubr.f32.mxu1 %v10768_v15 }
 0x612   : > { %6040 = vmatprep.subr.mxu1 %v6940_v38  ;;  %5946 = vmatprep.mubr.f32.mxu0 %v10768_v15 }
 0x613   : > { %6041 = vmatpush1.msra.mxu1 %v6939_v13  ;;  %5947 = vmatmul.mubr.f32.gmra.mxu0 %v5816_v6 }
 0x614   : > { %5777 = vmatmul.mubr.f32.gmra.mxu1 %v10827_v47  ;;  %6042 = vmatprep.subr.mxu1 %v6938_v9  ;;  %v6933_v47 = vld [vmem:[%s11718_s11 + $0x830] sm:$0xff] }
 0x615   : > { %6043 = vmatpush1.msra.mxu1 %v6937_v35  ;;  %5782 = vmatprep.mubr.f32.mxu1 %v10768_v15 }
 0x616   : > { %6044 = vmatprep.subr.mxu1 %v6936_v43  ;;  %5952 = vmatprep.mubr.f32.mxu0 %v10768_v15 }
 0x617   : > { %6045 = vmatpush1.msra.mxu1 %v6935_v5  ;;  %5953 = vmatmul.mubr.f32.gmra.mxu0 %v5817_v17 }
 0x618   : > { %5783 = vmatmul.mubr.f32.gmra.mxu1 %v11031_v53  ;;  %6046 = vmatprep.subr.mxu1 %v6934_v24  ;;  %v6929_v53 = vld [vmem:[%s11718_s11 + $0x810] sm:$0xff] }
 0x619   : > { %6047 = vmatpush1.msra.mxu1 %v6933_v47  ;;  %5788 = vmatprep.mubr.f32.mxu1 %v10768_v15 }
 0x61a   : > { %6048 = vmatprep.subr.mxu1 %v6932_v7  ;;  %5958 = vmatprep.mubr.f32.mxu0 %v10768_v15 }
 0x61b   : > { %6049 = vmatpush1.msra.mxu1 %v6931_v59  ;;  %5959 = vmatmul.mubr.f32.gmra.mxu0 %v5818_v2 }
 0x61c   : > { %5789 = vmatmul.mubr.f32.gmra.mxu1 %v10768_v15  ;;  %6050 = vmatprep.subr.mxu1 %v6930_v25 }
 0x61d   : > { %6051 = vmatpush1.msra.mxu1 %v6929_v53  ;;  %6086 = vmatprep.mubr.f32.mxu1 %v10768_v15 }
 0x61e   : > { %6052 = vmatprep.subr.mxu1 %v6928_v34 }
 0x61f   : > { %6053 = vmatpush1.msra.mxu1 %v6927_v10 }
 0x620   : > { %6087 = vmatmul.mubr.f32.vlgmr.msra.gmra.mxu1 %v10860_v48  ;;  %v5988_v48 = vld [vmem:[#allocation2 + $0x92] sm:$0xff] }
 0x621   : > { %6092 = vmatprep.mubr.f32.mxu1 %v10768_v15 }
 0x624   : > { %6093 = vmatmul.mubr.f32.gmra.mxu1 %v10904_v50  ;;  %v11412_v50 = vpop.f32.mrf.mxu1 }
 0x625   : > { %6098 = vmatprep.mubr.f32.mxu1 %v10768_v15 }
 0x628   : > { %6099 = vmatmul.mubr.f32.gmra.mxu1 %v10934_v56 }
 0x629   : > { %6104 = vmatprep.mubr.f32.mxu1 %v10768_v15 }
 0x62c   : > { %6105 = vmatmul.mubr.f32.gmra.mxu1 %v10964_v3 }
 0x62d   : > { %6110 = vmatprep.mubr.f32.mxu1 %v10768_v15 }
 0x630   : > { %6111 = vmatmul.mubr.f32.gmra.mxu1 %v10996_v4 }
 0x631   : > { %6116 = vmatprep.mubr.f32.mxu1 %v10768_v15 }
 0x634   : > { %6117 = vmatmul.mubr.f32.gmra.mxu1 %v11029_v1 }
 0x635   : > { %6122 = vmatprep.mubr.f32.mxu1 %v10768_v15 }
 0x638   : > { %6123 = vmatmul.mubr.f32.gmra.mxu1 %v11254_v61 }
 0x639   : > { %6128 = vmatprep.mubr.f32.mxu1 %v10768_v15 }
 0x63c   : > { %6129 = vmatmul.mubr.f32.gmra.mxu1 %v5988_v48 }
 0x641   : > { %v4807_v56 = vpop.f32.mrf.mxu1 }
 0x643   : > { %v4809_v3 = vpop.f32.mrf.mxu1 }
 0x645   : > { %v4813_v44 = vpop.f32.mrf.mxu1 }
 0x647   : > { %v4815_v4 = vpop.f32.mrf.mxu1 }
 0x649   : > { %v4920_v63 = vpop.f32.mrf.mxu0  ;;  %v4819_v36 = vpop.f32.mrf.mxu1 }
 0x64a   : > { %v4921_v20 = vadd.f32 %v4920_v63, %v4807_v56 }
 0x64b   : > { %v4922_v1 = vpop.f32.mrf.mxu0  ;;  %v4821_v58 = vpop.f32.mrf.mxu1 }
 0x64c   : > { %v4923_v27 = vadd.f32 %v4922_v1, %v4809_v3 }
 0x64d   : > { %v4926_v45 = vpop.f32.mrf.mxu0  ;;  %v4825_v23 = vpop.f32.mrf.mxu1 }
 0x64e   : > { %v4927_v61 = vadd.f32 %v4926_v45, %v4813_v44 }
 0x64f   : > { %v4928_v15 = vpop.f32.mrf.mxu0  ;;  %v4827_v41 = vpop.f32.mrf.mxu1 }
 0x650   : > { %v4929_v18 = vadd.f32 %v4928_v15, %v4815_v4 }
 0x651   : > { %v4932_v21 = vpop.f32.mrf.mxu0  ;;  %v4831_v22 = vpop.f32.mrf.mxu1 }
 0x652   : > { %v4933_v39 = vadd.f32 %v4932_v21, %v4819_v36 }
 0x653   : > { %v4934_v51 = vpop.f32.mrf.mxu0  ;;  %v4833_v33 = vpop.f32.mrf.mxu1 }
 0x654   : > { %v4935_v0 = vadd.f32 %v4934_v51, %v4821_v58 }
 0x655   : > { %v4938_v30 = vpop.f32.mrf.mxu0  ;;  %v4837_v62 = vpop.f32.mrf.mxu1 }
 0x656   : > { %v4939_v46 = vadd.f32 %v4938_v30, %v4825_v23 }
 0x657   : > { %v4940_v40 = vpop.f32.mrf.mxu0  ;;  %v4839_v55 = vpop.f32.mrf.mxu1 }
 0x658   : > { %v4941_v37 = vadd.f32 %v4940_v40, %v4827_v41 }
 0x659   : > { %v4944_v16 = vpop.f32.mrf.mxu0  ;;  %v4843_v54 = vpop.f32.mrf.mxu1 }
 0x65a   : > { %v4945_v60 = vadd.f32 %v4944_v16, %v4831_v22 }
 0x65b   : > { %v4946_v31 = vpop.f32.mrf.mxu0  ;;  %v4845_v32 = vpop.f32.mrf.mxu1 }
 0x65c   : > { %v4947_v11 = vadd.f32 %v4946_v31, %v4833_v33 }
 0x65d   : > { %v4950_v26 = vpop.f32.mrf.mxu0  ;;  %v5068_v29 = vpop.f32.mrf.mxu1 }
 0x65e   : > { %v4951_v28 = vadd.f32 %v4950_v26, %v4837_v62  ;;  %v11417_v19 = vadd.f32 %v5068_v29, %v10980_v49 }
 0x65f   : > { %v4952_v12 = vpop.f32.mrf.mxu0  ;;  %v11419_v52 = vpop.f32.mrf.mxu1 }
 0x660   : > { %v4953_v8 = vadd.f32 %v4952_v12, %v4839_v55 }
 0x661   : > { %v4956_v14 = vpop.f32.mrf.mxu0  ;;  %v5074_v57 = vpop.f32.mrf.mxu1 }
 0x662   : > { %v4957_v38 = vadd.f32 %v4956_v14, %v4843_v54  ;;  %v11421_v13 = vadd.f32 %v5074_v57, %v4921_v20 }
 0x663   : > { %v4958_v9 = vpop.f32.mrf.mxu0  ;;  %v5076_v6 = vpop.f32.mrf.mxu1 }
 0x664   : > { %v4959_v35 = vadd.f32 %v4958_v9, %v4845_v32  ;;  %v11423_v43 = vadd.f32 %v5076_v6, %v4923_v27 }
 0x665   : > { %v11425_v5 = vpop.f32.mrf.mxu0 }
 0x667   : > { %v11427_v24 = vpop.f32.mrf.mxu0  ;;  %v5080_v49 = vpop.f32.mrf.mxu1 }
 0x668   : > { %v11429_v17 = vadd.f32 %v5080_v49, %v4927_v61 }
 0x669   : > { %v11431_v47 = vpop.f32.mrf.mxu0  ;;  %v5082_v7 = vpop.f32.mrf.mxu1 }
 0x66a   : > { %v11433_v59 = vadd.f32 %v5082_v7, %v4929_v18 }
 0x66b   : > { %v11435_v2 = vpop.f32.mrf.mxu0 }
 0x66d   : > { %v11437_v25 = vpop.f32.mrf.mxu0 }
 0x66f   : > { %v11439_v53 = vpop.f32.mrf.mxu0 }
 0x671   : > { %v5086_v34 = vpop.f32.mrf.mxu1  ;;  %v11441_v10 = vpop.f32.mrf.mxu0 }
 0x672   : > { %v11443_v48 = vadd.f32 %v5086_v34, %v4933_v39 }
 0x673   : > { %v5088_v56 = vpop.f32.mrf.mxu1  ;;  %v11445_v3 = vpop.f32.mrf.mxu0 }
 0x674   : > { %v11447_v44 = vadd.f32 %v5088_v56, %v4935_v0 }
 0x677   : > { %v5092_v4 = vpop.f32.mrf.mxu1  ;;  %v11449_v63 = vpop.f32.mrf.mxu0 }
 0x678   : > { %v11451_v36 = vadd.f32 %v5092_v4, %v4939_v46 }
 0x679   : > { %v5094_v20 = vpop.f32.mrf.mxu1  ;;  %v11453_v1 = vpop.f32.mrf.mxu0 }
 0x67a   : > { %v11455_v58 = vadd.f32 %v5094_v20, %v4941_v37 }
 0x67d   : > { %v5098_v27 = vpop.f32.mrf.mxu1  ;;  %v11457_v45 = vpop.f32.mrf.mxu0 }
 0x67e   : > { %11760 = vst [vmem:[#allocation8_spill] sm:$0xff] %v11457_v45  ;;  %v11459_v23 = vadd.f32 %v5098_v27, %v4945_v60 }
 0x67f   : > { %v5100_v61 = vpop.f32.mrf.mxu1  ;;  %v11461_v15 = vpop.f32.mrf.mxu0 }
 0x680   : > { %11761 = vst [vmem:[#allocation5_spill] sm:$0xff] %v11459_v23  ;;  %11762 = vst [vmem:[#allocation6_spill] sm:$0xff] %v11461_v15  ;;  %v11463_v41 = vadd.f32 %v5100_v61, %v4947_v11 }
 0x682   : > { %11763 = vst [vmem:[#allocation7_spill] sm:$0xff] %v11463_v41 }
 0x683   : > { %v5104_v18 = vpop.f32.mrf.mxu1  ;;  %v11465_v21 = vpop.f32.mrf.mxu0 }
 0x684   : > { %11764 = vst [vmem:[#allocation4_spill] sm:$0xff] %v11465_v21  ;;  %v11467_v22 = vadd.f32 %v5104_v18, %v4951_v28 }
 0x685   : > { %v5106_v39 = vpop.f32.mrf.mxu1  ;;  %v11469_v51 = vpop.f32.mrf.mxu0 }
 0x686   : > { %11765 = vst [vmem:[#allocation9_spill] sm:$0xff] %v11467_v22  ;;  %11766 = vst [vmem:[#allocation3_spill] sm:$0xff] %v11469_v51  ;;  %v11471_v33 = vadd.f32 %v5106_v39, %v4953_v8  ;;  %v6153_v22 = vlaneseq }
 0x688   : > { %11767 = vst [vmem:[#allocation10_spill] sm:$0xff] %v11471_v33 }
 0x689   : > { %v5110_v0 = vpop.f32.mrf.mxu1  ;;  %v11473_v30 = vpop.f32.mrf.mxu0 }
 0x68a   : > { %11768 = vst [vmem:[#allocation11_spill] sm:$0xff] %v11473_v30  ;;  %v11475_v62 = vadd.f32 %v5110_v0, %v4957_v38 }
 0x68b   : > { %v5112_v46 = vpop.f32.mrf.mxu1  ;;  %v11477_v40 = vpop.f32.mrf.mxu0 }
 0x68c   : > { %11769 = vst [vmem:[#allocation12_spill] sm:$0xff] %v11475_v62  ;;  %11770 = vst [vmem:[#allocation13_spill] sm:$0xff] %v11477_v40  ;;  %v11479_v55 = vadd.f32 %v5112_v46, %v4959_v35 }
 0x68e   : > { %11771 = vst [vmem:[#allocation14_spill] sm:$0xff] %v11479_v55 }
 0x68f   : > { %v5408_v37 = vpop.f32.mrf.mxu1  ;;  %v5578_v16 = vpop.f32.mrf.mxu0 }
 0x691   : > { %v5410_v54 = vpop.f32.mrf.mxu1  ;;  %v11481_v60 = vpop.f32.mrf.mxu0 }
 0x695   : > { %v11483_v31 = vpop.f32.mrf.mxu1  ;;  %v11485_v32 = vpop.f32.mrf.mxu0 }
 0x697   : > { %v11487_v11 = vpop.f32.mrf.mxu1  ;;  %v11489_v26 = vpop.f32.mrf.mxu0 }
 0x69b   : > { %v11491_v29 = vpop.f32.mrf.mxu1  ;;  %v11493_v28 = vpop.f32.mrf.mxu0 }
 0x69d   : > { %v11495_v12 = vpop.f32.mrf.mxu1  ;;  %v11497_v8 = vpop.f32.mrf.mxu0 }
 0x6a1   : > { %v11499_v14 = vpop.f32.mrf.mxu1  ;;  %v11501_v57 = vpop.f32.mrf.mxu0 }
 0x6a3   : > { %v11503_v38 = vpop.f32.mrf.mxu1  ;;  %v11505_v9 = vpop.f32.mrf.mxu0 }
 0x6a7   : > { %v11507_v6 = vpop.f32.mrf.mxu1  ;;  %v11509_v35 = vpop.f32.mrf.mxu0 }
 0x6a8   : > { %11772 = vst [vmem:[#allocation15_spill] sm:$0xff] %v11509_v35 }
 0x6a9   : > { %v11511_v49 = vpop.f32.mrf.mxu1  ;;  %v11513_v7 = vpop.f32.mrf.mxu0 }
 0x6aa   : > { %11773 = vst [vmem:[#allocation16_spill] sm:$0xff] %v11511_v49  ;;  %11774 = vst [vmem:[#allocation17_spill] sm:$0xff] %v11513_v7  ;;  %v4917_v7 = vadd.f32 %v11414_v42, %v11412_v50  ;;  %v6154_v49 = vshrl.u32 %v6153_v22, 7  ;;  %v5287_v42 = vadd.f32 %v11431_v47, %v11421_v13 }
 0x6ac   : > { %v6155_v50 = vsub.s32 0, %v6154_v49 }
 0x6ad   : > { %v11515_v34 = vpop.f32.mrf.mxu1  ;;  %v11517_v56 = vpop.f32.mrf.mxu0 }
 0x6ae   : > { %11775 = vst [vmem:[#allocation18_spill] sm:$0xff] %v11515_v34  ;;  %11776 = vst [vmem:[#allocation19_spill] sm:$0xff] %v11517_v56 }
 0x6af   : > { %v11519_v4 = vpop.f32.mrf.mxu1  ;;  %v11521_v20 = vpop.f32.mrf.mxu0 }
 0x6b0   : > { %11777 = vst [vmem:[#allocation20_spill] sm:$0xff] %v11519_v4  ;;  %11778 = vst [vmem:[#allocation21_spill] sm:$0xff] %v11521_v20 }
 0x6b3   : > { %v11523_v27 = vpop.f32.mrf.mxu1  ;;  %v11525_v61 = vpop.f32.mrf.mxu0 }
 0x6b4   : > { %11779 = vst [vmem:[#allocation22_spill] sm:$0xff] %v11523_v27  ;;  %11780 = vst [vmem:[#allocation23_spill] sm:$0xff] %v11525_v61 }
 0x6b5   : > { %v11527_v18 = vpop.f32.mrf.mxu1  ;;  %v11529_v39 = vpop.f32.mrf.mxu0 }
 0x6b6   : > { %11781 = vst [vmem:[#allocation24_spill] sm:$0xff] %v11527_v18  ;;  %11782 = vst [vmem:[#allocation25_spill] sm:$0xff] %v11529_v39 }
 0x6b9   : > { %v11531_v0 = vpop.f32.mrf.mxu1  ;;  %v11533_v46 = vpop.f32.mrf.mxu0 }
 0x6ba   : > { %11783 = vst [vmem:[#allocation26_spill] sm:$0xff] %v11531_v0  ;;  %11784 = vst [vmem:[#allocation27_spill] sm:$0xff] %v11533_v46 }
 0x6bb   : > { %v11535_v40 = vpop.f32.mrf.mxu1  ;;  %v11537_v55 = vpop.f32.mrf.mxu0 }
 0x6bc   : > { %11785 = vst [vmem:[#allocation28_spill] sm:$0xff] %v11535_v40  ;;  %11786 = vst [vmem:[#allocation29_spill] sm:$0xff] %v11537_v55 }
 0x6bf   : > { %v5748_v30 = vpop.f32.mrf.mxu1  ;;  %v5918_v62 = vpop.f32.mrf.mxu0 }
 0x6c1   : > { %v5750_v51 = vpop.f32.mrf.mxu1  ;;  %v5920_v20 = vpop.f32.mrf.mxu0 }
 0x6c3   : > { %v5924_v27 = vpop.f32.mrf.mxu0 }
 0x6c4   : > { %v5754_v33 = vpop.f32.mrf.mxu1 }
 0x6c5   : > { %v5926_v18 = vpop.f32.mrf.mxu0 }
 0x6c6   : > { %v5756_v4 = vpop.f32.mrf.mxu1 }
 0x6c7   : > { %v11545_v0 = vpop.f32.mrf.mxu0 }
 0x6c8   : > { %v11539_v61 = vpop.f32.mrf.mxu1 }
 0x6c9   : > { %v11551_v55 = vpop.f32.mrf.mxu0 }
 0x6ca   : > { %v11541_v56 = vpop.f32.mrf.mxu1 }
 0x6cb   : > { %v11559_v15 = vpop.f32.mrf.mxu0 }
 0x6cc   : > { %v11543_v39 = vpop.f32.mrf.mxu1 }
 0x6cd   : > { %v11569_v23 = vpop.f32.mrf.mxu0 }
 0x6ce   : > { %v11547_v46 = vpop.f32.mrf.mxu1 }
 0x6cf   : > { %11787 = vst [vmem:[#allocation30_spill] sm:$0xff] %v11547_v46  ;;  %v5285_v46 = vadd.f32 %v11425_v5, %v11417_v19  ;;  %v6151_v19 = vld [vmem:[%s11719_s12] sm:$0x3]  ;;  %v11585_v47 = vpop.f32.mrf.mxu0 }
 0x6d0   : > { %v11549_v40 = vpop.f32.mrf.mxu1 }
 0x6d1   : > { %11788 = vst [vmem:[#allocation31_spill] sm:$0xff] %v11549_v40  ;;  %v5116_v40 = vadd.f32 %v11419_v52, %v4917_v7  ;;  %v5455_v45 = vadd.f32 %v5408_v37, %v5285_v46  ;;  %v5288_v52 = vadd.f32 %v11435_v2, %v11423_v43  ;;  %v5457_v37 = vadd.f32 %v11483_v31, %v5287_v42 }
 0x6d2   : > { %v11553_v21 = vpop.f32.mrf.mxu1  ;;  %v5289_v43 = vadd.f32 %v11437_v25, %v11429_v17  ;;  %v5291_v17 = vadd.f32 %v11441_v10, %v11443_v48 }
 0x6d3   : > { %11789 = vst [vmem:[#allocation32_spill] sm:$0xff] %v11553_v21  ;;  %v5286_v21 = vadd.f32 %v11427_v24, %v5116_v40  ;;  %v6159_v24 = vsub.s32 1, %v6154_v49  ;;  %v5458_v13 = vadd.f32 %v11487_v11, %v5288_v52  ;;  %v5627_v2 = vadd.f32 %v11485_v32, %v5457_v37 }
 0x6d4   : > { %v11555_v34 = vpop.f32.mrf.mxu1  ;;  %v5459_v11 = vadd.f32 %v11491_v29, %v5289_v43  ;;  %v11793_v43 = vld [vmem:[#allocation8_spill] sm:$0xff] }
 0x6d5   : > { %11790 = vst [vmem:[#allocation33_spill] sm:$0xff] %v11555_v34  ;;  %v5456_v22 = vadd.f32 %v5410_v54, %v5286_v21  ;;  %v11589_v21 = vrot.slane %v6151_v19, %v6155_v50  ;;  %v11597_v31 = vrot.slane %v6151_v19, %v6159_v24  ;;  %v5797_v46 = vadd.f32 %v5754_v33, %v5627_v2 }
 0x6d6   : > { %v11561_v41 = vpop.f32.mrf.mxu1  ;;  %v5292_v33 = vadd.f32 %v11445_v3, %v11447_v44  ;;  %v5293_v3 = vadd.f32 %v11449_v63, %v11451_v36  ;;  %v5294_v63 = vadd.f32 %v11453_v1, %v11455_v58  ;;  %v11795_v58 = vld [vmem:[#allocation16_spill] sm:$0xff] }
 0x6d7   : > { %11791 = vst [vmem:[#allocation34_spill] sm:$0xff] %v11561_v41  ;;  %v5625_v41 = vadd.f32 %v5578_v16, %v5455_v45  ;;  %v5626_v40 = vadd.f32 %v11481_v60, %v5456_v22  ;;  %v5290_v60 = vadd.f32 %v11439_v53, %v11433_v59  ;;  %v5629_v53 = vadd.f32 %v11493_v28, %v5459_v11 }
 0x6d8   : > { %v11566_v35 = vpop.f32.mrf.mxu1  ;;  %v5967_v32 = vadd.f32 %v5924_v27, %v5797_v46  ;;  %v11798_v46 = vld [vmem:[#allocation6_spill] sm:$0xff] }
 0x6d9   : > { %v5795_v7 = vadd.f32 %v5748_v30, %v5625_v41  ;;  %v5796_v54 = vadd.f32 %v5750_v51, %v5626_v40  ;;  %v5628_v41 = vadd.f32 %v11489_v26, %v5458_v13  ;;  %v5460_v25 = vadd.f32 %v11495_v12, %v5290_v60  ;;  %v11792_v13 = vld [vmem:[#allocation5_spill] sm:$0xff] }
 0x6da   : > { %v11571_v34 = vpop.f32.mrf.mxu1  ;;  %v5799_v28 = vadd.f32 %v11539_v61, %v5629_v53  ;;  %v5295_v2 = vadd.f32 %v11793_v43, %v11792_v13 }
 0x6db   : > { %v5965_v16 = vadd.f32 %v5918_v62, %v5795_v7  ;;  %v5966_v49 = vadd.f32 %v5920_v20, %v5796_v54  ;;  %v5798_v51 = vadd.f32 %v5756_v4, %v5628_v41  ;;  %v11604_v62 = vpop.f32.mrf.mxu0  ;;  %v5630_v29 = vadd.f32 %v11497_v8, %v5460_v25  ;;  %v11796_v54 = vld [vmem:[#allocation30_spill] sm:$0xff] }
 0x6dc   : > { %v11580_v5 = vpop.f32.mrf.mxu1  ;;  %v5461_v20 = vadd.f32 %v11499_v14, %v5291_v17  ;;  %v5462_v8 = vadd.f32 %v11503_v38, %v5292_v33  ;;  %v5969_v19 = vadd.f32 %v11545_v0, %v5799_v28  ;;  %v11799_v17 = vld [vmem:[#allocation17_spill] sm:$0xff]  ;;  %v11804_v28 = vld [vmem:[#allocation19_spill] sm:$0xff] }
 0x6dd   : > { %v5968_v10 = vadd.f32 %v5926_v18, %v5798_v51  ;;  %v5800_v14 = vadd.f32 %v11541_v56, %v5630_v29  ;;  %v11624_v18 = vpop.f32.mrf.mxu0  ;;  %v11800_v51 = vld [vmem:[#allocation18_spill] sm:$0xff] }
 0x6de   : > { %v11587_v45 = vpop.f32.mrf.mxu1  ;;  %v5631_v44 = vadd.f32 %v11501_v57, %v5461_v20  ;;  %v5632_v36 = vadd.f32 %v11505_v9, %v5462_v8  ;;  %v5463_v57 = vadd.f32 %v11507_v6, %v5293_v3  ;;  %v5464_v9 = vadd.f32 %v11795_v58, %v5294_v63  ;;  %v11802_v20 = vld [vmem:[#allocation9_spill] sm:$0xff]  ;;  %v11806_v3 = vld [vmem:[#allocation32_spill] sm:$0xff]  ;;  %v11814_v58 = vld [vmem:[#allocation23_spill] sm:$0xff] }
 0x6df   : > { %v5970_v38 = vadd.f32 %v11551_v55, %v5800_v14  ;;  %v5950_v60 = vpop.f32.mrf.mxu0 }
 0x6e0   : > { %v6088_v30 = vpop.f32.mrf.mxu1  ;;  %v5801_v40 = vadd.f32 %v11543_v39, %v5631_v44  ;;  %v5802_v6 = vadd.f32 %v11796_v54, %v5632_v36  ;;  %v5634_v25 = vadd.f32 %v11799_v17, %v5464_v9  ;;  %v11809_v36 = vld [vmem:[#allocation21_spill] sm:$0xff]  ;;  %v11815_v54 = vld [vmem:[#allocation24_spill] sm:$0xff] }
 0x6e1   : > { %v6135_v50 = vadd.f32 %v6088_v30, %v5965_v16  ;;  %v11794_v16 = vld [vmem:[#allocation15_spill] sm:$0xff]  ;;  %v5954_v8 = vpop.f32.mrf.mxu0  ;;  %v11818_v17 = vld [vmem:[#allocation13_spill] sm:$0xff] }
 0x6e2   : > { %v6090_v59 = vpop.f32.mrf.mxu1  ;;  %v5633_v1 = vadd.f32 %v11794_v16, %v5463_v57  ;;  %v5971_v41 = vadd.f32 %v11559_v15, %v5801_v40  ;;  %v5972_v53 = vadd.f32 %v11569_v23, %v5802_v6  ;;  %v5804_v44 = vadd.f32 %v11806_v3, %v5634_v25  ;;  %v11813_v16 = vld [vmem:[#allocation11_spill] sm:$0xff] }
 0x6e3   : > { %v6163_v26 = vadd.f32 %v11589_v21, %v6135_v50  ;;  %v6136_v42 = vadd.f32 %v6090_v59, %v5966_v49  ;;  %v11797_v49 = vld [vmem:[#allocation7_spill] sm:$0xff]  ;;  %v5465_v59 = vadd.f32 %v11800_v51, %v5295_v2  ;;  %v11812_v2 = vld [vmem:[#allocation12_spill] sm:$0xff]  ;;  %v11819_v51 = vld [vmem:[#allocation25_spill] sm:$0xff] }
 0x6e4   : > { %v6094_v48 = vpop.f32.mrf.mxu1  ;;  %v5296_v50 = vadd.f32 %v11798_v46, %v11797_v49  ;;  %v5974_v40 = vadd.f32 %v11604_v62, %v5804_v44 }
 0x6e5   : > { %v6179_v12 = vmax.f32 %v6163_v26, 0.0  ;;  %v6164_v4 = vadd.f32 %v11597_v31, %v6136_v42  ;;  %v6137_v27 = vadd.f32 %v6094_v48, %v5967_v32  ;;  %v11801_v26 = vld [vmem:[#allocation31_spill] sm:$0xff] }
 0x6e6   : > { %v6096_v22 = vpop.f32.mrf.mxu1  ;;  %v5803_v42 = vadd.f32 %v11801_v26, %v5633_v1  ;;  %v5299_v1 = vadd.f32 %v11813_v16, %v11812_v2 }
 0x6e7   : > { %6195 = vst [vmem:[%s11615_s28] sm:$0xff] %v6179_v12  ;;  %v6180_v61 = vmax.f32 %v6164_v4, 0.0  ;;  %v6165_v52 = vadd.f32 %v11589_v21, %v6137_v27  ;;  %v6138_v24 = vadd.f32 %v6096_v22, %v5968_v10  ;;  %v11803_v10 = vld [vmem:[#allocation4_spill] sm:$0xff]  ;;  %v5635_v12 = vadd.f32 %v11804_v28, %v5465_v59 }
 0x6e8   : > { %v6100_v56 = vpop.f32.mrf.mxu1  ;;  %v5297_v48 = vadd.f32 %v11803_v10, %v11802_v20  ;;  %v11805_v4 = vld [vmem:[#allocation20_spill] sm:$0xff]  ;;  %v5973_v14 = vadd.f32 %v11585_v47, %v5803_v42  ;;  %v11821_v20 = vld [vmem:[#allocation27_spill] sm:$0xff] }
 0x6e9   : > { %6196 = vst [vmem:[%s11615_s28 + $0x8] sm:$0xff] %v6180_v61  ;;  %v6181_v0 = vmax.f32 %v6165_v52, 0.0  ;;  %v6166_v37 = vadd.f32 %v11597_v31, %v6138_v24  ;;  %v6139_v7 = vadd.f32 %v6100_v56, %v5969_v19  ;;  %v5466_v27 = vadd.f32 %v11805_v4, %v5296_v50  ;;  %v11807_v52 = vld [vmem:[#allocation10_spill] sm:$0xff]  ;;  %v11808_v24 = vld [vmem:[#allocation3_spill] sm:$0xff] }
 0x6ea   : > { %v6102_v55 = vpop.f32.mrf.mxu1  ;;  %v5298_v63 = vadd.f32 %v11808_v24, %v11807_v52  ;;  %v11817_v50 = vld [vmem:[#allocation14_spill] sm:$0xff] }
 0x6eb   : > { %6197 = vst [vmem:[%s11615_s28 + $0x10] sm:$0xff] %v6181_v0  ;;  %v6182_v39 = vmax.f32 %v6166_v37, 0.0  ;;  %v6167_v30 = vadd.f32 %v11589_v21, %v6139_v7  ;;  %v6140_v11 = vadd.f32 %v6102_v55, %v5970_v38  ;;  %v5636_v57 = vadd.f32 %v11809_v36, %v5466_v27  ;;  %v11810_v38 = vld [vmem:[#allocation22_spill] sm:$0xff]  ;;  %v11811_v37 = vld [vmem:[#allocation33_spill] sm:$0xff] }
 0x6ec   : > { %v6106_v32 = vpop.f32.mrf.mxu1  ;;  %v5467_v56 = vadd.f32 %v11810_v38, %v5297_v48  ;;  %v5805_v7 = vadd.f32 %v11811_v37, %v5635_v12  ;;  %v5468_v6 = vadd.f32 %v11815_v54, %v5298_v63  ;;  %v11816_v55 = vld [vmem:[#allocation34_spill] sm:$0xff]  ;;  %v5300_v25 = vadd.f32 %v11818_v17, %v11817_v50  ;;  %v11822_v48 = vld [vmem:[#allocation28_spill] sm:$0xff] }
 0x6ed   : > { %6198 = vst [vmem:[%s11615_s28 + $0x18] sm:$0xff] %v6182_v39  ;;  %v6183_v15 = vmax.f32 %v6167_v30, 0.0  ;;  %v6168_v33 = vadd.f32 %v11597_v31, %v6140_v11  ;;  %v6141_v29 = vadd.f32 %v6106_v32, %v5971_v41  ;;  %v5806_v41 = vadd.f32 %v11816_v55, %v5636_v57  ;;  %v5956_v39 = vpop.f32.mrf.mxu0 }
 0x6ee   : > { %v6108_v23 = vpop.f32.mrf.mxu1  ;;  %v5637_v9 = vadd.f32 %v11814_v58, %v5467_v56  ;;  %v5975_v30 = vadd.f32 %v11624_v18, %v5805_v7  ;;  %v5638_v59 = vadd.f32 %v11819_v51, %v5468_v6  ;;  %v5470_v28 = vadd.f32 %v11822_v48, %v5300_v25 }
 0x6ef   : > { %6199 = vst [vmem:[%s11615_s28 + $0x20] sm:$0xff] %v6183_v15  ;;  %v6184_v22 = vmax.f32 %v6168_v33, 0.0  ;;  %v6169_v19 = vadd.f32 %v11589_v21, %v6141_v29  ;;  %v6142_v61 = vadd.f32 %v6108_v23, %v5972_v53  ;;  %v11820_v53 = vld [vmem:[#allocation26_spill] sm:$0xff]  ;;  %v5976_v26 = vadd.f32 %v5950_v60, %v5806_v41  ;;  %v5960_v4 = vpop.f32.mrf.mxu0  ;;  %v11823_v23 = vld [vmem:[#allocation29_spill] sm:$0xff] }
 0x6f0   : > { %v6112_v0 = vpop.f32.mrf.mxu1  ;;  %v5469_v32 = vadd.f32 %v11820_v53, %v5299_v1  ;;  %v5807_v15 = vadd.f32 %v11566_v35, %v5637_v9  ;;  %v5808_v12 = vadd.f32 %v11571_v34, %v5638_v59 }
 0x6f1   : > { %6200 = vst [vmem:[%s11615_s28 + $0x28] sm:$0xff] %v6184_v22  ;;  %v6185_v47 = vmax.f32 %v6169_v19, 0.0  ;;  %v6170_v13 = vadd.f32 %v11597_v31, %v6142_v61  ;;  %v6143_v43 = vadd.f32 %v6112_v0, %v5973_v14  ;;  %v5640_v14 = vadd.f32 %v11823_v23, %v5470_v28  ;;  %v5962_v63 = vpop.f32.mrf.mxu0 }
 0x6f2   : > { %v6114_v62 = vpop.f32.mrf.mxu1  ;;  %v5639_v10 = vadd.f32 %v11821_v20, %v5469_v32  ;;  %v5977_v3 = vadd.f32 %v5954_v8, %v5807_v15  ;;  %v5978_v22 = vadd.f32 %v5956_v39, %v5808_v12 }
 0x6f3   : > { %6201 = vst [vmem:[%s11615_s28 + $0x30] sm:$0xff] %v6185_v47  ;;  %v6186_v11 = vmax.f32 %v6170_v13, 0.0  ;;  %v6171_v49 = vadd.f32 %v11589_v21, %v6143_v43  ;;  %v6144_v46 = vadd.f32 %v6114_v62, %v5974_v40  ;;  %v5810_v8 = vadd.f32 %v11587_v45, %v5640_v14 }
 0x6f4   : > { %v6118_v42 = vpop.f32.mrf.mxu1  ;;  %v5809_v61 = vadd.f32 %v11580_v5, %v5639_v10 }
 0x6f5   : > { %6202 = vst [vmem:[%s11615_s28 + $0x38] sm:$0xff] %v6186_v11  ;;  %v6187_v33 = vmax.f32 %v6171_v49, 0.0  ;;  %v6172_v18 = vadd.f32 %v11597_v31, %v6144_v46  ;;  %v6145_v29 = vadd.f32 %v6118_v42, %v5975_v30  ;;  %v5980_v5 = vadd.f32 %v5962_v63, %v5810_v8 }
 0x6f6   : > { %v6120_v27 = vpop.f32.mrf.mxu1  ;;  %v5979_v57 = vadd.f32 %v5960_v4, %v5809_v61 }
 0x6f7   : > { %6203 = vst [vmem:[%s11615_s28 + $0x40] sm:$0xff] %v6187_v33  ;;  %v6188_v60 = vmax.f32 %v6172_v18, 0.0  ;;  %v6173_v35 = vadd.f32 %v11589_v21, %v6145_v29  ;;  %v6146_v44 = vadd.f32 %v6120_v27, %v5976_v26 }
 0x6f8   : > { %v6124_v19 = vpop.f32.mrf.mxu1 }
 0x6f9   : > { %6204 = vst [vmem:[%s11615_s28 + $0x48] sm:$0xff] %v6188_v60  ;;  %v6189_v52 = vmax.f32 %v6173_v35, 0.0  ;;  %v6174_v34 = vadd.f32 %v11597_v31, %v6146_v44  ;;  %v6147_v24 = vadd.f32 %v6124_v19, %v5977_v3 }
 0x6fa   : > { %v6126_v36 = vpop.f32.mrf.mxu1 }
 0x6fb   : > { %6205 = vst [vmem:[%s11615_s28 + $0x50] sm:$0xff] %v6189_v52  ;;  %v6190_v38 = vmax.f32 %v6174_v34, 0.0  ;;  %v6175_v56 = vadd.f32 %v11589_v21, %v6147_v24  ;;  %v6148_v40 = vadd.f32 %v6126_v36, %v5978_v22 }
 0x6fc   : > { %v6130_v0 = vpop.f32.mrf.mxu1 }
 0x6fd   : > { %6206 = vst [vmem:[%s11615_s28 + $0x58] sm:$0xff] %v6190_v38  ;;  %v6191_v37 = vmax.f32 %v6175_v56, 0.0  ;;  %v6176_v7 = vadd.f32 %v11597_v31, %v6148_v40  ;;  %v6149_v47 = vadd.f32 %v6130_v0, %v5979_v57 }
 0x6fe   : > { %v6132_v13 = vpop.f32.mrf.mxu1 }
 0x6ff   : > { %6207 = vst [vmem:[%s11615_s28 + $0x60] sm:$0xff] %v6191_v37  ;;  %v6192_v45 = vmax.f32 %v6176_v7, 0.0  ;;  %v6177_v43 = vadd.f32 %v11589_v21, %v6149_v47  ;;  %v6150_v2 = vadd.f32 %v6132_v13, %v5980_v5 }
 0x701   : > { %6208 = vst [vmem:[%s11615_s28 + $0x68] sm:$0xff] %v6192_v45  ;;  %v6193_v16 = vmax.f32 %v6177_v43, 0.0  ;;  %v6178_v1 = vadd.f32 %v11597_v31, %v6150_v2 }
 0x703   : > { %6209 = vst [vmem:[%s11615_s28 + $0x70] sm:$0xff] %v6193_v16  ;;  %v6194_v58 = vmax.f32 %v6178_v1, 0.0 }
 0x705   : > { %6210 = vst [vmem:[%s11615_s28 + $0x78] sm:$0xff] %v6194_v58 }
 0x706 PF: > { %s23_s25 = sadd.s32 1, %s8581_s25  }
 0x707   : > { %p20_p4 = scmp.ge.s32.totalorder %s23_s25, 4  }
 0x709   :  { %22 = sbr.rel (!%p20_p4) target bundleno = 1 (0x1), region = 138 }

</bundles_post_ra>
